<compile_context>
chip_gen: v6e
topology: v6e:2x2x1
jax: 0.10.0
libtpu: 0.0.40
codegen_flags: <defaults>
</compile_context>

<pallas_src>
import jax
import jax.numpy as jnp
import numpy as np
from jax.experimental import pallas as pl
from jax.experimental.pallas import tpu as pltpu

# ----------------------------------------------------------------------------
# Model configuration (small but structurally faithful to SDFNetwork_OBJ)
# ----------------------------------------------------------------------------
D_IN = 3
D_OUT = 9          # 1 sdf value + 8 feature channels
D_HIDDEN = 64
N_LAYERS = 4
SKIP_IN = (2,)     # skip connection into layer 2 (analogue of default skip_in=(4,))
V_MULTIRES = 6     # positional-encoding levels
BIAS = 0.5
SCALE = 1.0
INSIDE_OUTSIDE = False
TRAINDATA_NUM = 4  # for the (unused-in-forward) se3_refine parameter
BETA = 100.0       # Softplus beta
INV_BETA = 1.0 / BETA
SOFTPLUS_THRESHOLD = 20.0  # PyTorch Softplus threshold

ENC_CH = V_MULTIRES * 2 * D_IN            # 36
INPUT_CH = ENC_CH + D_IN                  # 39
SKIP_W = D_HIDDEN - INPUT_CH              # 25  (layer-1 output width)
DIMS = [INPUT_CH] + [D_HIDDEN] * N_LAYERS + [D_OUT]
NUM_LINEAR = len(DIMS) - 1                # 5 linear layers (matches the module)
D_OUT_PAD = 128                           # lane-dense padded output width


# ----------------------------------------------------------------------------
# BARF positional encoding (plain-JAX; used by the reference & layout spec)
# ----------------------------------------------------------------------------
def barf_encoding(x, L):
    # (N, d_in) -> (N, d_in*2*L), flattened as (d, [sin|cos], freq).
    freqs = (2.0 ** jnp.arange(L, dtype=jnp.float32)) * jnp.pi        # (L,)
    spectrum = x[..., None] * freqs                                   # (N, d, L)
    enc = jnp.stack([jnp.sin(spectrum), jnp.cos(spectrum)], axis=-2)  # (N, d, 2, L)
    return enc.reshape(x.shape[0], -1)                                # (N, 2*L*d)


def _encoding_constants():
    """Frequency matrix M (3, 36) and phase row (1, 36) such that
    enc[n, j] = sin(pts[n, :] @ M[:, j] + phase[j]) reproduces barf_encoding's
    column order exactly (cos = sin(x + pi/2))."""
    L = V_MULTIRES
    M = np.zeros((D_IN, ENC_CH), np.float32)
    phase = np.zeros((1, ENC_CH), np.float32)
    for j in range(ENC_CH):
        d = j // (2 * L)
        s = (j // L) % 2
        k = j % L
        M[d, j] = (2.0 ** k) * np.pi
        phase[0, j] = 0.0 if s == 0 else np.pi / 2.0
    return jnp.asarray(M), jnp.asarray(phase)


# ----------------------------------------------------------------------------
# Deterministic parameter initialization (geometric_init; weight_norm at init
# leaves the effective weight equal to the initialized weight).
# ----------------------------------------------------------------------------
def init_params(key):
    params = []
    for l in range(len(DIMS) - 1):
        if (l + 1) in SKIP_IN:
            out_dim = DIMS[l + 1] - DIMS[0]
        else:
            out_dim = DIMS[l + 1]
        in_dim = DIMS[l]
        key, k1 = jax.random.split(key)

        if l == len(DIMS) - 2:  # last linear layer
            mean = np.sqrt(np.pi) / np.sqrt(DIMS[l])
            if INSIDE_OUTSIDE:
                mean = -mean
            W = mean + 1e-4 * jax.random.normal(k1, (out_dim, in_dim), jnp.float32)
            b = jnp.full((out_dim,), BIAS if INSIDE_OUTSIDE else -BIAS, jnp.float32)
        elif V_MULTIRES > 0 and l == 0:
            std = np.sqrt(2.0) / np.sqrt(out_dim)
            W = jnp.zeros((out_dim, in_dim), jnp.float32)
            W = W.at[:, :3].set(std * jax.random.normal(k1, (out_dim, 3), jnp.float32))
            b = jnp.zeros((out_dim,), jnp.float32)
        elif V_MULTIRES > 0 and l in SKIP_IN:
            std = np.sqrt(2.0) / np.sqrt(out_dim)
            W = std * jax.random.normal(k1, (out_dim, in_dim), jnp.float32)
            W = W.at[:, -(DIMS[0] - 3):].set(0.0)
            b = jnp.zeros((out_dim,), jnp.float32)
        else:
            std = np.sqrt(2.0) / np.sqrt(out_dim)
            W = std * jax.random.normal(k1, (out_dim, in_dim), jnp.float32)
            b = jnp.zeros((out_dim,), jnp.float32)
        params.append((W, b))

    # se3_refine parameter exists in the module but is unused in forward().
    se3_refine = jnp.zeros((TRAINDATA_NUM, 9), jnp.float32)
    se3_refine = se3_refine.at[:, 0].set(1.0).at[:, 3].set(1.0)
    return params, se3_refine


# ----------------------------------------------------------------------------
# Softplus(beta=100) -- log1p form, constant 1/beta multiply, no inf branch.
# ----------------------------------------------------------------------------
def _softplus100(x):
    bx = BETA * x
    safe = jnp.minimum(bx, SOFTPLUS_THRESHOLD)
    return jnp.where(bx > SOFTPLUS_THRESHOLD, x, jnp.log1p(jnp.exp(safe)) * INV_BETA)


# ----------------------------------------------------------------------------
# Pallas kernel: whole MLP (with in-kernel BARF encoding) for one batch tile
# ----------------------------------------------------------------------------
def _sdf_mlp_kernel(pts_ref, rc_ref, w0_ref, w1_ref, w2_ref, w3_ref, w4_ref,
                    o_ref, x_sc):
    # rc_ref (16, 128) f32 rows: 0..2 = freq rows M[d], 3 = phase,
    #                            4..8 = biases b0,b1,b2,b3,b4(padded, 1/scale folded)
    # x_sc  (tile, 128) bf16 concat scratch: [pts(3) | enc(36) | h1(25) | 0-pad]
    pts = pts_ref[...]                                   # (tile, 3) f32

    # BARF positional encoding on the VPU: three broadcast-FMAs (exact f32),
    # one EUP sin pass over the 36 live lanes (cos folded in as +pi/2 phase).
    m0 = rc_ref[0:1, 0:ENC_CH]
    m1 = rc_ref[1:2, 0:ENC_CH]
    m2 = rc_ref[2:3, 0:ENC_CH]
    ph = rc_ref[3:4, 0:ENC_CH]
    ang = pts[:, 0:1] * m0 + pts[:, 1:2] * m1 + pts[:, 2:3] * m2 + ph
    enc = jnp.sin(ang)                                   # (tile, 36) f32

    # Build the 128-lane concat input.  Re-zero every tile so pad lanes (and
    # the not-yet-written h1 lanes) are exactly 0 regardless of grid/core
    # split -- no cross-tile state, megacore-safe.
    x_sc[...] = jnp.zeros_like(x_sc)
    x_sc[:, 0:D_IN] = pts.astype(jnp.bfloat16)
    x_sc[:, D_IN:INPUT_CH] = enc.astype(jnp.bfloat16)

    b0 = rc_ref[4:5, 0:D_HIDDEN]
    b1 = rc_ref[5:6, 0:SKIP_W]
    b2 = rc_ref[6:7, 0:D_HIDDEN]
    b3 = rc_ref[7:8, 0:D_HIDDEN]
    b4 = rc_ref[8:9, :]

    # layer 0 -- single (tile,128)x(128,64) bf16 dot (weight rows >=39 are 0)
    h = jnp.dot(x_sc[...], w0_ref[...], preferred_element_type=jnp.float32) + b0
    h = _softplus100(h)

    # layer 1 -- (tile,64)x(64,25)
    h = jnp.dot(h.astype(jnp.bfloat16), w1_ref[...],
                preferred_element_type=jnp.float32) + b1
    h = _softplus100(h)

    # layer 2 (skip) -- write h1 into lanes 39..63 of the concat scratch, then
    # one fused (tile,128)x(128,64) dot; 1/sqrt(2) is folded into the weights.
    x_sc[:, INPUT_CH:D_HIDDEN] = h.astype(jnp.bfloat16)
    h = jnp.dot(x_sc[...], w2_ref[...], preferred_element_type=jnp.float32) + b2
    h = _softplus100(h)

    # layer 3
    h = jnp.dot(h.astype(jnp.bfloat16), w3_ref[...],
                preferred_element_type=jnp.float32) + b3
    h = _softplus100(h)

    # layer 4 -- output padded to 128 lanes (lane-dense f32 store);
    # 1/scale already folded into column 0 of w4/b4.
    o_ref[...] = jnp.dot(h.astype(jnp.bfloat16), w4_ref[...],
                         preferred_element_type=jnp.float32) + b4


# ----------------------------------------------------------------------------
# Wrapper: parameter folding / packing / padding + pallas_call
# ----------------------------------------------------------------------------
def sdf_forward_pallas(inputs, params, *, tile_n=1024):
    """inputs: (N, 3) points.  tile_n: batch tile (sweepable; 1024-2048 is
    appropriate for production N -- per-tile VMEM footprint is <3 MiB even at
    2048, far under every generation's limit, so tile size is driven purely by
    grid-step overhead amortization and v7x core balance)."""
    N, d_in = inputs.shape
    assert d_in == D_IN
    assert tile_n % 8 == 0
    assert len(params) == NUM_LINEAR == 5

    pts = inputs.astype(jnp.float32)
    n_pad = (-N) % tile_n
    if n_pad:
        pts = jnp.concatenate([pts, jnp.zeros((n_pad, D_IN), jnp.float32)], axis=0)
    Np = N + n_pad

    M, phase = _encoding_constants()
    (W0, b0), (W1, b1), (W2, b2), (W3, b3), (W4, b4) = params
    inv_sqrt2 = np.float32(1.0 / np.sqrt(2.0))

    # ---- packed row constants: freq rows, phase, biases (f32, (16,128)) ----
    b4f = b4.at[0].multiply(1.0 / SCALE)
    rc = jnp.zeros((16, D_OUT_PAD), jnp.float32)
    rc = rc.at[0:3, :ENC_CH].set(M)
    rc = rc.at[3, :ENC_CH].set(phase[0])
    rc = rc.at[4, :D_HIDDEN].set(b0)
    rc = rc.at[5, :SKIP_W].set(b1)
    rc = rc.at[6, :D_HIDDEN].set(b2)
    rc = rc.at[7, :D_HIDDEN].set(b3)
    rc = rc.at[8, :D_OUT].set(b4f)

    # ---- layer 0: fused over concat lanes [pts(3) | enc(36) | pad] ----------
    w0s = jnp.zeros((D_OUT_PAD, D_HIDDEN), jnp.float32)
    w0s = w0s.at[0:D_IN, :].set(W0[:, :D_IN].T)
    w0s = w0s.at[D_IN:INPUT_CH, :].set(W0[:, D_IN:].T)
    w0s = w0s.astype(jnp.bfloat16)                       # (128, 64)

    # ---- layer 1 -------------------------------------------------------------
    w1t = W1.T.astype(jnp.bfloat16)                      # (64, 25)

    # ---- layer 2 (skip): reference input order is [h1(25) | pts(3) | enc(36)],
    # scratch order is [pts | enc | h1]; 1/sqrt(2) folded into the weights. ----
    w2s = jnp.zeros((D_OUT_PAD, D_HIDDEN), jnp.float32)
    w2s = w2s.at[0:D_IN, :].set((W2[:, SKIP_W:SKIP_W + D_IN] * inv_sqrt2).T)
    w2s = w2s.at[D_IN:INPUT_CH, :].set((W2[:, SKIP_W + D_IN:] * inv_sqrt2).T)
    w2s = w2s.at[INPUT_CH:D_HIDDEN, :].set((W2[:, :SKIP_W] * inv_sqrt2).T)
    w2s = w2s.astype(jnp.bfloat16)                       # (128, 64)

    # ---- layer 3 -------------------------------------------------------------
    w3t = W3.T.astype(jnp.bfloat16)                      # (64, 64)

    # ---- layer 4: fold 1/scale into output column 0, zero-pad to 128 lanes --
    W4f = W4.at[0].multiply(1.0 / SCALE)
    w4t = (jnp.zeros((D_HIDDEN, D_OUT_PAD), jnp.float32)
           .at[:, :D_OUT].set(W4f.T).astype(jnp.bfloat16))   # (64, 128)

    const_args = (rc, w0s, w1t, w2s, w3t, w4t)

    in_specs = [pl.BlockSpec((tile_n, D_IN), lambda i: (i, 0))]
    in_specs += [pl.BlockSpec(a.shape, lambda i: (0, 0)) for a in const_args]

    out_pad = pl.pallas_call(
        _sdf_mlp_kernel,
        out_shape=jax.ShapeDtypeStruct((Np, D_OUT_PAD), jnp.float32),
        grid=(Np // tile_n,),
        in_specs=in_specs,
        out_specs=pl.BlockSpec((tile_n, D_OUT_PAD), lambda i: (i, 0)),
        scratch_shapes=[pltpu.VMEM((tile_n, D_OUT_PAD), jnp.bfloat16)],
        compiler_params=pltpu.CompilerParams(
            dimension_semantics=("parallel",)),
    )(pts, *const_args)

    return out_pad[:N, :D_OUT]


# ----------------------------------------------------------------------------
# Pure-JAX reference (original, unfolded math) for correctness checking
# ----------------------------------------------------------------------------
def sdf_forward_ref(inputs, params):
    enc = barf_encoding(inputs, V_MULTIRES)
    x_full = jnp.concatenate([inputs, enc], axis=-1)
    x = x_full
    num_linear = len(params)
    for l, (W, b) in enumerate(params):
        if l in SKIP_IN:
            x = jnp.concatenate([x, x_full], axis=1) / np.sqrt(2.0)
        x = jnp.dot(x, W.T, precision=jax.lax.Precision.HIGHEST) + b
        if l < num_linear - 1:
            x = _softplus100(x)
    return jnp.concatenate([x[:, :1] / SCALE, x[:, 1:]], axis=-1)


# ----------------------------------------------------------------------------
# Main
# ----------------------------------------------------------------------------
if __name__ == "__main__":
    key = jax.random.PRNGKey(0)
    k_param, k_in = jax.random.split(key)
    params, _se3_refine = init_params(k_param)

    N = 2048                     # grid = N // tile_n = 8 -> >=4 tiles per v7x core
    inputs = jax.random.uniform(k_in, (N, D_IN), jnp.float32, minval=-1.0, maxval=1.0)

    out = jax.block_until_ready(sdf_forward_pallas(inputs, params, tile_n=256))
    ref = jax.block_until_ready(sdf_forward_ref(inputs, params))

    assert out.shape == (N, D_OUT), out.shape
    assert bool(jnp.all(jnp.isfinite(out)))
    max_err = float(jnp.max(jnp.abs(out - ref)))
    # NOTE: kernel matmuls use bf16 operands / f32 accumulation (same as the
    # MXU's DEFAULT-precision behavior for f32); expect ~1e-3 relative gap vs
    # the HIGHEST-precision reference -- not a bug.
    assert jnp.allclose(out, ref, rtol=1e-2, atol=1e-2), max_err

    print("KERNEL_OK")
</pallas_src>

<mosaic_0001>
module attributes {stable_mosaic.version = 11 : i64} {
  func.func @_sdf_mlp_kernel(%arg0: i32, %arg1: memref<256x3xf32, #tpu.memory_space<vmem>>, %arg2: memref<16x128xf32, #tpu.memory_space<vmem>>, %arg3: memref<128x64xbf16, #tpu.memory_space<vmem>>, %arg4: memref<64x25xbf16, #tpu.memory_space<vmem>>, %arg5: memref<128x64xbf16, #tpu.memory_space<vmem>>, %arg6: memref<64x64xbf16, #tpu.memory_space<vmem>>, %arg7: memref<64x128xbf16, #tpu.memory_space<vmem>>, %arg8: memref<256x128xf32, #tpu.memory_space<vmem>>, %arg9: memref<256x128xbf16, #tpu.memory_space<vmem>>) attributes {dimension_semantics = [#tpu.dimension_semantics<parallel>], iteration_bounds = array<i64: 8>, scalar_prefetch = 0 : i64, scratch_operands = 1 : i64, tpu.core_type = #tpu.core_type<tc>, window_params = [{transform_indices = @transform_0, window_bounds = array<i64: 256, 3>}, {pipeline_mode = #tpu.pipeline_mode<synchronous>, transform_indices = @transform_1, window_bounds = array<i64: 16, 128>}, {pipeline_mode = #tpu.pipeline_mode<synchronous>, transform_indices = @transform_2, window_bounds = array<i64: 128, 64>}, {pipeline_mode = #tpu.pipeline_mode<synchronous>, transform_indices = @transform_3, window_bounds = array<i64: 64, 25>}, {pipeline_mode = #tpu.pipeline_mode<synchronous>, transform_indices = @transform_4, window_bounds = array<i64: 128, 64>}, {pipeline_mode = #tpu.pipeline_mode<synchronous>, transform_indices = @transform_5, window_bounds = array<i64: 64, 64>}, {pipeline_mode = #tpu.pipeline_mode<synchronous>, transform_indices = @transform_6, window_bounds = array<i64: 64, 128>}, {transform_indices = @transform_7, window_bounds = array<i64: 256, 128>}]} {
    %c0 = arith.constant 0 : index
    %c0_0 = arith.constant 0 : index
    %0 = vector.load %arg1[%c0, %c0_0] : memref<256x3xf32, #tpu.memory_space<vmem>>, vector<256x3xf32>
    %c0_1 = arith.constant 0 : index
    %c0_2 = arith.constant 0 : index
    %1 = vector.load %arg2[%c0_1, %c0_2] : memref<16x128xf32, #tpu.memory_space<vmem>>, vector<1x36xf32>
    %c1 = arith.constant 1 : index
    %c0_3 = arith.constant 0 : index
    %2 = vector.load %arg2[%c1, %c0_3] : memref<16x128xf32, #tpu.memory_space<vmem>>, vector<1x36xf32>
    %c2 = arith.constant 2 : index
    %c0_4 = arith.constant 0 : index
    %3 = vector.load %arg2[%c2, %c0_4] : memref<16x128xf32, #tpu.memory_space<vmem>>, vector<1x36xf32>
    %c3 = arith.constant 3 : index
    %c0_5 = arith.constant 0 : index
    %4 = vector.load %arg2[%c3, %c0_5] : memref<16x128xf32, #tpu.memory_space<vmem>>, vector<1x36xf32>
    %5 = vector.extract_strided_slice %0 {offsets = [0, 0], sizes = [256, 1], strides = [1, 1]} : vector<256x3xf32> to vector<256x1xf32>
    %6 = vector.broadcast %5 : vector<256x1xf32> to vector<256x36xf32>
    %7 = vector.broadcast %1 : vector<1x36xf32> to vector<256x36xf32>
    %8 = arith.mulf %6, %7 : vector<256x36xf32>
    %9 = vector.extract_strided_slice %0 {offsets = [0, 1], sizes = [256, 1], strides = [1, 1]} : vector<256x3xf32> to vector<256x1xf32>
    %10 = vector.broadcast %9 : vector<256x1xf32> to vector<256x36xf32>
    %11 = vector.broadcast %2 : vector<1x36xf32> to vector<256x36xf32>
    %12 = arith.mulf %10, %11 : vector<256x36xf32>
    %13 = arith.addf %8, %12 : vector<256x36xf32>
    %14 = vector.extract_strided_slice %0 {offsets = [0, 2], sizes = [256, 1], strides = [1, 1]} : vector<256x3xf32> to vector<256x1xf32>
    %15 = vector.broadcast %14 : vector<256x1xf32> to vector<256x36xf32>
    %16 = vector.broadcast %3 : vector<1x36xf32> to vector<256x36xf32>
    %17 = arith.mulf %15, %16 : vector<256x36xf32>
    %18 = arith.addf %13, %17 : vector<256x36xf32>
    %19 = vector.broadcast %4 : vector<1x36xf32> to vector<256x36xf32>
    %20 = arith.addf %18, %19 : vector<256x36xf32>
    %21 = math.sin %20 : vector<256x36xf32>
    %cst = arith.constant 0.000000e+00 : bf16
    %22 = vector.broadcast %cst : bf16 to vector<256x128xbf16>
    %c0_6 = arith.constant 0 : index
    %c0_7 = arith.constant 0 : index
    %23 = vector.load %arg9[%c0_6, %c0_7] : memref<256x128xbf16, #tpu.memory_space<vmem>>, vector<256x128xbf16>
    tpu.vector_store %arg9[%c0_6, %c0_7], %22 {strides = array<i32>} : memref<256x128xbf16, #tpu.memory_space<vmem>>, vector<256x128xbf16>,
    %24 = arith.truncf %0 : vector<256x3xf32> to vector<256x3xbf16>
    %c0_8 = arith.constant 0 : index
    %c0_9 = arith.constant 0 : index
    %25 = vector.load %arg9[%c0_8, %c0_9] : memref<256x128xbf16, #tpu.memory_space<vmem>>, vector<256x3xbf16>
    tpu.vector_store %arg9[%c0_8, %c0_9], %24 {strides = array<i32>} : memref<256x128xbf16, #tpu.memory_space<vmem>>, vector<256x3xbf16>,
    %26 = arith.truncf %21 : vector<256x36xf32> to vector<256x36xbf16>
    %c0_10 = arith.constant 0 : index
    %c3_11 = arith.constant 3 : index
    %27 = vector.load %arg9[%c0_10, %c3_11] : memref<256x128xbf16, #tpu.memory_space<vmem>>, vector<256x36xbf16>
    tpu.vector_store %arg9[%c0_10, %c3_11], %26 {strides = array<i32>} : memref<256x128xbf16, #tpu.memory_space<vmem>>, vector<256x36xbf16>,
    %c4 = arith.constant 4 : index
    %c0_12 = arith.constant 0 : index
    %28 = vector.load %arg2[%c4, %c0_12] : memref<16x128xf32, #tpu.memory_space<vmem>>, vector<1x64xf32>
    %c5 = arith.constant 5 : index
    %c0_13 = arith.constant 0 : index
    %29 = vector.load %arg2[%c5, %c0_13] : memref<16x128xf32, #tpu.memory_space<vmem>>, vector<1x25xf32>
    %c6 = arith.constant 6 : index
    %c0_14 = arith.constant 0 : index
    %30 = vector.load %arg2[%c6, %c0_14] : memref<16x128xf32, #tpu.memory_space<vmem>>, vector<1x64xf32>
    %c7 = arith.constant 7 : index
    %c0_15 = arith.constant 0 : index
    %31 = vector.load %arg2[%c7, %c0_15] : memref<16x128xf32, #tpu.memory_space<vmem>>, vector<1x64xf32>
    %c8 = arith.constant 8 : index
    %c0_16 = arith.constant 0 : index
    %32 = vector.load %arg2[%c8, %c0_16] : memref<16x128xf32, #tpu.memory_space<vmem>>, vector<1x128xf32>
    %c0_17 = arith.constant 0 : index
    %c0_18 = arith.constant 0 : index
    %33 = vector.load %arg9[%c0_17, %c0_18] : memref<256x128xbf16, #tpu.memory_space<vmem>>, vector<256x128xbf16>
    %c0_19 = arith.constant 0 : index
    %c0_20 = arith.constant 0 : index
    %34 = vector.load %arg3[%c0_19, %c0_20] : memref<128x64xbf16, #tpu.memory_space<vmem>>, vector<128x64xbf16>
    %cst_21 = arith.constant dense<0.000000e+00> : vector<256x64xf32>
    %35 = tpu.matmul %33, %34, %cst_21 {dimension_numbers = #tpu.dot_dimension_numbers<[1], [0], [0], [1], [0, 0, 1, 1], [], []>} : vector<256x128xbf16>, vector<128x64xbf16>, vector<256x64xf32> -> vector<256x64xf32>
    %36 = vector.broadcast %28 : vector<1x64xf32> to vector<256x64xf32>
    %37 = arith.addf %35, %36 : vector<256x64xf32>
    %cst_22 = arith.constant 1.000000e+02 : f32
    %38 = vector.broadcast %cst_22 : f32 to vector<256x64xf32>
    %39 = arith.mulf %38, %37 : vector<256x64xf32>
    %cst_23 = arith.constant 2.000000e+01 : f32
    %40 = vector.broadcast %cst_23 : f32 to vector<256x64xf32>
    %41 = arith.minimumf %39, %40 : vector<256x64xf32>
    %cst_24 = arith.constant 2.000000e+01 : f32
    %42 = vector.broadcast %cst_24 : f32 to vector<256x64xf32>
    %43 = arith.cmpf ogt, %39, %42 : vector<256x64xf32>
    %44 = math.exp %41 : vector<256x64xf32>
    %45 = math.log1p %44 : vector<256x64xf32>
    %cst_25 = arith.constant 0.00999999977 : f32
    %46 = vector.broadcast %cst_25 : f32 to vector<256x64xf32>
    %47 = arith.mulf %45, %46 : vector<256x64xf32>
    %48 = arith.select %43, %37, %47 : vector<256x64xi1>, vector<256x64xf32>
    %49 = arith.truncf %48 : vector<256x64xf32> to vector<256x64xbf16>
    %c0_26 = arith.constant 0 : index
    %c0_27 = arith.constant 0 : index
    %50 = vector.load %arg4[%c0_26, %c0_27] : memref<64x25xbf16, #tpu.memory_space<vmem>>, vector<64x25xbf16>
    %cst_28 = arith.constant dense<0.000000e+00> : vector<256x25xf32>
    %51 = tpu.matmul %49, %50, %cst_28 {dimension_numbers = #tpu.dot_dimension_numbers<[1], [0], [0], [1], [0, 0, 1, 1], [], []>} : vector<256x64xbf16>, vector<64x25xbf16>, vector<256x25xf32> -> vector<256x25xf32>
    %52 = vector.broadcast %29 : vector<1x25xf32> to vector<256x25xf32>
    %53 = arith.addf %51, %52 : vector<256x25xf32>
    %cst_29 = arith.constant 1.000000e+02 : f32
    %54 = vector.broadcast %cst_29 : f32 to vector<256x25xf32>
    %55 = arith.mulf %54, %53 : vector<256x25xf32>
    %cst_30 = arith.constant 2.000000e+01 : f32
    %56 = vector.broadcast %cst_30 : f32 to vector<256x25xf32>
    %57 = arith.minimumf %55, %56 : vector<256x25xf32>
    %cst_31 = arith.constant 2.000000e+01 : f32
    %58 = vector.broadcast %cst_31 : f32 to vector<256x25xf32>
    %59 = arith.cmpf ogt, %55, %58 : vector<256x25xf32>
    %60 = math.exp %57 : vector<256x25xf32>
    %61 = math.log1p %60 : vector<256x25xf32>
    %cst_32 = arith.constant 0.00999999977 : f32
    %62 = vector.broadcast %cst_32 : f32 to vector<256x25xf32>
    %63 = arith.mulf %61, %62 : vector<256x25xf32>
    %64 = arith.select %59, %53, %63 : vector<256x25xi1>, vector<256x25xf32>
    %65 = arith.truncf %64 : vector<256x25xf32> to vector<256x25xbf16>
    %c0_33 = arith.constant 0 : index
    %c39 = arith.constant 39 : index
    %66 = vector.load %arg9[%c0_33, %c39] : memref<256x128xbf16, #tpu.memory_space<vmem>>, vector<256x25xbf16>
    tpu.vector_store %arg9[%c0_33, %c39], %65 {strides = array<i32>} : memref<256x128xbf16, #tpu.memory_space<vmem>>, vector<256x25xbf16>,
    %c0_34 = arith.constant 0 : index
    %c0_35 = arith.constant 0 : index
    %67 = vector.load %arg9[%c0_34, %c0_35] : memref<256x128xbf16, #tpu.memory_space<vmem>>, vector<256x128xbf16>
    %c0_36 = arith.constant 0 : index
    %c0_37 = arith.constant 0 : index
    %68 = vector.load %arg5[%c0_36, %c0_37] : memref<128x64xbf16, #tpu.memory_space<vmem>>, vector<128x64xbf16>
    %cst_38 = arith.constant dense<0.000000e+00> : vector<256x64xf32>
    %69 = tpu.matmul %67, %68, %cst_38 {dimension_numbers = #tpu.dot_dimension_numbers<[1], [0], [0], [1], [0, 0, 1, 1], [], []>} : vector<256x128xbf16>, vector<128x64xbf16>, vector<256x64xf32> -> vector<256x64xf32>
    %70 = vector.broadcast %30 : vector<1x64xf32> to vector<256x64xf32>
    %71 = arith.addf %69, %70 : vector<256x64xf32>
    %cst_39 = arith.constant 1.000000e+02 : f32
    %72 = vector.broadcast %cst_39 : f32 to vector<256x64xf32>
    %73 = arith.mulf %72, %71 : vector<256x64xf32>
    %cst_40 = arith.constant 2.000000e+01 : f32
    %74 = vector.broadcast %cst_40 : f32 to vector<256x64xf32>
    %75 = arith.minimumf %73, %74 : vector<256x64xf32>
    %cst_41 = arith.constant 2.000000e+01 : f32
    %76 = vector.broadcast %cst_41 : f32 to vector<256x64xf32>
    %77 = arith.cmpf ogt, %73, %76 : vector<256x64xf32>
    %78 = math.exp %75 : vector<256x64xf32>
    %79 = math.log1p %78 : vector<256x64xf32>
    %cst_42 = arith.constant 0.00999999977 : f32
    %80 = vector.broadcast %cst_42 : f32 to vector<256x64xf32>
    %81 = arith.mulf %79, %80 : vector<256x64xf32>
    %82 = arith.select %77, %71, %81 : vector<256x64xi1>, vector<256x64xf32>
    %83 = arith.truncf %82 : vector<256x64xf32> to vector<256x64xbf16>
    %c0_43 = arith.constant 0 : index
    %c0_44 = arith.constant 0 : index
    %84 = vector.load %arg6[%c0_43, %c0_44] : memref<64x64xbf16, #tpu.memory_space<vmem>>, vector<64x64xbf16>
    %cst_45 = arith.constant dense<0.000000e+00> : vector<256x64xf32>
    %85 = tpu.matmul %83, %84, %cst_45 {dimension_numbers = #tpu.dot_dimension_numbers<[1], [0], [0], [1], [0, 0, 1, 1], [], []>} : vector<256x64xbf16>, vector<64x64xbf16>, vector<256x64xf32> -> vector<256x64xf32>
    %86 = vector.broadcast %31 : vector<1x64xf32> to vector<256x64xf32>
    %87 = arith.addf %85, %86 : vector<256x64xf32>
    %cst_46 = arith.constant 1.000000e+02 : f32
    %88 = vector.broadcast %cst_46 : f32 to vector<256x64xf32>
    %89 = arith.mulf %88, %87 : vector<256x64xf32>
    %cst_47 = arith.constant 2.000000e+01 : f32
    %90 = vector.broadcast %cst_47 : f32 to vector<256x64xf32>
    %91 = arith.minimumf %89, %90 : vector<256x64xf32>
    %cst_48 = arith.constant 2.000000e+01 : f32
    %92 = vector.broadcast %cst_48 : f32 to vector<256x64xf32>
    %93 = arith.cmpf ogt, %89, %92 : vector<256x64xf32>
    %94 = math.exp %91 : vector<256x64xf32>
    %95 = math.log1p %94 : vector<256x64xf32>
    %cst_49 = arith.constant 0.00999999977 : f32
    %96 = vector.broadcast %cst_49 : f32 to vector<256x64xf32>
    %97 = arith.mulf %95, %96 : vector<256x64xf32>
    %98 = arith.select %93, %87, %97 : vector<256x64xi1>, vector<256x64xf32>
    %99 = arith.truncf %98 : vector<256x64xf32> to vector<256x64xbf16>
    %c0_50 = arith.constant 0 : index
    %c0_51 = arith.constant 0 : index
    %100 = vector.load %arg7[%c0_50, %c0_51] : memref<64x128xbf16, #tpu.memory_space<vmem>>, vector<64x128xbf16>
    %cst_52 = arith.constant dense<0.000000e+00> : vector<256x128xf32>
    %101 = tpu.matmul %99, %100, %cst_52 {dimension_numbers = #tpu.dot_dimension_numbers<[1], [0], [0], [1], [0, 0, 1, 1], [], []>} : vector<256x64xbf16>, vector<64x128xbf16>, vector<256x128xf32> -> vector<256x128xf32>
    %102 = vector.broadcast %32 : vector<1x128xf32> to vector<256x128xf32>
    %103 = arith.addf %101, %102 : vector<256x128xf32>
    %c0_53 = arith.constant 0 : index
    %c0_54 = arith.constant 0 : index
    %104 = vector.load %arg8[%c0_53, %c0_54] : memref<256x128xf32, #tpu.memory_space<vmem>>, vector<256x128xf32>
    tpu.vector_store %arg8[%c0_53, %c0_54], %103 {strides = array<i32>} : memref<256x128xf32, #tpu.memory_space<vmem>>, vector<256x128xf32>,
    return
  }
  func.func @transform_0(%arg0: i32) -> (i32, i32) {
    %c0_i32 = arith.constant 0 : i32
    %c0_i32_0 = arith.constant 0 : i32
    return %arg0, %c0_i32 : i32, i32
  }
  func.func @transform_1(%arg0: i32) -> (i32, i32) {
    %c0_i32 = arith.constant 0 : i32
    %c0_i32_0 = arith.constant 0 : i32
    %c0_i32_1 = arith.constant 0 : i32
    return %c0_i32, %c0_i32_0 : i32, i32
  }
  func.func @transform_2(%arg0: i32) -> (i32, i32) {
    %c0_i32 = arith.constant 0 : i32
    %c0_i32_0 = arith.constant 0 : i32
    %c0_i32_1 = arith.constant 0 : i32
    return %c0_i32, %c0_i32_0 : i32, i32
  }
  func.func @transform_3(%arg0: i32) -> (i32, i32) {
    %c0_i32 = arith.constant 0 : i32
    %c0_i32_0 = arith.constant 0 : i32
    %c0_i32_1 = arith.constant 0 : i32
    return %c0_i32, %c0_i32_0 : i32, i32
  }
  func.func @transform_4(%arg0: i32) -> (i32, i32) {
    %c0_i32 = arith.constant 0 : i32
    %c0_i32_0 = arith.constant 0 : i32
    %c0_i32_1 = arith.constant 0 : i32
    return %c0_i32, %c0_i32_0 : i32, i32
  }
  func.func @transform_5(%arg0: i32) -> (i32, i32) {
    %c0_i32 = arith.constant 0 : i32
    %c0_i32_0 = arith.constant 0 : i32
    %c0_i32_1 = arith.constant 0 : i32
    return %c0_i32, %c0_i32_0 : i32, i32
  }
  func.func @transform_6(%arg0: i32) -> (i32, i32) {
    %c0_i32 = arith.constant 0 : i32
    %c0_i32_0 = arith.constant 0 : i32
    %c0_i32_1 = arith.constant 0 : i32
    return %c0_i32, %c0_i32_0 : i32, i32
  }
  func.func @transform_7(%arg0: i32) -> (i32, i32) {
    %c0_i32 = arith.constant 0 : i32
    %c0_i32_0 = arith.constant 0 : i32
    return %arg0, %c0_i32 : i32, i32
  }
}

</mosaic_0001>

<bundles_post_ra>
// kernel: tpu_custom_call.1
= control target key start
LH: loop header
LB: loop body
LE: loop exit
PB: predicated region body
PF: predicated region fallthrough
CT: control target
= control target key end

     0   :  { %12 = vsyncpa [#allocation4], 0  ;;  %s18037_s0 = inlined_call_operand.vmem [shape: f32[2048,3], index: 0, kind: input, shape index: {}]   ;;  %s18038_s1 = inlined_call_operand.vmem [shape: f32[16,128], index: 1, kind: input, shape index: {}]   ;;  %s18039_s2 = inlined_call_operand.vmem [shape: bf16[128,64], index: 2, kind: input, shape index: {}]   ;;  %s18040_s3 = inlined_call_operand.vmem [shape: bf16[64,25], index: 3, kind: input, shape index: {}]   ;;  %s18041_s4 = inlined_call_operand.vmem [shape: bf16[128,64], index: 4, kind: input, shape index: {}]   ;;  %s18042_s5 = inlined_call_operand.vmem [shape: bf16[64,64], index: 5, kind: input, shape index: {}]   ;;  %s18043_s6 = inlined_call_operand.vmem [shape: bf16[64,128], index: 6, kind: input, shape index: {}]   ;;  %s18044_s7 = inlined_call_operand.hbm [shape: f32[2048,128], index: 7, kind: output, shape index: {}]  }
   0x1   :  { %14 = vsyncpa [#allocation4 + $0x1], 0  ;;  %s10413_s24 = smov 0   ;;  %s10415_s25 = smov 0  }
   0x2   :  { %s10417_s26 = smov 0   ;;  %s10419_s27 = smov 0  }
   0x3 LB: > { %s10434_s28 = sadd.s32 4294967295, %s10357_s27   ;;  %s8571_s29 = sadd.s32 4294967294, %s10357_s27   ;;  %s10357_s27 = sphi %s10419_s27, %s19027_s27   ;;  %s10353_s26 = sphi %s10417_s26, %s19026_s26   ;;  %s10349_s25 = sphi %s10415_s25, %s19025_s25   ;;  %s10345_s24 = sphi %s10413_s24, %s19024_s24  }
   0x4   : > { %s10438_s30 = sadd.s32 1, %s10357_s27   ;;  %s179_s8 = sadd.s32 1, %s10353_s26 }
   0x5   : > { %s176_s9 = ssub.s32 %s10357_s27, %s10438_s30  ;;  %p189_p0 = scmp.ne.s32.totalorder %s10353_s26, %s10349_s25 }
   0x6   : > { %p177_p1 = scmp.eq.s32.totalorder %s176_s9, 0  ;;  %p190_p2 = scmp.eq.s32.totalorder %s10434_s28, 7 }
   0x7   : > { %p195_p3 = scmp.ne.s32.totalorder %s10349_s25, %s10345_s24  ;;  %p196_p4 = scmp.eq.s32.totalorder %s8571_s29, 7 }
   0x8   : > { %s10449_s10 = scalar_select %p177_p1, %s10353_s26, %s179_s8  }
   0x9   : > { %p10451_p5 = por %p190_p2, %p189_p0  ;;  %p10455_p6 = por %p196_p4, %p195_p3 }
   0xa   : > { %p8574_p7 = scmp.ge.s32.totalorder %s10357_s27, 1  ;;  %p241_p8 = scmp.lt.s32.totalorder %s10357_s27, 9 }
   0xc   : > { %p242_p9 = pnand %p8574_p7, %p241_p8 }
   0xe   : > { %245 = sbr.rel (%p242_p9) target bundleno = 2571 (0xa0b), region = 48 }
  0x13   : > { %s8576_s13 = sshll.u32 %s10434_s28, 5  ;;  %v18047_v0 = vmov 1   ;;  %v18053_v1 = vmov 0   ;;  %v18045_v8 = vmov 2   ;;  %v10749_v59 = vld [vmem:[%s18038_s1 + $0x1] ss:$0 sm:$0xff] }
  0x14   : > { %9535 = vset.pattern.permute.xlu0 %v18047_v0  ;;  %9533 = vset.pattern.permute.xlu1 %v18047_v0  ;;  %p10466_p10 = scmp.lt.s32.totalorder %s8576_s13, 255  ;;  %4269 = vst [vmem:[#allocation2] sm:$0xf] %v18053_v1  ;;  %4270 = vst [vmem:[#allocation2 + $0x4] sm:$0xf] %v18053_v1  ;;  %s10368_s21 = smov 3  }
  0x15   : > { %4271 = vst [vmem:[#allocation2 + $0x8] sm:$0xf] %v18053_v1  ;;  %4272 = vst [vmem:[#allocation2 + $0xc] sm:$0xf] %v18053_v1  ;;  %v10754_v60 = vld [vmem:[%s18038_s1] ss:$0 sm:$0xff] }
  0x16   : > { %4273 = vst [vmem:[#allocation2 + $0x10] sm:$0xf] %v18053_v1  ;;  %4274 = vst [vmem:[#allocation2 + $0x14] sm:$0xf] %v18053_v1  ;;  %s19029_s13 = smov (!%p10466_p10, %s8576_s13), 255  ;;  %s10369_s23 = smov 39  }
  0x17   : > { %4275 = vst [vmem:[#allocation2 + $0x18] sm:$0xf] %v18053_v1  ;;  %4276 = vst [vmem:[#allocation2 + $0x1c] sm:$0xf] %v18053_v1  ;;  %s8577_s15 = sshll.u32 %s19029_s13, 3  ;;  %s270_s8 = sand.u32 1, %s10349_s25  }
  0x18   : > { %4277 = vst [vmem:[#allocation2 + $0x20] sm:$0xf] %v18053_v1  ;;  %4278 = vst [vmem:[#allocation2 + $0x24] sm:$0xf] %v18053_v1  ;;  %s10509_s18 = scalar_lea.vmem %s18037_s0, %s8577_s15  ;;  %s17862_s9 = sshll.u32 %s270_s8, 8 }
  0x19   : > { %4279 = vst [vmem:[#allocation2 + $0x28] sm:$0xf] %v18053_v1  ;;  %4280 = vst [vmem:[#allocation2 + $0x2c] sm:$0xf] %v18053_v1  ;;  %v10512_v2 = vld [vmem:[%s10509_s18 + $0x10] sm:$0xff]  ;;  %v10515_v3 = vld [vmem:[%s10509_s18] sm:$0xff] }
  0x1a   : > { %4281 = vst [vmem:[#allocation2 + $0x30] sm:$0xf] %v18053_v1  ;;  %4282 = vst [vmem:[#allocation2 + $0x34] sm:$0xf] %v18053_v1  ;;  %522 = vperm.xlu0 %9535, %v10512_v2   ;;  %514 = vperm.xlu1 %9533, %v10515_v3   ;;  %v10520_v4 = vld [vmem:[%s10509_s18 + $0x28] sm:$0xff]  ;;  %v10528_v6 = vld [vmem:[%s10509_s18 + $0x30] sm:$0xff] }
  0x1b   : > { %4283 = vst [vmem:[#allocation2 + $0x38] sm:$0xf] %v18053_v1  ;;  %4284 = vst [vmem:[#allocation2 + $0x3c] sm:$0xf] %v18053_v1  ;;  %v10523_v5 = vld [vmem:[%s10509_s18 + $0x8] sm:$0xff]  ;;  %v10531_v7 = vld [vmem:[%s10509_s18 + $0x18] sm:$0xff] }
  0x1c   : > { %4285 = vst [vmem:[#allocation2 + $0x40] sm:$0xf] %v18053_v1  ;;  %4286 = vst [vmem:[#allocation2 + $0x44] sm:$0xf] %v18053_v1  ;;  %v10538_v9 = vld [vmem:[%s10509_s18 + $0x20] sm:$0xff]  ;;  %v10544_v10 = vld [vmem:[%s10509_s18 + $0x38] sm:$0xff] }
  0x1d   : > { %4287 = vst [vmem:[#allocation2 + $0x48] sm:$0xf] %v18053_v1  ;;  %4288 = vst [vmem:[#allocation2 + $0x4c] sm:$0xf] %v18053_v1  ;;  %v10551_v11 = vld [vmem:[%s10509_s18 + $0x48] sm:$0xff]  ;;  %v10556_v12 = vld [vmem:[%s10509_s18 + $0x60] sm:$0xff] }
  0x1e   : > { %4289 = vst [vmem:[#allocation2 + $0x50] sm:$0xf] %v18053_v1  ;;  %4290 = vst [vmem:[#allocation2 + $0x54] sm:$0xf] %v18053_v1  ;;  %534 = vperm.xlu0 %9535, %v10520_v4   ;;  %518 = vperm.xlu1 %9533, %v10523_v5   ;;  %v10561_v13 = vld [vmem:[%s10509_s18 + $0x78] sm:$0xff]  ;;  %v10567_v14 = vld [vmem:[%s10509_s18 + $0x88] sm:$0xff] }
  0x1f   : > { %4291 = vst [vmem:[#allocation2 + $0x58] sm:$0xf] %v18053_v1  ;;  %4292 = vst [vmem:[#allocation2 + $0x5c] sm:$0xf] %v18053_v1  ;;  %v10573_v15 = vld [vmem:[%s10509_s18 + $0xa0] sm:$0xff]  ;;  %v10579_v16 = vld [vmem:[%s10509_s18 + $0xb8] sm:$0xff] }
  0x20   : > { %4293 = vst [vmem:[#allocation2 + $0x60] sm:$0xf] %v18053_v1  ;;  %4294 = vst [vmem:[#allocation2 + $0x64] sm:$0xf] %v18053_v1  ;;  %v10584_v17 = vld [vmem:[%s10509_s18 + $0xc8] sm:$0xff]  ;;  %v10597_v18 = vld [vmem:[%s10509_s18 + $0x40] sm:$0xff] }
  0x21   : > { %4295 = vst [vmem:[#allocation2 + $0x68] sm:$0xf] %v18053_v1  ;;  %4296 = vst [vmem:[#allocation2 + $0x6c] sm:$0xf] %v18053_v1  ;;  %v10606_v19 = vld [vmem:[%s10509_s18 + $0x50] sm:$0xff]  ;;  %v10611_v20 = vld [vmem:[%s10509_s18 + $0x58] sm:$0xff] }
  0x22   : > { %4297 = vst [vmem:[#allocation2 + $0x70] sm:$0xf] %v18053_v1  ;;  %4298 = vst [vmem:[#allocation2 + $0x74] sm:$0xf] %v18053_v1  ;;  %538 = vperm.xlu0 %9535, %v10528_v6   ;;  %9534 = vset.pattern.permute.xlu1 %v18053_v1  ;;  %v10619_v21 = vld [vmem:[%s10509_s18 + $0x90] sm:$0xff]  ;;  %v10634_v23 = vld [vmem:[%s10509_s18 + $0xe0] sm:$0xff] }
  0x23   : > { %4299 = vst [vmem:[#allocation2 + $0x78] sm:$0xf] %v18053_v1  ;;  %4300 = vst [vmem:[#allocation2 + $0x7c] sm:$0xf] %v18053_v1  ;;  %334 = vperm.xlu1 %9534, %v10531_v7   ;;  %v10629_v22 = vld [vmem:[%s10509_s18 + $0xd0] sm:$0xff]  ;;  %v10637_v24 = vld [vmem:[%s10509_s18 + $0x68] sm:$0xff] }
  0x24   : > { %18334 = vst [vmem:[#allocation6_spill] sm:$0xff] %v10512_v2  ;;  %18335 = vst [vmem:[#allocation7_spill] sm:$0xff] %v10515_v3  ;;  %v10647_v25 = vld [vmem:[%s10509_s18 + $0x70] sm:$0xff]  ;;  %v10657_v26 = vld [vmem:[%s10509_s18 + $0xa8] sm:$0xff]  ;;  %s17902_s15 = scalar_lea.vmem [#allocation3], %s17862_s9  ;;  %s9020_s16 = sshll.u32 %s10434_s28, 12 }
  0x25   : > { %18336 = vst [vmem:[#allocation8_spill] sm:$0xff] %v10520_v4  ;;  %18337 = vst [vmem:[#allocation9_spill] sm:$0xff] %v10523_v5  ;;  %v10666_v29 = vld [vmem:[%s10509_s18 + $0xb0] sm:$0xff]  ;;  %v10680_v34 = vld [vmem:[%s10509_s18 + $0x80] sm:$0xff]  ;;  %s17988_s19 = scalar_lea.hbm %s18044_s7, %s9020_s16  ;;  %s17997_s28 = scalar_lea.sflag [#allocation4], %s270_s8 }
  0x26   : > { %18338 = vst [vmem:[#allocation10_spill] sm:$0xff] %v10528_v6  ;;  %18339 = vst [vmem:[#allocation11_spill] sm:$0xff] %v10531_v7  ;;  %9541 = vset.pattern.permute.xlu0 %v18045_v8  ;;  %v10683_v35 = vld [vmem:[%s10509_s18 + $0xe8] sm:$0xff]  ;;  %v10691_v37 = vld [vmem:[%s10509_s18 + $0xf0] sm:$0xff]  ;;  %s10370_s22 = smov [#allocation3]  }
  0x27   : > { %18340 = vst [vmem:[#allocation12_spill] sm:$0xff] %v10538_v9  ;;  %714 = vperm.xlu0 %9541, %v10523_v5   ;;  %9536 = vset.pattern.permute.xlu1 %v18047_v0  ;;  %18341 = vst [vmem:[#allocation13_spill] sm:$0xff] %v10544_v10  ;;  %v10708_v43 = vld [vmem:[%s10509_s18 + $0x98] sm:$0xff] }
  0x28   : > { %526 = vperm.xlu1 %9536, %v10531_v7   ;;  %18342 = vst [vmem:[#allocation14_spill] sm:$0xff] %v10551_v11  ;;  %18343 = vst [vmem:[#allocation15_spill] sm:$0xff] %v10556_v12  ;;  %v10725_v49 = vld [vmem:[%s10509_s18 + $0xf8] sm:$0xff] }
  0x29   : > { %18344 = vst [vmem:[#allocation16_spill] sm:$0xff] %v10561_v13  ;;  %18345 = vst [vmem:[#allocation17_spill] sm:$0xff] %v10567_v14 }
  0x2a   : > { %18346 = vst [vmem:[#allocation18_spill] sm:$0xff] %v10573_v15  ;;  %18347 = vst [vmem:[#allocation19_spill] sm:$0xff] %v10579_v16 }
  0x2b   : > { %726 = vperm.xlu0 %9541, %v10538_v9   ;;  %18348 = vst [vmem:[#allocation20_spill] sm:$0xff] %v10584_v17  ;;  %18349 = vst [vmem:[#allocation21_spill] sm:$0xff] %v10597_v18 }
  0x2c   : > { %9537 = vset.pattern.permute.xlu1 %v18045_v8  ;;  %18350 = vst [vmem:[#allocation22_spill] sm:$0xff] %v10606_v19  ;;  %18351 = vst [vmem:[#allocation23_spill] sm:$0xff] %v10611_v20 }
  0x2d   : > { %710 = vperm.xlu1 %9537, %v10515_v3   ;;  %18352 = vst [vmem:[#allocation24_spill] sm:$0xff] %v10619_v21  ;;  %18353 = vst [vmem:[#allocation25_spill] sm:$0xff] %v10629_v22 }
  0x2e   : > { %18354 = vst [vmem:[#allocation26_spill] sm:$0xff] %v10634_v23  ;;  %18355 = vst [vmem:[#allocation27_spill] sm:$0xff] %v10637_v24 }
  0x2f   : > { %738 = vperm.xlu0 %9541, %v10544_v10   ;;  %18356 = vst [vmem:[#allocation28_spill] sm:$0xff] %v10647_v25  ;;  %18357 = vst [vmem:[#allocation29_spill] sm:$0xff] %v10657_v26 }
  0x30   : > { %18358 = vst [vmem:[#allocation30_spill] sm:$0xff] %v10666_v29  ;;  %18359 = vst [vmem:[#allocation31_spill] sm:$0xff] %v10680_v34 }
  0x31   : > { %718 = vperm.xlu1 %9537, %v10512_v2   ;;  %18360 = vst [vmem:[#allocation32_spill] sm:$0xff] %v10683_v35  ;;  %18361 = vst [vmem:[#allocation33_spill] sm:$0xff] %v10691_v37 }
  0x32   : > { %18363 = vst [vmem:[#allocation35_spill] sm:$0xff] %v10708_v43  ;;  %18367 = vst [vmem:[#allocation39_spill] sm:$0xff] %v10725_v49 }
  0x33   : > { %746 = vperm.xlu0 %9541, %v10551_v11  }
  0x35   : > { %722 = vperm.xlu1 %9537, %v10531_v7   ;;  %v18081_v7 = vmov 683565275  }
  0x37   : > { %758 = vperm.xlu0 %9541, %v10556_v12  }
  0x39   : > { %9538 = vset.pattern.permute.xlu1 %v18053_v1 }
  0x3a   : > { %344 = vperm.xlu1 %9538, %v10520_v4  }
  0x3b   : > { %770 = vperm.xlu0 %9541, %v10561_v13  }
  0x3e   : > { %9539 = vset.pattern.permute.xlu1 %v18047_v0 }
  0x3f   : > { %778 = vperm.xlu0 %9541, %v10567_v14   ;;  %530 = vperm.xlu1 %9539, %v10538_v9  }
  0x43   : > { %790 = vperm.xlu0 %9541, %v10573_v15   ;;  %9540 = vset.pattern.permute.xlu1 %v18053_v1 }
  0x44   : > { %349 = vperm.xlu1 %9540, %v10528_v6  }
  0x47   : > { %802 = vperm.xlu0 %9541, %v10579_v16  }
  0x48   : > { %354 = vperm.xlu1 %9540, %v10544_v10  }
  0x4b   : > { %810 = vperm.xlu0 %9541, %v10584_v17  }
  0x4c   : > { %9542 = vset.pattern.permute.xlu1 %v18047_v0 }
  0x4d   : > { %542 = vperm.xlu1 %9542, %v10544_v10  }
  0x4f   : > { %9569 = vset.pattern.permute.xlu0 %v18053_v1 }
  0x50   : > { %319 = vperm.xlu0 %9569, %v10515_v3  }
  0x51   : > { %9543 = vset.pattern.permute.xlu1 %v18045_v8 }
  0x52   : > { %730 = vperm.xlu1 %9543, %v10520_v4  }
  0x54   : > { %324 = vperm.xlu0 %9569, %v10523_v5   ;;  %v18083_v5 = vmov 2475754826  }
  0x56   : > { %734 = vperm.xlu1 %9543, %v10528_v6  }
  0x58   : > { %329 = vperm.xlu0 %9569, %v10512_v2  }
  0x5a   : > { %9544 = vset.pattern.permute.xlu1 %v18053_v1 }
  0x5b   : > { %359 = vperm.xlu1 %9544, %v10597_v18  }
  0x5c   : > { %339 = vperm.xlu0 %9569, %v10538_v9  }
  0x5f   : > { %9545 = vset.pattern.permute.xlu1 %v18047_v0 }
  0x60   : > { %364 = vperm.xlu0 %9569, %v10551_v11   ;;  %546 = vperm.xlu1 %9545, %v10597_v18  }
  0x64   : > { %369 = vperm.xlu0 %9569, %v10606_v19   ;;  %550 = vperm.xlu1 %9545, %v10551_v11  }
  0x68   : > { %379 = vperm.xlu0 %9569, %v10556_v12   ;;  %9546 = vset.pattern.permute.xlu1 %v18053_v1 }
  0x69   : > { %374 = vperm.xlu1 %9546, %v10611_v20  }
  0x6c   : > { %404 = vperm.xlu0 %9569, %v10567_v14  }
  0x6d   : > { %9547 = vset.pattern.permute.xlu1 %v18047_v0 }
  0x6e   : > { %558 = vperm.xlu1 %9547, %v10611_v20  }
  0x70   : > { %409 = vperm.xlu0 %9569, %v10619_v21  }
  0x72   : > { %9548 = vset.pattern.permute.xlu1 %v18045_v8 }
  0x73   : > { %742 = vperm.xlu1 %9548, %v10597_v18  }
  0x74   : > { %419 = vperm.xlu0 %9569, %v10573_v15  }
  0x77   : > { %750 = vperm.xlu1 %9548, %v10606_v19  }
  0x78   : > { %444 = vperm.xlu0 %9569, %v10584_v17  }
  0x7b   : > { %754 = vperm.xlu1 %9548, %v10611_v20  }
  0x7c   : > { %449 = vperm.xlu0 %9569, %v10629_v22  }
  0x7f   : > { %9549 = vset.pattern.permute.xlu1 %v18053_v1 }
  0x80   : > { %459 = vperm.xlu0 %9569, %v10634_v23   ;;  %384 = vperm.xlu1 %9549, %v10637_v24  }
  0x84   : > { %9570 = vset.pattern.permute.xlu0 %v18047_v0  ;;  %9550 = vset.pattern.permute.xlu1 %v18047_v0 }
  0x85   : > { %554 = vperm.xlu0 %9570, %v10606_v19   ;;  %562 = vperm.xlu1 %9550, %v10556_v12  }
  0x89   : > { %566 = vperm.xlu0 %9570, %v10637_v24   ;;  %9551 = vset.pattern.permute.xlu1 %v18053_v1 }
  0x8a   : > { %389 = vperm.xlu1 %9551, %v10647_v25  }
  0x8d   : > { %570 = vperm.xlu0 %9570, %v10647_v25  }
  0x8e   : > { %394 = vperm.xlu1 %9551, %v10561_v13  }
  0x91   : > { %586 = vperm.xlu0 %9570, %v10619_v21  }
  0x92   : > { %9552 = vset.pattern.permute.xlu1 %v18047_v0 }
  0x93   : > { %574 = vperm.xlu1 %9552, %v10561_v13  }
  0x95   : > { %v10660_v27 = vpop.permute.xlu1 %514  ;;  %v10662_v28 = vpop.permute.xlu0 %522  ;;  %598 = vperm.xlu0 %9570, %v10657_v26  }
  0x96   : > { %v645_v12 = vmul.f32 %v10749_v59, %v10660_v27 }
  0x97   : > { %9553 = vset.pattern.permute.xlu1 %v18045_v8 }
  0x98   : > { %762 = vperm.xlu1 %9553, %v10637_v24  }
  0x99   : > { %v10670_v30 = vpop.permute.xlu1 %518  ;;  %v10672_v31 = vpop.permute.xlu0 %534  ;;  %602 = vperm.xlu0 %9570, %v10666_v29  }
  0x9c   : > { %766 = vperm.xlu1 %9553, %v10647_v25  }
  0x9d   : > { %v539_v32 = vpop.permute.xlu0 %538  ;;  %618 = vperm.xlu0 %9570, %v10629_v22  }
  0x9e   : > { %v10677_v33 = vpop.permute.xlu1 %334  ;;  %v651_v62 = vmul.f32 %v10749_v59, %v539_v32 }
  0xa0   : > { %9554 = vset.pattern.permute.xlu1 %v18053_v1 }
  0xa1   : > { %399 = vperm.xlu1 %9554, %v10680_v34   ;;  %630 = vperm.xlu0 %9570, %v10683_v35   ;;  %v10779_v35 = vld [vmem:[%s18038_s1 + $0x3] ss:$0 sm:$0xff] }
  0xa2   : > { %v10688_v36 = vpop.permute.xlu0 %714 }
  0xa3   : > { %v527_v38 = vpop.permute.xlu1 %526 }
  0xa5   : > { %9555 = vset.pattern.permute.xlu1 %v18047_v0  ;;  %634 = vperm.xlu0 %9570, %v10691_v37   ;;  %v648_v37 = vmul.f32 %v10749_v59, %v527_v38 }
  0xa6   : > { %578 = vperm.xlu1 %9555, %v10680_v34   ;;  %v10696_v39 = vpop.permute.xlu0 %726 }
  0xa7   : > { %18362 = vst [vmem:[#allocation34_spill] sm:$0xff] %v10696_v39 }
  0xa8   : > { %v10698_v40 = vpop.permute.xlu1 %710 }
  0xa9   : > { %9575 = vset.pattern.permute.xlu0 %v18045_v8 }
  0xaa   : > { %582 = vperm.xlu1 %9555, %v10567_v14   ;;  %v10702_v41 = vpop.permute.xlu0 %738  ;;  %822 = vperm.xlu0 %9575, %v10634_v23  }
  0xac   : > { %v10705_v42 = vpop.permute.xlu1 %718 }
  0xae   : > { %9556 = vset.pattern.permute.xlu1 %v18053_v1  ;;  %v10711_v44 = vpop.permute.xlu0 %746  ;;  %834 = vperm.xlu0 %9575, %v10725_v49  }
  0xaf   : > { %18364 = vst [vmem:[#allocation36_spill] sm:$0xff] %v10711_v44  ;;  %414 = vperm.xlu1 %9556, %v10708_v43  }
  0xb0   : > { %v723_v45 = vpop.permute.xlu1 %722 }
  0xb2   : > { %v10714_v46 = vpop.permute.xlu0 %758 }
  0xb3   : > { %18365 = vst [vmem:[#allocation37_spill] sm:$0xff] %v10714_v46  ;;  %9557 = vset.pattern.permute.xlu1 %v18047_v0 }
  0xb4   : > { %590 = vperm.xlu1 %9557, %v10708_v43  }
  0xb5   : > { %v10718_v47 = vpop.permute.xlu1 %344 }
  0xb6   : > { %v10720_v48 = vpop.permute.xlu0 %770 }
  0xb7   : > { %18366 = vst [vmem:[#allocation38_spill] sm:$0xff] %v10720_v48  ;;  %v18378_v48 = vmov 2  }
  0xb8   : > { %9558 = vset.pattern.permute.xlu1 %v18045_v8 }
  0xb9   : > { %774 = vperm.xlu1 %9558, %v10680_v34  }
  0xba   : > { %v10727_v50 = vpop.permute.xlu1 %530  ;;  %v10729_v51 = vpop.permute.xlu0 %778 }
  0xbb   : > { %18368 = vst [vmem:[#allocation40_spill] sm:$0xff] %v10727_v50  ;;  %18369 = vst [vmem:[#allocation41_spill] sm:$0xff] %v10729_v51 }
  0xbd   : > { %782 = vperm.xlu1 %9558, %v10619_v21  }
  0xbe   : > { %v10733_v52 = vpop.permute.xlu0 %790 }
  0xbf   : > { %18370 = vst [vmem:[#allocation42_spill] sm:$0xff] %v10733_v52  ;;  %v350_v53 = vpop.permute.xlu1 %349 }
  0xc0   : > { %v487_v63 = vmul.f32 %v10754_v60, %v350_v53 }
  0xc1   : > { %786 = vperm.xlu1 %9558, %v10708_v43  }
  0xc2   : > { %v10736_v54 = vpop.permute.xlu0 %802 }
  0xc3   : > { %18371 = vst [vmem:[#allocation43_spill] sm:$0xff] %v10736_v54  ;;  %v355_v55 = vpop.permute.xlu1 %354 }
  0xc5   : > { %9559 = vset.pattern.permute.xlu1 %v18053_v1 }
  0xc6   : > { %424 = vperm.xlu1 %9559, %v10657_v26   ;;  %v10740_v56 = vpop.permute.xlu0 %810 }
  0xc7   : > { %18372 = vst [vmem:[#allocation44_spill] sm:$0xff] %v10740_v56  ;;  %v683_v56 = vadd.f32 %v651_v62, %v487_v63 }
  0xc8   : > { %v543_v57 = vpop.permute.xlu1 %542 }
  0xca   : > { %9560 = vset.pattern.permute.xlu1 %v18047_v0  ;;  %v10767_v0 = vld [vmem:[%s18038_s1 + $0x2] ss:$0 sm:$0xff] }
  0xcb   : > { %v10743_v58 = vpop.permute.xlu0 %319  ;;  %594 = vperm.xlu1 %9560, %v10573_v15   ;;  %v844_v52 = vmul.f32 %v10767_v0, %v723_v45 }
  0xcd   : > { %v10756_v61 = vpop.permute.xlu1 %730 }
  0xcf   : > { %v10760_v8 = vpop.permute.xlu0 %324  ;;  %9561 = vset.pattern.permute.xlu1 %v18053_v1  ;;  %v484_v1 = vmul.f32 %v10754_v60, %v10677_v33 }
  0xd0   : > { %429 = vperm.xlu1 %9561, %v10666_v29  }
  0xd1   : > { %v735_v49 = vpop.permute.xlu1 %734 }
  0xd2   : > { %v847_v54 = vmul.f32 %v10767_v0, %v735_v49  ;;  %v680_v49 = vadd.f32 %v648_v37, %v484_v1 }
  0xd3   : > { %v10771_v32 = vpop.permute.xlu0 %329 }
  0xd4   : > { %v879_v53 = vadd.f32 %v847_v54, %v683_v56  ;;  %434 = vperm.xlu1 %9561, %v10579_v16   ;;  %v18375_v54 = vmov 1   ;;  %v876_v56 = vadd.f32 %v844_v52, %v680_v49  ;;  %v10842_v52 = vmul.f32 %v10767_v0, %v10698_v40 }
  0xd6   : > { %v10783_v62 = vadd.f32 %v10779_v35, %v879_v53  ;;  %v10785_v38 = vpop.permute.xlu1 %359  ;;  %v10797_v53 = vadd.f32 %v10779_v35, %v876_v56  ;;  %v488_v56 = vmul.f32 %v10754_v60, %v355_v55  ;;  %v10847_v55 = vld [vmem:[%s10509_s18 + $0xc0] sm:$0xff] }
  0xd7   : > { %v10787_v63 = vpop.permute.xlu0 %339  ;;  %18382 = vst [vmem:[#allocation52_spill] sm:$0xff] %v10847_v55 }
  0xd8   : > { %18373 = vst [vmem:[#allocation45_spill] sm:$0xff] %v10783_v62  ;;  %18374 = vst [vmem:[#allocation46_spill] sm:$0xff] %v10787_v63  ;;  %9562 = vset.pattern.permute.xlu1 %v18375_v54  ;;  %v1568_v33 = vand.u32 2139095040, %v10783_v62  ;;  %v18383_v10 = vand.u32 2147483647, %v10783_v62 }
  0xd9   : > { %606 = vperm.xlu1 %9562, %v10579_v16   ;;  %18377 = vst [vmem:[#allocation48_spill] sm:$0xff] %v10797_v53  ;;  %v18093_v62 = vmov 2102212464  }
  0xda   : > { %v1569_v51 = vshrl.u32 %v1568_v33, 23  ;;  %v1256_v33 = vand.u32 2139095040, %v10797_v53  ;;  %v1572_v4 = vand.u32 8388607, %v18383_v10 }
  0xdb   : > { %v10792_v50 = vpop.permute.xlu0 %364  ;;  %v10799_v37 = vpop.permute.xlu1 %546 }
  0xdc   : > { %18376 = vst [vmem:[#allocation47_spill] sm:$0xff] %v10792_v50  ;;  %v8606_v1 = vadd.s32 4294967169, %v1569_v51  ;;  %v652_v51 = vmul.f32 %v10749_v59, %v543_v57  ;;  %v10838_v57 = vmul.f32 %v10749_v59, %v10662_v28  ;;  %v10849_v6 = vshrl.u32 %v1256_v33, 23 }
  0xdd   : > { %9563 = vset.pattern.permute.xlu1 %v18378_v48  ;;  %v481_v28 = vmul.f32 %v10754_v60, %v10743_v58  ;;  %v1573_v63 = vor.u32 8388608, %v1572_v4 }
  0xde   : > { %794 = vperm.xlu1 %9563, %v10657_v26   ;;  %v1575_v2 = vadd.s32 1, %v8606_v1  ;;  %v684_v13 = vadd.f32 %v652_v51, %v488_v56  ;;  %v18087_v51 = vmov 2131351028  }
  0xdf   : > { %v10817_v3 = vpop.permute.xlu0 %369  ;;  %v10830_v11 = vpop.permute.xlu1 %550 }
  0xe0   : > { %18379 = vst [vmem:[#allocation49_spill] sm:$0xff] %v10817_v3  ;;  %vm1576_vm0 = vcmp.gt.s32.totalorder %v1575_v2, 0  ;;  %18380 = vst [vmem:[#allocation50_spill] sm:$0xff] %v10830_v11  ;;  %v18097_v3 = vmov 920167782  }
  0xe1   : > { %v1577_v1 = vsel %vm1576_vm0, %v1575_v2, 0  ;;  %v848_v2 = vmul.f32 %v10767_v0, %v10702_v41 }
  0xe2   : > { %798 = vperm.xlu1 %9563, %v10666_v29   ;;  %v1579_v49 = vand.u32 31, %v1577_v1  ;;  %v10855_v9 = vshrl.u32 %v1577_v1, 5 }
  0xe3   : > { %v10832_v45 = vpop.permute.xlu0 %379  ;;  %v880_v29 = vadd.f32 %v848_v2, %v684_v13  ;;  %v18385_v2 = vmov 683565275   ;;  %v18415_v43 = vld [vmem:[#allocation47_spill] sm:$0xff] }
  0xe4   : > { %18381 = vst [vmem:[#allocation51_spill] sm:$0xff] %v10832_v45  ;;  %v1580_v27 = vsub.s32 32, %v1579_v49  ;;  %v1582_v40 = vshll.u32 %v18081_v7, %v1579_v49  ;;  %v1585_v41 = vshll.u32 %v18083_v5, %v1579_v49  ;;  %v18384_v45 = vmov 0   ;;  %v10871_v48 = vpop.permute.xlu1 %374 }
  0xe5   : > { %v1588_v10 = vshll.u32 %v18087_v51, %v1579_v49  ;;  %v1591_v7 = vshll.u32 %v18093_v62, %v1579_v49  ;;  %v1594_v50 = vshll.u32 %v18097_v3, %v1579_v49  ;;  %vm1597_vm1 = vcmp.lt.s32.totalorder %v10855_v9, 1 }
  0xe6   : > { %9564 = vset.pattern.permute.xlu1 %v18384_v45  ;;  %v1583_v33 = vshrl.u32 %v18083_v5, %v1580_v27  ;;  %v1586_v56 = vshrl.u32 %v18087_v51, %v1580_v27  ;;  %v1589_v58 = vshrl.u32 %v18093_v62, %v1580_v27  ;;  %v1592_v11 = vshrl.u32 %v18097_v3, %v1580_v27 }
  0xe7   : > { %439 = vperm.xlu1 %9564, %v10847_v55   ;;  %v10865_v1 = vpop.permute.xlu0 %404  ;;  %v18095_v5 = vmov 1326507024   ;;  %v677_v62 = vadd.f32 %v645_v12, %v481_v28  ;;  %vm1600_vm2 = vcmp.lt.s32.totalorder %v10855_v9, 4  ;;  %vm1599_vm3 = vcmp.lt.s32.totalorder %v10855_v9, 3  ;;  %v18416_v24 = vld [vmem:[#allocation50_spill] sm:$0xff] }
  0xe8   : > { %v1595_v53 = vshrl.u32 %v18095_v5, %v1580_v27  ;;  %v1584_v46 = vor.u32 %v1583_v33, %v1582_v40  ;;  %v1587_v51 = vor.u32 %v1586_v56, %v1585_v41  ;;  %v1590_v44 = vor.u32 %v1589_v58, %v1588_v10 }
  0xe9   : > { %v1593_v39 = vor.u32 %v1592_v11, %v1591_v7  ;;  %v483_v11 = vmul.f32 %v10754_v60, %v10771_v32  ;;  %vm1598_vm4 = vcmp.lt.s32.totalorder %v10855_v9, 2  ;;  %v1581_v28 = vshrl.u32 %v18385_v2, %v1580_v27  ;;  %v10903_v58 = vpop.permute.xlu1 %558 }
  0xea   : > { %v1596_v26 = vor.u32 %v1595_v53, %v1594_v50  ;;  %v1605_v49 = vsel %vm1597_vm1, %v1584_v46, %v1587_v51  ;;  %v1609_v5 = vsel %vm1597_vm1, %v1587_v51, %v1590_v44  ;;  %v1613_v53 = vshll.u32 %v1573_v63, 8 }
  0xeb   : > { %9565 = vset.pattern.permute.xlu1 %v18375_v54  ;;  %v10880_v4 = vpop.permute.xlu0 %409  ;;  %v1606_v13 = vsel %vm1600_vm2, %v1593_v39, 920167782  ;;  %v1602_v40 = vsel %vm1600_vm2, %v1590_v44, 2102212464  ;;  %v10914_v27 = vadd.f32 %v10779_v35, %v880_v29  ;;  %v842_v9 = vmul.f32 %v10767_v0, %v10688_v36 }
  0xec   : > { %v1610_v7 = vsel %vm1600_vm2, %v1596_v26, 1326507024  ;;  %610 = vperm.xlu1 %9565, %v10847_v55   ;;  %v1607_v12 = vsel %vm1599_vm3, %v1590_v44, %v1606_v13  ;;  %v873_v13 = vadd.f32 %v10842_v52, %v677_v62  ;;  %v482_v62 = vmul.f32 %v10754_v60, %v10760_v8  ;;  %v18398_v44 = vld [vmem:[#allocation46_spill] sm:$0xff] }
  0xed   : > { %v1611_v50 = vsel %vm1599_vm3, %v1593_v39, %v1610_v7  ;;  %v1608_v26 = vsel %vm1598_vm4, %v1605_v49, %v1607_v12  ;;  %18386 = vst [vmem:[#allocation53_spill] sm:$0xff] %v10914_v27  ;;  %v486_v49 = vmul.f32 %v10754_v60, %v10718_v47  ;;  %v1601_v7 = vsel %vm1597_vm1, %v1581_v28, %v1584_v46  ;;  %v10932_v47 = vld [vmem:[%s10509_s18 + $0xd8] sm:$0xff] }
  0xee   : > { %v1612_v32 = vsel %vm1598_vm4, %v1609_v5, %v1611_v50  ;;  %v10899_v56 = vmul.u32.u64.low %v1613_v53, %v1608_v26  ;;  %v10900_v10 = vmul.u32.u64.high %v1613_v53, %v1608_v26, %v10899_v56  ;;  %v650_v5 = vmul.f32 %v10749_v59, %v10672_v31  ;;  %18387 = vst [vmem:[#allocation54_spill] sm:$0xff] %v10932_v47 }
  0xef   : > { %v10896_v41 = vmul.u32.u64.low %v1613_v53, %v1612_v32  ;;  %v10897_v33 = vmul.u32.u64.high %v1613_v53, %v1612_v32, %v10896_v41  ;;  %v10905_v39 = vpop.permute.xlu0 %419  ;;  %v1603_v12 = vsel %vm1599_vm3, %v1587_v51, %v1602_v40  ;;  %v8594_v31 = vadd.s32 4294967169, %v10849_v6  ;;  %v743_v32 = vpop.permute.xlu1 %742 }
  0xf0   : > { %614 = vperm.xlu1 %9565, %v10584_v17   ;;  %v846_v26 = vmul.f32 %v10767_v0, %v10756_v61  ;;  %v1623_v46 = vadd.s32 1, %v10900_v10  ;;  %v679_v52 = vadd.f32 %v10838_v57, %v483_v11  ;;  %v1672_v6 = vand.u32 2139095040, %v10914_v27  ;;  %v18406_v17 = vld [vmem:[#allocation42_spill] sm:$0xff] }
  0xf1   : > { %vm1622_vm5 = vc.u32 %v10897_v33, %v10899_v56  ;;  %v1604_v61 = vsel %vm1598_vm4, %v1601_v7, %v1603_v12  ;;  %v653_v28 = vmul.f32 %v10749_v59, %v10799_v37  ;;  %v646_v8 = vmul.f32 %v10749_v59, %v10670_v30 }
  0xf2   : > { %v843_v40 = vmul.f32 %v10767_v0, %v10705_v42  ;;  %v682_v57 = vadd.f32 %v650_v5, %v486_v49  ;;  %v10953_v11 = vadd.f32 %v10779_v35, %v873_v13  ;;  %v1263_v37 = vadd.s32 1, %v8594_v31 }
  0xf3   : > { %v10955_v41 = vpop.permute.xlu0 %444  ;;  %v1624_v30 = vsel %vm1622_vm5, %v1623_v46, %v10900_v10  ;;  %v489_v42 = vmul.f32 %v10754_v60, %v10785_v38  ;;  %v678_v49 = vadd.f32 %v646_v8, %v482_v62  ;;  %v1620_v13 = vmul.u32 %v1613_v53, %v1604_v61  ;;  %v18397_v53 = vld [vmem:[#allocation37_spill] sm:$0xff]  ;;  %v18401_v62 = vld [vmem:[#allocation40_spill] sm:$0xff] }
  0xf4   : > { %9566 = vset.pattern.permute.xlu1 %v18384_v45  ;;  %v878_v5 = vadd.f32 %v846_v26, %v682_v57  ;;  %v875_v7 = vadd.f32 %v843_v40, %v679_v52  ;;  %v1673_v29 = vshrl.u32 %v1672_v6, 23  ;;  %v849_v36 = vmul.f32 %v10767_v0, %v743_v32 }
  0xf5   : > { %454 = vperm.xlu1 %9566, %v10932_v47   ;;  %v685_v50 = vadd.f32 %v653_v28, %v489_v42  ;;  %v944_v46 = vand.u32 2139095040, %v10953_v11  ;;  %v10974_v38 = vadd.s32 %v1624_v30, %v1620_v13  ;;  %vm1264_vm6 = vcmp.gt.s32.totalorder %v1263_v37, 0  ;;  %v18392_v13 = vld [vmem:[#allocation34_spill] sm:$0xff]  ;;  %v18408_v42 = vld [vmem:[#allocation32_spill] sm:$0xff] }
  0xf6   : > { %v10985_v6 = vadd.f32 %v10779_v35, %v878_v5  ;;  %v874_v61 = vadd.f32 %v842_v9, %v678_v49  ;;  %v10988_v28 = vadd.f32 %v10779_v35, %v875_v7  ;;  %v8610_v32 = vadd.s32 4294967169, %v1673_v29 }
  0xf7   : > { %v881_v52 = vadd.f32 %v849_v36, %v685_v50  ;;  %v10990_v8 = vpop.permute.xlu0 %449  ;;  %v945_v5 = vshrl.u32 %v944_v46, 23  ;;  %v1626_v49 = vadd.s32 536870912, %v10974_v38  ;;  %v845_v7 = vmul.f32 %v10767_v0, %v18392_v13 }
  0xf8   : > { %18388 = vst [vmem:[#allocation55_spill] sm:$0xff] %v10985_v6  ;;  %18389 = vst [vmem:[#allocation56_spill] sm:$0xff] %v10988_v28  ;;  %v1265_v36 = vsel %vm1264_vm6, %v1263_v37, 0  ;;  %v1464_v63 = vand.u32 2139095040, %v10985_v6  ;;  %v11013_v30 = vadd.f32 %v10779_v35, %v874_v61  ;;  %v1152_v46 = vand.u32 2139095040, %v10988_v28  ;;  %v18396_v37 = vld [vmem:[#allocation36_spill] sm:$0xff] }
  0xf9   : > { %9567 = vset.pattern.permute.xlu1 %v18375_v54  ;;  %v10997_v50 = vadd.f32 %v10779_v35, %v881_v52  ;;  %v18394_v52 = vmov 2   ;;  %v11020_v13 = vmul.f32 %v10767_v0, %v18396_v37  ;;  %v11024_v29 = vmul.f32 %v10767_v0, %v18397_v53  ;;  %v18399_v61 = vld [vmem:[#allocation38_spill] sm:$0xff]  ;;  %v18404_v53 = vld [vmem:[#allocation41_spill] sm:$0xff] }
  0xfa   : > { %622 = vperm.xlu1 %9567, %v10932_v47   ;;  %18395 = vst [vmem:[#allocation34_spill] sm:$0xff] %v11013_v30  ;;  %v1679_v10 = vadd.s32 1, %v8610_v32  ;;  %v485_v57 = vmul.f32 %v10754_v60, %v18398_v44  ;;  %v11030_v40 = vmul.f32 %v10767_v0, %v18399_v61  ;;  %v649_v31 = vmul.f32 %v10749_v59, %v18401_v62 }
  0xfb   : > { %18390 = vst [vmem:[#allocation57_spill] sm:$0xff] %v10997_v50  ;;  %v1776_v9 = vand.u32 2139095040, %v10997_v50  ;;  %v8582_v12 = vadd.s32 4294967169, %v945_v5  ;;  %v11034_v51 = vshrl.u32 %v1626_v49, 30  ;;  %v11036_v37 = vpop.permute.xlu0 %459  ;;  %v11038_v3 = vand.u32 31, %v1265_v36  ;;  %v18412_v5 = vld [vmem:[#allocation43_spill] sm:$0xff] }
  0xfc   : > { %18400 = vst [vmem:[#allocation36_spill] sm:$0xff] %v11030_v40  ;;  %v11042_v32 = vmul.f32 %v10767_v0, %v18404_v53  ;;  %v11046_v44 = vmul.f32 %v10767_v0, %v18406_v17  ;;  %v1048_v16 = vand.u32 2139095040, %v11013_v30  ;;  %v1153_v62 = vshrl.u32 %v1152_v46, 23 }
  0xfd   : > { %18402 = vst [vmem:[#allocation37_spill] sm:$0xff] %v11034_v51  ;;  %18403 = vst [vmem:[#allocation46_spill] sm:$0xff] %v11038_v3  ;;  %v1777_v61 = vshrl.u32 %v1776_v9, 23  ;;  %vm1680_vm7 = vcmp.gt.s32.totalorder %v1679_v10, 0  ;;  %v681_v49 = vadd.f32 %v649_v31, %v485_v57  ;;  %v11054_v15 = vshrl.u32 %v1265_v36, 5  ;;  %v18414_v57 = vld [vmem:[#allocation48_spill] sm:$0xff] }
  0xfe   : > { %9568 = vset.pattern.permute.xlu1 %v18394_v52  ;;  %18405 = vst [vmem:[#allocation38_spill] sm:$0xff] %v11042_v32  ;;  %18407 = vst [vmem:[#allocation40_spill] sm:$0xff] %v11046_v44  ;;  %v951_v17 = vadd.s32 1, %v8582_v12  ;;  %v1628_v9 = vshll.u32 %v11034_v51, 30  ;;  %v11060_v46 = vsub.s32 32, %v11038_v3  ;;  %v11067_v21 = vsel %vm1680_vm7, %v1679_v10, 0 }
  0xff   : > { %806 = vperm.xlu1 %9568, %v10847_v55   ;;  %v1465_v55 = vshrl.u32 %v1464_v63, 23  ;;  %v8614_v26 = vadd.s32 4294967169, %v1777_v61  ;;  %18409 = vst [vmem:[#allocation41_spill] sm:$0xff] %v11054_v15  ;;  %v18410_v63 = vld [vmem:[#allocation33_spill] sm:$0xff]  ;;  %v18125_v61 = vand.u32 2147483647, %v18414_v57  ;;  %v877_v34 = vadd.f32 %v845_v7, %v681_v49  ;;  %v751_v49 = vpop.permute.xlu1 %750 }
 0x100   : > { %18411 = vst [vmem:[#allocation42_spill] sm:$0xff] %v11060_v46  ;;  %v1049_v53 = vshrl.u32 %v1048_v16, 23  ;;  %v8590_v12 = vadd.s32 4294967169, %v1153_v62  ;;  %v555_v14 = vpop.permute.xlu0 %554  ;;  %v490_v25 = vmul.f32 %v10754_v60, %v18415_v43  ;;  %v654_v20 = vmul.f32 %v10749_v59, %v18416_v24  ;;  %v18417_v16 = vld [vmem:[#allocation44_spill] sm:$0xff] }
 0x101   : > { %v1783_v31 = vadd.s32 1, %v8614_v26  ;;  %v8602_v36 = vadd.s32 4294967169, %v1465_v55  ;;  %vm952_vm9 = vcmp.gt.s32.totalorder %v951_v17, 0  ;;  %v11075_v26 = vsub.s32 %v10974_v38, %v1628_v9 }
 0x102   : > { %v11080_v62 = vmul.f32 %v10767_v0, %v18417_v16  ;;  %v655_v43 = vmul.f32 %v10749_v59, %v555_v14  ;;  %v11087_v24 = vand.u32 8388607, %v18125_v61  ;;  %v11090_v38 = vand.u32 31, %v11067_v21 }
 0x103   : > { %814 = vperm.xlu1 %9568, %v10629_v22   ;;  %v11064_v22 = vmul.f32 %v10767_v0, %v18412_v5  ;;  %vm1784_vm8 = vcmp.gt.s32.totalorder %v1783_v31, 0  ;;  %v18419_v5 = vld [vmem:[#allocation49_spill] sm:$0xff]  ;;  %v11092_v9 = vadd.s32 1, %v8602_v36  ;;  %v11095_v16 = vsel %vm952_vm9, %v951_v17, 0  ;;  %v11119_v28 = vpop.permute.xlu1 %754 }
 0x104   : > { %v1785_v55 = vsel %vm1784_vm8, %v1783_v31, 0  ;;  %18418 = vst [vmem:[#allocation47_spill] sm:$0xff] %v11080_v62  ;;  %v491_v7 = vmul.f32 %v10754_v60, %v18419_v5  ;;  %18420 = vst [vmem:[#allocation50_spill] sm:$0xff] %v11090_v38  ;;  %v8586_v31 = vadd.s32 4294967169, %v1049_v53  ;;  %v11100_v5 = vadd.f32 %v10779_v35, %v877_v34 }
 0x105   : > { %18413 = vst [vmem:[#allocation43_spill] sm:$0xff] %v11064_v22  ;;  %v1787_v10 = vand.u32 31, %v1785_v55  ;;  %v686_v14 = vadd.f32 %v654_v20, %v490_v25  ;;  %v1631_v61 = vsub.s32 0, %v11075_v26  ;;  %v18422_v19 = vand.u32 2147483647, %v10997_v50 }
 0x106   : > { %18421 = vst [vmem:[#allocation44_spill] sm:$0xff] %v11100_v5  ;;  %v851_v53 = vmul.f32 %v10767_v0, %v751_v49  ;;  %v11107_v62 = vshrl.u32 %v1785_v55, 5  ;;  %v687_v44 = vadd.f32 %v655_v43, %v491_v7  ;;  %v18424_v20 = vmov 2131351028  }
 0x107   : > { %818 = vperm.xlu1 %9568, %v10932_v47   ;;  %v11097_v47 = vadd.s32 1, %v8590_v12  ;;  %v1780_v36 = vand.u32 8388607, %v18422_v19  ;;  %v1788_v18 = vsub.s32 32, %v1787_v10  ;;  %v1790_v17 = vshll.u32 %v18385_v2, %v1787_v10 }
 0x108   : > { %v18423_v12 = vmov 2475754826   ;;  %v1796_v51 = vshll.u32 %v18424_v20, %v1787_v10  ;;  %v18425_v27 = vmov 2102212464   ;;  %v18426_v50 = vmov 920167782  }
 0x109   : > { %v1793_v22 = vshll.u32 %v18423_v12, %v1787_v10  ;;  %v1791_v34 = vshrl.u32 %v18423_v12, %v1788_v18  ;;  %v1794_v25 = vshrl.u32 %v18424_v20, %v1788_v18  ;;  %v1797_v32 = vshrl.u32 %v18425_v27, %v1788_v18 }
 0x10a   : > { %v1799_v19 = vshll.u32 %v18425_v27, %v1787_v10  ;;  %v1800_v6 = vshrl.u32 %v18426_v50, %v1788_v18  ;;  %v1802_v55 = vshll.u32 %v18426_v50, %v1787_v10  ;;  %v18427_v49 = vmov 1326507024  }
 0x10b   : > { %9571 = vset.pattern.permute.xlu1 %v18384_v45  ;;  %v1803_v57 = vshrl.u32 %v18427_v49, %v1788_v18  ;;  %v1781_v7 = vor.u32 8388608, %v1780_v36  ;;  %v1792_v43 = vor.u32 %v1791_v34, %v1790_v17  ;;  %v1795_v15 = vor.u32 %v1794_v25, %v1793_v22 }
 0x10c   : > { %464 = vperm.xlu1 %9571, %v18408_v42   ;;  %v1798_v3 = vor.u32 %v1797_v32, %v1796_v51  ;;  %v8607_v46 = vmin.u32 %v1631_v61, %v11075_v26  ;;  %v1801_v30 = vor.u32 %v1800_v6, %v1799_v19  ;;  %vm1805_vm10 = vcmp.lt.s32.totalorder %v11107_v62, 1 }
 0x10d   : > { %v1804_v40 = vor.u32 %v1803_v57, %v1802_v55  ;;  %v1360_v10 = vand.u32 2139095040, %v11100_v5  ;;  %vm1808_vm11 = vcmp.lt.s32.totalorder %v11107_v62, 4  ;;  %v1813_v20 = vsel %vm1805_vm10, %v1792_v43, %v1795_v15 }
 0x10e   : > { %v1817_v36 = vsel %vm1805_vm10, %v1795_v15, %v1798_v3  ;;  %vm1807_vm12 = vcmp.lt.s32.totalorder %v11107_v62, 3  ;;  %v1814_v22 = vsel %vm1808_vm11, %v1801_v30, 920167782  ;;  %v883_v6 = vadd.f32 %v851_v53, %v687_v44  ;;  %v11149_v44 = vpop.permute.xlu1 %384 }
 0x10f   : > { %v1818_v51 = vsel %vm1808_vm11, %v1804_v40, 1326507024  ;;  %vm1806_vm13 = vcmp.lt.s32.totalorder %v11107_v62, 2  ;;  %v1815_v32 = vsel %vm1807_vm12, %v1798_v3, %v1814_v22  ;;  %v11141_v61 = vshll.u32 %v1781_v7, 8 }
 0x110   : > { %9572 = vset.pattern.permute.xlu1 %v18375_v54  ;;  %v1819_v57 = vsel %vm1807_vm12, %v1801_v30, %v1818_v51  ;;  %v1633_v17 = vclz %v8607_v46  ;;  %v882_v34 = vadd.f32 %v11020_v13, %v686_v14  ;;  %v1816_v25 = vsel %vm1806_vm13, %v1813_v20, %v1815_v32  ;;  %v18430_v32 = vld [vmem:[#allocation39_spill] sm:$0xff] }
 0x111   : > { %626 = vperm.xlu1 %9572, %v10634_v23   ;;  %v1820_v40 = vsel %vm1806_vm13, %v1817_v36, %v1819_v57  ;;  %vm1472_vm14 = vcmp.gt.s32.totalorder %v11092_v9, 0  ;;  %v1361_v13 = vshrl.u32 %v1360_v10, 23  ;;  %v11163_v46 = vadd.f32 %v10779_v35, %v883_v6 }
 0x112   : > { %v11153_v53 = vmul.u32.u64.low %v11141_v61, %v1820_v40  ;;  %v11154_v30 = vmul.u32.u64.high %v11141_v61, %v1820_v40, %v11153_v53  ;;  %v11167_v20 = vand.u32 31, %v11095_v16  ;;  %v1055_v55 = vadd.s32 1, %v8586_v31  ;;  %v563_v40 = vpop.permute.xlu1 %562 }
 0x113   : > { %18428 = vst [vmem:[#allocation49_spill] sm:$0xff] %v11163_v46  ;;  %v1810_v7 = vsel %vm1808_vm11, %v1798_v3, 2102212464  ;;  %v11173_v22 = vshrl.u32 %v11067_v21, 5  ;;  %v8608_v51 = vadd.s32 4294967294, %v1633_v17  ;;  %v1789_v10 = vshrl.u32 %v18385_v2, %v1788_v18 }
 0x114   : > { %v1984_v6 = vand.u32 2139095040, %v11163_v46  ;;  %v11179_v57 = vsub.s32 32, %v11090_v38  ;;  %v1473_v31 = vsel %vm1472_vm14, %v11092_v9, 0  ;;  %vm1160_vm15 = vcmp.gt.s32.totalorder %v11097_v47, 0 }
 0x115   : > { %9573 = vset.pattern.permute.xlu1 %v18384_v45  ;;  %v11157_v19 = vmul.u32.u64.low %v11141_v61, %v1816_v25  ;;  %v11158_v45 = vmul.u32.u64.high %v11141_v61, %v1816_v25, %v11157_v19  ;;  %18429 = vst [vmem:[#allocation58_spill] sm:$0xff] %v11173_v22  ;;  %v11186_v3 = vadd.f32 %v10779_v35, %v882_v34  ;;  %v11189_v21 = vshrl.u32 %v11095_v16, 5 }
 0x116   : > { %469 = vperm.xlu1 %9573, %v18410_v63   ;;  %18431 = vst [vmem:[#allocation59_spill] sm:$0xff] %v11179_v57  ;;  %v8598_v18 = vadd.s32 4294967169, %v1361_v13  ;;  %v1809_v17 = vsel %vm1805_vm10, %v1789_v10, %v1792_v43  ;;  %v1811_v25 = vsel %vm1807_vm12, %v1795_v15, %v1810_v7  ;;  %v11196_v53 = vsub.s32 32, %v11167_v20  ;;  %v18433_v43 = vld [vmem:[#allocation51_spill] sm:$0xff] }
 0x117   : > { %18432 = vst [vmem:[#allocation60_spill] sm:$0xff] %v11186_v3  ;;  %vm1056_vm0 = vcmp.gt.s32.totalorder %v1055_v55, 0  ;;  %v1831_v9 = vadd.s32 1, %v11158_v45  ;;  %v1985_v14 = vshrl.u32 %v1984_v6, 23  ;;  %vm8609_vm1 = vcmp.lt.s32.totalorder %v8608_v51, 0 }
 0x118   : > { %v1161_v34 = vsel %vm1160_vm15, %v11097_v47, 0  ;;  %v656_v16 = vmul.f32 %v10749_v59, %v10903_v58  ;;  %vm1830_vm2 = vc.u32 %v11154_v30, %v11157_v19  ;;  %v1880_v15 = vand.u32 2139095040, %v11186_v3 }
 0x119   : > { %v493_v13 = vmul.f32 %v10754_v60, %v18433_v43  ;;  %v1812_v7 = vsel %vm1806_vm13, %v1809_v17, %v1811_v25  ;;  %v657_v10 = vmul.f32 %v10749_v59, %v563_v40  ;;  %v11212_v47 = vshrl.u32 %v1473_v31, 5 }
 0x11a   : > { %474 = vperm.xlu1 %9573, %v18430_v32   ;;  %v1367_v58 = vadd.s32 1, %v8598_v18  ;;  %v492_v6 = vmul.f32 %v10754_v60, %v10871_v48  ;;  %v11218_v36 = vsel %vm8609_vm1, 0, %v8608_v51  ;;  %v11220_v23 = vand.u32 31, %v1161_v34 }
 0x11b   : > { %18434 = vst [vmem:[#allocation51_spill] sm:$0xff] %v11212_v47  ;;  %v1832_v62 = vsel %vm1830_vm2, %v1831_v9, %v11158_v45  ;;  %v8622_v17 = vadd.s32 4294967169, %v1985_v14  ;;  %v11223_v25 = vand.u32 31, %v1473_v31  ;;  %v1057_v40 = vsel %vm1056_vm0, %v1055_v55, 0  ;;  %v11235_v55 = vpop.permute.xlu1 %389 }
 0x11c   : > { %18435 = vst [vmem:[#allocation61_spill] sm:$0xff] %v11220_v23  ;;  %v688_v43 = vadd.f32 %v656_v16, %v492_v6  ;;  %v1828_v18 = vmul.u32 %v11141_v61, %v1812_v7  ;;  %v968_v48 = vshrl.u32 %v18426_v50, %v11196_v53  ;;  %v1881_v51 = vshrl.u32 %v1880_v15, 23 }
 0x11d   : > { %18436 = vst [vmem:[#allocation62_spill] sm:$0xff] %v11223_v25  ;;  %v689_v3 = vadd.f32 %v657_v10, %v493_v13  ;;  %v1641_v45 = vsub.s32 4294967266, %v11218_v36  ;;  %vm1368_vm3 = vcmp.gt.s32.totalorder %v1367_v58, 0  ;;  %v967_v61 = vshll.u32 %v18425_v27, %v11167_v20 }
 0x11e   : > { %9574 = vset.pattern.permute.xlu1 %v18375_v54  ;;  %v852_v54 = vmul.f32 %v10767_v0, %v11119_v28  ;;  %v971_v28 = vshrl.u32 %v18427_v49, %v11196_v53  ;;  %v11233_v14 = vadd.s32 %v1832_v62, %v1828_v18  ;;  %v11240_v9 = vand.u32 31, %v1057_v40 }
 0x11f   : > { %638 = vperm.xlu1 %9574, %v18430_v32   ;;  %v11243_v16 = vsub.s32 32, %v11220_v23  ;;  %v1991_v15 = vadd.s32 1, %v8622_v17  ;;  %vm976_vm4 = vcmp.lt.s32.totalorder %v11189_v21, 4  ;;  %v11249_v13 = vsub.s32 32, %v11223_v25 }
 0x120   : > { %v884_v31 = vadd.f32 %v852_v54, %v688_v43  ;;  %v11251_v7 = vshrl.u32 %v1057_v40, 5  ;;  %v11253_v10 = vor.u32 %v968_v48, %v967_v61  ;;  %v1369_v6 = vsel %vm1368_vm3, %v1367_v58, 0 }
 0x121   : > { %18437 = vst [vmem:[#allocation63_spill] sm:$0xff] %v11243_v16  ;;  %18438 = vst [vmem:[#allocation64_spill] sm:$0xff] %v11249_v13  ;;  %v8618_v54 = vadd.s32 4294967169, %v1881_v51  ;;  %v885_v62 = vadd.f32 %v11024_v29, %v689_v3  ;;  %v1642_v18 = vadd.s32 127, %v1641_v45  ;;  %v1834_v17 = vadd.s32 536870912, %v11233_v14  ;;  %v11275_v51 = vpop.permute.xlu1 %394 }
 0x122   : > { %v11262_v22 = vsub.s32 32, %v11240_v9  ;;  %v1176_v40 = vshrl.u32 %v18426_v50, %v11243_v16  ;;  %v1179_v58 = vshrl.u32 %v18427_v49, %v11243_v16  ;;  %vm1992_vm5 = vcmp.gt.s32.totalorder %v1991_v15, 0 }
 0x123   : > { %9576 = vset.pattern.permute.xlu1 %v18394_v52  ;;  %v970_v52 = vshll.u32 %v18426_v50, %v11167_v20  ;;  %v1621_v29 = vadd.s32 %v10899_v56, %v10897_v33  ;;  %v1637_v3 = vsub.s32 32, %v11218_v36  ;;  %v11271_v48 = vshrl.u32 %v1161_v34, 5 }
 0x124   : > { %826 = vperm.xlu1 %9576, %v18408_v42   ;;  %v11258_v42 = vadd.f32 %v10779_v35, %v884_v31  ;;  %v1175_v45 = vshll.u32 %v18425_v27, %v11220_v23  ;;  %v1178_v31 = vshll.u32 %v18426_v50, %v11220_v23  ;;  %v1887_v61 = vadd.s32 1, %v8618_v54 }
 0x125   : > { %v972_v43 = vor.u32 %v971_v28, %v970_v52  ;;  %18440 = vst [vmem:[#allocation66_spill] sm:$0xff] %v11271_v48  ;;  %v11273_v28 = vand.u32 31, %v1369_v6  ;;  %v11282_v52 = vadd.f32 %v10779_v35, %v885_v62  ;;  %v11284_v33 = vshrl.u32 %v1834_v17, 30 }
 0x126   : > { %18439 = vst [vmem:[#allocation65_spill] sm:$0xff] %v11258_v42  ;;  %v2088_v56 = vand.u32 2139095040, %v11258_v42  ;;  %v1993_v34 = vsel %vm1992_vm5, %v1991_v15, 0  ;;  %v11290_v38 = vsel %vm976_vm4, %v11253_v10, 920167782  ;;  %v11296_v5 = vor.u32 %v1176_v40, %v1175_v45 }
 0x127   : > { %18441 = vst [vmem:[#allocation67_spill] sm:$0xff] %v11273_v28  ;;  %18442 = vst [vmem:[#allocation68_spill] sm:$0xff] %v11282_v52  ;;  %v11294_v57 = vsel %vm976_vm4, %v972_v43, 1326507024  ;;  %v1180_v54 = vor.u32 %v1179_v58, %v1178_v31  ;;  %v1639_v62 = vshrl.u32 %v1621_v29, %v1637_v3  ;;  %vm1184_vm6 = vcmp.lt.s32.totalorder %v11271_v48, 4  ;;  %v575_v31 = vpop.permute.xlu1 %574 }
 0x128   : > { %830 = vperm.xlu1 %9576, %v18410_v63   ;;  %v1643_v63 = vshll.u32 %v1642_v18, 23  ;;  %18443 = vst [vmem:[#allocation69_spill] sm:$0xff] %v11284_v33  ;;  %18444 = vst [vmem:[#allocation70_spill] sm:$0xff] %v11296_v5  ;;  %v11300_v18 = vsub.s32 32, %v11273_v28  ;;  %v11304_v15 = vmul.f32 %v10754_v60, %v10865_v1  ;;  %vm1888_vm7 = vcmp.gt.s32.totalorder %v1887_v61, 0 }
 0x129   : > { %v11308_v17 = vmul.f32 %v10754_v60, %v10880_v4  ;;  %v1995_v43 = vand.u32 31, %v1993_v34  ;;  %v2192_v40 = vand.u32 2139095040, %v11282_v52  ;;  %v1638_v58 = vshll.u32 %v11075_v26, %v11218_v36 }
 0x12a   : > { %18445 = vst [vmem:[#allocation71_spill] sm:$0xff] %v11300_v18  ;;  %18446 = vst [vmem:[#allocation72_spill] sm:$0xff] %v11304_v15  ;;  %v1644_v29 = vor.u32 4788187, %v1643_v63  ;;  %v1836_v3 = vshll.u32 %v11284_v33, 30  ;;  %v2089_v45 = vshrl.u32 %v2088_v56, 23  ;;  %v11325_v52 = vmul.f32 %v10754_v60, %v10905_v39 }
 0x12b   : > { %18447 = vst [vmem:[#allocation73_spill] sm:$0xff] %v11308_v17  ;;  %v11317_v1 = vsel %vm1184_vm6, %v11296_v5, 920167782  ;;  %v11321_v4 = vsel %vm1184_vm6, %v1180_v54, 1326507024  ;;  %v11329_v63 = vmul.f32 %v10754_v60, %v10955_v41  ;;  %v1640_v26 = vor.u32 %v1639_v62, %v1638_v58 }
 0x12c   : > { %18448 = vst [vmem:[#allocation74_spill] sm:$0xff] %v11317_v1  ;;  %18449 = vst [vmem:[#allocation75_spill] sm:$0xff] %v11321_v4  ;;  %v1384_v36 = vshrl.u32 %v18426_v50, %v11300_v18  ;;  %v11335_v56 = vmul.f32 %v10754_v60, %v10990_v8  ;;  %v494_v54 = vmul.f32 %v10754_v60, %v11149_v44  ;;  %v1889_v39 = vsel %vm1888_vm7, %v1887_v61, 0 }
 0x12d   : > { %18450 = vst [vmem:[#allocation76_spill] sm:$0xff] %v11325_v52  ;;  %18451 = vst [vmem:[#allocation77_spill] sm:$0xff] %v11329_v63  ;;  %v11341_v42 = vshrl.u32 %v18427_v49, %v11300_v18  ;;  %v11344_v52 = vsub.s32 32, %v1995_v43  ;;  %v2193_v41 = vshrl.u32 %v2192_v40, 23  ;;  %v1645_v62 = vand.u32 2147483647, %v1644_v29 }
 0x12e   : > { %18452 = vst [vmem:[#allocation78_spill] sm:$0xff] %v11335_v56  ;;  %v1383_v58 = vshll.u32 %v18425_v27, %v11273_v28  ;;  %v11349_v63 = vsub.s32 %v11233_v14, %v1836_v3  ;;  %v8626_v8 = vadd.s32 4294967169, %v2089_v45  ;;  %v567_v56 = vpop.permute.xlu0 %566  ;;  %v11351_v33 = vshrl.u32 %v1369_v6, 5  ;;  %v763_v6 = vpop.permute.xlu1 %762 }
 0x12f   : > { %v11355_v44 = vshll.u32 %v18426_v50, %v11273_v28  ;;  %v11359_v61 = vmul.f32 %v10754_v60, %v11036_v37  ;;  %v1647_v29 = vcvt.s32.f32 %v1640_v26  ;;  %v11365_v14 = vshrl.u32 %v1889_v39, 5 }
 0x130   : > { %v11363_v17 = vor.u32 %v1384_v36, %v1383_v58  ;;  %v11367_v3 = vand.u32 31, %v1889_v39  ;;  %v2008_v28 = vshrl.u32 %v18426_v50, %v11344_v52  ;;  %v8630_v18 = vadd.s32 4294967169, %v2193_v41 }
 0x131   : > { %18453 = vst [vmem:[#allocation79_spill] sm:$0xff] %v11359_v61  ;;  %18454 = vst [vmem:[#allocation80_spill] sm:$0xff] %v11365_v14  ;;  %v658_v37 = vmul.f32 %v10749_v59, %v567_v56  ;;  %v11374_v61 = vmul.f32 %v1647_v29, %v1645_v62  ;;  %v1839_v26 = vsub.s32 0, %v11349_v63  ;;  %v2095_v36 = vadd.s32 1, %v8626_v8 }
 0x132   : > { %18455 = vst [vmem:[#allocation81_spill] sm:$0xff] %v11367_v3  ;;  %v2011_v58 = vshrl.u32 %v18427_v49, %v11344_v52  ;;  %v11380_v40 = vshrl.u32 %v1993_v34, 5  ;;  %v2007_v45 = vshll.u32 %v18425_v27, %v1995_v43  ;;  %v660_v32 = vmul.f32 %v10749_v59, %v575_v31  ;;  %v571_v14 = vpop.permute.xlu0 %570  ;;  %v767_v5 = vpop.permute.xlu1 %766 }
 0x133   : > { %v1999_v41 = vshrl.u32 %v18423_v12, %v11344_v52  ;;  %v18456_v56 = vmov 2131351028   ;;  %v2005_v8 = vshrl.u32 %v18425_v27, %v11344_v52  ;;  %v2010_v29 = vshll.u32 %v18426_v50, %v1995_v43 }
 0x134   : > { %v2002_v62 = vshrl.u32 %v18456_v56, %v11344_v52  ;;  %v1998_v39 = vshll.u32 %v18385_v2, %v1995_v43  ;;  %v2009_v34 = vor.u32 %v2008_v28, %v2007_v45  ;;  %v2199_v47 = vadd.s32 1, %v8630_v18 }
 0x135   : > { %v496_v25 = vmul.f32 %v10754_v60, %v11275_v51  ;;  %vm1392_vm8 = vcmp.lt.s32.totalorder %v11351_v33, 4  ;;  %v8615_v31 = vmin.u32 %v1839_v26, %v11349_v63  ;;  %v2001_v15 = vshll.u32 %v18423_v12, %v1995_v43 }
 0x136   : > { %v2004_v13 = vshll.u32 %v18456_v56, %v1995_v43  ;;  %v2012_v1 = vor.u32 %v2011_v58, %v2010_v29  ;;  %v18457_v4 = vand.u32 2147483647, %v11163_v46  ;;  %v659_v16 = vmul.f32 %v10749_v59, %v571_v14 }
 0x137   : > { %v692_v28 = vadd.f32 %v660_v32, %v496_v25  ;;  %v854_v18 = vmul.f32 %v10767_v0, %v763_v6  ;;  %v2000_v45 = vor.u32 %v1999_v41, %v1998_v39  ;;  %v2003_v51 = vor.u32 %v2002_v62, %v2001_v15 }
 0x138   : > { %v1988_v48 = vand.u32 8388607, %v18457_v4  ;;  %v2006_v23 = vor.u32 %v2005_v8, %v2004_v13  ;;  %vm2016_vm9 = vcmp.lt.s32.totalorder %v11380_v40, 4  ;;  %vm2096_vm10 = vcmp.gt.s32.totalorder %v2095_v36, 0  ;;  %v18458_v4 = vld [vmem:[#allocation45_spill] sm:$0xff] }
 0x139   : > { %v2022_v26 = vsel %vm2016_vm9, %v2009_v34, 920167782  ;;  %v495_v43 = vmul.f32 %v10754_v60, %v11235_v55  ;;  %v855_v58 = vmul.f32 %v10767_v0, %v767_v5  ;;  %vm1567_vm11 = vcmp.lt.s32.totalorder %v18458_v4, 0  ;;  %v18459_v60 = vld [vmem:[#allocation36_spill] sm:$0xff] }
 0x13a   : > { %v1841_v59 = vclz %v8615_v31  ;;  %v2026_v32 = vsel %vm2016_vm9, %v2012_v1, 1326507024  ;;  %vm2200_vm12 = vcmp.gt.s32.totalorder %v2199_v47, 0  ;;  %v690_v25 = vadd.f32 %v658_v37, %v494_v54  ;;  %v400_v37 = vpop.permute.xlu1 %399 }
 0x13b   : > { %v1989_v13 = vor.u32 8388608, %v1988_v48  ;;  %vm2013_vm13 = vcmp.lt.s32.totalorder %v11380_v40, 1  ;;  %vm2015_vm14 = vcmp.lt.s32.totalorder %v11380_v40, 3  ;;  %v691_v15 = vadd.f32 %v659_v16, %v495_v43 }
 0x13c   : > { %v2021_v14 = vsel %vm2013_vm13, %v2000_v45, %v2003_v51  ;;  %v2023_v0 = vsel %vm2015_vm14, %v2006_v23, %v2022_v26  ;;  %v888_v5 = vadd.f32 %v18459_v60, %v692_v28  ;;  %v886_v55 = vadd.f32 %v854_v18, %v690_v25 }
 0x13d   : > { %v2025_v1 = vsel %vm2013_vm13, %v2003_v51, %v2006_v23  ;;  %v2027_v48 = vsel %vm2015_vm14, %v2009_v34, %v2026_v32  ;;  %v2201_v54 = vsel %vm2200_vm12, %v2199_v47, 0  ;;  %v887_v6 = vadd.f32 %v855_v58, %v691_v15 }
 0x13e   : > { %v11423_v16 = vsub.s32 32, %v11367_v3  ;;  %v8616_v39 = vadd.s32 4294967294, %v1841_v59  ;;  %v2097_v41 = vsel %vm2096_vm10, %v2095_v36, 0  ;;  %vm2014_vm15 = vcmp.lt.s32.totalorder %v11380_v40, 2  ;;  %v579_v15 = vpop.permute.xlu1 %578 }
 0x13f   : > { %v1649_v62 = vxor.u32 2147483648, %v11374_v61  ;;  %v11431_v8 = vsel %vm1392_vm8, %v11363_v17, 920167782  ;;  %v18461_v47 = vor.u32 %v11341_v42, %v11355_v44  ;;  %v2024_v34 = vsel %vm2014_vm15, %v2021_v14, %v2023_v0 }
 0x140   : > { %18460 = vst [vmem:[#allocation36_spill] sm:$0xff] %v11423_v16  ;;  %v2028_v36 = vsel %vm2014_vm15, %v2025_v1, %v2027_v48  ;;  %v11444_v31 = vshll.u32 %v1989_v13, 8  ;;  %v11446_v28 = vand.u32 31, %v2201_v54  ;;  %v11449_v18 = vadd.f32 %v10779_v35, %v886_v55  ;;  %v18483_v16 = vld [vmem:[#allocation41_spill] sm:$0xff] }
 0x141   : > { %v11438_v29 = vsel %vm1392_vm8, %v18461_v47, 1326507024  ;;  %v11451_v26 = vand.u32 31, %v2097_v41  ;;  %v2018_v42 = vsel %vm2016_vm9, %v2006_v23, 2102212464  ;;  %v11456_v44 = vadd.f32 %v10779_v35, %v888_v5 }
 0x142   : > { %18462 = vst [vmem:[#allocation82_spill] sm:$0xff] %v11446_v28  ;;  %18463 = vst [vmem:[#allocation83_spill] sm:$0xff] %v11449_v18  ;;  %v11459_v43 = vadd.f32 %v10779_v35, %v887_v6  ;;  %vm8617_vm0 = vcmp.lt.s32.totalorder %v8616_v39, 0  ;;  %v1997_v58 = vshrl.u32 %v18385_v2, %v11344_v52  ;;  %v11471_v25 = vsel %vm1567_vm11, %v1649_v62, %v11374_v61 }
 0x143   : > { %18464 = vst [vmem:[#allocation84_spill] sm:$0xff] %v11451_v26  ;;  %18465 = vst [vmem:[#allocation85_spill] sm:$0xff] %v11456_v44  ;;  %v11464_v59 = vmul.u32.u64.low %v11444_v31, %v2024_v34  ;;  %v11465_v32 = vmul.u32.u64.high %v11444_v31, %v2024_v34, %v11464_v59  ;;  %v11473_v23 = vshrl.u32 %v2097_v41, 5  ;;  %v2019_v14 = vsel %vm2015_vm14, %v2003_v51, %v2018_v42  ;;  %v10277_v51 = vld [vmem:[%s18038_s1] ss:$0 sm:$0xff] }
 0x144   : > { %18466 = vst [vmem:[#allocation86_spill] sm:$0xff] %v11459_v43  ;;  %18467 = vst [vmem:[#allocation87_spill] sm:$0xff] %v11471_v25  ;;  %v11476_v13 = vmul.u32.u64.low %v11444_v31, %v2028_v36  ;;  %v11477_v35 = vmul.u32.u64.high %v11444_v31, %v2028_v36, %v11476_v13  ;;  %v2017_v52 = vsel %vm2013_vm13, %v1997_v58, %v2000_v45  ;;  %v11484_v0 = vsub.s32 32, %v11446_v28 }
 0x145   : > { %18468 = vst [vmem:[#allocation88_spill] sm:$0xff] %v11473_v23  ;;  %v2296_v60 = vand.u32 2139095040, %v11449_v18  ;;  %v1829_v61 = vadd.s32 %v11157_v19, %v11154_v30  ;;  %v11489_v5 = vsel %vm8617_vm0, 0, %v8616_v39  ;;  %v11492_v55 = vsub.s32 32, %v11451_v26  ;;  %v11506_v30 = vld [vmem:[%s18038_s1 + $0x1] ss:$0 sm:$0xff] }
 0x146   : > { %18469 = vst [vmem:[#allocation89_spill] sm:$0xff] %v11484_v0  ;;  %v2400_v1 = vand.u32 2139095040, %v11459_v43  ;;  %v11495_v48 = vshrl.u32 %v2201_v54, 5  ;;  %v2504_v45 = vand.u32 2139095040, %v11456_v44  ;;  %v11501_v6 = vmul.f32 %v10277_v51, %v400_v37 }
 0x147   : > { %18470 = vst [vmem:[#allocation90_spill] sm:$0xff] %v11492_v55  ;;  %v11509_v19 = vmul.f32 %v11506_v30, %v579_v15  ;;  %v2020_v54 = vsel %vm2014_vm15, %v2017_v52, %v2019_v14  ;;  %v959_v39 = vshrl.u32 %v18423_v12, %v11196_v53  ;;  %v962_v41 = vshrl.u32 %v18456_v56, %v11196_v53 }
 0x148   : > { %18471 = vst [vmem:[#allocation91_spill] sm:$0xff] %v11495_v48  ;;  %v965_v37 = vshrl.u32 %v18425_v27, %v11196_v53  ;;  %v1845_v62 = vsub.s32 32, %v11489_v5  ;;  %v2215_v47 = vshll.u32 %v18425_v27, %v11446_v28  ;;  %v2216_v34 = vshrl.u32 %v18426_v50, %v11484_v0 }
 0x149   : > { %v2297_v36 = vshrl.u32 %v2296_v60, 23  ;;  %v2401_v40 = vshrl.u32 %v2400_v1, 23  ;;  %v958_v42 = vshll.u32 %v18385_v2, %v11167_v20  ;;  %v961_v58 = vshll.u32 %v18423_v12, %v11167_v20 }
 0x14a   : > { %v964_v13 = vshll.u32 %v18456_v56, %v11167_v20  ;;  %v1849_v15 = vsub.s32 4294967266, %v11489_v5  ;;  %v2036_v52 = vmul.u32 %v11444_v31, %v2020_v54  ;;  %v2039_v14 = vadd.s32 1, %v11465_v32 }
 0x14b   : > { %v18472_v51 = vand.u32 2147483647, %v10953_v11  ;;  %vm2038_vm1 = vc.u32 %v11477_v35, %v11464_v59  ;;  %v960_v60 = vor.u32 %v959_v39, %v958_v42  ;;  %v963_v1 = vor.u32 %v962_v41, %v961_v58 }
 0x14c   : > { %v966_v18 = vor.u32 %v965_v37, %v964_v13  ;;  %v1846_v46 = vshll.u32 %v11349_v63, %v11489_v5  ;;  %v11539_v23 = vor.u32 %v2216_v34, %v2215_v47  ;;  %v2218_v20 = vshll.u32 %v18426_v50, %v11446_v28 }
 0x14d   : > { %v948_v44 = vand.u32 8388607, %v18472_v51  ;;  %v2219_v31 = vshrl.u32 %v18427_v49, %v11484_v0  ;;  %v1847_v54 = vshrl.u32 %v1829_v61, %v1845_v62  ;;  %vm2224_vm2 = vcmp.lt.s32.totalorder %v11495_v48, 4 }
 0x14e   : > { %18473 = vst [vmem:[#allocation92_spill] sm:$0xff] %v11539_v23  ;;  %v2505_v51 = vshrl.u32 %v2504_v45, 23  ;;  %v8638_v26 = vadd.s32 4294967169, %v2401_v40  ;;  %v1850_v55 = vadd.s32 127, %v1849_v15  ;;  %v2040_v39 = vsel %vm2038_vm1, %v2039_v14, %v11465_v32  ;;  %v18475_v14 = vld [vmem:[#allocation34_spill] sm:$0xff] }
 0x14f   : > { %v949_v41 = vor.u32 8388608, %v948_v44  ;;  %vm973_vm3 = vcmp.lt.s32.totalorder %v11189_v21, 1  ;;  %v957_v63 = vshrl.u32 %v18385_v2, %v11196_v53  ;;  %vm975_vm5 = vcmp.lt.s32.totalorder %v11189_v21, 3 }
 0x150   : > { %v978_v5 = vsel %vm976_vm4, %v966_v18, 2102212464  ;;  %v981_v37 = vsel %vm973_vm3, %v960_v60, %v963_v1  ;;  %vm974_vm7 = vcmp.lt.s32.totalorder %v11189_v21, 2  ;;  %v983_v61 = vsel %vm975_vm5, %v966_v18, %v11290_v38 }
 0x151   : > { %v985_v45 = vsel %vm973_vm3, %v963_v1, %v966_v18  ;;  %v987_v32 = vsel %vm975_vm5, %v11253_v10, %v11294_v57  ;;  %v2220_v44 = vor.u32 %v2219_v31, %v2218_v20  ;;  %v8642_v62 = vadd.s32 4294967169, %v2505_v51 }
 0x152   : > { %v2407_v47 = vadd.s32 1, %v8638_v26  ;;  %v988_v53 = vsel %vm974_vm7, %v985_v45, %v987_v32  ;;  %v977_v34 = vsel %vm973_vm3, %v957_v63, %v960_v60  ;;  %v979_v40 = vsel %vm975_vm5, %v963_v1, %v978_v5 }
 0x153   : > { %v984_v42 = vsel %vm974_vm7, %v981_v37, %v983_v61  ;;  %v989_v58 = vshll.u32 %v949_v41, 8  ;;  %v1851_v13 = vshll.u32 %v1850_v55, 23  ;;  %v11563_v38 = vadd.s32 %v11464_v59, %v11477_v35 }
 0x154   : > { %v11565_v18 = vadd.s32 %v2040_v39, %v2036_v52  ;;  %v11570_v57 = vsel %vm2224_vm2, %v11539_v23, 920167782  ;;  %v11572_v10 = vor.u32 %v1847_v54, %v1846_v46  ;;  %v18193_v60 = vand.u32 2147483647, %v18475_v14 }
 0x155   : > { %18474 = vst [vmem:[#allocation93_spill] sm:$0xff] %v11570_v57  ;;  %v11574_v26 = vmul.u32.u64.low %v989_v58, %v988_v53  ;;  %v11575_v15 = vmul.u32.u64.high %v989_v58, %v988_v53, %v11574_v26  ;;  %vm2408_vm4 = vcmp.gt.s32.totalorder %v2407_v47, 0  ;;  %v980_v55 = vsel %vm974_vm7, %v977_v34, %v979_v40 }
 0x156   : > { %v11580_v59 = vmul.u32.u64.low %v989_v58, %v984_v42  ;;  %v11581_v35 = vmul.u32.u64.high %v989_v58, %v984_v42, %v11580_v59  ;;  %v11586_v52 = vsel %vm2224_vm2, %v2220_v44, 1326507024  ;;  %v11588_v1 = vadd.s32 1, %v8642_v62 }
 0x157   : > { %18476 = vst [vmem:[#allocation34_spill] sm:$0xff] %v11586_v52  ;;  %v8634_v46 = vadd.s32 4294967169, %v2297_v36  ;;  %v18194_v20 = vand.u32 2147483647, %v11459_v43  ;;  %v11591_v31 = vor.u32 4788187, %v1851_v13  ;;  %v1062_v21 = vshll.u32 %v18385_v2, %v11240_v9 }
 0x158   : > { %v2042_v54 = vadd.s32 536870912, %v11565_v18  ;;  %v1063_v51 = vshrl.u32 %v18423_v12, %v11262_v22  ;;  %v2409_v39 = vsel %vm2408_vm4, %v2407_v47, 0  ;;  %v996_v41 = vmul.u32 %v989_v58, %v980_v55 }
 0x159   : > { %vm998_vm9 = vc.u32 %v11575_v15, %v11580_v59  ;;  %v1052_v36 = vand.u32 8388607, %v18193_v60  ;;  %v999_v63 = vadd.s32 1, %v11581_v35  ;;  %v1065_v37 = vshll.u32 %v18423_v12, %v11240_v9 }
 0x15a   : > { %v1064_v5 = vor.u32 %v1063_v51, %v1062_v21  ;;  %v1066_v61 = vshrl.u32 %v18456_v56, %v11262_v22  ;;  %v1068_v45 = vshll.u32 %v18456_v56, %v11240_v9  ;;  %v1069_v32 = vshrl.u32 %v18425_v27, %v11262_v22 }
 0x15b   : > { %v1071_v44 = vshll.u32 %v18425_v27, %v11240_v9  ;;  %v1072_v62 = vshrl.u32 %v18426_v50, %v11262_v22  ;;  %v1000_v47 = vsel %vm998_vm9, %v999_v63, %v11581_v35  ;;  %v1074_v34 = vshll.u32 %v18426_v50, %v11240_v9 }
 0x15c   : > { %v1067_v53 = vor.u32 %v1066_v61, %v1065_v37  ;;  %v1075_v40 = vshrl.u32 %v18427_v49, %v11262_v22  ;;  %v11622_v42 = vand.u32 8388607, %v18194_v20  ;;  %v1001_v58 = vadd.s32 %v1000_v47, %v996_v41 }
 0x15d   : > { %v1070_v13 = vor.u32 %v1069_v32, %v1068_v45  ;;  %v1073_v26 = vor.u32 %v1072_v62, %v1071_v44  ;;  %v11624_v55 = vshrl.u32 %v2042_v54, 30  ;;  %v2411_v21 = vand.u32 31, %v2409_v39 }
 0x15e   : > { %v1053_v51 = vor.u32 8388608, %v1052_v36  ;;  %v1076_v60 = vor.u32 %v1075_v40, %v1074_v34  ;;  %v1002_v35 = vadd.s32 536870912, %v1001_v58  ;;  %v1061_v63 = vshrl.u32 %v18385_v2, %v11262_v22 }
 0x15f   : > { %18477 = vst [vmem:[#allocation94_spill] sm:$0xff] %v11624_v55  ;;  %vm1077_vm10 = vcmp.lt.s32.totalorder %v11251_v7, 1  ;;  %vm1080_vm12 = vcmp.lt.s32.totalorder %v11251_v7, 4  ;;  %vm1078_vm13 = vcmp.lt.s32.totalorder %v11251_v7, 2  ;;  %vm1079_vm14 = vcmp.lt.s32.totalorder %v11251_v7, 3 }
 0x160   : > { %v1085_v9 = vsel %vm1077_vm10, %v1064_v5, %v1067_v53  ;;  %v1086_v54 = vsel %vm1080_vm12, %v1073_v26, 920167782  ;;  %v1003_v41 = vshrl.u32 %v1002_v35, 30  ;;  %v1082_v37 = vsel %vm1080_vm12, %v1070_v13, 2102212464 }
 0x161   : > { %v1087_v36 = vsel %vm1079_vm14, %v1070_v13, %v1086_v54  ;;  %v1089_v61 = vsel %vm1077_vm10, %v1067_v53, %v1070_v13  ;;  %v11636_v45 = vsub.s32 32, %v2411_v21  ;;  %v1090_v32 = vsel %vm1080_vm12, %v1076_v60, 1326507024 }
 0x162   : > { %v1088_v22 = vsel %vm1078_vm13, %v1085_v9, %v1087_v36  ;;  %v1093_v44 = vshll.u32 %v1053_v51, 8  ;;  %v1004_v47 = vshll.u32 %v1003_v41, 30  ;;  %v1081_v34 = vsel %vm1077_vm10, %v1061_v63, %v1064_v5 }
 0x163   : > { %v1091_v40 = vsel %vm1079_vm14, %v1073_v26, %v1090_v32  ;;  %v1083_v35 = vsel %vm1079_vm14, %v1067_v53, %v1082_v37  ;;  %v2044_v43 = vshll.u32 %v11624_v55, 30  ;;  %v11650_v9 = vadd.s32 1, %v8634_v46 }
 0x164   : > { %v1092_v54 = vsel %vm1078_vm13, %v1089_v61, %v1091_v40  ;;  %v11645_v20 = vmul.u32.u64.low %v1093_v44, %v1088_v22  ;;  %v11646_v13 = vmul.u32.u64.high %v1093_v44, %v1088_v22, %v11645_v20  ;;  %v2405_v60 = vor.u32 8388608, %v11622_v42 }
 0x165   : > { %vm943_vm15 = vcmp.lt.s32.totalorder %v10953_v11, 0  ;;  %v11654_v51 = vsub.s32 %v1001_v58, %v1004_v47  ;;  %v11656_v5 = vshrl.u32 %v2409_v39, 5  ;;  %v2415_v53 = vshrl.u32 %v18423_v12, %v11636_v45 }
 0x166   : > { %v11660_v26 = vmul.u32.u64.low %v1093_v44, %v1092_v54  ;;  %v11661_v63 = vmul.u32.u64.high %v1093_v44, %v1092_v54, %v11660_v26  ;;  %v2418_v37 = vshrl.u32 %v18456_v56, %v11636_v45  ;;  %v2424_v46 = vshrl.u32 %v18426_v50, %v11636_v45 }
 0x167   : > { %v1007_v42 = vsub.s32 0, %v11654_v51  ;;  %v1084_v58 = vsel %vm1078_vm13, %v1081_v34, %v1083_v35  ;;  %v2414_v39 = vshll.u32 %v18385_v2, %v2411_v21  ;;  %v2417_v36 = vshll.u32 %v18423_v12, %v2411_v21 }
 0x168   : > { %v2421_v61 = vshrl.u32 %v18425_v27, %v11636_v45  ;;  %v18478_v22 = vand.u32 2147483647, %v10953_v11  ;;  %v1103_v47 = vadd.s32 1, %v11646_v13  ;;  %v2420_v40 = vshll.u32 %v18456_v56, %v2411_v21 }
 0x169   : > { %v2423_v7 = vshll.u32 %v18425_v27, %v2411_v21  ;;  %v2427_v34 = vshrl.u32 %v18427_v49, %v11636_v45  ;;  %v8583_v35 = vmin.u32 %v1007_v42, %v11654_v51  ;;  %v11686_v54 = vor.u32 %v2415_v53, %v2414_v39  ;;  %v18481_v39 = vld [vmem:[#allocation42_spill] sm:$0xff] }
 0x16a   : > { %vm11676_vm0 = vcmp.le.f32.partialorder %v18478_v22, 0.7853982  ;;  %v1027_v26 = vsub.s32 4, %v1003_v41  ;;  %v1100_v62 = vmul.u32 %v1093_v44, %v1084_v58  ;;  %vm1102_vm1 = vc.u32 %v11661_v63, %v11645_v20 }
 0x16b   : > { %v11690_v22 = vor.u32 %v2418_v37, %v2417_v36  ;;  %v11692_v57 = vor.u32 %v2424_v46, %v2423_v7  ;;  %v1009_v23 = vclz %v8583_v35  ;;  %v1104_v52 = vsel %vm1102_vm1, %v1103_v47, %v11646_v13  ;;  %v18482_v35 = vld [vmem:[#allocation46_spill] sm:$0xff] }
 0x16c   : > { %v11695_v48 = vor.u32 %v2421_v61, %v2420_v40  ;;  %v11697_v0 = vshll.u32 %v2405_v60, 8  ;;  %v11701_v53 = vadd.f32 %v11509_v19, %v11501_v6  ;;  %v1105_v42 = vadd.s32 %v1104_v52, %v1100_v62 }
 0x16d   : > { %v11704_v44 = vsub.s32 %v11565_v18, %v2044_v43  ;;  %v2426_v37 = vshll.u32 %v18426_v50, %v2411_v21  ;;  %vm2429_vm3 = vcmp.lt.s32.totalorder %v11656_v5, 1  ;;  %v8584_v46 = vadd.s32 4294967294, %v1009_v23 }
 0x16e   : > { %vm2431_vm5 = vcmp.lt.s32.totalorder %v11656_v5, 3  ;;  %vm2432_vm7 = vcmp.lt.s32.totalorder %v11656_v5, 4  ;;  %v1028_v13 = vsel %vm943_vm15, %v1027_v26, %v1003_v41  ;;  %v1106_v60 = vadd.s32 536870912, %v1105_v42 }
 0x16f   : > { %v2428_v58 = vor.u32 %v2427_v34, %v2426_v37  ;;  %v11716_v43 = vsel %vm2429_vm3, %v11686_v54, %v11690_v22  ;;  %v2438_v6 = vsel %vm2432_vm7, %v11692_v57, 920167782  ;;  %vm8585_vm4 = vcmp.lt.s32.totalorder %v8584_v46, 0 }
 0x170   : > { %v11725_v23 = vsel %vm2429_vm3, %v11690_v22, %v11695_v48  ;;  %v997_v19 = vadd.s32 %v11580_v59, %v11575_v15  ;;  %v1012_v18 = vsel %vm8585_vm4, 0, %v8584_v46  ;;  %v11729_v52 = vshrl.u32 %v1106_v60, 30 }
 0x171   : > { %v1013_v21 = vsub.s32 32, %v1012_v18  ;;  %v1017_v41 = vsub.s32 4294967266, %v1012_v18  ;;  %v1030_v62 = vsel %vm11676_vm0, 0, %v1028_v13  ;;  %v1271_v36 = vshrl.u32 %v18423_v12, %v18481_v39 }
 0x172   : > { %v1108_v61 = vshll.u32 %v11729_v52, 30  ;;  %v1274_v47 = vshrl.u32 %v18456_v56, %v18481_v39  ;;  %v1277_v40 = vshrl.u32 %v18425_v27, %v18481_v39  ;;  %v1280_v15 = vshrl.u32 %v18426_v50, %v18481_v39 }
 0x173   : > { %v1014_v59 = vshll.u32 %v11654_v51, %v1012_v18  ;;  %v1015_v7 = vshrl.u32 %v997_v19, %v1013_v21  ;;  %v1018_v34 = vadd.s32 127, %v1017_v41  ;;  %v1279_v26 = vshll.u32 %v18425_v27, %v18482_v35 }
 0x174   : > { %v11745_v37 = vsub.s32 %v1105_v42, %v1108_v61  ;;  %v1270_v46 = vshll.u32 %v18385_v2, %v18482_v35  ;;  %v1273_v13 = vshll.u32 %v18423_v12, %v18482_v35  ;;  %v1283_v60 = vshrl.u32 %v18427_v49, %v18481_v39 }
 0x175   : > { %v1016_v28 = vor.u32 %v1015_v7, %v1014_v59  ;;  %v1019_v55 = vshll.u32 %v1018_v34, 23  ;;  %v1276_v51 = vshll.u32 %v18456_v56, %v18482_v35  ;;  %v1281_v19 = vor.u32 %v1280_v15, %v1279_v26 }
 0x176   : > { %v11758_v42 = vsel %vm2431_vm5, %v11695_v48, %v2438_v6  ;;  %v2442_v18 = vsel %vm2432_vm7, %v2428_v58, 1326507024  ;;  %v1111_v21 = vsub.s32 0, %v11745_v37  ;;  %v1282_v41 = vshll.u32 %v18426_v50, %v18482_v35  ;;  %v11767_v6 = vpop.permute.xlu1 %582 }
 0x177   : > { %v1020_v61 = vor.u32 4788187, %v1019_v55  ;;  %v1272_v59 = vor.u32 %v1271_v36, %v1270_v46  ;;  %v1275_v7 = vor.u32 %v1274_v47, %v1273_v13  ;;  %v1278_v34 = vor.u32 %v1277_v40, %v1276_v51 }
 0x178   : > { %v1034_v3 = vadd.s32 3, %v1030_v62  ;;  %v8587_v15 = vmin.u32 %v1111_v21, %v11745_v37  ;;  %v1284_v26 = vor.u32 %v1283_v60, %v1282_v41  ;;  %vm1288_vm9 = vcmp.lt.s32.totalorder %v18483_v16, 4  ;;  %v18485_v41 = vld [vmem:[#allocation56_spill] sm:$0xff] }
 0x179   : > { %v1021_v25 = vand.u32 2147483647, %v1020_v61  ;;  %v1023_v4 = vcvt.s32.f32 %v1016_v28  ;;  %v1269_v58 = vshrl.u32 %v18385_v2, %v18481_v39  ;;  %v1294_v35 = vsel %vm1288_vm9, %v1281_v19, 920167782 }
 0x17a   : > { %v1101_v55 = vadd.s32 %v11645_v20, %v11661_v63  ;;  %v1113_v36 = vclz %v8587_v15  ;;  %vm1285_vm10 = vcmp.lt.s32.totalorder %v18483_v16, 1  ;;  %vm1287_vm12 = vcmp.lt.s32.totalorder %v18483_v16, 3 }
 0x17b   : > { %v1024_v62 = vmul.f32 %v1023_v4, %v1021_v25  ;;  %v1293_v47 = vsel %vm1285_vm10, %v1272_v59, %v1275_v7  ;;  %v1295_v40 = vsel %vm1287_vm12, %v1278_v34, %v1294_v35  ;;  %v1297_v28 = vsel %vm1285_vm10, %v1275_v7, %v1278_v34 }
 0x17c   : > { %v8588_v46 = vadd.s32 4294967294, %v1113_v36  ;;  %vm1286_vm13 = vcmp.lt.s32.totalorder %v18483_v16, 2  ;;  %v1289_v39 = vsel %vm1285_vm10, %v1269_v58, %v1272_v59  ;;  %v1298_v13 = vsel %vm1288_vm9, %v1284_v26, 1326507024  ;;  %v11793_v59 = vpop.permute.xlu1 %414 }
 0x17d   : > { %v1025_v60 = vxor.u32 2147483648, %v1024_v62  ;;  %v1290_v20 = vsel %vm1288_vm9, %v1278_v34, 2102212464  ;;  %v1299_v63 = vsel %vm1287_vm12, %v1281_v19, %v1298_v13  ;;  %v18484_v4 = vor.u32 8388608, %v11087_v24  ;;  %18486 = vst [vmem:[#allocation42_spill] sm:$0xff] %v11793_v59  ;;  %v18493_v59 = vld [vmem:[#allocation66_spill] sm:$0xff] }
 0x17e   : > { %vm8589_vm14 = vcmp.lt.s32.totalorder %v8588_v46, 0  ;;  %v1296_v51 = vsel %vm1286_vm13, %v1293_v47, %v1295_v40  ;;  %v1300_v21 = vsel %vm1286_vm13, %v1297_v28, %v1299_v63  ;;  %v18210_v61 = vand.u32 2147483647, %v18485_v41 }
 0x17f   : > { %v1301_v25 = vshll.u32 %v18484_v4, 8  ;;  %v1026_v34 = vsel %vm943_vm15, %v1025_v60, %v1024_v62  ;;  %v1116_v15 = vsel %vm8589_vm14, 0, %v8588_v46  ;;  %v1291_v36 = vsel %vm1287_vm12, %v1275_v7, %v1290_v20  ;;  %v18487_v20 = vld [vmem:[#allocation61_spill] sm:$0xff]  ;;  %v18488_v4 = vld [vmem:[#allocation63_spill] sm:$0xff] }
 0x180   : > { %v1029_v24 = vsel %vm11676_vm0, %v10953_v11, %v1026_v34  ;;  %v1117_v58 = vsub.s32 32, %v1116_v15  ;;  %v1121_v35 = vsub.s32 4294967266, %v1116_v15  ;;  %v11808_v47 = vsel %vm2431_vm5, %v11692_v57, %v2442_v18  ;;  %v11829_v16 = vpop.permute.xlu1 %590 }
 0x181   : > { %v11797_v26 = vmul.u32.u64.low %v1301_v25, %v1300_v21  ;;  %v11798_v19 = vmul.u32.u64.high %v1301_v25, %v1300_v21, %v11797_v26  ;;  %9637 = vcosq.f32 %v1029_v24  ;;  %v1118_v28 = vshll.u32 %v11745_v37, %v1116_v15  ;;  %18489 = vst [vmem:[#allocation46_spill] sm:$0xff] %v11829_v16 }
 0x182   : > { %v11810_v62 = vmul.u32.u64.low %v1301_v25, %v1296_v51  ;;  %v11811_v40 = vmul.u32.u64.high %v1301_v25, %v1296_v51, %v11810_v62  ;;  %9639 = vsinq.f32 %v1029_v24  ;;  %v1119_v32 = vshrl.u32 %v1101_v55, %v1117_v58 }
 0x183   : > { %v1122_v46 = vadd.s32 127, %v1121_v35  ;;  %v11815_v13 = vand.u32 3, %v1034_v3  ;;  %v1292_v7 = vsel %vm1286_vm13, %v1289_v39, %v1291_v36  ;;  %v1156_v57 = vand.u32 8388607, %v18210_v61 }
 0x184   : > { %vm1310_vm15 = vc.u32 %v11798_v19, %v11810_v62  ;;  %v1120_v18 = vor.u32 %v1119_v32, %v1118_v28  ;;  %v1166_v63 = vshll.u32 %v18385_v2, %v18487_v20  ;;  %v1167_v37 = vshrl.u32 %v18423_v12, %v18488_v4 }
 0x185   : > { %v1123_v60 = vshll.u32 %v1122_v46, 23  ;;  %vm1047_vm0 = vcmp.lt.s32.totalorder %v18475_v14, 0  ;;  %v1131_v3 = vsub.s32 4, %v11729_v52  ;;  %v1311_v55 = vadd.s32 1, %v11811_v40 }
 0x186   : > { %v1169_v39 = vshll.u32 %v18423_v12, %v18487_v20  ;;  %v1170_v51 = vshrl.u32 %v18456_v56, %v18488_v4  ;;  %v18490_v21 = vand.u32 2147483647, %v18475_v14  ;;  %v1308_v26 = vmul.u32 %v1301_v25, %v1292_v7 }
 0x187   : > { %v1124_v15 = vor.u32 4788187, %v1123_v60  ;;  %v1157_v24 = vor.u32 8388608, %v1156_v57  ;;  %v1168_v58 = vor.u32 %v1167_v37, %v1166_v63  ;;  %v1312_v35 = vsel %vm1310_vm15, %v1311_v55, %v11811_v40  ;;  %v18496_v55 = vld [vmem:[#allocation74_spill] sm:$0xff] }
 0x188   : > { %vm11838_vm1 = vcmp.le.f32.partialorder %v18490_v21, 0.7853982  ;;  %v1171_v36 = vor.u32 %v1170_v51, %v1169_v39  ;;  %v1172_v28 = vshll.u32 %v18456_v56, %v18487_v20  ;;  %v1173_v32 = vshrl.u32 %v18425_v27, %v18488_v4  ;;  %v18494_v20 = vld [vmem:[#allocation75_spill] sm:$0xff] }
 0x189   : > { %v1125_v46 = vand.u32 2147483647, %v1124_v15  ;;  %v1127_v21 = vcvt.s32.f32 %v1120_v18  ;;  %v1313_v61 = vadd.s32 %v1312_v35, %v1308_v26  ;;  %vm1181_vm4 = vcmp.lt.s32.totalorder %v18493_v59, 1  ;;  %v18495_v18 = vld [vmem:[#allocation70_spill] sm:$0xff]  ;;  %v775_v15 = vpop.permute.xlu1 %774 }
 0x18a   : > { %vm1037_vm9 = vcmp.eq.s32.totalorder %v11815_v13, 0  ;;  %v1165_v25 = vshrl.u32 %v18385_v2, %v18488_v4  ;;  %v1174_v7 = vor.u32 %v1173_v32, %v1172_v28  ;;  %vm1183_vm10 = vcmp.lt.s32.totalorder %v18493_v59, 3 }
 0x18b   : > { %v1189_v40 = vsel %vm1181_vm4, %v1168_v58, %v1171_v36  ;;  %v1128_v57 = vmul.f32 %v1127_v21, %v1125_v46  ;;  %v1314_v60 = vadd.s32 536870912, %v1313_v61  ;;  %vm1182_vm12 = vcmp.lt.s32.totalorder %v18493_v59, 2 }
 0x18c   : > { %v1195_v63 = vsel %vm1183_vm10, %v18495_v18, %v18494_v20  ;;  %v1186_v37 = vsel %vm1184_vm6, %v1174_v7, 2102212464  ;;  %v1191_v39 = vsel %vm1183_vm10, %v1174_v7, %v18496_v55  ;;  %v1193_v4 = vsel %vm1181_vm4, %v1171_v36, %v1174_v7 }
 0x18d   : > { %v1197_v51 = vshll.u32 %v1157_v24, 8  ;;  %v1129_v26 = vxor.u32 2147483648, %v1128_v57  ;;  %v11865_v35 = vshrl.u32 %v1314_v60, 30  ;;  %v1185_v28 = vsel %vm1181_vm4, %v1165_v25, %v1168_v58  ;;  %v11884_v58 = vld [vmem:[%s18038_s1 + $0x2] ss:$0 sm:$0xff] }
 0x18e   : > { %v1192_v32 = vsel %vm1182_vm12, %v1189_v40, %v1191_v39  ;;  %v1187_v46 = vsel %vm1183_vm10, %v1171_v36, %v1186_v37  ;;  %v1196_v21 = vsel %vm1182_vm12, %v1193_v4, %v1195_v63  ;;  %v9638_v7 = vpop.eup %9637  ;;  %vm1040_vm6 = vcmp.eq.s32.totalorder %v11815_v13, 2 }
 0x18f   : > { %v11873_v20 = vmul.u32.u64.low %v1197_v51, %v1192_v32  ;;  %v11874_v18 = vmul.u32.u64.high %v1197_v51, %v1192_v32, %v11873_v20  ;;  %v1130_v24 = vsel %vm1047_vm0, %v1129_v26, %v1128_v57  ;;  %v1316_v60 = vshll.u32 %v11865_v35, 30  ;;  %v9640_v25 = vpop.eup %9639 }
 0x190   : > { %v857_v36 = vmul.f32 %v11884_v58, %v775_v15  ;;  %v1041_v40 = vxor.u32 2147483648, %v9638_v7  ;;  %v1133_v63 = vsel %vm11838_vm1, %v18475_v14, %v1130_v24  ;;  %v1038_v39 = vxor.u32 2147483648, %v9640_v25 }
 0x191   : > { %v11890_v37 = vmul.u32.u64.low %v1197_v51, %v1196_v21  ;;  %v11891_v55 = vmul.u32.u64.high %v1197_v51, %v1196_v21, %v11890_v37  ;;  %9641 = vcosq.f32 %v1133_v63  ;;  %v11893_v57 = vsub.s32 %v1313_v61, %v1316_v60 }
 0x192   : > { %v1188_v4 = vsel %vm1182_vm12, %v1185_v28, %v1187_v46  ;;  %v1042_v26 = vsel %vm1040_vm6, %v1041_v40, %v9640_v25  ;;  %v1132_v15 = vsel %vm1047_vm0, %v1131_v3, %v11729_v52  ;;  %9643 = vsinq.f32 %v1133_v63 }
 0x193   : > { %v1207_v32 = vadd.s32 1, %v11874_v18  ;;  %vm1036_vm13 = vcmp.lt.s32.totalorder %v11815_v13, 2  ;;  %v1039_v21 = vsel %vm1037_vm9, %v9638_v7, %v1038_v39  ;;  %v1319_v24 = vsub.s32 0, %v11893_v57 }
 0x194   : > { %v889_v61 = vadd.f32 %v857_v36, %v11701_v53  ;;  %vm1033_vm14 = vweird.f32 %v10953_v11  ;;  %v1043_v59 = vsel %vm1036_vm13, %v1039_v21, %v1042_v26  ;;  %v1204_v28 = vmul.u32 %v1197_v51, %v1188_v4  ;;  %v11917_v11 = vld [vmem:[%s18038_s1 + $0x3] ss:$0 sm:$0xff]  ;;  %v18498_v21 = vld [vmem:[#allocation48_spill] sm:$0xff] }
 0x195   : > { %vm1206_vm15 = vc.u32 %v11891_v55, %v11873_v20  ;;  %v1044_v52 = vsel %vm1033_vm14, nan, %v1043_v59  ;;  %v1134_v3 = vsel %vm11838_vm1, 0, %v1132_v15  ;;  %v8595_v46 = vmin.u32 %v1319_v24, %v11893_v57 }
 0x196   : > { %v1208_v13 = vsel %vm1206_vm15, %v1207_v32, %v11874_v18  ;;  %vm2430_vm0 = vcmp.lt.s32.totalorder %v11656_v5, 2  ;;  %v8956_v7 = vpack.c.bf16 %v1044_v52, %v1044_v52  ;;  %v11920_v53 = vadd.f32 %v11917_v11, %v889_v61 }
 0x197   : > { %v1209_v60 = vadd.s32 %v1208_v13, %v1204_v28  ;;  %v2413_v34 = vshrl.u32 %v18385_v2, %v11636_v45  ;;  %v2434_v51 = vsel %vm2432_vm7, %v11695_v48, 2102212464  ;;  %v2444_v18 = vsel %vm2430_vm0, %v11725_v23, %v11808_v47 }
 0x198   : > { %18497 = vst [vmem:[#allocation41_spill] sm:$0xff] %v11920_v53  ;;  %v1321_v36 = vclz %v8595_v46  ;;  %v2440_v25 = vsel %vm2430_vm0, %v11716_v43, %v11758_v42  ;;  %4558 = vrot.lane.b32.xlu1 %v8956_v7, %s10368_s21  ;;  %v1138_v40 = vadd.s32 3, %v1134_v3  ;;  %v2608_v63 = vand.u32 2139095040, %v11920_v53 }
 0x199   : > { %v1210_v45 = vadd.s32 536870912, %v1209_v60  ;;  %v2047_v48 = vsub.s32 0, %v11704_v44  ;;  %vm2512_vm7 = vcmp.gt.s32.totalorder %v11588_v1, 0  ;;  %v2433_v23 = vsel %vm2429_vm3, %v2413_v34, %v11686_v54 }
 0x19a   : > { %v8596_v47 = vadd.s32 4294967294, %v1321_v36  ;;  %v11943_v37 = vmul.u32.u64.low %v11697_v0, %v2444_v18  ;;  %v11944_v39 = vmul.u32.u64.high %v11697_v0, %v2444_v18, %v11943_v37  ;;  %v2609_v42 = vshrl.u32 %v2608_v63, 23 }
 0x19b   : > { %v11946_v43 = vshrl.u32 %v1210_v45, 30  ;;  %v2435_v4 = vsel %vm2431_vm5, %v11690_v22, %v2434_v51  ;;  %v11952_v26 = vmul.u32.u64.low %v11697_v0, %v2440_v25  ;;  %v11953_v15 = vmul.u32.u64.high %v11697_v0, %v2440_v25, %v11952_v26 }
 0x19c   : > { %vm8597_vm1 = vcmp.lt.s32.totalorder %v8596_v47, 0  ;;  %v1139_v32 = vand.u32 3, %v1138_v40  ;;  %vm1255_vm3 = vcmp.lt.s32.totalorder %v18498_v21, 0  ;;  %v11960_v59 = vsel %vm2512_vm7, %v11588_v1, 0 }
 0x19d   : > { %v1324_v24 = vsel %vm8597_vm1, 0, %v8596_v47  ;;  %v1212_v61 = vshll.u32 %v11946_v43, 30  ;;  %v1309_v22 = vadd.s32 %v11810_v62, %v11798_v19  ;;  %v11965_v46 = vmin.u32 %v2047_v48, %v11704_v44 }
 0x19e   : > { %v1325_v28 = vsub.s32 32, %v1324_v24  ;;  %v1329_v52 = vsub.s32 4294967266, %v1324_v24  ;;  %v9642_v3 = vpop.eup %9641  ;;  %v11969_v13 = vsel %vm2430_vm0, %v2433_v23, %v2435_v4  ;;  %v8646_v34 = vadd.s32 4294967169, %v2609_v42 }
 0x19f   : > { %v11971_v7 = vsub.s32 %v1209_v60, %v1212_v61  ;;  %v9644_v51 = vpop.eup %9643  ;;  %v1145_v18 = vxor.u32 2147483648, %v9642_v3  ;;  %v18499_v1 = vand.u32 2147483647, %v18498_v21  ;;  %v1326_v19 = vshll.u32 %v11893_v57, %v1324_v24 }
 0x1a0   : > { %v1327_v62 = vshrl.u32 %v1309_v22, %v1325_v28  ;;  %v1330_v25 = vadd.s32 127, %v1329_v52  ;;  %vm1141_vm4 = vcmp.eq.s32.totalorder %v1139_v32, 0  ;;  %v1142_v40 = vxor.u32 2147483648, %v9644_v51 }
 0x1a1   : > { %vm11975_vm5 = vcmp.le.f32.partialorder %v18499_v1, 0.7853982  ;;  %vm1144_vm9 = vcmp.eq.s32.totalorder %v1139_v32, 2  ;;  %v1215_v5 = vsub.s32 0, %v11971_v7  ;;  %v1339_v48 = vsub.s32 4, %v11865_v35 }
 0x1a2   : > { %v1146_v60 = vsel %vm1144_vm9, %v1145_v18, %v9644_v51  ;;  %v1328_v45 = vor.u32 %v1327_v62, %v1326_v19  ;;  %v1331_v63 = vshll.u32 %v1330_v25, 23  ;;  %vm2454_vm10 = vc.u32 %v11944_v39, %v11952_v26 }
 0x1a3   : > { %vm1140_vm12 = vcmp.lt.s32.totalorder %v1139_v32, 2  ;;  %v1143_v23 = vsel %vm1141_vm4, %v9642_v3, %v1142_v40  ;;  %v8591_v47 = vmin.u32 %v1215_v5, %v11971_v7  ;;  %vm1137_vm6 = vweird.f32 %v18475_v14 }
 0x1a4   : > { %v1147_v57 = vsel %vm1140_vm12, %v1143_v23, %v1146_v60  ;;  %v1332_v37 = vor.u32 4788187, %v1331_v63  ;;  %v2615_v42 = vadd.s32 1, %v8646_v34  ;;  %vm2304_vm13 = vcmp.gt.s32.totalorder %v11650_v9, 0  ;;  %v18506_v60 = vld [vmem:[#allocation55_spill] sm:$0xff] }
 0x1a5   : > { %v2455_v4 = vadd.s32 1, %v11953_v15  ;;  %v1148_v24 = vsel %vm1137_vm6, nan, %v1147_v57  ;;  %v1217_v61 = vclz %v8591_v47  ;;  %v1235_v22 = vsub.s32 4, %v11946_v43 }
 0x1a6   : > { %v8957_v28 = vpack.c.bf16 %v1148_v24, %v1148_v24  ;;  %v1333_v52 = vand.u32 2147483647, %v1332_v37  ;;  %v1335_v51 = vcvt.s32.f32 %v1328_v45  ;;  %v1340_v32 = vsel %vm1255_vm3, %v1339_v48, %v11865_v35 }
 0x1a7   : > { %v2049_v14 = vclz %v11965_v46  ;;  %v11994_v3 = vshrl.u32 %v11960_v59, 5  ;;  %v662_v34 = vmul.f32 %v11506_v30, %v11767_v6  ;;  %v8592_v18 = vadd.s32 4294967294, %v1217_v61 }
 0x1a8   : > { %v2452_v1 = vmul.u32 %v11697_v0, %v11969_v13  ;;  %4560 = vrot.lane.b32.xlu0 %v8957_v28, %s10368_s21  ;;  %v1336_v19 = vmul.f32 %v1335_v51, %v1333_v52  ;;  %vm1151_vm14 = vcmp.lt.s32.totalorder %v18485_v41, 0  ;;  %vm2616_vm15 = vcmp.gt.s32.totalorder %v2615_v42, 0  ;;  %v18508_v28 = vld [vmem:[#allocation64_spill] sm:$0xff] }
 0x1a9   : > { %18502 = vst [vmem:[#allocation56_spill] sm:$0xff] %v11994_v3  ;;  %v2456_v35 = vsel %vm2454_vm10, %v2455_v4, %v11953_v15  ;;  %v1342_v46 = vsel %vm11975_vm5, 0, %v1340_v32  ;;  %vm8593_vm0 = vcmp.lt.s32.totalorder %v8592_v18, 0  ;;  %v1236_v30 = vsel %vm1151_vm14, %v1235_v22, %v11946_v43  ;;  %v18509_v32 = vld [vmem:[#allocation72_spill] sm:$0xff] }
 0x1aa   : > { %v1337_v0 = vxor.u32 2147483648, %v1336_v19  ;;  %v18503_v6 = vand.u32 2147483647, %v18485_v41  ;;  %v1205_v62 = vadd.s32 %v11873_v20, %v11891_v55  ;;  %v1220_v25 = vsel %vm8593_vm0, 0, %v8592_v18 }
 0x1ab   : > { %v1221_v15 = vsub.s32 32, %v1220_v25  ;;  %v1225_v40 = vsub.s32 4294967266, %v1220_v25  ;;  %v2617_v5 = vsel %vm2616_vm15, %v2615_v42, 0  ;;  %v18212_v45 = vand.u32 2147483647, %v18506_v60 }
 0x1ac   : > { %vm12013_vm7 = vcmp.le.f32.partialorder %v18503_v6, 0.7853982  ;;  %v1338_v63 = vsel %vm1255_vm3, %v1337_v0, %v1336_v19  ;;  %v1346_v43 = vadd.s32 3, %v1342_v46  ;;  %v18211_v23 = vand.u32 2147483647, %v11920_v53 }
 0x1ad   : > { %v1238_v48 = vsel %vm12013_vm7, 0, %v1236_v30  ;;  %v1341_v47 = vsel %vm11975_vm5, %v18498_v21, %v1338_v63  ;;  %v1222_v20 = vshll.u32 %v11971_v7, %v1220_v25  ;;  %v1223_v55 = vshrl.u32 %v1205_v62, %v1221_v15  ;;  %v18510_v30 = vld [vmem:[#allocation62_spill] sm:$0xff] }
 0x1ae   : > { %v1226_v57 = vadd.s32 127, %v1225_v40  ;;  %v12030_v37 = vand.u32 31, %v11960_v59  ;;  %v12032_v42 = vadd.s32 %v2456_v35, %v2452_v1  ;;  %9645 = vcosq.f32 %v1341_v47 }
 0x1af   : > { %v12034_v4 = vand.u32 31, %v2617_v5  ;;  %9647 = vsinq.f32 %v1341_v47  ;;  %v1224_v24 = vor.u32 %v1223_v55, %v1222_v20  ;;  %v12038_v22 = vand.u32 8388607, %v18212_v45 }
 0x1b0   : > { %18507 = vst [vmem:[#allocation61_spill] sm:$0xff] %v12030_v37  ;;  %v1227_v61 = vshll.u32 %v1226_v57, 23  ;;  %v12043_v7 = vsel %vm2304_vm13, %v11650_v9, 0  ;;  %v1242_v36 = vadd.s32 3, %v1238_v48  ;;  %v12047_v59 = vand.u32 8388607, %v18211_v23 }
 0x1b1   : > { %v1479_v52 = vshrl.u32 %v18423_v12, %v18508_v28  ;;  %v12051_v51 = vadd.s32 4294967294, %v2049_v14  ;;  %v12054_v18 = vadd.f32 %v662_v34, %v18509_v32  ;;  %v12056_v1 = vand.u32 3, %v1346_v43 }
 0x1b2   : > { %v1228_v19 = vor.u32 4788187, %v1227_v61  ;;  %v12059_v35 = vadd.s32 536870912, %v12032_v42  ;;  %v12062_v9 = vsub.s32 32, %v12034_v4  ;;  %v1477_v46 = vshrl.u32 %v18385_v2, %v18508_v28 }
 0x1b3   : > { %v1478_v0 = vshll.u32 %v18385_v2, %v18510_v30  ;;  %v1231_v6 = vcvt.s32.f32 %v1224_v24  ;;  %v1469_v34 = vor.u32 8388608, %v12038_v22  ;;  %v1481_v62 = vshll.u32 %v18423_v12, %v18510_v30 }
 0x1b4   : > { %v1229_v14 = vand.u32 2147483647, %v1228_v19  ;;  %v12071_v25 = vand.u32 3, %v1242_v36  ;;  %v1482_v63 = vshrl.u32 %v18456_v56, %v18508_v28  ;;  %vm1352_vm1 = vcmp.eq.s32.totalorder %v12056_v1, 2 }
 0x1b5   : > { %v1480_v40 = vor.u32 %v1479_v52, %v1478_v0  ;;  %v12077_v48 = vshrl.u32 %v2617_v5, 5  ;;  %v2622_v47 = vshll.u32 %v18385_v2, %v12034_v4  ;;  %v1485_v20 = vshrl.u32 %v18425_v27, %v18508_v28 }
 0x1b6   : > { %v1232_v43 = vmul.f32 %v1231_v6, %v1229_v14  ;;  %vm1349_vm3 = vcmp.eq.s32.totalorder %v12056_v1, 0  ;;  %v2625_v55 = vshll.u32 %v18423_v12, %v12034_v4  ;;  %v2628_v57 = vshll.u32 %v18456_v56, %v12034_v4 }
 0x1b7   : > { %v2632_v24 = vshrl.u32 %v18426_v50, %v12062_v9  ;;  %v1484_v5 = vshll.u32 %v18456_v56, %v18510_v30  ;;  %vm1348_vm5 = vcmp.lt.s32.totalorder %v12056_v1, 2  ;;  %v1487_v22 = vshll.u32 %v18425_v27, %v18510_v30 }
 0x1b8   : > { %v1233_v61 = vxor.u32 2147483648, %v1232_v43  ;;  %v1488_v36 = vshrl.u32 %v18426_v50, %v18508_v28  ;;  %v1491_v52 = vshrl.u32 %v18427_v49, %v18508_v28  ;;  %vm1345_vm4 = vweird.f32 %v18498_v21 }
 0x1b9   : > { %v2623_v32 = vshrl.u32 %v18423_v12, %v12062_v9  ;;  %v2626_v19 = vshrl.u32 %v18456_v56, %v12062_v9  ;;  %v1483_v0 = vor.u32 %v1482_v63, %v1481_v62  ;;  %v1490_v14 = vshll.u32 %v18426_v50, %v18510_v30  ;;  %v18511_v62 = vld [vmem:[#allocation51_spill] sm:$0xff] }
 0x1ba   : > { %v1234_v6 = vsel %vm1151_vm14, %v1233_v61, %v1232_v43  ;;  %v2631_v23 = vshll.u32 %v18425_v27, %v12034_v4  ;;  %v1486_v45 = vor.u32 %v1485_v20, %v1484_v5  ;;  %v1489_v28 = vor.u32 %v1488_v36, %v1487_v22 }
 0x1bb   : > { %v1237_v54 = vsel %vm12013_vm7, %v18485_v41, %v1234_v6  ;;  %v2629_v15 = vshrl.u32 %v18425_v27, %v12062_v9  ;;  %v1492_v3 = vor.u32 %v1491_v52, %v1490_v14  ;;  %vm1496_vm9 = vcmp.lt.s32.totalorder %v18511_v62, 4  ;;  %v9646_v63 = vpop.eup %9645 }
 0x1bc   : > { %9649 = vcosq.f32 %v1237_v54  ;;  %v12116_v30 = vor.u32 %v2632_v24, %v2631_v23  ;;  %vm1493_vm10 = vcmp.lt.s32.totalorder %v18511_v62, 1  ;;  %v1502_v43 = vsel %vm1496_vm9, %v1489_v28, 920167782  ;;  %v9648_v20 = vpop.eup %9647 }
 0x1bd   : > { %v1353_v5 = vxor.u32 2147483648, %v9646_v63  ;;  %9651 = vsinq.f32 %v1237_v54  ;;  %vm1495_vm12 = vcmp.lt.s32.totalorder %v18511_v62, 3  ;;  %v1501_v13 = vsel %vm1493_vm10, %v1480_v40, %v1483_v0 }
 0x1be   : > { %v1350_v61 = vxor.u32 2147483648, %v9648_v20  ;;  %v2635_v22 = vshrl.u32 %v18427_v49, %v12062_v9  ;;  %v1498_v23 = vsel %vm1496_vm9, %v1486_v45, 2102212464  ;;  %v1503_v24 = vsel %vm1495_vm12, %v1486_v45, %v1502_v43 }
 0x1bf   : > { %v1354_v36 = vsel %vm1352_vm1, %v1353_v5, %v9648_v20  ;;  %vm1494_vm6 = vcmp.lt.s32.totalorder %v18511_v62, 2  ;;  %v1505_v54 = vsel %vm1493_vm10, %v1483_v0, %v1486_v45  ;;  %v1506_v52 = vsel %vm1496_vm9, %v1492_v3, 1326507024 }
 0x1c0   : > { %v1351_v14 = vsel %vm1349_vm3, %v9646_v63, %v1350_v61  ;;  %v1504_v6 = vsel %vm1494_vm6, %v1501_v13, %v1503_v24  ;;  %v1507_v43 = vsel %vm1495_vm12, %v1489_v28, %v1506_v52  ;;  %v1509_v53 = vshll.u32 %v1469_v34, 8  ;;  %v18512_v28 = vld [vmem:[#allocation44_spill] sm:$0xff] }
 0x1c1   : > { %v1355_v20 = vsel %vm1348_vm5, %v1351_v14, %v1354_v36  ;;  %v1497_v5 = vsel %vm1493_vm10, %v1477_v46, %v1480_v40  ;;  %v1499_v45 = vsel %vm1495_vm12, %v1483_v0, %v1498_v23  ;;  %v1508_v3 = vsel %vm1494_vm6, %v1505_v54, %v1507_v43  ;;  %v18513_v54 = vld [vmem:[#allocation71_spill] sm:$0xff] }
 0x1c2   : > { %v1356_v63 = vsel %vm1345_vm4, nan, %v1355_v20  ;;  %v12153_v13 = vmul.u32.u64.low %v1509_v53, %v1508_v3  ;;  %v12154_v61 = vmul.u32.u64.high %v1509_v53, %v1508_v3, %v12153_v13  ;;  %v18216_v34 = vand.u32 2147483647, %v18512_v28 }
 0x1c3   : > { %v8959_v24 = vpack.c.bf16 %v1356_v63, %v1356_v63  ;;  %vm1248_vm13 = vcmp.eq.s32.totalorder %v12071_v25, 2  ;;  %v2634_v1 = vshll.u32 %v18426_v50, %v12034_v4  ;;  %vm1245_vm14 = vcmp.eq.s32.totalorder %v12071_v25, 0 }
 0x1c4   : > { %v12160_v46 = vmul.u32.u64.low %v1509_v53, %v1504_v6  ;;  %v12161_v40 = vmul.u32.u64.high %v1509_v53, %v1504_v6, %v12160_v46  ;;  %v12165_v0 = vor.u32 %v2623_v32, %v2622_v47  ;;  %v12167_v21 = vor.u32 %v2626_v19, %v2625_v55  ;;  %v18514_v32 = vld [vmem:[#allocation67_spill] sm:$0xff] }
 0x1c5   : > { %v12169_v23 = vor.u32 %v2629_v15, %v2628_v57  ;;  %vm2637_vm15 = vcmp.lt.s32.totalorder %v12077_v48, 1  ;;  %4564 = vrot.lane.b32.xlu0 %v8959_v24, %s10368_s21  ;;  %vm1244_vm0 = vcmp.lt.s32.totalorder %v12071_v25, 2  ;;  %v2636_v36 = vor.u32 %v2635_v22, %v2634_v1 }
 0x1c6   : > { %vm2640_vm7 = vcmp.lt.s32.totalorder %v12077_v48, 4  ;;  %v1500_v4 = vsel %vm1494_vm6, %v1497_v5, %v1499_v45  ;;  %v1375_v47 = vshrl.u32 %v18423_v12, %v18513_v54  ;;  %vm1241_vm1 = vweird.f32 %v18485_v41 }
 0x1c7   : > { %vm2639_vm3 = vcmp.lt.s32.totalorder %v12077_v48, 3  ;;  %v2646_v15 = vsel %vm2640_vm7, %v12116_v30, 920167782  ;;  %vm1518_vm5 = vc.u32 %v12154_v61, %v12160_v46  ;;  %v1364_v55 = vand.u32 8388607, %v18216_v34 }
 0x1c8   : > { %v1519_v57 = vadd.s32 1, %v12161_v40  ;;  %v1374_v19 = vshll.u32 %v18385_v2, %v18514_v32  ;;  %v1377_v62 = vshll.u32 %v18423_v12, %v18514_v32  ;;  %v1378_v22 = vshrl.u32 %v18456_v56, %v18513_v54 }
 0x1c9   : > { %vm2638_vm4 = vcmp.lt.s32.totalorder %v12077_v48, 2  ;;  %v2645_v52 = vsel %vm2637_vm15, %v12165_v0, %v12167_v21  ;;  %v1516_v14 = vmul.u32 %v1509_v53, %v1500_v4  ;;  %v1380_v6 = vshll.u32 %v18456_v56, %v18514_v32  ;;  %v9650_v20 = vpop.eup %9649 }
 0x1ca   : > { %v1381_v43 = vshrl.u32 %v18425_v27, %v18513_v54  ;;  %v2647_v5 = vsel %vm2639_vm3, %v12169_v23, %v2646_v15  ;;  %v1520_v45 = vsel %vm1518_vm5, %v1519_v57, %v12161_v40  ;;  %v1376_v3 = vor.u32 %v1375_v47, %v1374_v19  ;;  %v9652_v13 = vpop.eup %9651 }
 0x1cb   : > { %v1379_v63 = vor.u32 %v1378_v22, %v1377_v62  ;;  %v1249_v24 = vxor.u32 2147483648, %v9650_v20  ;;  %v2649_v53 = vsel %vm2637_vm15, %v12167_v21, %v12169_v23  ;;  %v1521_v1 = vadd.s32 %v1520_v45, %v1516_v14 }
 0x1cc   : > { %v1382_v4 = vor.u32 %v1381_v43, %v1380_v6  ;;  %v1246_v32 = vxor.u32 2147483648, %v9652_v13  ;;  %v2650_v34 = vsel %vm2640_vm7, %v2636_v36, 1326507024  ;;  %v1365_v16 = vor.u32 8388608, %v1364_v55 }
 0x1cd   : > { %vm1391_vm9 = vcmp.lt.s32.totalorder %v11351_v33, 3  ;;  %v1250_v40 = vsel %vm1248_vm13, %v1249_v24, %v9652_v13  ;;  %v1522_v47 = vadd.s32 536870912, %v1521_v1  ;;  %vm1389_vm10 = vcmp.lt.s32.totalorder %v11351_v33, 1 }
 0x1ce   : > { %v1403_v15 = vsel %vm1391_vm9, %v11363_v17, %v11438_v29  ;;  %v1247_v57 = vsel %vm1245_vm14, %v9650_v20, %v1246_v32  ;;  %v1397_v36 = vsel %vm1389_vm10, %v1376_v3, %v1379_v63  ;;  %v1399_v55 = vsel %vm1391_vm9, %v1382_v4, %v11431_v8  ;;  %v587_v20 = vpop.permute.xlu0 %586 }
 0x1cf   : > { %v1401_v19 = vsel %vm1389_vm10, %v1379_v63, %v1382_v4  ;;  %v1251_v62 = vsel %vm1244_vm0, %v1247_v57, %v1250_v40  ;;  %v2651_v17 = vsel %vm2639_vm3, %v12116_v30, %v2650_v34  ;;  %v12236_v29 = vshrl.u32 %v1522_v47, 30  ;;  %v12278_v47 = vld [vmem:[%s18038_s1 + $0x1] ss:$0 sm:$0xff] }
 0x1d0   : > { %vm1390_vm12 = vcmp.lt.s32.totalorder %v11351_v33, 2  ;;  %v1252_v22 = vsel %vm1241_vm1, nan, %v1251_v62  ;;  %v1394_v8 = vsel %vm1392_vm8, %v1382_v4, 2102212464  ;;  %v1405_v6 = vshll.u32 %v1365_v16, 8 }
 0x1d1   : > { %v1404_v14 = vsel %vm1390_vm12, %v1401_v19, %v1403_v15  ;;  %v8958_v25 = vpack.c.bf16 %v1252_v22, %v1252_v22  ;;  %v1524_v43 = vshll.u32 %v12236_v29, 30  ;;  %v1373_v30 = vshrl.u32 %v18385_v2, %v18513_v54 }
 0x1d2   : > { %v1400_v34 = vsel %vm1390_vm12, %v1397_v36, %v1399_v55  ;;  %v2648_v41 = vsel %vm2638_vm4, %v2645_v52, %v2647_v5  ;;  %v18515_v45 = vor.u32 8388608, %v12047_v59  ;;  %v2652_v16 = vsel %vm2638_vm4, %v2649_v53, %v2651_v17  ;;  %v18517_v55 = vld [vmem:[#allocation73_spill] sm:$0xff] }
 0x1d3   : > { %v12256_v24 = vmul.u32.u64.low %v1405_v6, %v1404_v14  ;;  %v12257_v4 = vmul.u32.u64.high %v1405_v6, %v1404_v14, %v12256_v24  ;;  %4562 = vrot.lane.b32.xlu1 %v8958_v25, %s10368_s21  ;;  %v12262_v54 = vsub.s32 %v1521_v1, %v1524_v43  ;;  %v1393_v32 = vsel %vm1389_vm10, %v1373_v30, %v1376_v3  ;;  %v783_v1 = vpop.permute.xlu1 %782 }
 0x1d4   : > { %v12254_v13 = vshll.u32 %v18515_v45, 8  ;;  %v1395_v52 = vsel %vm1391_vm9, %v1379_v63, %v1394_v8  ;;  %v12269_v59 = vshrl.u32 %v12059_v35, 30  ;;  %v663_v53 = vmul.f32 %v12278_v47, %v587_v20 }
 0x1d5   : > { %v12271_v5 = vmul.u32.u64.low %v1405_v6, %v1400_v34  ;;  %v12272_v40 = vmul.u32.u64.high %v1405_v6, %v1400_v34, %v12271_v5  ;;  %vm8625_vm8 = vcmp.lt.s32.totalorder %v12051_v51, 0  ;;  %v1527_v35 = vsub.s32 0, %v12262_v54 }
 0x1d6   : > { %18516 = vst [vmem:[#allocation63_spill] sm:$0xff] %v12269_v59  ;;  %v12283_v3 = vmul.u32.u64.low %v12254_v13, %v2648_v41  ;;  %v12284_v63 = vmul.u32.u64.high %v12254_v13, %v2648_v41, %v12283_v3  ;;  %v12289_v15 = vmul.u32.u64.low %v12254_v13, %v2652_v16  ;;  %v12290_v57 = vmul.u32.u64.high %v12254_v13, %v2652_v16, %v12289_v15 }
 0x1d7   : > { %v1396_v36 = vsel %vm1390_vm12, %v1393_v32, %v1395_v52  ;;  %v695_v19 = vadd.f32 %v663_v53, %v18517_v55  ;;  %v2642_v62 = vsel %vm2640_vm7, %v12169_v23, 2102212464  ;;  %v8603_v17 = vmin.u32 %v1527_v35, %v12262_v54 }
 0x1d8   : > { %vm1414_vm6 = vc.u32 %v12257_v4, %v12271_v5  ;;  %v859_v22 = vmul.f32 %v11884_v58, %v783_v1  ;;  %v18518_v8 = vand.u32 2147483647, %v11591_v31  ;;  %v18519_v14 = vcvt.s32.f32 %v11572_v10  ;;  %v18520_v58 = vld [vmem:[#allocation38_spill] sm:$0xff] }
 0x1d9   : > { %v2460_v33 = vshll.u32 %v12269_v59, 30  ;;  %v2621_v43 = vshrl.u32 %v18385_v2, %v12062_v9  ;;  %v1415_v23 = vadd.s32 1, %v12272_v40  ;;  %v12313_v30 = vsel %vm8625_vm8, 0, %v12051_v51 }
 0x1da   : > { %v12306_v25 = vmul.f32 %v18519_v14, %v18518_v8  ;;  %v1529_v34 = vclz %v8603_v17  ;;  %v1412_v20 = vmul.u32 %v1405_v6, %v1396_v36  ;;  %v891_v41 = vadd.f32 %v859_v22, %v695_v19 }
 0x1db   : > { %v890_v31 = vadd.f32 %v18520_v58, %v12054_v18  ;;  %v2641_v10 = vsel %vm2637_vm15, %v2621_v43, %v12165_v0  ;;  %v2643_v45 = vsel %vm2639_vm3, %v12167_v21, %v2642_v62  ;;  %v1416_v9 = vsel %vm1414_vm6, %v1415_v23, %v12272_v40 }
 0x1dc   : > { %v8604_v24 = vadd.s32 4294967294, %v1529_v34  ;;  %v1547_v51 = vsub.s32 4, %v12236_v29  ;;  %v1417_v16 = vadd.s32 %v1416_v9, %v1412_v20  ;;  %v12326_v6 = vadd.f32 %v11917_v11, %v891_v41 }
 0x1dd   : > { %v2053_v32 = vsub.s32 32, %v12313_v30  ;;  %v2057_v18 = vsub.s32 4294967266, %v12313_v30  ;;  %v12331_v52 = vsub.s32 %v12032_v42, %v2460_v33  ;;  %vm1463_vm13 = vcmp.lt.s32.totalorder %v18506_v60, 0 }
 0x1de   : > { %18521 = vst [vmem:[#allocation66_spill] sm:$0xff] %v12326_v6  ;;  %v2644_v0 = vsel %vm2638_vm4, %v2641_v10, %v2643_v45  ;;  %v2663_v21 = vadd.s32 1, %v12284_v63  ;;  %vm8605_vm14 = vcmp.lt.s32.totalorder %v8604_v24, 0  ;;  %v1418_v40 = vadd.s32 536870912, %v1417_v16 }
 0x1df   : > { %vm2662_vm15 = vc.u32 %v12290_v57, %v12283_v3  ;;  %v1517_v53 = vadd.s32 %v12160_v46, %v12154_v61  ;;  %v1532_v1 = vsel %vm8605_vm14, 0, %v8604_v24  ;;  %v2816_v35 = vand.u32 2139095040, %v12326_v6 }
 0x1e0   : > { %v1533_v42 = vsub.s32 32, %v1532_v1  ;;  %v1537_v15 = vsub.s32 4294967266, %v1532_v1  ;;  %v1548_v48 = vsel %vm1463_vm13, %v1547_v51, %v12236_v29  ;;  %v18217_v36 = vand.u32 2147483647, %v12326_v6  ;;  %v18526_v51 = vld [vmem:[#allocation53_spill] sm:$0xff] }
 0x1e1   : > { %v2463_v55 = vsub.s32 0, %v12331_v52  ;;  %v18522_v19 = vand.u32 2147483647, %v18506_v60  ;;  %v12353_v61 = vshrl.u32 %v1418_v40, 30  ;;  %v2817_v46 = vshrl.u32 %v2816_v35, 23 }
 0x1e2   : > { %v2664_v17 = vsel %vm2662_vm15, %v2663_v21, %v12284_v63  ;;  %v1534_v22 = vshll.u32 %v12262_v54, %v1532_v1  ;;  %v1535_v8 = vshrl.u32 %v1517_v53, %v1533_v42  ;;  %v1538_v14 = vadd.s32 127, %v1537_v15  ;;  %v18527_v21 = vld [vmem:[#allocation59_spill] sm:$0xff]  ;;  %v18528_v42 = vld [vmem:[#allocation50_spill] sm:$0xff] }
 0x1e3   : > { %vm12349_vm0 = vcmp.le.f32.partialorder %v18522_v19, 0.7853982  ;;  %v2660_v29 = vmul.u32 %v12254_v13, %v2644_v0  ;;  %v1420_v43 = vshll.u32 %v12353_v61, 30  ;;  %v8654_v23 = vadd.s32 4294967169, %v2817_v46 }
 0x1e4   : > { %v1550_v33 = vsel %vm12349_vm0, 0, %v1548_v48  ;;  %v12362_v34 = vadd.f32 %v11917_v11, %v890_v31  ;;  %v1536_v20 = vor.u32 %v1535_v8, %v1534_v22  ;;  %v1539_v41 = vshll.u32 %v1538_v14, 23 }
 0x1e5   : > { %v2820_v63 = vand.u32 8388607, %v18217_v36  ;;  %v12367_v54 = vshrl.u32 %v11563_v38, %v2053_v32  ;;  %v12369_v58 = vadd.s32 %v2664_v17, %v2660_v29  ;;  %v12371_v13 = vsub.s32 %v1417_v16, %v1420_v43 }
 0x1e6   : > { %18525 = vst [vmem:[#allocation75_spill] sm:$0xff] %v12362_v34  ;;  %v2823_v10 = vadd.s32 1, %v8654_v23  ;;  %v12373_v45 = vadd.s32 127, %v2057_v18  ;;  %v1540_v9 = vor.u32 4788187, %v1539_v41  ;;  %v1554_v24 = vadd.s32 3, %v1550_v33 }
 0x1e7   : > { %v1669_v11 = vand.u32 2147483647, %v18526_v51  ;;  %v12377_v31 = vmin.u32 %v2463_v55, %v12331_v52  ;;  %v1423_v0 = vsub.s32 0, %v12371_v13  ;;  %v1687_v38 = vshrl.u32 %v18423_v12, %v18527_v21 }
 0x1e8   : > { %vm2824_vm7 = vcmp.gt.s32.totalorder %v2823_v10, 0  ;;  %v1541_v32 = vand.u32 2147483647, %v1540_v9  ;;  %v1543_v40 = vcvt.s32.f32 %v1536_v20  ;;  %v2821_v16 = vor.u32 8388608, %v2820_v63 }
 0x1e9   : > { %v2825_v53 = vsel %vm2824_vm7, %v2823_v10, 0  ;;  %v12383_v18 = vadd.s32 536870912, %v12369_v58  ;;  %v8599_v1 = vmin.u32 %v1423_v0, %v12371_v13  ;;  %v1686_v15 = vshll.u32 %v18385_v2, %v18528_v42 }
 0x1ea   : > { %v2827_v35 = vand.u32 31, %v2825_v53  ;;  %v1544_v48 = vmul.f32 %v1543_v40, %v1541_v32  ;;  %v12388_v55 = vand.u32 3, %v1554_v24  ;;  %v1413_v19 = vadd.s32 %v12271_v5, %v12257_v4 }
 0x1eb   : > { %v12394_v46 = vand.u32 8388607, %v1669_v11  ;;  %v1425_v17 = vclz %v8599_v1  ;;  %v1443_v22 = vsub.s32 4, %v12353_v61  ;;  %v12397_v8 = vor.u32 %v1687_v38, %v1686_v15 }
 0x1ec   : > { %v1689_v14 = vshll.u32 %v18423_v12, %v18528_v42  ;;  %v1545_v29 = vxor.u32 2147483648, %v1544_v48  ;;  %v12401_v33 = vsub.s32 32, %v2827_v35  ;;  %v12403_v43 = vshll.u32 %v2821_v16, 8 }
 0x1ed   : > { %v1690_v4 = vshrl.u32 %v18456_v56, %v18527_v21  ;;  %v8600_v5 = vadd.s32 4294967294, %v1425_v17  ;;  %v12407_v23 = vshrl.u32 %v2825_v53, 5  ;;  %v2830_v20 = vshll.u32 %v18385_v2, %v2827_v35 }
 0x1ee   : > { %v2833_v41 = vshll.u32 %v18423_v12, %v2827_v35  ;;  %v1546_v63 = vsel %vm1463_vm13, %v1545_v29, %v1544_v48  ;;  %v2831_v10 = vshrl.u32 %v18423_v12, %v12401_v33  ;;  %v2834_v9 = vshrl.u32 %v18456_v56, %v12401_v33 }
 0x1ef   : > { %v2836_v24 = vshll.u32 %v18456_v56, %v2827_v35  ;;  %v1549_v0 = vsel %vm12349_vm0, %v18506_v60, %v1546_v63  ;;  %vm8601_vm1 = vcmp.lt.s32.totalorder %v8600_v5, 0  ;;  %v2837_v38 = vshrl.u32 %v18425_v27, %v12401_v33 }
 0x1f0   : > { %v2840_v32 = vshrl.u32 %v18426_v50, %v12401_v33  ;;  %9653 = vcosq.f32 %v1549_v0  ;;  %v1428_v40 = vsel %vm8601_vm1, 0, %v8600_v5  ;;  %v12425_v16 = vor.u32 %v2831_v10, %v2830_v20 }
 0x1f1   : > { %v2839_v53 = vshll.u32 %v18425_v27, %v2827_v35  ;;  %9655 = vsinq.f32 %v1549_v0  ;;  %vm1359_vm3 = vcmp.lt.s32.totalorder %v18512_v28, 0  ;;  %v1429_v1 = vsub.s32 32, %v1428_v40 }
 0x1f2   : > { %v1433_v15 = vsub.s32 4294967266, %v1428_v40  ;;  %v12429_v62 = vor.u32 %v2834_v9, %v2833_v41  ;;  %v12431_v48 = vor.u32 %v2837_v38, %v2836_v24  ;;  %v2842_v29 = vshll.u32 %v18426_v50, %v2827_v35 }
 0x1f3   : > { %v2841_v17 = vor.u32 %v2840_v32, %v2839_v53  ;;  %v2843_v63 = vshrl.u32 %v18427_v49, %v12401_v33  ;;  %v1430_v5 = vshll.u32 %v12371_v13, %v1428_v40  ;;  %v1431_v20 = vshrl.u32 %v1413_v19, %v1429_v1  ;;  %v18538_v53 = vld [vmem:[#allocation37_spill] sm:$0xff] }
 0x1f4   : > { %v1434_v10 = vadd.s32 127, %v1433_v15  ;;  %v1696_v0 = vshrl.u32 %v18426_v50, %v18527_v21  ;;  %vm2845_vm5 = vcmp.lt.s32.totalorder %v12407_v23, 1  ;;  %vm2847_vm4 = vcmp.lt.s32.totalorder %v12407_v23, 3 }
 0x1f5   : > { %v2844_v36 = vor.u32 %v2843_v63, %v2842_v29  ;;  %vm2848_vm9 = vcmp.lt.s32.totalorder %v12407_v23, 4  ;;  %v1432_v41 = vor.u32 %v1431_v20, %v1430_v5  ;;  %v2853_v35 = vsel %vm2845_vm5, %v12425_v16, %v12429_v62 }
 0x1f6   : > { %v1435_v9 = vshll.u32 %v1434_v10, 23  ;;  %v2854_v13 = vsel %vm2848_vm9, %v2841_v17, 920167782  ;;  %v2857_v24 = vsel %vm2845_vm5, %v12429_v62, %v12431_v48  ;;  %v1693_v32 = vshrl.u32 %v18425_v27, %v18527_v21 }
 0x1f7   : > { %v2855_v19 = vsel %vm2847_vm4, %v12431_v48, %v2854_v13  ;;  %v2858_v38 = vsel %vm2848_vm9, %v2844_v36, 1326507024  ;;  %vm1560_vm10 = vcmp.eq.s32.totalorder %v12388_v55, 2  ;;  %v18529_v40 = vand.u32 2147483647, %v18512_v28 }
 0x1f8   : > { %v1436_v1 = vor.u32 4788187, %v1435_v9  ;;  %vm2846_vm8 = vcmp.lt.s32.totalorder %v12407_v23, 2  ;;  %v1691_v15 = vor.u32 %v1690_v4, %v1689_v14  ;;  %v1695_v29 = vshll.u32 %v18425_v27, %v18528_v42 }
 0x1f9   : > { %vm12462_vm12 = vcmp.le.f32.partialorder %v18529_v40, 0.7853982  ;;  %vm1557_vm6 = vcmp.eq.s32.totalorder %v12388_v55, 0  ;;  %v1439_v36 = vcvt.s32.f32 %v1432_v41  ;;  %v2856_v63 = vsel %vm2846_vm8, %v2853_v35, %v2855_v19 }
 0x1fa   : > { %v2859_v5 = vsel %vm2847_vm4, %v2841_v17, %v2858_v38  ;;  %v1692_v20 = vshll.u32 %v18456_v56, %v18528_v42  ;;  %vm1556_vm13 = vcmp.lt.s32.totalorder %v12388_v55, 2  ;;  %v1437_v10 = vand.u32 2147483647, %v1436_v1 }
 0x1fb   : > { %v2860_v14 = vsel %vm2846_vm8, %v2857_v24, %v2859_v5  ;;  %v1697_v4 = vor.u32 %v1696_v0, %v1695_v29  ;;  %v1699_v9 = vshrl.u32 %v18427_v49, %v18527_v21  ;;  %vm1553_vm14 = vweird.f32 %v18506_v60 }
 0x1fc   : > { %v1444_v17 = vsel %vm1359_vm3, %v1443_v22, %v12353_v61  ;;  %v1677_v41 = vor.u32 8388608, %v12394_v46  ;;  %v1685_v35 = vshrl.u32 %v18385_v2, %v18527_v21  ;;  %v1694_v13 = vor.u32 %v1693_v32, %v1692_v20  ;;  %v18532_v61 = vld [vmem:[#allocation58_spill] sm:$0xff] }
 0x1fd   : > { %v1440_v19 = vmul.f32 %v1439_v36, %v1437_v10  ;;  %v12491_v0 = vmul.u32.u64.low %v12403_v43, %v2856_v63  ;;  %v12492_v24 = vmul.u32.u64.high %v12403_v43, %v2856_v63, %v12491_v0  ;;  %v1698_v38 = vshll.u32 %v18426_v50, %v18528_v42  ;;  %v9654_v46 = vpop.eup %9653 }
 0x1fe   : > { %v12498_v40 = vmul.u32.u64.low %v12403_v43, %v2860_v14  ;;  %v12499_v1 = vmul.u32.u64.high %v12403_v43, %v2860_v14, %v12498_v40  ;;  %vm1701_vm15 = vcmp.lt.s32.totalorder %v18532_v61, 1  ;;  %vm1704_vm0 = vcmp.lt.s32.totalorder %v18532_v61, 4  ;;  %v9656_v36 = vpop.eup %9655 }
 0x1ff   : > { %v1441_v21 = vxor.u32 2147483648, %v1440_v19  ;;  %v1700_v22 = vor.u32 %v1699_v9, %v1698_v38  ;;  %v1709_v32 = vsel %vm1701_vm15, %v12397_v8, %v1691_v15  ;;  %v1710_v29 = vsel %vm1704_vm0, %v1697_v4, 920167782 }
 0x200   : > { %v1561_v42 = vxor.u32 2147483648, %v9654_v46  ;;  %vm1702_vm7 = vcmp.lt.s32.totalorder %v18532_v61, 2  ;;  %vm1703_vm1 = vcmp.lt.s32.totalorder %v18532_v61, 3  ;;  %v1705_v63 = vsel %vm1701_vm15, %v1685_v35, %v12397_v8 }
 0x201   : > { %v1558_v5 = vxor.u32 2147483648, %v9656_v36  ;;  %v1442_v20 = vsel %vm1359_vm3, %v1441_v21, %v1440_v19  ;;  %v1706_v10 = vsel %vm1704_vm0, %v1694_v13, 2102212464  ;;  %v1711_v14 = vsel %vm1703_vm1, %v1694_v13, %v1710_v29 }
 0x202   : > { %v1562_v9 = vsel %vm1560_vm10, %v1561_v42, %v9656_v36  ;;  %v1445_v38 = vsel %vm12462_vm12, %v18512_v28, %v1442_v20  ;;  %v1712_v8 = vsel %vm1702_vm7, %v1709_v32, %v1711_v14  ;;  %v1713_v35 = vsel %vm1701_vm15, %v1691_v15, %v1694_v13 }
 0x203   : > { %v1559_v19 = vsel %vm1557_vm6, %v9654_v46, %v1558_v5  ;;  %9657 = vcosq.f32 %v1445_v38  ;;  %v1714_v40 = vsel %vm1704_vm0, %v1700_v22, 1326507024  ;;  %v1717_v21 = vshll.u32 %v1677_v41, 8 }
 0x204   : > { %v1563_v29 = vsel %vm1556_vm13, %v1559_v19, %v1562_v9  ;;  %9659 = vsinq.f32 %v1445_v38  ;;  %v1707_v36 = vsel %vm1703_vm1, %v1691_v15, %v1706_v10  ;;  %v1715_v32 = vsel %vm1703_vm1, %v1697_v4, %v1714_v40  ;;  %v18533_v15 = vld [vmem:[#allocation57_spill] sm:$0xff] }
 0x205   : > { %v1564_v13 = vsel %vm1553_vm14, nan, %v1563_v29  ;;  %v1716_v46 = vsel %vm1702_vm7, %v1713_v35, %v1715_v32  ;;  %v12542_v42 = vmul.u32.u64.low %v1717_v21, %v1712_v8  ;;  %v12543_v5 = vmul.u32.u64.high %v1717_v21, %v1712_v8, %v12542_v42  ;;  %v18534_v10 = vld [vmem:[#allocation45_spill] sm:$0xff]  ;;  %v18539_v35 = vld [vmem:[#allocation87_spill] sm:$0xff] }
 0x206   : > { %v8961_v41 = vpack.c.bf16 %v1564_v13, %v1564_v13  ;;  %v1446_v55 = vsel %vm12462_vm12, 0, %v1444_v17  ;;  %v12548_v22 = vmul.u32.u64.low %v1717_v21, %v1716_v46  ;;  %v12549_v20 = vmul.u32.u64.high %v1717_v21, %v1716_v46, %v12548_v22 }
 0x207   : > { %vm1775_vm3 = vcmp.lt.s32.totalorder %v18533_v15, 0  ;;  %v2850_v60 = vsel %vm2848_vm9, %v12431_v48, 2102212464  ;;  %v1708_v4 = vsel %vm1702_vm7, %v1705_v63, %v1707_v36  ;;  %v18535_v14 = vand.u32 2147483647, %v18534_v10 }
 0x208   : > { %v1651_v17 = vsub.s32 4, %v18538_v53  ;;  %v2465_v38 = vclz %v12377_v31  ;;  %v2712_v8 = vand.u32 2139095040, %v12362_v34  ;;  %4568 = vrot.lane.b32.xlu0 %v8961_v41, %s10368_s21  ;;  %v2829_v48 = vshrl.u32 %v18385_v2, %v12401_v33 }
 0x209   : > { %vm12559_vm10 = vcmp.le.f32.partialorder %v18535_v14, 0.7853982  ;;  %v12574_v63 = vshrl.u32 %v12383_v18, 30  ;;  %v1450_v19 = vadd.s32 3, %v1446_v55  ;;  %v1727_v40 = vadd.s32 1, %v12543_v5 }
 0x20a   : > { %v1653_v61 = vsel %vm12559_vm10, %v18534_v10, %v18539_v35  ;;  %v2849_v31 = vsel %vm2845_vm5, %v2829_v48, %v12425_v16  ;;  %v2851_v33 = vsel %vm2847_vm4, %v12429_v62, %v2850_v60  ;;  %v1724_v29 = vmul.u32 %v1717_v21, %v1708_v4 }
 0x20b   : > { %18540 = vst [vmem:[#allocation70_spill] sm:$0xff] %v12574_v63  ;;  %9661 = vcosq.f32 %v1653_v61  ;;  %vm1726_vm9 = vc.u32 %v12549_v20, %v12542_v42  ;;  %v2871_v36 = vadd.s32 1, %v12492_v24  ;;  %v1652_v32 = vsel %vm1567_vm11, %v1651_v17, %v18538_v53 }
 0x20c   : > { %v1728_v18 = vsel %vm1726_vm9, %v1727_v40, %v12543_v5  ;;  %9663 = vsinq.f32 %v1653_v61  ;;  %v1857_v13 = vxor.u32 2147483648, %v12306_v25  ;;  %v2059_v16 = vshll.u32 %v12373_v45, 23 }
 0x20d   : > { %vm2870_vm5 = vc.u32 %v12499_v1, %v12491_v0  ;;  %v1729_v62 = vadd.s32 %v1728_v18, %v1724_v29  ;;  %v2054_v21 = vshll.u32 %v11704_v44, %v12313_v30  ;;  %v8640_v46 = vadd.s32 4294967294, %v2465_v38 }
 0x20e   : > { %v2668_v41 = vshll.u32 %v12574_v63, 30  ;;  %v2852_v5 = vsel %vm2846_vm8, %v2849_v31, %v2851_v33  ;;  %v12600_v55 = vshrl.u32 %v12043_v7, 5  ;;  %v1451_v22 = vand.u32 3, %v1450_v19 }
 0x20f   : > { %v1730_v60 = vadd.s32 536870912, %v1729_v62  ;;  %v1654_v45 = vsel %vm12559_vm10, 0, %v1652_v32  ;;  %v2056_v4 = vor.u32 %v12367_v54, %v2054_v21  ;;  %v12606_v14 = vand.u32 31, %v12043_v7 }
 0x210   : > { %18541 = vst [vmem:[#allocation74_spill] sm:$0xff] %v12600_v55  ;;  %v2713_v44 = vshrl.u32 %v2712_v8, 23  ;;  %v2872_v30 = vsel %vm2870_vm5, %v2871_v36, %v12492_v24  ;;  %v9658_v53 = vpop.eup %9657  ;;  %v12612_v23 = vsel %vm1775_vm3, %v1857_v13, %v12306_v25  ;;  %v2060_v17 = vor.u32 4788187, %v2059_v16 }
 0x211   : > { %18542 = vst [vmem:[#allocation48_spill] sm:$0xff] %v12606_v14  ;;  %v2868_v38 = vmul.u32 %v12403_v43, %v2852_v5  ;;  %v12615_v48 = vshrl.u32 %v1730_v60, 30  ;;  %v9660_v9 = vpop.eup %9659  ;;  %vm8641_vm11 = vcmp.lt.s32.totalorder %v8640_v46, 0  ;;  %v12618_v54 = vsub.s32 %v12369_v58, %v2668_v41 }
 0x212   : > { %v1457_v7 = vxor.u32 2147483648, %v9658_v53  ;;  %v1658_v8 = vadd.s32 3, %v1654_v45  ;;  %v1454_v35 = vxor.u32 2147483648, %v9660_v9  ;;  %vm1456_vm4 = vcmp.eq.s32.totalorder %v1451_v22, 2 }
 0x213   : > { %v12620_v24 = vadd.s32 %v2872_v30, %v2868_v38  ;;  %v1732_v61 = vshll.u32 %v12615_v48, 30  ;;  %v2063_v25 = vcvt.s32.f32 %v2056_v4  ;;  %v8650_v19 = vadd.s32 4294967169, %v2713_v44 }
 0x214   : > { %vm1453_vm12 = vcmp.eq.s32.totalorder %v1451_v22, 0  ;;  %v1458_v40 = vsel %vm1456_vm4, %v1457_v7, %v9660_v9  ;;  %v2061_v43 = vand.u32 2147483647, %v2060_v17  ;;  %vm1452_vm8 = vcmp.lt.s32.totalorder %v1451_v22, 2  ;;  %v18545_v9 = vld [vmem:[#allocation36_spill] sm:$0xff] }
 0x215   : > { %v1455_v31 = vsel %vm1453_vm12, %v9658_v53, %v1454_v35  ;;  %v12623_v33 = vsub.s32 %v1729_v62, %v1732_v61  ;;  %v12626_v58 = vsel %vm8641_vm11, 0, %v8640_v46  ;;  %vm1449_vm6 = vweird.f32 %v18512_v28 }
 0x216   : > { %v1459_v29 = vsel %vm1452_vm8, %v1455_v31, %v1458_v40  ;;  %v1659_v36 = vand.u32 3, %v1658_v8  ;;  %v12631_v32 = vadd.s32 %v11952_v26, %v11944_v39  ;;  %v2671_v13 = vsub.s32 0, %v12618_v54  ;;  %v18543_v26 = vld [vmem:[#allocation60_spill] sm:$0xff] }
 0x217   : > { %v1460_v16 = vsel %vm1449_vm6, nan, %v1459_v29  ;;  %v2874_v21 = vadd.s32 536870912, %v12620_v24  ;;  %v12635_v41 = vadd.s32 1, %v8650_v19  ;;  %v1735_v46 = vsub.s32 0, %v12623_v33  ;;  %v18546_v19 = vld [vmem:[#allocation81_spill] sm:$0xff] }
 0x218   : > { %v9662_v18 = vpop.eup %9661  ;;  %v8960_v62 = vpack.c.bf16 %v1460_v16, %v1460_v16  ;;  %v12638_v28 = vmul.f32 %v2063_v25, %v2061_v43  ;;  %v2469_v60 = vsub.s32 32, %v12626_v58  ;;  %v2470_v39 = vshll.u32 %v12331_v52, %v12626_v58 }
 0x219   : > { %v1665_v5 = vxor.u32 2147483648, %v9662_v18  ;;  %v9664_v22 = vpop.eup %9663  ;;  %v18219_v45 = vand.u32 2147483647, %v18543_v26  ;;  %v2473_v4 = vsub.s32 4294967266, %v12626_v58  ;;  %v8611_v44 = vmin.u32 %v1735_v46, %v12623_v33  ;;  %v12796_v58 = vld [vmem:[%s18038_s1 + $0x2] ss:$0 sm:$0xff] }
 0x21a   : > { %4566 = vrot.lane.b32.xlu1 %v8960_v62, %s10368_s21  ;;  %v1662_v30 = vxor.u32 2147483648, %v9664_v22  ;;  %vm1664_vm13 = vcmp.eq.s32.totalorder %v1659_v36, 2  ;;  %v12648_v53 = vmin.u32 %v2671_v13, %v12618_v54  ;;  %v12650_v17 = vshrl.u32 %v2874_v21, 30 }
 0x21b   : > { %v1666_v38 = vsel %vm1664_vm13, %v1665_v5, %v9664_v22  ;;  %v1895_v7 = vshrl.u32 %v18423_v12, %v18545_v9  ;;  %v1737_v8 = vclz %v8611_v44  ;;  %vm1657_vm14 = vweird.f32 %v18534_v10 }
 0x21c   : > { %18544 = vst [vmem:[#allocation55_spill] sm:$0xff] %v12650_v17  ;;  %vm1661_vm15 = vcmp.eq.s32.totalorder %v1659_v36, 0  ;;  %v1898_v35 = vshrl.u32 %v18456_v56, %v18545_v9  ;;  %vm1660_vm0 = vcmp.lt.s32.totalorder %v1659_v36, 2  ;;  %v1884_v25 = vand.u32 8388607, %v18219_v45 }
 0x21d   : > { %v1663_v61 = vsel %vm1661_vm15, %v9662_v18, %v1662_v30  ;;  %v1894_v40 = vshll.u32 %v18385_v2, %v18546_v19  ;;  %v8612_v43 = vadd.s32 4294967294, %v1737_v8  ;;  %v1897_v29 = vshll.u32 %v18423_v12, %v18546_v19 }
 0x21e   : > { %v1667_v31 = vsel %vm1660_vm0, %v1663_v61, %v1666_v38  ;;  %v1901_v10 = vshrl.u32 %v18425_v27, %v18545_v9  ;;  %v1903_v36 = vshll.u32 %v18425_v27, %v18546_v19  ;;  %v1904_v18 = vshrl.u32 %v18426_v50, %v18545_v9  ;;  %v12678_v61 = vpop.permute.xlu1 %786 }
 0x21f   : > { %v1668_v13 = vsel %vm1657_vm14, nan, %v1667_v31  ;;  %v1896_v16 = vor.u32 %v1895_v7, %v1894_v40  ;;  %vm8613_vm7 = vcmp.lt.s32.totalorder %v8612_v43, 0  ;;  %v1899_v62 = vor.u32 %v1898_v35, %v1897_v29 }
 0x220   : > { %v8962_v21 = vpack.c.bf16 %v1668_v13, %v1668_v13  ;;  %v1900_v46 = vshll.u32 %v18456_v56, %v18546_v19  ;;  %v1740_v5 = vsel %vm8613_vm7, 0, %v8612_v43  ;;  %v1905_v22 = vor.u32 %v1904_v18, %v1903_v36  ;;  %v18547_v36 = vld [vmem:[#allocation80_spill] sm:$0xff] }
 0x221   : > { %v1906_v44 = vshll.u32 %v18426_v50, %v18546_v19  ;;  %v1907_v30 = vshrl.u32 %v18427_v49, %v18545_v9  ;;  %v1725_v38 = vadd.s32 %v12542_v42, %v12549_v20  ;;  %v1741_v7 = vsub.s32 32, %v1740_v5 }
 0x222   : > { %v1745_v8 = vsub.s32 4294967266, %v1740_v5  ;;  %4570 = vrot.lane.b32.xlu1 %v8962_v21, %s10368_s21  ;;  %v1902_v35 = vor.u32 %v1901_v10, %v1900_v46  ;;  %v2876_v40 = vshll.u32 %v12650_v17, 30  ;;  %v1742_v43 = vshll.u32 %v12623_v33, %v1740_v5 }
 0x223   : > { %v1885_v31 = vor.u32 8388608, %v1884_v25  ;;  %v1908_v29 = vor.u32 %v1907_v30, %v1906_v44  ;;  %v1743_v19 = vshrl.u32 %v1725_v38, %v1741_v7  ;;  %vm1909_vm1 = vcmp.lt.s32.totalorder %v18547_v36, 1 }
 0x224   : > { %v1746_v13 = vadd.s32 127, %v1745_v8  ;;  %vm1912_vm10 = vcmp.lt.s32.totalorder %v18547_v36, 4  ;;  %v1893_v42 = vshrl.u32 %v18385_v2, %v18545_v9  ;;  %vm1911_vm9 = vcmp.lt.s32.totalorder %v18547_v36, 3  ;;  %v12699_v8 = vpop.permute.xlu1 %424 }
 0x225   : > { %v1917_v20 = vsel %vm1909_vm1, %v1896_v16, %v1899_v62  ;;  %v1918_v10 = vsel %vm1912_vm10, %v1905_v22, 920167782  ;;  %v1744_v18 = vor.u32 %v1743_v19, %v1742_v43  ;;  %v1914_v33 = vsel %vm1912_vm10, %v1902_v35, 2102212464 }
 0x226   : > { %v1747_v21 = vshll.u32 %v1746_v13, 23  ;;  %v1919_v25 = vsel %vm1911_vm9, %v1902_v35, %v1918_v10  ;;  %v1755_v46 = vsub.s32 4, %v12615_v48  ;;  %vm1910_vm5 = vcmp.lt.s32.totalorder %v18547_v36, 2 }
 0x227   : > { %v1921_v5 = vsel %vm1909_vm1, %v1899_v62, %v1902_v35  ;;  %v1922_v9 = vsel %vm1912_vm10, %v1908_v29, 1326507024  ;;  %v1920_v30 = vsel %vm1910_vm5, %v1917_v20, %v1919_v25  ;;  %v1925_v7 = vshll.u32 %v1885_v31, 8 }
 0x228   : > { %v1748_v44 = vor.u32 4788187, %v1747_v21  ;;  %v1923_v38 = vsel %vm1911_vm9, %v1905_v22, %v1922_v9  ;;  %v12702_v43 = vsub.s32 %v12620_v24, %v2876_v40  ;;  %v1913_v19 = vsel %vm1909_vm1, %v1893_v42, %v1896_v16  ;;  %v18551_v21 = vld [vmem:[#allocation69_spill] sm:$0xff]  ;;  %v595_v36 = vpop.permute.xlu1 %594 }
 0x229   : > { %v1915_v35 = vsel %vm1911_vm9, %v1899_v62, %v1914_v33  ;;  %v1924_v29 = vsel %vm1910_vm5, %v1921_v5, %v1923_v38  ;;  %vm2720_vm11 = vcmp.gt.s32.totalorder %v12635_v41, 0  ;;  %v1751_v20 = vcvt.s32.f32 %v1744_v18  ;;  %v12783_v18 = vld [vmem:[%s18038_s1] ss:$0 sm:$0xff] }
 0x22a   : > { %v1749_v13 = vand.u32 2147483647, %v1748_v44  ;;  %v12711_v22 = vmul.u32.u64.low %v1925_v7, %v1924_v29  ;;  %v12712_v31 = vmul.u32.u64.high %v1925_v7, %v1924_v29, %v12711_v22  ;;  %v2474_v24 = vadd.s32 127, %v2473_v4 }
 0x22b   : > { %vm1671_vm4 = vcmp.lt.s32.totalorder %v18526_v51, 0  ;;  %v12717_v40 = vmul.u32.u64.low %v1925_v7, %v1920_v30  ;;  %v12718_v16 = vmul.u32.u64.high %v1925_v7, %v1920_v30, %v12717_v40  ;;  %v18548_v10 = vand.u32 2147483647, %v18533_v15 }
 0x22c   : > { %v1752_v62 = vmul.f32 %v1751_v20, %v1749_v13  ;;  %v1756_v42 = vsel %vm1671_vm4, %v1755_v46, %v12615_v48  ;;  %v1859_v33 = vsub.s32 4, %v18551_v21  ;;  %v2673_v4 = vclz %v12648_v53 }
 0x22d   : > { %vm12726_vm12 = vcmp.le.f32.partialorder %v18548_v10, 0.7853982  ;;  %v2879_v25 = vsub.s32 0, %v12702_v43  ;;  %v1916_v5 = vsel %vm1910_vm5, %v1913_v19, %v1915_v35  ;;  %v2471_v46 = vshrl.u32 %v12631_v32, %v2469_v60 }
 0x22e   : > { %v1861_v48 = vsel %vm12726_vm12, %v18533_v15, %v12612_v23  ;;  %vm12744_vm8 = vcmp.le.f32.partialorder %v1669_v11, 0.7853982  ;;  %v1753_v53 = vxor.u32 2147483648, %v1752_v62  ;;  %vm1934_vm6 = vc.u32 %v12712_v31, %v12717_v40 }
 0x22f   : > { %v1758_v44 = vsel %vm12744_vm8, 0, %v1756_v42  ;;  %v1935_v23 = vadd.s32 1, %v12718_v16  ;;  %v1860_v32 = vsel %vm1775_vm3, %v1859_v33, %v18551_v21  ;;  %9665 = vcosq.f32 %v1861_v48  ;;  %v18557_v21 = vld [vmem:[#allocation42_spill] sm:$0xff] }
 0x230   : > { %v2475_v60 = vshll.u32 %v2474_v24, 23  ;;  %v1754_v11 = vsel %vm1671_vm4, %v1753_v53, %v1752_v62  ;;  %v1932_v30 = vmul.u32 %v1925_v7, %v1916_v5  ;;  %9667 = vsinq.f32 %v1861_v48  ;;  %v18556_v62 = vld [vmem:[#allocation46_spill] sm:$0xff]  ;;  %v430_v5 = vpop.permute.xlu1 %429 }
 0x231   : > { %v8648_v38 = vadd.s32 4294967294, %v2673_v4  ;;  %v8655_v19 = vmin.u32 %v2879_v25, %v12702_v43  ;;  %v1757_v35 = vsel %vm12744_vm8, %v18526_v51, %v1754_v11  ;;  %v1936_v29 = vsel %vm1934_vm6, %v1935_v23, %v12718_v16  ;;  %v599_v4 = vpop.permute.xlu0 %598 }
 0x232   : > { %9669 = vcosq.f32 %v1757_v35  ;;  %v1762_v13 = vadd.s32 3, %v1758_v44  ;;  %v1937_v20 = vadd.s32 %v1936_v29, %v1932_v30  ;;  %v1862_v22 = vsel %vm12726_vm12, 0, %v1860_v32 }
 0x233   : > { %v12766_v24 = vsub.s32 32, %v12030_v37  ;;  %v12769_v7 = vsub.s32 32, %v12606_v14  ;;  %v664_v42 = vmul.f32 %v12278_v47, %v18556_v62  ;;  %9671 = vsinq.f32 %v1757_v35 }
 0x234   : > { %v12776_v16 = vor.u32 %v2471_v46, %v2470_v39  ;;  %v12778_v10 = vor.u32 4788187, %v2475_v60  ;;  %v500_v33 = vmul.f32 %v12783_v18, %v18557_v21  ;;  %v1938_v25 = vadd.s32 536870912, %v1937_v20  ;;  %v18559_v60 = vld [vmem:[#allocation65_spill] sm:$0xff] }
 0x235   : > { %18554 = vst [vmem:[#allocation64_spill] sm:$0xff] %v12766_v24  ;;  %18555 = vst [vmem:[#allocation72_spill] sm:$0xff] %v12769_v7  ;;  %v12791_v52 = vsel %vm2720_vm11, %v12635_v41, 0  ;;  %v860_v39 = vmul.f32 %v12796_v58, %v12678_v61  ;;  %v1866_v46 = vadd.s32 3, %v1862_v22  ;;  %vm8649_vm3 = vcmp.lt.s32.totalorder %v8648_v38, 0  ;;  %v603_v21 = vpop.permute.xlu0 %602 }
 0x236   : > { %18558 = vst [vmem:[#allocation62_spill] sm:$0xff] %v12791_v52  ;;  %v2881_v9 = vclz %v8655_v19  ;;  %v12800_v53 = vand.u32 3, %v1762_v13  ;;  %v12802_v44 = vshrl.u32 %v1938_v25, 30  ;;  %v696_v23 = vadd.f32 %v664_v42, %v500_v33  ;;  %v12828_v33 = vpop.permute.xlu1 %434 }
 0x237   : > { %v666_v32 = vmul.f32 %v12278_v47, %v599_v4  ;;  %v502_v41 = vmul.f32 %v12783_v18, %v12699_v8  ;;  %v18218_v11 = vand.u32 2147483647, %v18559_v60  ;;  %v12811_v61 = vand.u32 31, %v12791_v52 }
 0x238   : > { %v1940_v19 = vshll.u32 %v12802_v44, 30  ;;  %v12816_v29 = vadd.s32 %v12283_v3, %v12290_v57  ;;  %v12818_v13 = vsel %vm8649_vm3, 0, %v8648_v38  ;;  %v12820_v22 = vadd.f32 %v860_v39, %v696_v23 }
 0x239   : > { %18560 = vst [vmem:[#allocation51_spill] sm:$0xff] %v12811_v61  ;;  %v1867_v8 = vand.u32 3, %v1866_v46  ;;  %v12822_v62 = vadd.s32 4294967294, %v2881_v9  ;;  %vm1765_vm13 = vcmp.eq.s32.totalorder %v12800_v53, 0  ;;  %vm1768_vm14 = vcmp.eq.s32.totalorder %v12800_v53, 2  ;;  %v18561_v9 = vld [vmem:[#allocation90_spill] sm:$0xff] }
 0x23a   : > { %v12826_v42 = vsub.s32 %v1937_v20, %v1940_v19  ;;  %vm1764_vm15 = vcmp.lt.s32.totalorder %v12800_v53, 2  ;;  %v12832_v3 = vmul.f32 %v12278_v47, %v603_v21  ;;  %v12834_v57 = vadd.f32 %v666_v32, %v502_v41  ;;  %v12871_v34 = vpop.permute.xlu1 %606 }
 0x23b   : > { %v12837_v38 = vmul.f32 %v12278_v47, %v595_v36  ;;  %v12841_v4 = vand.u32 8388607, %v18218_v11  ;;  %vm1761_vm0 = vweird.f32 %v18526_v51  ;;  %v1933_v20 = vadd.s32 %v12717_v40, %v12712_v31  ;;  %v18562_v31 = vld [vmem:[#allocation84_spill] sm:$0xff] }
 0x23c   : > { %v9666_v25 = vpop.eup %9665  ;;  %v1943_v39 = vsub.s32 0, %v12826_v42  ;;  %v12848_v46 = vmul.f32 %v12783_v18, %v430_v5  ;;  %v12852_v23 = vshrl.u32 %v18385_v2, %v18561_v9  ;;  %vm1868_vm7 = vcmp.lt.s32.totalorder %v1867_v8, 2 }
 0x23d   : > { %v9668_v47 = vpop.eup %9667  ;;  %vm1869_vm1 = vcmp.eq.s32.totalorder %v1867_v8, 0  ;;  %v1873_v36 = vxor.u32 2147483648, %v9666_v25  ;;  %v2103_v32 = vshrl.u32 %v18423_v12, %v18561_v9  ;;  %vm1865_vm10 = vweird.f32 %v18533_v15 }
 0x23e   : > { %v8619_v41 = vmin.u32 %v1943_v39, %v12826_v42  ;;  %vm1872_vm9 = vcmp.eq.s32.totalorder %v1867_v8, 2  ;;  %v2102_v40 = vshll.u32 %v18385_v2, %v18562_v31  ;;  %v2106_v5 = vshrl.u32 %v18456_v56, %v18561_v9  ;;  %v795_v53 = vpop.permute.xlu1 %794 }
 0x23f   : > { %v9670_v19 = vpop.eup %9669  ;;  %v1870_v21 = vxor.u32 2147483648, %v9668_v47  ;;  %v2093_v11 = vor.u32 8388608, %v12841_v4  ;;  %v2105_v48 = vshll.u32 %v18423_v12, %v18562_v31  ;;  %v2109_v35 = vshrl.u32 %v18425_v27, %v18561_v9 }
 0x240   : > { %v9672_v39 = vpop.eup %9671  ;;  %v1769_v30 = vxor.u32 2147483648, %v9670_v19  ;;  %v1945_v45 = vclz %v8619_v41  ;;  %v2108_v17 = vshll.u32 %v18456_v56, %v18562_v31  ;;  %v2112_v63 = vshrl.u32 %v18426_v50, %v18561_v9 }
 0x241   : > { %v1766_v59 = vxor.u32 2147483648, %v9672_v39  ;;  %v1874_v37 = vsel %vm1872_vm9, %v1873_v36, %v9668_v47  ;;  %v2104_v4 = vor.u32 %v2103_v32, %v2102_v40  ;;  %v2115_v24 = vshrl.u32 %v18427_v49, %v18561_v9  ;;  %v18563_v32 = vld [vmem:[#allocation88_spill] sm:$0xff] }
 0x242   : > { %v1770_v55 = vsel %vm1768_vm14, %v1769_v30, %v9672_v39  ;;  %v8620_v14 = vadd.s32 4294967294, %v1945_v45  ;;  %v2107_v7 = vor.u32 %v2106_v5, %v2105_v48  ;;  %v2111_v41 = vshll.u32 %v18425_v27, %v18562_v31 }
 0x243   : > { %v1767_v6 = vsel %vm1765_vm13, %v9670_v19, %v1766_v59  ;;  %v1871_v61 = vsel %vm1869_vm1, %v9666_v25, %v1870_v21  ;;  %v2110_v52 = vor.u32 %v2109_v35, %v2108_v17  ;;  %v2114_v47 = vshll.u32 %v18426_v50, %v18562_v31 }
 0x244   : > { %v1771_v9 = vsel %vm1764_vm15, %v1767_v6, %v1770_v55  ;;  %vm8621_vm5 = vcmp.lt.s32.totalorder %v8620_v14, 0  ;;  %v1875_v30 = vsel %vm1868_vm7, %v1871_v61, %v1874_v37  ;;  %v2113_v45 = vor.u32 %v2112_v63, %v2111_v41 }
 0x245   : > { %vm8657_vm11 = vcmp.lt.s32.totalorder %v12822_v62, 0  ;;  %v1772_v48 = vsel %vm1761_vm0, nan, %v1771_v9  ;;  %v1948_v36 = vsel %vm8621_vm5, 0, %v8620_v14  ;;  %v2116_v59 = vor.u32 %v2115_v24, %v2114_v47 }
 0x246   : > { %vm2117_vm4 = vcmp.lt.s32.totalorder %v18563_v32, 1  ;;  %v8963_v17 = vpack.c.bf16 %v1772_v48, %v1772_v48  ;;  %v1949_v35 = vsub.s32 32, %v1948_v36  ;;  %v1953_v25 = vsub.s32 4294967266, %v1948_v36 }
 0x247   : > { %vm2120_vm12 = vcmp.lt.s32.totalorder %v18563_v32, 4  ;;  %v1876_v6 = vsel %vm1865_vm10, nan, %v1875_v30  ;;  %vm2118_vm8 = vcmp.lt.s32.totalorder %v18563_v32, 2  ;;  %vm2119_vm6 = vcmp.lt.s32.totalorder %v18563_v32, 3 }
 0x248   : > { %v2122_v37 = vsel %vm2120_vm12, %v2110_v52, 2102212464  ;;  %4572 = vrot.lane.b32.xlu0 %v8963_v17, %s10368_s21  ;;  %v1950_v51 = vshll.u32 %v12826_v42, %v1948_v36  ;;  %v1951_v63 = vshrl.u32 %v1933_v20, %v1949_v35  ;;  %v1954_v55 = vadd.s32 127, %v1953_v25  ;;  %v18564_v20 = vld [vmem:[#allocation76_spill] sm:$0xff] }
 0x249   : > { %v8964_v14 = vpack.c.bf16 %v1876_v6, %v1876_v6  ;;  %v2125_v24 = vsel %vm2117_vm4, %v2104_v4, %v2107_v7  ;;  %v2126_v61 = vsel %vm2120_vm12, %v2113_v45, 920167782  ;;  %v2129_v15 = vsel %vm2117_vm4, %v2107_v7, %v2110_v52 }
 0x24a   : > { %v2130_v8 = vsel %vm2120_vm12, %v2116_v59, 1326507024  ;;  %v1952_v31 = vor.u32 %v1951_v63, %v1950_v51  ;;  %v1955_v40 = vshll.u32 %v1954_v55, 23  ;;  %v2127_v5 = vsel %vm2119_vm6, %v2110_v52, %v2126_v61  ;;  %v18566_v63 = vld [vmem:[#allocation49_spill] sm:$0xff]  ;;  %v18567_v55 = vld [vmem:[#allocation40_spill] sm:$0xff] }
 0x24b   : > { %4574 = vrot.lane.b32.xlu1 %v8964_v14, %s10368_s21  ;;  %v2131_v42 = vsel %vm2119_vm6, %v2113_v45, %v2130_v8  ;;  %v697_v19 = vadd.f32 %v12837_v38, %v18564_v20  ;;  %v2128_v21 = vsel %vm2118_vm8, %v2125_v24, %v2127_v5  ;;  %v2133_v41 = vshll.u32 %v2093_v11, 8  ;;  %v799_v45 = vpop.permute.xlu1 %798  ;;  %v12929_v11 = vld [vmem:[%s18038_s1 + $0x3] ss:$0 sm:$0xff] }
 0x24c   : > { %v2132_v39 = vsel %vm2118_vm8, %v2129_v15, %v2131_v42  ;;  %v1956_v47 = vor.u32 4788187, %v1955_v40  ;;  %v2121_v9 = vsel %vm2117_vm4, %v12852_v23, %v2104_v4  ;;  %v2123_v52 = vsel %vm2119_vm6, %v2107_v7, %v2122_v37 }
 0x24d   : > { %v862_v30 = vmul.f32 %v12796_v58, %v795_v53  ;;  %v12919_v48 = vmul.u32.u64.low %v2133_v41, %v2132_v39  ;;  %v12920_v38 = vmul.u32.u64.high %v2133_v41, %v2132_v39, %v12919_v48  ;;  %v12933_v23 = vadd.f32 %v12929_v11, %v12820_v22 }
 0x24e   : > { %v12922_v36 = vmul.u32.u64.low %v2133_v41, %v2128_v21  ;;  %v12923_v59 = vmul.u32.u64.high %v2133_v41, %v2128_v21, %v12922_v36  ;;  %v1957_v7 = vand.u32 2147483647, %v1956_v47  ;;  %v1959_v4 = vcvt.s32.f32 %v1952_v31 }
 0x24f   : > { %18565 = vst [vmem:[#allocation44_spill] sm:$0xff] %v12933_v23  ;;  %v12936_v17 = vadd.f32 %v862_v30, %v12834_v57  ;;  %v1963_v35 = vsub.s32 4, %v12802_v44  ;;  %v699_v25 = vadd.f32 %v12832_v3, %v12848_v46  ;;  %v2124_v53 = vsel %vm2118_vm8, %v2121_v9, %v2123_v52 }
 0x250   : > { %v863_v6 = vmul.f32 %v12796_v58, %v799_v45  ;;  %v2677_v37 = vsub.s32 32, %v12818_v13  ;;  %v2681_v22 = vsub.s32 4294967266, %v12818_v13  ;;  %v2884_v51 = vsel %vm8657_vm11, 0, %v12822_v62 }
 0x251   : > { %v1960_v57 = vmul.f32 %v1959_v4, %v1957_v7  ;;  %vm1983_vm3 = vcmp.lt.s32.totalorder %v18566_v63, 0  ;;  %v893_v14 = vadd.f32 %v18567_v55, %v697_v19  ;;  %vm2142_vm13 = vc.u32 %v12920_v38, %v12922_v36 }
 0x252   : > { %v2143_v3 = vadd.s32 1, %v12923_v59  ;;  %v895_v46 = vadd.f32 %v863_v6, %v699_v25  ;;  %v2920_v58 = vand.u32 2139095040, %v12933_v23  ;;  %vm1879_vm14 = vcmp.lt.s32.totalorder %v18543_v26, 0 }
 0x253   : > { %v1961_v32 = vxor.u32 2147483648, %v1960_v57  ;;  %v2140_v24 = vmul.u32 %v2133_v41, %v2124_v53  ;;  %v2889_v61 = vsub.s32 4294967266, %v2884_v51  ;;  %v1964_v62 = vsel %vm1879_vm14, %v1963_v35, %v12802_v44 }
 0x254   : > { %v2144_v15 = vsel %vm2142_vm13, %v2143_v3, %v12923_v59  ;;  %v12959_v8 = vadd.f32 %v12929_v11, %v895_v46  ;;  %v2682_v31 = vadd.s32 127, %v2681_v22  ;;  %v18568_v40 = vand.u32 2147483647, %v18543_v26 }
 0x255   : > { %v1962_v42 = vsel %vm1879_vm14, %v1961_v32, %v1960_v57  ;;  %v2145_v20 = vadd.s32 %v2144_v15, %v2140_v24  ;;  %v2679_v19 = vshrl.u32 %v12816_v29, %v2677_v37  ;;  %v12972_v21 = vadd.f32 %v12929_v11, %v893_v14 }
 0x256   : > { %vm12963_vm15 = vcmp.le.f32.partialorder %v18568_v40, 0.7853982  ;;  %v3232_v39 = vand.u32 2139095040, %v12959_v8  ;;  %v2921_v41 = vshrl.u32 %v2920_v58, 23  ;;  %v2885_v52 = vsub.s32 32, %v2884_v51 }
 0x257   : > { %v1965_v44 = vsel %vm12963_vm15, %v18543_v26, %v1962_v42  ;;  %18571 = vst [vmem:[#allocation71_spill] sm:$0xff] %v12972_v21  ;;  %v1966_v47 = vsel %vm12963_vm15, 0, %v1964_v62  ;;  %v2146_v9 = vadd.s32 536870912, %v2145_v20  ;;  %v2890_v30 = vadd.s32 127, %v2889_v61 }
 0x258   : > { %9673 = vcosq.f32 %v1965_v44  ;;  %v3233_v45 = vshrl.u32 %v3232_v39, 23  ;;  %v18572_v29 = vand.u32 2147483647, %v12778_v10  ;;  %v18573_v48 = vcvt.s32.f32 %v12776_v16 }
 0x259   : > { %9675 = vsinq.f32 %v1965_v44  ;;  %v2678_v7 = vshll.u32 %v12618_v54, %v12818_v13  ;;  %v2683_v4 = vshll.u32 %v2682_v31, 23  ;;  %v12985_v35 = vshrl.u32 %v2146_v9, 30  ;;  %v18575_v13 = vld [vmem:[#allocation94_spill] sm:$0xff] }
 0x25a   : > { %v12981_v59 = vmul.f32 %v18573_v48, %v18572_v29  ;;  %v2869_v25 = vadd.s32 %v12491_v0, %v12499_v1  ;;  %v1970_v53 = vadd.s32 3, %v1966_v47  ;;  %v3024_v6 = vand.u32 2139095040, %v12972_v21  ;;  %v13043_v29 = vld [vmem:[%s18038_s1 + $0x1] ss:$0 sm:$0xff] }
 0x25b   : > { %v8670_v37 = vadd.s32 4294967169, %v3233_v45  ;;  %v18574_v10 = vxor.u32 2147483648, %v12638_v28  ;;  %v12995_v22 = vor.u32 %v2679_v19, %v2678_v7  ;;  %v2148_v54 = vshll.u32 %v12985_v35, 30 }
 0x25c   : > { %v2067_v57 = vsub.s32 4, %v18575_v13  ;;  %v2887_v55 = vshrl.u32 %v2869_v25, %v2885_v52  ;;  %v2891_v14 = vshll.u32 %v2890_v30, 23  ;;  %v8658_v3 = vadd.s32 4294967169, %v2921_v41 }
 0x25d   : > { %v2066_v16 = vsel %vm1983_vm3, %v18574_v10, %v12638_v28  ;;  %v3239_v0 = vadd.s32 1, %v8670_v37  ;;  %v2481_v1 = vxor.u32 2147483648, %v12981_v59  ;;  %v13000_v46 = vor.u32 4788187, %v2683_v4 }
 0x25e   : > { %v13002_v58 = vsub.s32 %v2145_v20, %v2148_v54  ;;  %v18240_v32 = vand.u32 2147483647, %v12959_v8  ;;  %v2886_v28 = vshll.u32 %v12702_v43, %v2884_v51  ;;  %v1971_v24 = vand.u32 3, %v1970_v53 }
 0x25f   : > { %v3025_v61 = vshrl.u32 %v3024_v6, 23  ;;  %vm3240_vm0 = vcmp.gt.s32.totalorder %v3239_v0, 0  ;;  %v2687_v62 = vcvt.s32.f32 %v12995_v22  ;;  %v18576_v31 = vand.u32 2147483647, %v18566_v63 }
 0x260   : > { %v2151_v15 = vsub.s32 0, %v13002_v58  ;;  %v2068_v5 = vsel %vm1983_vm3, %v2067_v57, %v18575_v13  ;;  %v13017_v42 = vor.u32 %v2887_v55, %v2886_v28  ;;  %v13019_v43 = vor.u32 4788187, %v2891_v14 }
 0x261   : > { %vm13010_vm7 = vcmp.le.f32.partialorder %v18576_v31, 0.7853982  ;;  %v13021_v51 = vadd.s32 1, %v8658_v3  ;;  %vm1969_vm1 = vweird.f32 %v18543_v26  ;;  %v13029_v19 = vmul.f32 %v12783_v18, %v12828_v33 }
 0x262   : > { %v2069_v20 = vsel %vm13010_vm7, %v18566_v63, %v2066_v16  ;;  %v8627_v44 = vmin.u32 %v2151_v15, %v13002_v58  ;;  %v3236_v39 = vand.u32 8388607, %v18240_v32  ;;  %v3241_v41 = vsel %vm3240_vm0, %v3239_v0, 0 }
 0x263   : > { %vm1972_vm10 = vcmp.lt.s32.totalorder %v1971_v24, 2  ;;  %v13034_v47 = vadd.s32 4294967169, %v3025_v61  ;;  %v3243_v9 = vand.u32 31, %v3241_v41  ;;  %v2070_v52 = vsel %vm13010_vm7, 0, %v2068_v5 }
 0x264   : > { %vm1973_vm9 = vcmp.eq.s32.totalorder %v1971_v24, 0  ;;  %vm1976_vm5 = vcmp.eq.s32.totalorder %v1971_v24, 2  ;;  %v2153_v30 = vclz %v8627_v44  ;;  %9677 = vcosq.f32 %v2069_v20 }
 0x265   : > { %v9674_v45 = vpop.eup %9673  ;;  %v2141_v33 = vadd.s32 %v12922_v36, %v12920_v38  ;;  %v13047_v48 = vmul.f32 %v13043_v29, %v12871_v34  ;;  %v13049_v7 = vsub.s32 32, %v3243_v9  ;;  %9679 = vsinq.f32 %v2069_v20 }
 0x266   : > { %v9676_v4 = vpop.eup %9675  ;;  %v1977_v25 = vxor.u32 2147483648, %v9674_v45  ;;  %v8628_v53 = vadd.s32 4294967294, %v2153_v30  ;;  %v3237_v6 = vor.u32 8388608, %v3236_v39  ;;  %v2074_v37 = vadd.s32 3, %v2070_v52 }
 0x267   : > { %v1974_v10 = vxor.u32 2147483648, %v9676_v4  ;;  %v13051_v16 = vshrl.u32 %v3241_v41, 5  ;;  %v3246_v38 = vshll.u32 %v18385_v2, %v3243_v9  ;;  %v3249_v36 = vshll.u32 %v18423_v12, %v3243_v9 }
 0x268   : > { %v1978_v54 = vsel %vm1976_vm5, %v1977_v25, %v9676_v4  ;;  %vm8629_vm11 = vcmp.lt.s32.totalorder %v8628_v53, 0  ;;  %v3247_v34 = vshrl.u32 %v18423_v12, %v13049_v7  ;;  %v3250_v13 = vshrl.u32 %v18456_v56, %v13049_v7 }
 0x269   : > { %v1975_v57 = vsel %vm1973_vm9, %v9674_v45, %v1974_v10  ;;  %v2156_v55 = vsel %vm8629_vm11, 0, %v8628_v53  ;;  %v3252_v14 = vshll.u32 %v18456_v56, %v3243_v9  ;;  %v3253_v3 = vshrl.u32 %v18425_v27, %v13049_v7 }
 0x26a   : > { %v1979_v0 = vsel %vm1972_vm10, %v1975_v57, %v1978_v54  ;;  %vm2087_vm4 = vcmp.lt.s32.totalorder %v18559_v60, 0  ;;  %v2157_v28 = vsub.s32 32, %v2156_v55  ;;  %v2161_v61 = vsub.s32 4294967266, %v2156_v55 }
 0x26b   : > { %v3255_v15 = vshll.u32 %v18425_v27, %v3243_v9  ;;  %v1980_v31 = vsel %vm1969_vm1, nan, %v1979_v0  ;;  %v2158_v40 = vshll.u32 %v13002_v58, %v2156_v55  ;;  %v13070_v5 = vor.u32 %v3247_v34, %v3246_v38 }
 0x26c   : > { %v13072_v20 = vor.u32 %v3250_v13, %v3249_v36  ;;  %v8965_v44 = vpack.c.bf16 %v1980_v31, %v1980_v31  ;;  %v2159_v39 = vshrl.u32 %v2141_v33, %v2157_v28  ;;  %v2162_v41 = vadd.s32 127, %v2161_v61 }
 0x26d   : > { %v3256_v24 = vshrl.u32 %v18426_v50, %v13049_v7  ;;  %v18579_v52 = vand.u32 2147483647, %v18559_v60  ;;  %v2171_v26 = vsub.s32 4, %v12985_v35  ;;  %v3254_v45 = vor.u32 %v3253_v3, %v3252_v14 }
 0x26e   : > { %v3258_v58 = vshll.u32 %v18426_v50, %v3243_v9  ;;  %v3259_v4 = vshrl.u32 %v18427_v49, %v13049_v7  ;;  %4576 = vrot.lane.b32.xlu0 %v8965_v44, %s10368_s21  ;;  %v2160_v33 = vor.u32 %v2159_v39, %v2158_v40  ;;  %v2163_v25 = vshll.u32 %v2162_v41, 23 }
 0x26f   : > { %vm13078_vm12 = vcmp.le.f32.partialorder %v18579_v52, 0.7853982  ;;  %v3257_v53 = vor.u32 %v3256_v24, %v3255_v15  ;;  %vm3261_vm8 = vcmp.lt.s32.totalorder %v13051_v16, 1  ;;  %vm3264_vm6 = vcmp.lt.s32.totalorder %v13051_v16, 4  ;;  %v18582_v24 = vld [vmem:[#allocation68_spill] sm:$0xff] }
 0x270   : > { %v3260_v10 = vor.u32 %v3259_v4, %v3258_v58  ;;  %v3269_v38 = vsel %vm3261_vm8, %v13070_v5, %v13072_v20  ;;  %v13093_v36 = vshll.u32 %v3237_v6, 8  ;;  %v2164_v9 = vor.u32 4788187, %v2163_v25  ;;  %v440_v4 = vpop.permute.xlu1 %439 }
 0x271   : > { %vm3263_vm3 = vcmp.lt.s32.totalorder %v13051_v16, 3  ;;  %v3270_v54 = vsel %vm3264_vm6, %v3257_v53, 920167782  ;;  %v2075_v34 = vand.u32 3, %v2074_v37  ;;  %v9678_v13 = vpop.eup %9677  ;;  %vm3262_vm13 = vcmp.lt.s32.totalorder %v13051_v16, 2  ;;  %v18590_v16 = vld [vmem:[#allocation43_spill] sm:$0xff] }
 0x272   : > { %v3271_v57 = vsel %vm3263_vm3, %v3254_v45, %v3270_v54  ;;  %v3273_v55 = vsel %vm3261_vm8, %v13072_v20, %v3254_v45  ;;  %v3274_v6 = vsel %vm3264_vm6, %v3260_v10, 1326507024  ;;  %v9680_v14 = vpop.eup %9679  ;;  %v2165_v3 = vand.u32 2147483647, %v2164_v9 }
 0x273   : > { %v2167_v0 = vcvt.s32.f32 %v2160_v33  ;;  %v3272_v28 = vsel %vm3262_vm13, %v3269_v38, %v3271_v57  ;;  %v3275_v37 = vsel %vm3263_vm3, %v3257_v53, %v3274_v6  ;;  %v13111_v61 = vadd.s32 1, %v13034_v47 }
 0x274   : > { %v2172_v15 = vsel %vm2087_vm4, %v2171_v26, %v12985_v35  ;;  %v13118_v31 = vadd.f32 %v13047_v48, %v13029_v19  ;;  %v3276_v40 = vsel %vm3262_vm13, %v3273_v55, %v3275_v37  ;;  %v2189_v47 = vand.u32 2147483647, %v18582_v24  ;;  %v18584_v55 = vld [vmem:[#allocation82_spill] sm:$0xff] }
 0x275   : > { %v2168_v44 = vmul.f32 %v2167_v0, %v2165_v3  ;;  %v13123_v39 = vmul.u32.u64.low %v13093_v36, %v3272_v28  ;;  %v13124_v41 = vmul.u32.u64.high %v13093_v36, %v3272_v28, %v13123_v39  ;;  %v2078_v35 = vxor.u32 2147483648, %v9680_v14 }
 0x276   : > { %v13129_v52 = vmul.u32.u64.low %v13093_v36, %v3276_v40  ;;  %v13130_v58 = vmul.u32.u64.high %v13093_v36, %v3276_v40, %v13129_v52  ;;  %v2081_v26 = vxor.u32 2147483648, %v9678_v13  ;;  %v2174_v48 = vsel %vm13078_vm12, 0, %v2172_v15 }
 0x277   : > { %v2169_v19 = vxor.u32 2147483648, %v2168_v44  ;;  %vm2077_vm14 = vcmp.eq.s32.totalorder %v2075_v34, 0  ;;  %vm2080_vm15 = vcmp.eq.s32.totalorder %v2075_v34, 2  ;;  %vm2073_vm0 = vweird.f32 %v18566_v63 }
 0x278   : > { %vm2076_vm7 = vcmp.lt.s32.totalorder %v2075_v34, 2  ;;  %v2079_v33 = vsel %vm2077_vm14, %v9678_v13, %v2078_v35  ;;  %v2082_v25 = vsel %vm2080_vm15, %v2081_v26, %v9680_v14  ;;  %v13139_v10 = vadd.f32 %v12929_v11, %v12936_v17  ;;  %v18585_v14 = vld [vmem:[#allocation89_spill] sm:$0xff]  ;;  %v18586_v35 = vld [vmem:[#allocation91_spill] sm:$0xff] }
 0x279   : > { %v2170_v53 = vsel %vm2087_vm4, %v2169_v19, %v2168_v44  ;;  %v2083_v38 = vsel %vm2076_vm7, %v2079_v33, %v2082_v25  ;;  %v2196_v9 = vand.u32 8388607, %v2189_v47  ;;  %vm3032_vm1 = vcmp.gt.s32.totalorder %v13111_v61, 0  ;;  %v18587_v19 = vld [vmem:[#allocation34_spill] sm:$0xff] }
 0x27a   : > { %18583 = vst [vmem:[#allocation67_spill] sm:$0xff] %v13139_v10  ;;  %v2173_v63 = vsel %vm13078_vm12, %v18559_v60, %v2170_v53  ;;  %v2178_v54 = vadd.s32 3, %v2174_v48  ;;  %v3245_v34 = vshrl.u32 %v18385_v2, %v13049_v7  ;;  %v2084_v13 = vsel %vm2073_vm0, nan, %v2083_v38  ;;  %v611_v7 = vpop.permute.xlu1 %610  ;;  %v18588_v48 = vld [vmem:[#allocation92_spill] sm:$0xff]  ;;  %v18589_v38 = vld [vmem:[#allocation93_spill] sm:$0xff] }
 0x27b   : > { %9681 = vcosq.f32 %v2173_v63  ;;  %v3266_v17 = vsel %vm3264_vm6, %v3254_v45, 2102212464  ;;  %v8966_v57 = vpack.c.bf16 %v2084_v13, %v2084_v13  ;;  %v2206_v6 = vshll.u32 %v18385_v2, %v18584_v55 }
 0x27c   : > { %9683 = vsinq.f32 %v2173_v63  ;;  %v2207_v3 = vshrl.u32 %v18423_v12, %v18585_v14  ;;  %v2209_v30 = vshll.u32 %v18423_v12, %v18584_v55  ;;  %v2210_v0 = vshrl.u32 %v18456_v56, %v18585_v14 }
 0x27d   : > { %v3265_v28 = vsel %vm3261_vm8, %v3245_v34, %v13070_v5  ;;  %4578 = vrot.lane.b32.xlu1 %v8966_v57, %s10368_s21  ;;  %v2197_v45 = vor.u32 8388608, %v2196_v9  ;;  %v2212_v37 = vshll.u32 %v18456_v56, %v18584_v55  ;;  %v2213_v15 = vshrl.u32 %v18425_v27, %v18585_v14 }
 0x27e   : > { %v3267_v40 = vsel %vm3263_vm3, %v13072_v20, %v3266_v17  ;;  %v2208_v44 = vor.u32 %v2207_v3, %v2206_v6  ;;  %v2211_v52 = vor.u32 %v2210_v0, %v2209_v30  ;;  %vm2223_vm10 = vcmp.lt.s32.totalorder %v18586_v35, 3  ;;  %v615_v6 = vpop.permute.xlu1 %614 }
 0x27f   : > { %v3287_v26 = vadd.s32 1, %v13124_v41  ;;  %v2214_v5 = vor.u32 %v2213_v15, %v2212_v37  ;;  %vm2221_vm9 = vcmp.lt.s32.totalorder %v18586_v35, 1  ;;  %v2235_v33 = vsel %vm2223_vm10, %v18588_v48, %v18587_v19 }
 0x280   : > { %vm3286_vm5 = vc.u32 %v13130_v58, %v13123_v39  ;;  %v2205_v20 = vshrl.u32 %v18385_v2, %v18585_v14  ;;  %vm2222_vm11 = vcmp.lt.s32.totalorder %v18586_v35, 2  ;;  %v2229_v25 = vsel %vm2221_vm9, %v2208_v44, %v2211_v52 }
 0x281   : > { %v2226_v53 = vsel %vm2224_vm2, %v2214_v5, 2102212464  ;;  %v2231_v9 = vsel %vm2223_vm10, %v2214_v5, %v18589_v38  ;;  %v2233_v63 = vsel %vm2221_vm9, %v2211_v52, %v2214_v5  ;;  %v2237_v34 = vshll.u32 %v2197_v45, 8 }
 0x282   : > { %v2232_v13 = vsel %vm2222_vm11, %v2229_v25, %v2231_v9  ;;  %v2236_v17 = vsel %vm2222_vm11, %v2233_v63, %v2235_v33  ;;  %v505_v57 = vmul.f32 %v12783_v18, %v440_v4  ;;  %v669_v55 = vmul.f32 %v13043_v29, %v611_v7  ;;  %v18592_v33 = vld [vmem:[#allocation86_spill] sm:$0xff] }
 0x283   : > { %v2225_v14 = vsel %vm2221_vm9, %v2205_v20, %v2208_v44  ;;  %v2227_v3 = vsel %vm2223_vm10, %v2211_v52, %v2226_v53  ;;  %v13195_v30 = vmul.u32.u64.low %v2237_v34, %v2236_v17  ;;  %v13196_v0 = vmul.u32.u64.high %v2237_v34, %v2236_v17, %v13195_v30  ;;  %v18594_v53 = vld [vmem:[#allocation47_spill] sm:$0xff] }
 0x284   : > { %v3268_v45 = vsel %vm3262_vm13, %v3265_v28, %v3267_v40  ;;  %v13200_v37 = vmul.u32.u64.low %v2237_v34, %v2232_v13  ;;  %v13201_v15 = vmul.u32.u64.high %v2237_v34, %v2232_v13, %v13200_v37  ;;  %v13204_v5 = vadd.f32 %v669_v55, %v505_v57 }
 0x285   : > { %v2685_v18 = vand.u32 2147483647, %v13000_v46  ;;  %vm2928_vm2 = vcmp.gt.s32.totalorder %v13021_v51, 0  ;;  %v13211_v4 = vsel %vm3032_vm1, %v13111_v61, 0  ;;  %v670_v7 = vmul.f32 %v13043_v29, %v615_v6  ;;  %v18591_v61 = vld [vmem:[#allocation77_spill] sm:$0xff] }
 0x286   : > { %v2179_v44 = vand.u32 3, %v2178_v54  ;;  %v896_v28 = vadd.f32 %v18590_v16, %v13118_v31  ;;  %v3288_v40 = vsel %vm3286_vm5, %v3287_v26, %v13124_v41  ;;  %v2228_v46 = vsel %vm2222_vm11, %v2225_v14, %v2227_v3  ;;  %v18598_v16 = vld [vmem:[#allocation62_spill] sm:$0xff] }
 0x287   : > { %v2895_v52 = vcvt.s32.f32 %v13017_v42  ;;  %v3284_v19 = vmul.u32 %v13093_v36, %v3268_v45  ;;  %vm2246_vm4 = vc.u32 %v13196_v0, %v13200_v37  ;;  %v702_v54 = vadd.f32 %v670_v7, %v18591_v61 }
 0x288   : > { %v9682_v48 = vpop.eup %9681  ;;  %vm2399_vm12 = vcmp.lt.s32.totalorder %v18592_v33, 0  ;;  %v2893_v31 = vand.u32 2147483647, %v13019_v43  ;;  %v13230_v20 = vand.u32 31, %v13211_v4  ;;  %v3128_v41 = vand.u32 2139095040, %v13139_v10 }
 0x289   : > { %v2247_v35 = vadd.s32 1, %v13201_v15  ;;  %v9684_v42 = vpop.eup %9683  ;;  %v2185_v26 = vxor.u32 2147483648, %v9682_v48  ;;  %v13234_v36 = vadd.s32 %v3288_v40, %v3284_v19  ;;  %v2244_v25 = vmul.u32 %v2237_v34, %v2228_v46  ;;  %v18599_v46 = vld [vmem:[#allocation51_spill] sm:$0xff] }
 0x28a   : > { %18593 = vst [vmem:[#allocation73_spill] sm:$0xff] %v13230_v20  ;;  %v898_v38 = vadd.f32 %v18594_v53, %v702_v54  ;;  %v2182_v9 = vxor.u32 2147483648, %v9684_v42  ;;  %vm2184_vm8 = vcmp.eq.s32.totalorder %v2179_v44, 2  ;;  %v13238_v63 = vadd.f32 %v12929_v11, %v896_v28  ;;  %v18602_v53 = vld [vmem:[#allocation41_spill] sm:$0xff] }
 0x28b   : > { %v2248_v43 = vsel %vm2246_vm4, %v2247_v35, %v13201_v15  ;;  %vm2181_vm6 = vcmp.eq.s32.totalorder %v2179_v44, 0  ;;  %v2186_v13 = vsel %vm2184_vm8, %v2185_v26, %v9684_v42  ;;  %v13248_v34 = vsub.s32 32, %v13230_v20 }
 0x28c   : > { %18595 = vst [vmem:[#allocation38_spill] sm:$0xff] %v13238_v63  ;;  %v2249_v17 = vadd.s32 %v2248_v43, %v2244_v25  ;;  %v13245_v57 = vadd.f32 %v12929_v11, %v898_v38  ;;  %vm2180_vm3 = vcmp.lt.s32.totalorder %v2179_v44, 2  ;;  %v2183_v55 = vsel %vm2181_vm6, %v9682_v48, %v2182_v9 }
 0x28d   : > { %18597 = vst [vmem:[#allocation59_spill] sm:$0xff] %v13248_v34  ;;  %v3129_v6 = vshrl.u32 %v3128_v41, 23  ;;  %vm2177_vm13 = vweird.f32 %v18559_v60  ;;  %v2187_v14 = vsel %vm2180_vm3, %v2183_v55, %v2186_v13  ;;  %v3290_v3 = vadd.s32 536870912, %v13234_v36  ;;  %v619_v41 = vpop.permute.xlu0 %618 }
 0x28e   : > { %18596 = vst [vmem:[#allocation53_spill] sm:$0xff] %v13245_v57  ;;  %v2250_v30 = vadd.s32 536870912, %v2249_v17  ;;  %v2688_v45 = vmul.f32 %v2687_v62, %v2685_v18  ;;  %v2188_v15 = vsel %vm2177_vm13, nan, %v2187_v14  ;;  %v3336_v7 = vand.u32 2139095040, %v13238_v63 }
 0x28f   : > { %v3544_v11 = vand.u32 2139095040, %v13245_v57  ;;  %v13257_v28 = vshrl.u32 %v18598_v16, 5  ;;  %v2896_v44 = vmul.f32 %v2895_v52, %v2893_v31  ;;  %v2929_v60 = vsel %vm2928_vm2, %v13021_v51, 0 }
 0x290   : > { %v8967_v40 = vpack.c.bf16 %v2188_v15, %v2188_v15  ;;  %v13263_v19 = vsub.s32 32, %v18599_v46  ;;  %v8666_v61 = vadd.s32 4294967169, %v3129_v6  ;;  %v2251_v22 = vshrl.u32 %v2250_v30, 30  ;;  %v18605_v30 = vld [vmem:[#allocation66_spill] sm:$0xff] }
 0x291   : > { %v3545_v62 = vshrl.u32 %v3544_v11, 23  ;;  %v13270_v18 = vsel %vm2399_vm12, %v2481_v1, %v12981_v59  ;;  %v3048_v52 = vshrl.u32 %v18426_v50, %v13248_v34  ;;  %v3051_v51 = vshrl.u32 %v18427_v49, %v13248_v34 }
 0x292   : > { %4580 = vrot.lane.b32.xlu0 %v8967_v40, %s10368_s21  ;;  %v13277_v54 = vshrl.u32 %v3290_v3, 30  ;;  %v2689_v48 = vxor.u32 2147483648, %v2688_v45  ;;  %v13279_v31 = vand.u32 31, %v2929_v60  ;;  %v3337_v35 = vshrl.u32 %v3336_v7, 23 }
 0x293   : > { %v2252_v42 = vshll.u32 %v2251_v22, 30  ;;  %v2897_v26 = vxor.u32 2147483648, %v2896_v44  ;;  %v3047_v59 = vshll.u32 %v18425_v27, %v13230_v20  ;;  %v3050_v1 = vshll.u32 %v18426_v50, %v13230_v20 }
 0x294   : > { %18600 = vst [vmem:[#allocation50_spill] sm:$0xff] %v13277_v54  ;;  %18601 = vst [vmem:[#allocation58_spill] sm:$0xff] %v13279_v31  ;;  %v8682_v25 = vadd.s32 4294967169, %v3545_v62  ;;  %vm2607_vm14 = vcmp.lt.s32.totalorder %v18602_v53, 0  ;;  %v13287_v38 = vshrl.u32 %v13211_v4, 5  ;;  %v3135_v9 = vadd.s32 1, %v8666_v61 }
 0x295   : > { %v2253_v43 = vsub.s32 %v2249_v17, %v2252_v42  ;;  %v671_v13 = vmul.f32 %v13043_v29, %v619_v41  ;;  %v13290_v55 = vor.u32 %v3048_v52, %v3047_v59  ;;  %v3052_v6 = vor.u32 %v3051_v51, %v3050_v1  ;;  %v18608_v61 = vld [vmem:[#allocation78_spill] sm:$0xff]  ;;  %v18611_v41 = vld [vmem:[#allocation83_spill] sm:$0xff]  ;;  %v18612_v42 = vld [vmem:[#allocation72_spill] sm:$0xff] }
 0x296   : > { %18603 = vst [vmem:[#allocation57_spill] sm:$0xff] %v13287_v38  ;;  %v3292_v14 = vshll.u32 %v13277_v54, 30  ;;  %v13295_v3 = vsel %vm2607_vm14, %v2689_v48, %v2688_v45  ;;  %vm2815_vm15 = vcmp.lt.s32.totalorder %v18605_v30, 0  ;;  %v8674_v15 = vadd.s32 4294967169, %v3337_v35 }
 0x297   : > { %18604 = vst [vmem:[#allocation45_spill] sm:$0xff] %v13290_v55  ;;  %v2255_v7 = vsub.s32 0, %v2253_v43  ;;  %v13300_v4 = vsel %vm2815_vm15, %v2897_v26, %v2896_v44  ;;  %v13302_v17 = vshrl.u32 %v2929_v60, 5  ;;  %v13305_v11 = vsub.s32 32, %v13279_v31 }
 0x298   : > { %v3551_v16 = vadd.s32 1, %v8682_v25  ;;  %vm3056_vm0 = vcmp.lt.s32.totalorder %v13287_v38, 4  ;;  %vm3136_vm7 = vcmp.gt.s32.totalorder %v3135_v9, 0  ;;  %v18239_v45 = vand.u32 2147483647, %v13245_v57 }
 0x299   : > { %18606 = vst [vmem:[#allocation37_spill] sm:$0xff] %v13302_v17  ;;  %18607 = vst [vmem:[#allocation87_spill] sm:$0xff] %v13305_v11  ;;  %v8631_v40 = vmin.u32 %v2255_v7, %v2253_v43  ;;  %v13310_v62 = vadd.f32 %v671_v13, %v18608_v61  ;;  %v13315_v44 = vsel %vm3056_vm0, %v13290_v55, 920167782  ;;  %v13319_v60 = vsel %vm3056_vm0, %v3052_v6, 1326507024 }
 0x29a   : > { %18609 = vst [vmem:[#allocation60_spill] sm:$0xff] %v13315_v44  ;;  %18610 = vst [vmem:[#allocation36_spill] sm:$0xff] %v13319_v60  ;;  %v13322_v52 = vsub.s32 %v13234_v36, %v3292_v14  ;;  %v13324_v51 = vadd.s32 1, %v8674_v15  ;;  %v18247_v35 = vand.u32 2147483647, %v18611_v41  ;;  %v2311_v26 = vshrl.u32 %v18423_v12, %v18612_v42  ;;  %v18615_v6 = vld [vmem:[#allocation48_spill] sm:$0xff] }
 0x29b   : > { %v2257_v48 = vclz %v8631_v40  ;;  %v13329_v59 = vsel %vm3136_vm7, %v3135_v9, 0  ;;  %vm13333_vm1 = vcmp.le.f32.partialorder %v2189_v47, 0.7853982  ;;  %v2275_v25 = vsub.s32 4, %v2251_v22 }
 0x29c   : > { %vm3552_vm10 = vcmp.gt.s32.totalorder %v3551_v16, 0  ;;  %vm2191_vm9 = vcmp.lt.s32.totalorder %v18582_v24, 0  ;;  %v3548_v13 = vand.u32 8388607, %v18239_v45  ;;  %v2310_v14 = vshll.u32 %v18385_v2, %v18615_v6 }
 0x29d   : > { %v8632_v36 = vadd.s32 4294967294, %v2257_v48  ;;  %v2245_v15 = vadd.s32 %v13200_v37, %v13196_v0  ;;  %v2309_v47 = vshrl.u32 %v18385_v2, %v18612_v42  ;;  %v2313_v7 = vshll.u32 %v18423_v12, %v18615_v6 }
 0x29e   : > { %v3553_v40 = vsel %vm3552_vm10, %v3551_v16, 0  ;;  %v2300_v61 = vand.u32 8388607, %v18247_v35  ;;  %v2312_v48 = vor.u32 %v2311_v26, %v2310_v14  ;;  %v2276_v32 = vsel %vm2191_vm9, %v2275_v25, %v2251_v22 }
 0x29f   : > { %vm8633_vm5 = vcmp.lt.s32.totalorder %v8632_v36, 0  ;;  %v2314_v9 = vshrl.u32 %v18456_v56, %v18612_v42  ;;  %v2317_v0 = vshrl.u32 %v18425_v27, %v18612_v42  ;;  %v3549_v63 = vor.u32 8388608, %v3548_v13 }
 0x2a0   : > { %v2260_v45 = vsel %vm8633_vm5, 0, %v8632_v36  ;;  %v2320_v16 = vshrl.u32 %v18426_v50, %v18612_v42  ;;  %v3555_v10 = vand.u32 31, %v3553_v40  ;;  %v2316_v26 = vshll.u32 %v18456_v56, %v18615_v6 }
 0x2a1   : > { %v2261_v37 = vsub.s32 32, %v2260_v45  ;;  %v2265_v54 = vsub.s32 4294967266, %v2260_v45  ;;  %v2319_v36 = vshll.u32 %v18425_v27, %v18615_v6  ;;  %v2323_v22 = vshrl.u32 %v18427_v49, %v18612_v42 }
 0x2a2   : > { %v2262_v25 = vshll.u32 %v2253_v43, %v2260_v45  ;;  %v2278_v55 = vsel %vm13333_vm1, 0, %v2276_v32  ;;  %v2301_v13 = vor.u32 8388608, %v2300_v61  ;;  %v2315_v60 = vor.u32 %v2314_v9, %v2313_v7  ;;  %v18616_v43 = vld [vmem:[#allocation74_spill] sm:$0xff] }
 0x2a3   : > { %v2263_v14 = vshrl.u32 %v2245_v15, %v2261_v37  ;;  %v2266_v35 = vadd.s32 127, %v2265_v54  ;;  %v2318_v44 = vor.u32 %v2317_v0, %v2316_v26  ;;  %v2322_v38 = vshll.u32 %v18426_v50, %v18615_v6 }
 0x2a4   : > { %v13369_v57 = vshll.u32 %v3549_v63, 8  ;;  %v2321_v21 = vor.u32 %v2320_v16, %v2319_v36  ;;  %v2282_v17 = vadd.s32 3, %v2278_v55  ;;  %v3556_v31 = vsub.s32 32, %v3555_v10 }
 0x2a5   : > { %v2264_v20 = vor.u32 %v2263_v14, %v2262_v25  ;;  %v2267_v34 = vshll.u32 %v2266_v35, 23  ;;  %v2324_v42 = vor.u32 %v2323_v22, %v2322_v38  ;;  %vm2325_vm11 = vcmp.lt.s32.totalorder %v18616_v43, 1 }
 0x2a6   : > { %v13372_v45 = vshrl.u32 %v3553_v40, 5  ;;  %vm2326_vm2 = vcmp.lt.s32.totalorder %v18616_v43, 2  ;;  %vm2327_vm4 = vcmp.lt.s32.totalorder %v18616_v43, 3  ;;  %v3558_v32 = vshll.u32 %v18385_v2, %v3555_v10 }
 0x2a7   : > { %v2268_v54 = vor.u32 4788187, %v2267_v34  ;;  %vm2328_vm8 = vcmp.lt.s32.totalorder %v18616_v43, 4  ;;  %v2329_v63 = vsel %vm2325_vm11, %v2309_v47, %v2312_v48  ;;  %v2333_v55 = vsel %vm2325_vm11, %v2312_v48, %v2315_v60 }
 0x2a8   : > { %v2271_v35 = vcvt.s32.f32 %v2264_v20  ;;  %v3561_v34 = vshll.u32 %v18423_v12, %v3555_v10  ;;  %v2334_v6 = vsel %vm2328_vm8, %v2321_v21, 920167782  ;;  %v3559_v9 = vshrl.u32 %v18423_v12, %v3556_v31 }
 0x2a9   : > { %v2269_v38 = vand.u32 2147483647, %v2268_v54  ;;  %v3564_v15 = vshll.u32 %v18456_v56, %v3555_v10  ;;  %v3568_v7 = vshrl.u32 %v18426_v50, %v3556_v31  ;;  %v2335_v40 = vsel %vm2327_vm4, %v2318_v44, %v2334_v6 }
 0x2aa   : > { %v3562_v61 = vshrl.u32 %v18456_v56, %v3556_v31  ;;  %v3567_v48 = vshll.u32 %v18425_v27, %v3555_v10  ;;  %v2337_v20 = vsel %vm2325_vm11, %v2315_v60, %v2318_v44  ;;  %v3565_v0 = vshrl.u32 %v18425_v27, %v3556_v31 }
 0x2ab   : > { %v2272_v47 = vmul.f32 %v2271_v35, %v2269_v38  ;;  %v3571_v37 = vshrl.u32 %v18427_v49, %v3556_v31  ;;  %v2330_v16 = vsel %vm2328_vm8, %v2318_v44, 2102212464  ;;  %v2338_v26 = vsel %vm2328_vm8, %v2324_v42, 1326507024 }
 0x2ac   : > { %v2336_v22 = vsel %vm2326_vm2, %v2333_v55, %v2335_v40  ;;  %v2339_v25 = vsel %vm2327_vm4, %v2321_v21, %v2338_v26  ;;  %v2341_v14 = vshll.u32 %v2301_v13, 8  ;;  %v3560_v54 = vor.u32 %v3559_v9, %v3558_v32 }
 0x2ad   : > { %v2273_v36 = vxor.u32 2147483648, %v2272_v47  ;;  %v3569_v38 = vor.u32 %v3568_v7, %v3567_v48  ;;  %v3570_v35 = vshll.u32 %v18426_v50, %v3555_v10  ;;  %v2340_v6 = vsel %vm2326_vm2, %v2337_v20, %v2339_v25  ;;  %v18617_v7 = vld [vmem:[#allocation85_spill] sm:$0xff] }
 0x2ae   : > { %v2331_v42 = vsel %vm2327_vm4, %v2315_v60, %v2330_v16  ;;  %v13411_v11 = vmul.u32.u64.low %v2341_v14, %v2340_v6  ;;  %v13412_v23 = vmul.u32.u64.high %v2341_v14, %v2340_v6, %v13411_v11  ;;  %v13417_v13 = vor.u32 %v3562_v61, %v3561_v34 }
 0x2af   : > { %v2274_v44 = vsel %vm2191_vm9, %v2273_v36, %v2272_v47  ;;  %v13419_v32 = vmul.u32.u64.low %v2341_v14, %v2336_v22  ;;  %v13420_v10 = vmul.u32.u64.high %v2341_v14, %v2336_v22, %v13419_v32  ;;  %v13423_v55 = vor.u32 %v3565_v0, %v3564_v15  ;;  %v18618_v47 = vld [vmem:[#allocation64_spill] sm:$0xff]  ;;  %v18619_v0 = vld [vmem:[#allocation61_spill] sm:$0xff]  ;;  %v13458_v22 = vpop.permute.xlu1 %454 }
 0x2b0   : > { %v2277_v21 = vsel %vm13333_vm1, %v18582_v24, %v2274_v44  ;;  %v3572_v9 = vor.u32 %v3571_v37, %v3570_v35  ;;  %vm3576_vm6 = vcmp.lt.s32.totalorder %v13372_v45, 4  ;;  %v13426_v60 = vand.u32 3, %v2282_v17 }
 0x2b1   : > { %9685 = vcosq.f32 %v2277_v21  ;;  %v3582_v11 = vsel %vm3576_vm6, %v3569_v38, 920167782  ;;  %v2332_v1 = vsel %vm2326_vm2, %v2329_v63, %v2331_v42  ;;  %v3557_v34 = vshrl.u32 %v18385_v2, %v3556_v31 }
 0x2b2   : > { %9687 = vsinq.f32 %v2277_v21  ;;  %vm3573_vm3 = vcmp.lt.s32.totalorder %v13372_v45, 1  ;;  %vm3575_vm13 = vcmp.lt.s32.totalorder %v13372_v45, 3  ;;  %vm2350_vm7 = vc.u32 %v13412_v23, %v13419_v32 }
 0x2b3   : > { %v3581_v17 = vsel %vm3573_vm3, %v3560_v54, %v13417_v13  ;;  %v2351_v15 = vadd.s32 1, %v13420_v10  ;;  %v18265_v40 = vand.u32 2147483647, %v18617_v7  ;;  %v2522_v43 = vshrl.u32 %v18456_v56, %v18618_v47 }
 0x2b4   : > { %v3583_v31 = vsel %vm3575_vm13, %v13423_v55, %v3582_v11  ;;  %v3586_v63 = vsel %vm3576_vm6, %v3572_v9, 1326507024  ;;  %v2348_v61 = vmul.u32 %v2341_v14, %v2332_v1  ;;  %v2525_v48 = vshrl.u32 %v18425_v27, %v18618_v47 }
 0x2b5   : > { %v2352_v20 = vsel %vm2350_vm7, %v2351_v15, %v13420_v10  ;;  %v2521_v37 = vshll.u32 %v18423_v12, %v18619_v0  ;;  %v2524_v16 = vshll.u32 %v18456_v56, %v18619_v0  ;;  %v2528_v26 = vshrl.u32 %v18426_v50, %v18618_v47 }
 0x2b6   : > { %v2353_v36 = vadd.s32 %v2352_v20, %v2348_v61  ;;  %v2527_v25 = vshll.u32 %v18425_v27, %v18619_v0  ;;  %v2530_v14 = vshll.u32 %v18426_v50, %v18619_v0  ;;  %v2531_v35 = vshrl.u32 %v18427_v49, %v18618_v47 }
 0x2b7   : > { %vm2288_vm1 = vcmp.eq.s32.totalorder %v13426_v60, 2  ;;  %vm3574_vm10 = vcmp.lt.s32.totalorder %v13372_v45, 2  ;;  %v2508_v6 = vand.u32 8388607, %v18265_v40  ;;  %v13470_v44 = vor.u32 %v2522_v43, %v2521_v37 }
 0x2b8   : > { %v2526_v42 = vor.u32 %v2525_v48, %v2524_v16  ;;  %vm2285_vm9 = vcmp.eq.s32.totalorder %v13426_v60, 0  ;;  %v2354_v21 = vadd.s32 536870912, %v2353_v36  ;;  %v2519_v10 = vshrl.u32 %v18423_v12, %v18618_v47  ;;  %v13505_v16 = vpop.permute.xlu1 %622 }
 0x2b9   : > { %v2529_v9 = vor.u32 %v2528_v26, %v2527_v25  ;;  %v2532_v11 = vor.u32 %v2531_v35, %v2530_v14  ;;  %vm2284_vm5 = vcmp.lt.s32.totalorder %v13426_v60, 2  ;;  %v3577_v1 = vsel %vm3573_vm3, %v3557_v34, %v3560_v54  ;;  %v18620_v34 = vld [vmem:[#allocation56_spill] sm:$0xff] }
 0x2ba   : > { %v3584_v15 = vsel %vm3574_vm10, %v3581_v17, %v3583_v31  ;;  %v3585_v43 = vsel %vm3573_vm3, %v13417_v13, %v13423_v55  ;;  %v3587_v61 = vsel %vm3575_vm13, %v3569_v38, %v3586_v63  ;;  %vm3344_vm11 = vcmp.gt.s32.totalorder %v13324_v51, 0 }
 0x2bb   : > { %vm2281_vm2 = vweird.f32 %v18582_v24  ;;  %v13488_v48 = vshrl.u32 %v2354_v21, 30  ;;  %v2518_v54 = vshll.u32 %v18385_v2, %v18619_v0  ;;  %vm2533_vm4 = vcmp.lt.s32.totalorder %v18620_v34, 1 }
 0x2bc   : > { %vm2536_vm8 = vcmp.lt.s32.totalorder %v18620_v34, 4  ;;  %v2509_v17 = vor.u32 8388608, %v2508_v6  ;;  %vm2535_vm7 = vcmp.lt.s32.totalorder %v18620_v34, 3  ;;  %v2545_v38 = vsel %vm2533_vm4, %v13470_v44, %v2526_v42 }
 0x2bd   : > { %v2546_v31 = vsel %vm2536_vm8, %v2532_v11, 1326507024  ;;  %v3588_v63 = vsel %vm3574_vm10, %v3585_v43, %v3587_v61  ;;  %v2356_v20 = vshll.u32 %v13488_v48, 30  ;;  %v2520_v0 = vor.u32 %v2519_v10, %v2518_v54 }
 0x2be   : > { %v2547_v37 = vsel %vm2535_vm7, %v2529_v9, %v2546_v31  ;;  %v9686_v26 = vpop.eup %9685  ;;  %v13508_v25 = vmul.u32.u64.low %v13369_v57, %v3584_v15  ;;  %v13509_v14 = vmul.u32.u64.high %v13369_v57, %v3584_v15, %v13508_v25  ;;  %vm2534_vm3 = vcmp.lt.s32.totalorder %v18620_v34, 2 }
 0x2bf   : > { %v2542_v35 = vsel %vm2536_vm8, %v2529_v9, 920167782  ;;  %v9688_v6 = vpop.eup %9687  ;;  %v2289_v21 = vxor.u32 2147483648, %v9686_v26  ;;  %v3578_v10 = vsel %vm3576_vm6, %v13423_v55, 2102212464  ;;  %v13518_v11 = vsub.s32 %v2353_v36, %v2356_v20 }
 0x2c0   : > { %v2548_v43 = vsel %vm2534_vm3, %v2545_v38, %v2547_v37  ;;  %v2286_v61 = vxor.u32 2147483648, %v9688_v6  ;;  %v13523_v15 = vmul.u32.u64.low %v13369_v57, %v3588_v63  ;;  %v13524_v54 = vmul.u32.u64.high %v13369_v57, %v3588_v63, %v13523_v15 }
 0x2c1   : > { %v2549_v31 = vshll.u32 %v2509_v17, 8  ;;  %v2290_v9 = vsel %vm2288_vm1, %v2289_v21, %v9688_v6  ;;  %v2359_v40 = vsub.s32 0, %v13518_v11  ;;  %v2541_v55 = vsel %vm2533_vm4, %v2520_v0, %v13470_v44  ;;  %v18622_v15 = vld [vmem:[#allocation63_spill] sm:$0xff] }
 0x2c2   : > { %v2543_v36 = vsel %vm2535_vm7, %v2526_v42, %v2542_v35  ;;  %v2287_v38 = vsel %vm2285_vm9, %v9686_v26, %v2286_v61  ;;  %v3579_v63 = vsel %vm3575_vm13, %v13417_v13, %v3578_v10  ;;  %v18621_v37 = vsub.s32 0, %v13322_v52  ;;  %v807_v61 = vpop.permute.xlu1 %806 }
 0x2c3   : > { %v13539_v17 = vmul.u32.u64.low %v2549_v31, %v2548_v43  ;;  %v13540_v20 = vmul.u32.u64.high %v2549_v31, %v2548_v43, %v13539_v17  ;;  %v2291_v21 = vsel %vm2284_vm5, %v2287_v38, %v2290_v9  ;;  %v8635_v35 = vmin.u32 %v2359_v40, %v13518_v11 }
 0x2c4   : > { %v13545_v6 = vmin.u32 %v18621_v37, %v13322_v52  ;;  %v2538_v26 = vsel %vm2536_vm8, %v2526_v42, 2102212464  ;;  %v2292_v13 = vsel %vm2281_vm2, nan, %v2291_v21  ;;  %v2517_v10 = vshrl.u32 %v18385_v2, %v18618_v47 }
 0x2c5   : > { %v2544_v43 = vsel %vm2534_vm3, %v2541_v55, %v2543_v36  ;;  %v2483_v17 = vsub.s32 4, %v18622_v15  ;;  %v13560_v60 = vshrl.u32 %v13329_v59, 5  ;;  %v8968_v9 = vpack.c.bf16 %v2292_v13, %v2292_v13 }
 0x2c6   : > { %v3580_v40 = vsel %vm3574_vm10, %v3577_v1, %v3579_v63  ;;  %v2361_v42 = vclz %v8635_v35  ;;  %v13567_v24 = vsel %vm3344_vm11, %v13324_v51, 0  ;;  %v2537_v47 = vsel %vm2533_vm4, %v2517_v10, %v2520_v0 }
 0x2c7   : > { %18623 = vst [vmem:[#allocation81_spill] sm:$0xff] %v13560_v60  ;;  %v2539_v55 = vsel %vm2535_vm7, %v13470_v44, %v2538_v26  ;;  %v18624_v36 = vand.u32 2147483647, %v18592_v33  ;;  %4582 = vrot.lane.b32.xlu1 %v8968_v9, %s10368_s21  ;;  %vm2295_vm13 = vcmp.lt.s32.totalorder %v18611_v41, 0  ;;  %v3297_v0 = vclz %v13545_v6  ;;  %v815_v26 = vpop.permute.xlu1 %814 }
 0x2c8   : > { %v8636_v45 = vadd.s32 4294967294, %v2361_v42  ;;  %v13582_v51 = vmul.u32.u64.low %v2549_v31, %v2544_v43  ;;  %v13583_v1 = vmul.u32.u64.high %v2549_v31, %v2544_v43, %v13582_v51  ;;  %v3596_v63 = vmul.u32 %v13369_v57, %v3580_v40 }
 0x2c9   : > { %vm13576_vm6 = vcmp.le.f32.partialorder %v18624_v36, 0.7853982  ;;  %v2484_v37 = vsel %vm2399_vm12, %v2483_v17, %v18622_v15  ;;  %v3599_v21 = vadd.s32 1, %v13509_v14  ;;  %v2540_v35 = vsel %vm2534_vm3, %v2537_v47, %v2539_v55  ;;  %v13611_v15 = vld [vmem:[%s18038_s1] ss:$0 sm:$0xff] }
 0x2ca   : > { %v2485_v44 = vsel %vm13576_vm6, %v18592_v33, %v13270_v18  ;;  %vm8637_vm1 = vcmp.lt.s32.totalorder %v8636_v45, 0  ;;  %vm3598_vm10 = vc.u32 %v13524_v54, %v13508_v25  ;;  %v2349_v18 = vadd.s32 %v13419_v32, %v13412_v23 }
 0x2cb   : > { %9689 = vcosq.f32 %v2485_v44  ;;  %v2364_v57 = vsel %vm8637_vm1, 0, %v8636_v45  ;;  %vm2558_vm9 = vc.u32 %v13540_v20, %v13582_v51  ;;  %v2559_v10 = vadd.s32 1, %v13583_v1 }
 0x2cc   : > { %9691 = vsinq.f32 %v2485_v44  ;;  %v2365_v6 = vsub.s32 32, %v2364_v57  ;;  %v2369_v13 = vsub.s32 4294967266, %v2364_v57  ;;  %v2486_v34 = vsel %vm13576_vm6, 0, %v2484_v37 }
 0x2cd   : > { %v2379_v43 = vsub.s32 4, %v13488_v48  ;;  %v508_v23 = vmul.f32 %v13611_v15, %v13458_v22  ;;  %v2556_v32 = vmul.u32 %v2549_v31, %v2540_v35  ;;  %v672_v17 = vmul.f32 %v13043_v29, %v13505_v16  ;;  %v13626_v29 = vld [vmem:[%s18038_s1 + $0x2] ss:$0 sm:$0xff]  ;;  %v819_v31 = vpop.permute.xlu1 %818 }
 0x2ce   : > { %v2366_v9 = vshll.u32 %v13518_v11, %v2364_v57  ;;  %v2367_v40 = vshrl.u32 %v2349_v18, %v2365_v6  ;;  %v2370_v42 = vadd.s32 127, %v2369_v13  ;;  %v2560_v47 = vsel %vm2558_vm9, %v2559_v10, %v13583_v1 }
 0x2cf   : > { %v3600_v55 = vsel %vm3598_vm10, %v3599_v21, %v13509_v14  ;;  %v2561_v36 = vadd.s32 %v2560_v47, %v2556_v32  ;;  %v2490_v38 = vadd.s32 3, %v2486_v34  ;;  %v704_v45 = vadd.f32 %v672_v17, %v508_v23  ;;  %v13652_v34 = vld [vmem:[%s18038_s1 + $0x3] ss:$0 sm:$0xff] }
 0x2d0   : > { %v2368_v44 = vor.u32 %v2367_v40, %v2366_v9  ;;  %v2371_v22 = vshll.u32 %v2370_v42, 23  ;;  %v865_v16 = vmul.f32 %v13626_v29, %v807_v61  ;;  %v867_v11 = vmul.f32 %v13626_v29, %v815_v26 }
 0x2d1   : > { %v13631_v1 = vand.u32 31, %v13329_v59  ;;  %v8672_v37 = vadd.s32 4294967294, %v3297_v0  ;;  %v2380_v14 = vsel %vm2295_vm13, %v2379_v43, %v13488_v48  ;;  %v2562_v21 = vadd.s32 536870912, %v2561_v36 }
 0x2d2   : > { %v13636_v35 = vadd.s32 %v3600_v55, %v3596_v63  ;;  %v18628_v18 = vand.u32 2147483647, %v18611_v41  ;;  %v2372_v61 = vor.u32 4788187, %v2371_v22  ;;  %v897_v26 = vadd.f32 %v865_v16, %v13204_v5 }
 0x2d3   : > { %18627 = vst [vmem:[#allocation80_spill] sm:$0xff] %v13631_v1  ;;  %v2563_v6 = vshrl.u32 %v2562_v21, 30  ;;  %v2491_v59 = vand.u32 3, %v2490_v38  ;;  %v899_v0 = vadd.f32 %v867_v11, %v13310_v62  ;;  %v868_v13 = vmul.f32 %v13626_v29, %v819_v31 }
 0x2d4   : > { %vm13640_vm12 = vcmp.le.f32.partialorder %v18628_v18, 0.7853982  ;;  %v2373_v10 = vand.u32 2147483647, %v2372_v61  ;;  %v2375_v48 = vcvt.s32.f32 %v2368_v44  ;;  %v13655_v43 = vadd.f32 %v13652_v34, %v897_v26 }
 0x2d5   : > { %v2382_v63 = vsel %vm13640_vm12, 0, %v2380_v14  ;;  %vm8673_vm5 = vcmp.lt.s32.totalorder %v8672_v37, 0  ;;  %vm2503_vm11 = vcmp.lt.s32.totalorder %v18617_v7, 0  ;;  %v2564_v5 = vshll.u32 %v2563_v6, 30 }
 0x2d6   : > { %18631 = vst [vmem:[#allocation69_spill] sm:$0xff] %v13655_v43  ;;  %v900_v62 = vadd.f32 %v868_v13, %v704_v45  ;;  %v3602_v32 = vadd.s32 536870912, %v13636_v35  ;;  %v2376_v17 = vmul.f32 %v2375_v48, %v2373_v10  ;;  %v18267_v9 = vand.u32 2147483647, %v13655_v43 }
 0x2d7   : > { %v3440_v40 = vand.u32 2139095040, %v13655_v43  ;;  %v2386_v47 = vadd.s32 3, %v2382_v63  ;;  %v13661_v55 = vsub.s32 %v2561_v36, %v2564_v5  ;;  %vm2492_vm2 = vcmp.lt.s32.totalorder %v2491_v59, 2 }
 0x2d8   : > { %v9690_v23 = vpop.eup %9689  ;;  %v2377_v44 = vxor.u32 2147483648, %v2376_v17  ;;  %vm2493_vm4 = vcmp.eq.s32.totalorder %v2491_v59, 0  ;;  %vm2496_vm8 = vcmp.eq.s32.totalorder %v2491_v59, 2  ;;  %v2587_v16 = vsub.s32 4, %v2563_v6 }
 0x2d9   : > { %v9692_v42 = vpop.eup %9691  ;;  %v2497_v38 = vxor.u32 2147483648, %v9690_v23  ;;  %v2567_v45 = vsub.s32 0, %v13661_v55  ;;  %v3441_v31 = vshrl.u32 %v3440_v40, 23  ;;  %v3444_v18 = vand.u32 8388607, %v18267_v9 }
 0x2da   : > { %v2494_v22 = vxor.u32 2147483648, %v9692_v42  ;;  %v2378_v14 = vsel %vm2295_vm13, %v2377_v44, %v2376_v17  ;;  %v13669_v36 = vadd.f32 %v13652_v34, %v899_v0  ;;  %vm2489_vm7 = vweird.f32 %v18592_v33 }
 0x2db   : > { %v2498_v11 = vsel %vm2496_vm8, %v2497_v38, %v9692_v42  ;;  %v2381_v61 = vsel %vm13640_vm12, %v18611_v41, %v2378_v14  ;;  %v8643_v26 = vmin.u32 %v2567_v45, %v13661_v55  ;;  %v13677_v10 = vshrl.u32 %v3602_v32, 30 }
 0x2dc   : > { %v2495_v21 = vsel %vm2493_vm4, %v9690_v23, %v2494_v22  ;;  %18632 = vst [vmem:[#allocation46_spill] sm:$0xff] %v13669_v36  ;;  %9693 = vcosq.f32 %v2381_v61  ;;  %v8678_v63 = vadd.s32 4294967169, %v3441_v31  ;;  %v13680_v5 = vshrl.u32 %v13567_v24, 5 }
 0x2dd   : > { %v2499_v13 = vsel %vm2492_vm2, %v2495_v21, %v2498_v11  ;;  %18633 = vst [vmem:[#allocation42_spill] sm:$0xff] %v13677_v10  ;;  %9695 = vsinq.f32 %v2381_v61  ;;  %v2569_v0 = vclz %v8643_v26  ;;  %v13684_v57 = vsel %vm2503_vm11, %v2587_v16, %v2563_v6 }
 0x2de   : > { %v2500_v48 = vsel %vm2489_vm7, nan, %v2499_v13  ;;  %18634 = vst [vmem:[#allocation65_spill] sm:$0xff] %v13680_v5  ;;  %v3445_v17 = vor.u32 8388608, %v3444_v18  ;;  %v3447_v40 = vadd.s32 1, %v8678_v63  ;;  %v18266_v33 = vand.u32 2147483647, %v13669_v36 }
 0x2df   : > { %v8970_v23 = vpack.c.bf16 %v2500_v48, %v2500_v48  ;;  %v13688_v59 = vsel %vm8673_vm5, 0, %v8672_v37  ;;  %v13690_v32 = vand.u32 3, %v2386_v47  ;;  %v8644_v42 = vadd.s32 4294967294, %v2569_v0 }
 0x2e0   : > { %v3648_v38 = vand.u32 2139095040, %v13669_v36  ;;  %v18635_v22 = vand.u32 2147483647, %v18617_v7  ;;  %v2557_v45 = vadd.s32 %v13582_v51, %v13540_v20  ;;  %vm3448_vm6 = vcmp.gt.s32.totalorder %v3447_v40, 0 }
 0x2e1   : > { %4586 = vrot.lane.b32.xlu1 %v8970_v23, %s10368_s21  ;;  %vm8645_vm13 = vcmp.lt.s32.totalorder %v8644_v42, 0  ;;  %v3449_v47 = vsel %vm3448_vm6, %v3447_v40, 0  ;;  %v13706_v14 = vshll.u32 %v3445_v17, 8  ;;  %v13710_v21 = vand.u32 8388607, %v18266_v33 }
 0x2e2   : > { %vm13696_vm3 = vcmp.le.f32.partialorder %v18635_v22, 0.7853982  ;;  %v3649_v16 = vshrl.u32 %v3648_v38, 23  ;;  %v2572_v11 = vsel %vm8645_vm13, 0, %v8644_v42  ;;  %v3451_v31 = vand.u32 31, %v3449_v47 }
 0x2e3   : > { %vm2392_vm1 = vcmp.eq.s32.totalorder %v13690_v32, 2  ;;  %v2573_v20 = vsub.s32 32, %v2572_v11  ;;  %v2577_v51 = vsub.s32 4294967266, %v2572_v11  ;;  %v13713_v18 = vshrl.u32 %v3449_v47, 5 }
 0x2e4   : > { %v13716_v61 = vadd.f32 %v13652_v34, %v900_v62  ;;  %vm2389_vm10 = vcmp.eq.s32.totalorder %v13690_v32, 0  ;;  %v2574_v26 = vshll.u32 %v13661_v55, %v2572_v11  ;;  %v3452_v13 = vsub.s32 32, %v3451_v31 }
 0x2e5   : > { %v3454_v48 = vshll.u32 %v18385_v2, %v3451_v31  ;;  %v8686_v63 = vadd.s32 4294967169, %v3649_v16  ;;  %vm2388_vm9 = vcmp.lt.s32.totalorder %v13690_v32, 2  ;;  %v2575_v0 = vshrl.u32 %v2557_v45, %v2573_v20 }
 0x2e6   : > { %18638 = vst [vmem:[#allocation90_spill] sm:$0xff] %v13716_v61  ;;  %v2578_v23 = vadd.s32 127, %v2577_v51  ;;  %v3457_v17 = vshll.u32 %v18423_v12, %v3451_v31  ;;  %v3460_v40 = vshll.u32 %v18456_v56, %v3451_v31  ;;  %vm2385_vm12 = vweird.f32 %v18611_v41 }
 0x2e7   : > { %v3455_v62 = vshrl.u32 %v18423_v12, %v3452_v13  ;;  %v3458_v42 = vshrl.u32 %v18456_v56, %v3452_v13  ;;  %v3461_v55 = vshrl.u32 %v18425_v27, %v3452_v13  ;;  %v3463_v38 = vshll.u32 %v18425_v27, %v3451_v31 }
 0x2e8   : > { %v2576_v22 = vor.u32 %v2575_v0, %v2574_v26  ;;  %v2579_v47 = vshll.u32 %v2578_v23, 23  ;;  %v3464_v16 = vshrl.u32 %v18426_v50, %v3452_v13  ;;  %v3467_v45 = vshrl.u32 %v18427_v49, %v3452_v13 }
 0x2e9   : > { %v3456_v11 = vor.u32 %v3455_v62, %v3454_v48  ;;  %v3459_v20 = vor.u32 %v3458_v42, %v3457_v17  ;;  %v3462_v51 = vor.u32 %v3461_v55, %v3460_v40  ;;  %v3466_v33 = vshll.u32 %v18426_v50, %v3451_v31  ;;  %v9694_v9 = vpop.eup %9693 }
 0x2ea   : > { %v2580_v37 = vor.u32 4788187, %v2579_v47  ;;  %v3453_v44 = vshrl.u32 %v18385_v2, %v3452_v13  ;;  %v3465_v5 = vor.u32 %v3464_v16, %v3463_v38  ;;  %vm3469_vm5 = vcmp.lt.s32.totalorder %v13713_v18, 1  ;;  %v9696_v36 = vpop.eup %9695 }
 0x2eb   : > { %v2393_v43 = vxor.u32 2147483648, %v9694_v9  ;;  %v2583_v26 = vcvt.s32.f32 %v2576_v22  ;;  %v3468_v0 = vor.u32 %v3467_v45, %v3466_v33  ;;  %vm3470_vm2 = vcmp.lt.s32.totalorder %v13713_v18, 2 }
 0x2ec   : > { %v2390_v23 = vxor.u32 2147483648, %v9696_v36  ;;  %v2581_v60 = vand.u32 2147483647, %v2580_v37  ;;  %vm3471_vm4 = vcmp.lt.s32.totalorder %v13713_v18, 3  ;;  %vm3472_vm8 = vcmp.lt.s32.totalorder %v13713_v18, 4  ;;  %v9577_v18 = vld [vmem:[%s18039_s2 + $0x38] sm:$0xff]  }
 0x2ed   : > { %v2394_v31 = vsel %vm2392_vm1, %v2393_v43, %v9696_v36  ;;  %v3474_v48 = vsel %vm3472_vm8, %v3462_v51, 2102212464  ;;  %v3477_v13 = vsel %vm3469_vm5, %v3456_v11, %v3459_v20  ;;  %v3478_v17 = vsel %vm3472_vm8, %v3465_v5, 920167782  ;;  %9129 = vmatprep.subr.bf16.mxu0 %v9577_v18 }
 0x2ee   : > { %v2391_v40 = vsel %vm2389_vm10, %v9694_v9, %v2390_v23  ;;  %v2584_v33 = vmul.f32 %v2583_v26, %v2581_v60  ;;  %v3473_v62 = vsel %vm3469_vm5, %v3453_v44, %v3456_v11  ;;  %v3479_v37 = vsel %vm3471_vm4, %v3462_v51, %v3478_v17  ;;  %9130 = vmatpush3.bf16.msra.mxu0 %v9577_v18 }
 0x2ef   : > { %v2395_v42 = vsel %vm2388_vm9, %v2391_v40, %v2394_v31  ;;  %v3480_v43 = vsel %vm3470_vm2, %v3477_v13, %v3479_v37  ;;  %v3481_v36 = vsel %vm3469_vm5, %v3459_v20, %v3462_v51  ;;  %v3482_v55 = vsel %vm3472_vm8, %v3468_v0, 1326507024 }
 0x2f0   : > { %v2396_v9 = vsel %vm2385_vm12, nan, %v2395_v42  ;;  %v2585_v60 = vxor.u32 2147483648, %v2584_v33  ;;  %v3475_v44 = vsel %vm3471_vm4, %v3459_v20, %v3474_v48  ;;  %v3483_v38 = vsel %vm3471_vm4, %v3465_v5, %v3482_v55 }
 0x2f1   : > { %v8969_v22 = vpack.c.bf16 %v2396_v9, %v2396_v9  ;;  %v3484_v32 = vsel %vm3470_vm2, %v3481_v36, %v3483_v38  ;;  %v13762_v47 = vmul.u32.u64.low %v13706_v14, %v3480_v43  ;;  %v13763_v16 = vmul.u32.u64.high %v13706_v14, %v3480_v43, %v13762_v47 }
 0x2f2   : > { %v2586_v41 = vsel %vm2503_vm11, %v2585_v60, %v2584_v33  ;;  %v13769_v45 = vmul.u32.u64.low %v13706_v14, %v3484_v32  ;;  %v13770_v11 = vmul.u32.u64.high %v13706_v14, %v3484_v32, %v13769_v45  ;;  %v3655_v20 = vadd.s32 1, %v8686_v63 }
 0x2f3   : > { %v3305_v51 = vsub.s32 4294967266, %v13688_v59  ;;  %v18639_v5 = vshll.u32 %v13677_v10, 30  ;;  %4584 = vrot.lane.b32.xlu0 %v8969_v22, %s10368_s21  ;;  %v2589_v0 = vsel %vm13696_vm3, %v18617_v7, %v2586_v41  ;;  %v3476_v23 = vsel %vm3470_vm2, %v3473_v62, %v3475_v44 }
 0x2f4   : > { %9697 = vcosq.f32 %v2589_v0  ;;  %v18640_v63 = vsel %vm13696_vm3, 0, %v13684_v57  ;;  %v3653_v48 = vor.u32 8388608, %v13710_v21  ;;  %vm3656_vm11 = vcmp.gt.s32.totalorder %v3655_v20, 0 }
 0x2f5   : > { %v13776_v26 = vsub.s32 %v13636_v35, %v18639_v5  ;;  %v2594_v31 = vadd.s32 3, %v18640_v63  ;;  %9699 = vsinq.f32 %v2589_v0  ;;  %v3495_v35 = vadd.s32 1, %v13763_v16 }
 0x2f6   : > { %v3657_v13 = vsel %vm3656_vm11, %v3655_v20, 0  ;;  %v3752_v17 = vand.u32 2139095040, %v13716_v61  ;;  %v13795_v40 = vand.u32 31, %v13567_v24  ;;  %v3492_v6 = vmul.u32 %v13706_v14, %v3476_v23 }
 0x2f7   : > { %vm3494_vm7 = vc.u32 %v13770_v11, %v13762_v47  ;;  %v3659_v57 = vand.u32 31, %v3657_v13  ;;  %v13801_v21 = vsub.s32 32, %v13631_v1  ;;  %v13803_v33 = vadd.s32 127, %v3305_v51 }
 0x2f8   : > { %18641 = vst [vmem:[#allocation84_spill] sm:$0xff] %v13795_v40  ;;  %v3607_v62 = vsub.s32 0, %v13776_v26  ;;  %v3496_v37 = vsel %vm3494_vm7, %v3495_v35, %v13763_v16  ;;  %v13807_v42 = vand.u32 3, %v2594_v31  ;;  %v3658_v43 = vshrl.u32 %v3657_v13, 5 }
 0x2f9   : > { %18642 = vst [vmem:[#allocation88_spill] sm:$0xff] %v13801_v21  ;;  %v13809_v24 = vadd.s32 %v3496_v37, %v3492_v6  ;;  %v3660_v14 = vsub.s32 32, %v3659_v57  ;;  %v3662_v36 = vshll.u32 %v18385_v2, %v3659_v57  ;;  %v3665_v55 = vshll.u32 %v18423_v12, %v3659_v57 }
 0x2fa   : > { %v13813_v9 = vshll.u32 %v3653_v48, 8  ;;  %v3753_v60 = vshrl.u32 %v3752_v17, 23  ;;  %v3668_v22 = vshll.u32 %v18456_v56, %v3659_v57  ;;  %v3671_v32 = vshll.u32 %v18425_v27, %v3659_v57 }
 0x2fb   : > { %v3663_v44 = vshrl.u32 %v18423_v12, %v3660_v14  ;;  %v3666_v38 = vshrl.u32 %v18456_v56, %v3660_v14  ;;  %v3669_v16 = vshrl.u32 %v18425_v27, %v3660_v14  ;;  %v3672_v41 = vshrl.u32 %v18426_v50, %v3660_v14 }
 0x2fc   : > { %v3674_v45 = vshll.u32 %v18426_v50, %v3659_v57  ;;  %v3675_v20 = vshrl.u32 %v18427_v49, %v3660_v14  ;;  %v3498_v51 = vadd.s32 536870912, %v13809_v24  ;;  %vm3677_vm3 = vcmp.lt.s32.totalorder %v3658_v43, 1 }
 0x2fd   : > { %v3664_v5 = vor.u32 %v3663_v44, %v3662_v36  ;;  %v3667_v0 = vor.u32 %v3666_v38, %v3665_v55  ;;  %v3661_v23 = vshrl.u32 %v18385_v2, %v3660_v14  ;;  %v3670_v63 = vor.u32 %v3669_v16, %v3668_v22 }
 0x2fe   : > { %v3673_v31 = vor.u32 %v3672_v41, %v3671_v32  ;;  %v3676_v48 = vor.u32 %v3675_v20, %v3674_v45  ;;  %vm3679_vm6 = vcmp.lt.s32.totalorder %v3658_v43, 3  ;;  %vm3680_vm13 = vcmp.lt.s32.totalorder %v3658_v43, 4 }
 0x2ff   : > { %v3685_v35 = vsel %vm3677_vm3, %v3664_v5, %v3667_v0  ;;  %v8690_v13 = vadd.s32 4294967169, %v3753_v60  ;;  %v3682_v17 = vsel %vm3680_vm13, %v3670_v63, 2102212464  ;;  %v3689_v6 = vsel %vm3677_vm3, %v3667_v0, %v3670_v63 }
 0x300   : > { %v3686_v18 = vsel %vm3680_vm13, %v3673_v31, 920167782  ;;  %v3690_v57 = vsel %vm3680_vm13, %v3676_v48, 1326507024  ;;  %v13827_v37 = vshrl.u32 %v3498_v51, 30  ;;  %vm3678_vm1 = vcmp.lt.s32.totalorder %v3658_v43, 2 }
 0x301   : > { %v3687_v36 = vsel %vm3679_vm6, %v3670_v63, %v3686_v18  ;;  %v3691_v14 = vsel %vm3679_vm6, %v3673_v31, %v3690_v57  ;;  %v9698_v55 = vpop.eup %9697  ;;  %v3681_v44 = vsel %vm3677_vm3, %v3661_v23, %v3664_v5  ;;  %v3759_v60 = vadd.s32 1, %v8690_v13 }
 0x302   : > { %18643 = vst [vmem:[#allocation76_spill] sm:$0xff] %v13827_v37  ;;  %v3688_v38 = vsel %vm3678_vm1, %v3685_v35, %v3687_v36  ;;  %v3692_v22 = vsel %vm3678_vm1, %v3689_v6, %v3691_v14  ;;  %v9700_v32 = vpop.eup %9699  ;;  %v2601_v16 = vxor.u32 2147483648, %v9698_v55  ;;  %v3683_v41 = vsel %vm3679_vm6, %v3667_v0, %v3682_v17 }
 0x303   : > { %v13836_v45 = vmul.u32.u64.low %v13813_v9, %v3692_v22  ;;  %v13837_v20 = vmul.u32.u64.high %v13813_v9, %v3692_v22, %v13836_v45  ;;  %v2598_v51 = vxor.u32 2147483648, %v9700_v32  ;;  %vm2600_vm10 = vcmp.eq.s32.totalorder %v13807_v42, 2 }
 0x304   : > { %v13841_v63 = vmul.u32.u64.low %v13813_v9, %v3688_v38  ;;  %v13842_v31 = vmul.u32.u64.high %v13813_v9, %v3688_v38, %v13841_v63  ;;  %vm2597_vm9 = vcmp.eq.s32.totalorder %v13807_v42, 0  ;;  %v2602_v5 = vsel %vm2600_vm10, %v2601_v16, %v9700_v32 }
 0x305   : > { %v3500_v23 = vshll.u32 %v13827_v37, 30  ;;  %vm3760_vm12 = vcmp.gt.s32.totalorder %v3759_v60, 0  ;;  %vm2596_vm5 = vcmp.lt.s32.totalorder %v13807_v42, 2  ;;  %v2599_v0 = vsel %vm2597_vm9, %v9698_v55, %v2598_v51 }
 0x306   : > { %v3684_v48 = vsel %vm3678_vm1, %v3681_v44, %v3683_v41  ;;  %v3761_v35 = vsel %vm3760_vm12, %v3759_v60, 0  ;;  %v3301_v13 = vsub.s32 32, %v13688_v59  ;;  %vm2593_vm2 = vweird.f32 %v18617_v7 }
 0x307   : > { %v2603_v17 = vsel %vm2596_vm5, %v2599_v0, %v2602_v5  ;;  %vm3702_vm4 = vc.u32 %v13837_v20, %v13841_v63  ;;  %v3307_v18 = vshll.u32 %v13803_v33, 23  ;;  %v3703_v57 = vadd.s32 1, %v13842_v31 }
 0x308   : > { %v2604_v6 = vsel %vm2593_vm2, nan, %v2603_v17  ;;  %v3763_v36 = vand.u32 31, %v3761_v35  ;;  %v8683_v42 = vmin.u32 %v3607_v62, %v13776_v26  ;;  %v13859_v14 = vsub.s32 %v13809_v24, %v3500_v23 }
 0x309   : > { %v8971_v43 = vpack.c.bf16 %v2604_v6, %v2604_v6  ;;  %v3700_v7 = vmul.u32 %v13813_v9, %v3684_v48  ;;  %v3151_v55 = vshll.u32 %v18425_v27, %v13631_v1  ;;  %v3285_v33 = vadd.s32 %v13123_v39, %v13130_v58 }
 0x30a   : > { %v3704_v44 = vsel %vm3702_vm4, %v3703_v57, %v13842_v31  ;;  %v13867_v38 = vsub.s32 32, %v3763_v36  ;;  %v13871_v22 = vshll.u32 %v18426_v50, %v13631_v1  ;;  %v3302_v62 = vshll.u32 %v13322_v52, %v13688_v59 }
 0x30b   : > { %4588 = vrot.lane.b32.xlu0 %v8971_v43, %s10368_s21  ;;  %v3705_v24 = vadd.s32 %v3704_v44, %v3700_v7  ;;  %v18274_v9 = vand.u32 2147483647, %v13716_v61  ;;  %v3303_v60 = vshrl.u32 %v3285_v33, %v3301_v13  ;;  %v3308_v32 = vor.u32 4788187, %v3307_v18 }
 0x30c   : > { %18644 = vst [vmem:[#allocation49_spill] sm:$0xff] %v13871_v22  ;;  %v3767_v39 = vshrl.u32 %v18423_v12, %v13867_v38  ;;  %v3770_v58 = vshrl.u32 %v18456_v56, %v13867_v38  ;;  %v3609_v16 = vclz %v8683_v42  ;;  %v3503_v41 = vsub.s32 0, %v13859_v14 }
 0x30d   : > { %v3706_v45 = vadd.s32 536870912, %v3705_v24  ;;  %v3766_v51 = vshll.u32 %v18385_v2, %v3763_v36  ;;  %v3769_v52 = vshll.u32 %v18423_v12, %v3763_v36  ;;  %v3773_v59 = vshrl.u32 %v18425_v27, %v13867_v38 }
 0x30e   : > { %v3775_v31 = vshll.u32 %v18425_v27, %v3763_v36  ;;  %v3776_v5 = vshrl.u32 %v18426_v50, %v13867_v38  ;;  %v3756_v23 = vand.u32 8388607, %v18274_v9  ;;  %v13891_v0 = vshrl.u32 %v3761_v35, 5 }
 0x30f   : > { %v13893_v48 = vor.u32 %v3767_v39, %v3766_v51  ;;  %v3772_v13 = vshll.u32 %v18456_v56, %v3763_v36  ;;  %v13896_v17 = vor.u32 %v3770_v58, %v3769_v52  ;;  %v3778_v6 = vshll.u32 %v18426_v50, %v3763_v36 }
 0x310   : > { %v3777_v18 = vor.u32 %v3776_v5, %v3775_v31  ;;  %v3779_v57 = vshrl.u32 %v18427_v49, %v13867_v38  ;;  %v13902_v42 = vsub.s32 32, %v13795_v40  ;;  %v8679_v43 = vmin.u32 %v3503_v41, %v13859_v14  ;;  %v13986_v40 = vld [vmem:[%s18038_s1 + $0x1] ss:$0 sm:$0xff] }
 0x311   : > { %v13905_v7 = vshrl.u32 %v3706_v45, 30  ;;  %v3774_v35 = vor.u32 %v3773_v59, %v3772_v13  ;;  %v3152_v33 = vshrl.u32 %v18426_v50, %v13801_v21  ;;  %v3304_v44 = vor.u32 %v3303_v60, %v3302_v62 }
 0x312   : > { %18645 = vst [vmem:[#allocation40_spill] sm:$0xff] %v13902_v42  ;;  %v8684_v39 = vadd.s32 4294967294, %v3609_v16  ;;  %v3780_v58 = vor.u32 %v3779_v57, %v3778_v6  ;;  %v13911_v36 = vshrl.u32 %v18427_v49, %v13801_v21  ;;  %v3309_v51 = vand.u32 2147483647, %v3308_v32  ;;  %v18649_v6 = vld [vmem:[#allocation75_spill] sm:$0xff] }
 0x313   : > { %18646 = vst [vmem:[#allocation94_spill] sm:$0xff] %v13905_v7  ;;  %vm3781_vm8 = vcmp.lt.s32.totalorder %v13891_v0, 1  ;;  %vm3784_vm11 = vcmp.lt.s32.totalorder %v13891_v0, 4  ;;  %v3757_v52 = vor.u32 8388608, %v3756_v23  ;;  %vm3783_vm7 = vcmp.lt.s32.totalorder %v13891_v0, 3 }
 0x314   : > { %18647 = vst [vmem:[#allocation68_spill] sm:$0xff] %v13911_v36  ;;  %v3789_v41 = vsel %vm3781_vm8, %v13893_v48, %v13896_v17  ;;  %v3790_v62 = vsel %vm3784_vm11, %v3777_v18, 920167782  ;;  %v3505_v60 = vclz %v8679_v43  ;;  %v3708_v16 = vshll.u32 %v13905_v7, 30 }
 0x315   : > { %v3791_v32 = vsel %vm3783_vm7, %v3774_v35, %v3790_v62  ;;  %v3793_v45 = vsel %vm3781_vm8, %v13896_v17, %v3774_v35  ;;  %v3311_v59 = vcvt.s32.f32 %v3304_v44  ;;  %vm8685_vm3 = vcmp.lt.s32.totalorder %v8684_v39, 0 }
 0x316   : > { %vm3782_vm6 = vcmp.lt.s32.totalorder %v13891_v0, 2  ;;  %v3794_v31 = vsel %vm3784_vm11, %v3780_v58, 1326507024  ;;  %v13931_v5 = vor.u32 %v3152_v33, %v3151_v55  ;;  %v18275_v57 = vand.u32 2147483647, %v18649_v6 }
 0x317   : > { %v3792_v23 = vsel %vm3782_vm6, %v3789_v41, %v3791_v32  ;;  %v3795_v13 = vsel %vm3783_vm7, %v3777_v18, %v3794_v31  ;;  %v13940_v44 = vmul.f32 %v3311_v59, %v3309_v51  ;;  %v13944_v9 = vshll.u32 %v3757_v52, 8 }
 0x318   : > { %18648 = vst [vmem:[#allocation82_spill] sm:$0xff] %v13931_v5  ;;  %v3796_v62 = vsel %vm3782_vm6, %v3793_v45, %v3795_v13  ;;  %v13946_v55 = vsel %vm8685_vm3, 0, %v8684_v39  ;;  %v8680_v33 = vadd.s32 4294967294, %v3505_v60  ;;  %v13948_v58 = vsub.s32 %v3705_v24, %v3708_v16  ;;  %v631_v45 = vpop.permute.xlu0 %630 }
 0x319   : > { %v2727_v18 = vshrl.u32 %v18423_v12, %v13263_v19  ;;  %v13953_v41 = vmul.u32.u64.low %v13944_v9, %v3792_v23  ;;  %v13954_v32 = vmul.u32.u64.high %v13944_v9, %v3792_v23, %v13953_v41  ;;  %v2730_v51 = vshrl.u32 %v18456_v56, %v13263_v19 }
 0x31a   : > { %v2736_v52 = vshrl.u32 %v18426_v50, %v13263_v19  ;;  %v13962_v39 = vmul.u32.u64.low %v13944_v9, %v3796_v62  ;;  %v13963_v60 = vmul.u32.u64.high %v13944_v9, %v3796_v62, %v13962_v39  ;;  %v2716_v24 = vand.u32 8388607, %v18275_v57 }
 0x31b   : > { %v2733_v16 = vshrl.u32 %v18425_v27, %v13263_v19  ;;  %v2726_v59 = vshll.u32 %v18385_v2, %v18599_v46  ;;  %v2729_v31 = vshll.u32 %v18423_v12, %v18599_v46  ;;  %v2735_v23 = vshll.u32 %v18425_v27, %v18599_v46 }
 0x31c   : > { %v2739_v13 = vshrl.u32 %v18427_v49, %v13263_v19  ;;  %vm8681_vm13 = vcmp.lt.s32.totalorder %v8680_v33, 0  ;;  %v3711_v39 = vsub.s32 0, %v13948_v58  ;;  %v2732_v43 = vshll.u32 %v18456_v56, %v18599_v46 }
 0x31d   : > { %v2728_v57 = vor.u32 %v2727_v18, %v2726_v59  ;;  %v2731_v10 = vor.u32 %v2730_v51, %v2729_v31  ;;  %v2737_v7 = vor.u32 %v2736_v52, %v2735_v23  ;;  %v2738_v37 = vshll.u32 %v18426_v50, %v18599_v46  ;;  %v465_v18 = vpop.permute.xlu1 %464  ;;  %v9578_v31 = vld [vmem:[%s18039_s2 + $0x30] sm:$0xff]  }
 0x31e   : > { %v674_v42 = vmul.f32 %v13986_v40, %v631_v45  ;;  %v3765_v62 = vshrl.u32 %v18385_v2, %v13867_v38  ;;  %v3786_v61 = vsel %vm3784_vm11, %v3774_v35, 2102212464  ;;  %v2734_v21 = vor.u32 %v2733_v16, %v2732_v43  ;;  %v14000_v45 = vpop.permute.xlu0 %634  ;;  %9131 = vmatprep.subr.bf16.mxu0 %v9578_v31 }
 0x31f   : > { %v13993_v51 = vsel %vm8681_vm13, 0, %v8680_v33  ;;  %v2717_v52 = vor.u32 8388608, %v2716_v24  ;;  %v2725_v46 = vshrl.u32 %v18385_v2, %v13263_v19  ;;  %v2740_v59 = vor.u32 %v2739_v13, %v2738_v37  ;;  %9132 = vmatpush3.bf16.msra.mxu0 %v9578_v31 }
 0x320   : > { %v8687_v38 = vmin.u32 %v3711_v39, %v13948_v58  ;;  %v3785_v35 = vsel %vm3781_vm8, %v3765_v62, %v13893_v48  ;;  %vm2741_vm1 = vcmp.lt.s32.totalorder %v13257_v28, 1  ;;  %vm2744_vm10 = vcmp.lt.s32.totalorder %v13257_v28, 4 }
 0x321   : > { %v3787_v19 = vsel %vm3783_vm7, %v13896_v17, %v3786_v61  ;;  %v3807_v37 = vadd.s32 1, %v13954_v32  ;;  %v2749_v43 = vsel %vm2741_vm1, %v2728_v57, %v2731_v10  ;;  %v2750_v33 = vsel %vm2744_vm10, %v2737_v7, 920167782  ;;  %v627_v1 = vpop.permute.xlu1 %626 }
 0x322   : > { %vm3806_vm9 = vc.u32 %v13963_v60, %v13953_v41  ;;  %vm2742_vm12 = vcmp.lt.s32.totalorder %v13257_v28, 2  ;;  %vm2743_vm5 = vcmp.lt.s32.totalorder %v13257_v28, 3  ;;  %v2746_v48 = vsel %vm2744_vm10, %v2734_v21, 2102212464  ;;  %v823_v22 = vpop.permute.xlu0 %822 }
 0x323   : > { %v2751_v24 = vsel %vm2743_vm5, %v2734_v21, %v2750_v33  ;;  %v2753_v61 = vsel %vm2741_vm1, %v2731_v10, %v2734_v21  ;;  %v2754_v17 = vsel %vm2744_vm10, %v2740_v59, 1326507024  ;;  %v2757_v16 = vshll.u32 %v2717_v52, 8 }
 0x324   : > { %v3713_v23 = vclz %v8687_v38  ;;  %v3788_v13 = vsel %vm3782_vm6, %v3785_v35, %v3787_v19  ;;  %v2745_v62 = vsel %vm2741_vm1, %v2725_v46, %v2728_v57  ;;  %v2752_v39 = vsel %vm2742_vm12, %v2749_v43, %v2751_v24  ;;  %v18650_v43 = vld [vmem:[#allocation79_spill] sm:$0xff] }
 0x325   : > { %v2747_v36 = vsel %vm2743_vm5, %v2731_v10, %v2746_v48  ;;  %v2755_v31 = vsel %vm2743_vm5, %v2737_v7, %v2754_v17  ;;  %v14026_v33 = vmul.u32.u64.low %v2757_v16, %v2752_v39  ;;  %v14027_v5 = vmul.u32.u64.high %v2757_v16, %v2752_v39, %v14026_v33 }
 0x326   : > { %v3513_v21 = vsub.s32 4294967266, %v13993_v51  ;;  %v3808_v0 = vsel %vm3806_vm9, %v3807_v37, %v13954_v32  ;;  %v2756_v57 = vsel %vm2742_vm12, %v2753_v61, %v2755_v31  ;;  %v510_v52 = vmul.f32 %v13611_v15, %v465_v18  ;;  %v470_v61 = vpop.permute.xlu1 %469 }
 0x327   : > { %v14038_v46 = vmul.u32.u64.low %v2757_v16, %v2756_v57  ;;  %v14039_v59 = vmul.u32.u64.high %v2757_v16, %v2756_v57, %v14038_v46  ;;  %v673_v10 = vmul.f32 %v13986_v40, %v627_v1  ;;  %v869_v7 = vmul.f32 %v13626_v29, %v823_v22 }
 0x328   : > { %vm3231_vm2 = vcmp.lt.s32.totalorder %v12959_v8, 0  ;;  %v8688_v38 = vadd.s32 4294967294, %v3713_v23  ;;  %v3804_v35 = vmul.u32 %v13944_v9, %v3788_v13  ;;  %v2748_v32 = vsel %vm2742_vm12, %v2745_v62, %v2747_v36  ;;  %v9579_v62 = vld [vmem:[%s18039_s2 + $0x28] sm:$0xff]  }
 0x329   : > { %v14047_v19 = vadd.f32 %v674_v42, %v510_v52  ;;  %v3597_v18 = vadd.s32 %v13508_v25, %v13524_v54  ;;  %v2767_v37 = vadd.s32 1, %v14027_v5  ;;  %v705_v48 = vadd.f32 %v673_v10, %v18650_v43  ;;  %9133 = vmatprep.subr.bf16.mxu0 %v9579_v62 }
 0x32a   : > { %v18651_v1 = vand.u32 2147483647, %v18602_v53  ;;  %v3313_v22 = vxor.u32 2147483648, %v13940_v44  ;;  %v3617_v28 = vsub.s32 4294967266, %v13946_v55  ;;  %v14061_v9 = vadd.s32 %v3808_v0, %v3804_v35  ;;  %9134 = vmatpush3.bf16.msra.mxu0 %v9579_v62 }
 0x32b   : > { %v18654_v54 = vsub.s32 32, %v13946_v55  ;;  %v2764_v36 = vmul.u32 %v2757_v16, %v2748_v32  ;;  %vm2766_vm8 = vc.u32 %v14039_v59, %v14026_v33  ;;  %v901_v24 = vadd.f32 %v869_v7, %v705_v48  ;;  %v18655_v16 = vld [vmem:[#allocation70_spill] sm:$0xff] }
 0x32c   : > { %vm14055_vm4 = vcmp.le.f32.partialorder %v18651_v1, 0.7853982  ;;  %v3509_v17 = vsub.s32 32, %v13993_v51  ;;  %v3514_v23 = vadd.s32 127, %v3513_v21  ;;  %vm8689_vm11 = vcmp.lt.s32.totalorder %v8688_v38, 0 }
 0x32d   : > { %v2693_v25 = vsel %vm14055_vm4, %v18602_v53, %v13295_v3  ;;  %v3615_v42 = vshrl.u32 %v3597_v18, %v18654_v54  ;;  %v2768_v13 = vsel %vm2766_vm8, %v2767_v37, %v14027_v5  ;;  %v14077_v39 = vadd.f32 %v13652_v34, %v901_v24 }
 0x32e   : > { %v2769_v3 = vadd.s32 %v2768_v13, %v2764_v36  ;;  %v2691_v31 = vsub.s32 4, %v18655_v16  ;;  %9701 = vcosq.f32 %v2693_v25  ;;  %v675_v0 = vmul.f32 %v13986_v40, %v14000_v45 }
 0x32f   : > { %v3493_v21 = vadd.s32 %v13762_v47, %v13770_v11  ;;  %v3810_v57 = vadd.s32 536870912, %v14061_v9  ;;  %v511_v5 = vmul.f32 %v13611_v15, %v470_v61  ;;  %v14086_v52 = vadd.s32 127, %v3617_v28 }
 0x330   : > { %v14088_v46 = vsel %vm8689_vm11, 0, %v8688_v38  ;;  %v2770_v34 = vadd.s32 536870912, %v2769_v3  ;;  %v18294_v10 = vand.u32 2147483647, %v14077_v39  ;;  %v3515_v35 = vshll.u32 %v3514_v23, 23 }
 0x331   : > { %v3511_v7 = vshrl.u32 %v3493_v21, %v3509_v17  ;;  %v3856_v45 = vand.u32 2139095040, %v14077_v39  ;;  %v14092_v32 = vadd.f32 %v675_v0, %v511_v5  ;;  %v14097_v47 = vsel %vm3231_vm2, %v3313_v22, %v13940_v44  ;;  %v9580_v21 = vld [vmem:[%s18039_s2 + $0x20] sm:$0xff]  }
 0x332   : > { %v3614_v15 = vshll.u32 %v13776_v26, %v13946_v55  ;;  %v2771_v11 = vshrl.u32 %v2770_v34, 30  ;;  %v2692_v38 = vsel %vm2607_vm14, %v2691_v31, %v18655_v16  ;;  %v3510_v18 = vshll.u32 %v13859_v14, %v13993_v51  ;;  %9135 = vmatprep.subr.bf16.mxu0 %v9580_v21 }
 0x333   : > { %v3721_v37 = vsub.s32 4294967266, %v14088_v46  ;;  %v14107_v43 = vshrl.u32 %v3810_v57, 30  ;;  %v3857_v48 = vshrl.u32 %v3856_v45, 23  ;;  %v3860_v26 = vand.u32 8388607, %v18294_v10  ;;  %9136 = vmatpush3.bf16.msra.mxu0 %v9580_v21 }
 0x334   : > { %v14109_v1 = vor.u32 %v3615_v42, %v3614_v15  ;;  %v2772_v22 = vshll.u32 %v2771_v11, 30  ;;  %v14114_v55 = vor.u32 %v3511_v7, %v3510_v18  ;;  %v14116_v28 = vor.u32 4788187, %v3515_v35 }
 0x335   : > { %18656 = vst [vmem:[#allocation89_spill] sm:$0xff] %v14107_v43  ;;  %v8694_v54 = vadd.s32 4294967169, %v3857_v48  ;;  %v2694_v14 = vsel %vm14055_vm4, 0, %v2692_v38  ;;  %v18657_v51 = vand.u32 2147483647, %v18649_v6  ;;  %vm2711_vm7 = vcmp.lt.s32.totalorder %v18649_v6, 0 }
 0x336   : > { %v14127_v42 = vsub.s32 %v2769_v3, %v2772_v22  ;;  %v2795_v24 = vsub.s32 4, %v2771_v11  ;;  %v3717_v61 = vsub.s32 32, %v14088_v46  ;;  %v14130_v17 = vadd.s32 127, %v3721_v37 }
 0x337   : > { %vm14122_vm14 = vcmp.le.f32.partialorder %v18657_v51, 0.7853982  ;;  %v3812_v23 = vshll.u32 %v14107_v43, 30  ;;  %v3863_v13 = vadd.s32 1, %v8694_v54  ;;  %v3701_v29 = vadd.s32 %v13841_v63, %v13837_v20 }
 0x338   : > { %v2775_v62 = vsub.s32 0, %v14127_v42  ;;  %v3861_v16 = vor.u32 8388608, %v3860_v26  ;;  %v2698_v31 = vadd.s32 3, %v2694_v14  ;;  %9703 = vsinq.f32 %v2693_v25  ;;  %v18663_v26 = vld [vmem:[#allocation55_spill] sm:$0xff] }
 0x339   : > { %vm3864_vm3 = vcmp.gt.s32.totalorder %v3863_v13, 0  ;;  %v14146_v20 = vsel %vm2711_vm7, %v2795_v24, %v2771_v11  ;;  %v14150_v7 = vshrl.u32 %v3701_v29, %v3717_v61  ;;  %v14154_v35 = vsub.s32 %v14061_v9, %v3812_v23 }
 0x33a   : > { %v8651_v5 = vmin.u32 %v2775_v62, %v14127_v42  ;;  %v3865_v63 = vsel %vm3864_vm3, %v3863_v13, 0  ;;  %v2765_v15 = vadd.s32 %v14026_v33, %v14039_v59  ;;  %v14158_v18 = vshll.u32 %v3861_v16, 8 }
 0x33b   : > { %v14148_v34 = vpop.eup %9701  ;;  %v3867_v45 = vand.u32 31, %v3865_v63  ;;  %v14160_v11 = vand.u32 3, %v2698_v31  ;;  %v2798_v37 = vsel %vm14122_vm14, 0, %v14146_v20  ;;  %v18660_v22 = vand.u32 2147483647, %v18605_v30 }
 0x33c   : > { %v2777_v38 = vclz %v8651_v5  ;;  %v2899_v54 = vsub.s32 4, %v18663_v26  ;;  %v3866_v59 = vshrl.u32 %v3865_v63, 5  ;;  %v2705_v51 = vxor.u32 2147483648, %v14148_v34 }
 0x33d   : > { %v3868_v48 = vsub.s32 32, %v3867_v45  ;;  %vm14167_vm6 = vcmp.le.f32.partialorder %v18660_v22, 0.7853982  ;;  %v3870_v14 = vshll.u32 %v18385_v2, %v3867_v45  ;;  %v3873_v61 = vshll.u32 %v18423_v12, %v3867_v45 }
 0x33e   : > { %v8652_v33 = vadd.s32 4294967294, %v2777_v38  ;;  %v3876_v13 = vshll.u32 %v18456_v56, %v3867_v45  ;;  %v3879_v5 = vshll.u32 %v18425_v27, %v3867_v45  ;;  %v3882_v63 = vshll.u32 %v18426_v50, %v3867_v45 }
 0x33f   : > { %v3871_v24 = vshrl.u32 %v18423_v12, %v3868_v48  ;;  %v3874_v23 = vshrl.u32 %v18456_v56, %v3868_v48  ;;  %v3877_v29 = vshrl.u32 %v18425_v27, %v3868_v48  ;;  %v3880_v62 = vshrl.u32 %v18426_v50, %v3868_v48 }
 0x340   : > { %vm8653_vm13 = vcmp.lt.s32.totalorder %v8652_v33, 0  ;;  %v3883_v16 = vshrl.u32 %v18427_v49, %v3868_v48  ;;  %vm2701_vm1 = vcmp.eq.s32.totalorder %v14160_v11, 0  ;;  %vm2704_vm10 = vcmp.eq.s32.totalorder %v14160_v11, 2 }
 0x341   : > { %v2780_v31 = vsel %vm8653_vm13, 0, %v8652_v33  ;;  %v3872_v21 = vor.u32 %v3871_v24, %v3870_v14  ;;  %v3875_v10 = vor.u32 %v3874_v23, %v3873_v61  ;;  %v2900_v25 = vsel %vm2815_vm15, %v2899_v54, %v18663_v26 }
 0x342   : > { %v2781_v38 = vsub.s32 32, %v2780_v31  ;;  %v2785_v22 = vsub.s32 4294967266, %v2780_v31  ;;  %v3869_v57 = vshrl.u32 %v18385_v2, %v3868_v48  ;;  %v3878_v3 = vor.u32 %v3877_v29, %v3876_v13 }
 0x343   : > { %v3881_v33 = vor.u32 %v3880_v62, %v3879_v5  ;;  %v3884_v14 = vor.u32 %v3883_v16, %v3882_v63  ;;  %vm2700_vm9 = vcmp.lt.s32.totalorder %v14160_v11, 2  ;;  %v2782_v45 = vshll.u32 %v14127_v42, %v2780_v31 }
 0x344   : > { %v2783_v24 = vshrl.u32 %v2765_v15, %v2781_v38  ;;  %v2786_v0 = vadd.s32 127, %v2785_v22  ;;  %vm3885_vm12 = vcmp.lt.s32.totalorder %v3866_v59, 1  ;;  %vm2697_vm5 = vweird.f32 %v18602_v53 }
 0x345   : > { %vm3887_vm4 = vcmp.lt.s32.totalorder %v3866_v59, 3  ;;  %vm3888_vm8 = vcmp.lt.s32.totalorder %v3866_v59, 4  ;;  %v3889_v61 = vsel %vm3885_vm12, %v3869_v57, %v3872_v21  ;;  %v2901_v48 = vsel %vm14167_vm6, %v18605_v30, %v13300_v4  ;;  %v9704_v26 = vpop.eup %9703 }
 0x346   : > { %v2784_v54 = vor.u32 %v2783_v24, %v2782_v45  ;;  %v2787_v23 = vshll.u32 %v2786_v0, 23  ;;  %v3890_v13 = vsel %vm3888_vm8, %v3878_v3, 2102212464  ;;  %v3893_v29 = vsel %vm3885_vm12, %v3872_v21, %v3875_v10 }
 0x347   : > { %v3891_v42 = vsel %vm3887_vm4, %v3875_v10, %v3890_v13  ;;  %v3894_v15 = vsel %vm3888_vm8, %v3881_v33, 920167782  ;;  %v3897_v62 = vsel %vm3885_vm12, %v3875_v10, %v3878_v3  ;;  %v3898_v16 = vsel %vm3888_vm8, %v3884_v14, 1326507024 }
 0x348   : > { %v2788_v31 = vor.u32 4788187, %v2787_v23  ;;  %v2791_v5 = vcvt.s32.f32 %v2784_v54  ;;  %vm3886_vm15 = vcmp.lt.s32.totalorder %v3866_v59, 2  ;;  %v3895_v57 = vsel %vm3887_vm4, %v3878_v3, %v3894_v15 }
 0x349   : > { %v3892_v63 = vsel %vm3886_vm15, %v3889_v61, %v3891_v42  ;;  %v3896_v38 = vsel %vm3886_vm15, %v3893_v29, %v3895_v57  ;;  %v3899_v22 = vsel %vm3887_vm4, %v3881_v33, %v3898_v16  ;;  %v2702_v4 = vxor.u32 2147483648, %v9704_v26 }
 0x34a   : > { %v2789_v44 = vand.u32 2147483647, %v2788_v31  ;;  %v3900_v45 = vsel %vm3886_vm15, %v3897_v62, %v3899_v22  ;;  %v14200_v0 = vmul.u32.u64.low %v14158_v18, %v3896_v38  ;;  %v14201_v21 = vmul.u32.u64.high %v14158_v18, %v3896_v38, %v14200_v0  ;;  %v14261_v31 = vpop.permute.xlu1 %474 }
 0x34b   : > { %v14205_v10 = vmul.u32.u64.low %v14158_v18, %v3900_v45  ;;  %v14206_v14 = vmul.u32.u64.high %v14158_v18, %v3900_v45, %v14205_v10  ;;  %v2703_v3 = vsel %vm2701_vm1, %v14148_v34, %v2702_v4  ;;  %v2706_v59 = vsel %vm2704_vm10, %v2705_v51, %v9704_v26 }
 0x34c   : > { %v2792_v33 = vmul.f32 %v2791_v5, %v2789_v44  ;;  %v2707_v24 = vsel %vm2700_vm9, %v2703_v3, %v2706_v59  ;;  %v2902_v61 = vsel %vm14167_vm6, 0, %v2900_v25  ;;  %9705 = vcosq.f32 %v2901_v48  ;;  %v18670_v5 = vld [vmem:[#allocation87_spill] sm:$0xff]  ;;  %v14277_v10 = vpop.permute.xlu0 %834 }
 0x34d   : > { %v3815_v54 = vsub.s32 0, %v14154_v35  ;;  %v2802_v23 = vadd.s32 3, %v2798_v37  ;;  %v2708_v34 = vsel %vm2697_vm5, nan, %v2707_v24  ;;  %9707 = vsinq.f32 %v2901_v48 }
 0x34e   : > { %v2793_v51 = vxor.u32 2147483648, %v2792_v33  ;;  %v3911_v44 = vadd.s32 1, %v14201_v21  ;;  %v8972_v11 = vpack.c.bf16 %v2708_v34, %v2708_v34  ;;  %v2906_v26 = vadd.s32 3, %v2902_v61 }
 0x34f   : > { %v18664_v9 = vshll.u32 %v14086_v52, 23  ;;  %v18665_v13 = vand.u32 2147483647, %v14116_v28  ;;  %v18666_v29 = vcvt.s32.f32 %v14114_v55  ;;  %v3908_v20 = vmul.u32 %v14158_v18, %v3892_v63  ;;  %v18668_v55 = vld [vmem:[#allocation44_spill] sm:$0xff]  ;;  %v18671_v63 = vld [vmem:[#allocation58_spill] sm:$0xff] }
 0x350   : > { %vm3910_vm11 = vc.u32 %v14206_v14, %v14200_v0  ;;  %v18667_v53 = vshll.u32 %v13948_v58, %v14088_v46  ;;  %v2794_v52 = vsel %vm2711_vm7, %v2793_v51, %v2792_v33  ;;  %4590 = vrot.lane.b32.xlu1 %v8972_v11, %s10368_s21  ;;  %v18296_v48 = vand.u32 2147483647, %v18668_v55 }
 0x351   : > { %v14227_v25 = vor.u32 4788187, %v18664_v9  ;;  %v14233_v42 = vmul.f32 %v18666_v29, %v18665_v13  ;;  %v3912_v28 = vsel %vm3910_vm11, %v3911_v44, %v14201_v21  ;;  %v18669_v18 = vshll.u32 %v14130_v17, 23  ;;  %v18673_v13 = vld [vmem:[#allocation37_spill] sm:$0xff]  ;;  %v639_v29 = vpop.permute.xlu1 %638 }
 0x352   : > { %v14242_v37 = vor.u32 %v14150_v7, %v18667_v53  ;;  %v14254_v62 = vmin.u32 %v3815_v54, %v14154_v35  ;;  %v2797_v58 = vsel %vm14122_vm14, %v18649_v6, %v2794_v52  ;;  %v3913_v46 = vadd.s32 %v3912_v28, %v3908_v20 }
 0x353   : > { %v14251_v15 = vor.u32 4788187, %v18669_v18  ;;  %9709 = vcosq.f32 %v2797_v58  ;;  %v14259_v7 = vand.u32 3, %v2802_v23  ;;  %v2907_v16 = vand.u32 3, %v2906_v26 }
 0x354   : > { %v2933_v57 = vshrl.u32 %v18385_v2, %v18670_v5  ;;  %9711 = vsinq.f32 %v2797_v58  ;;  %v3914_v17 = vadd.s32 536870912, %v3913_v46  ;;  %v2934_v38 = vshll.u32 %v18385_v2, %v18671_v63 }
 0x355   : > { %v2935_v22 = vshrl.u32 %v18423_v12, %v18670_v5  ;;  %v2924_v36 = vand.u32 8388607, %v18296_v48  ;;  %v2937_v4 = vshll.u32 %v18423_v12, %v18671_v63  ;;  %v2938_v45 = vshrl.u32 %v18456_v56, %v18670_v5 }
 0x356   : > { %v2940_v21 = vshll.u32 %v18456_v56, %v18671_v63  ;;  %v14279_v3 = vshrl.u32 %v3914_v17, 30  ;;  %v2941_v33 = vshrl.u32 %v18425_v27, %v18670_v5  ;;  %v2943_v24 = vshll.u32 %v18425_v27, %v18671_v63 }
 0x357   : > { %v2936_v59 = vor.u32 %v2935_v22, %v2934_v38  ;;  %vm2905_vm14 = vweird.f32 %v18605_v30  ;;  %v2939_v61 = vor.u32 %v2938_v45, %v2937_v4  ;;  %v2944_v54 = vshrl.u32 %v18426_v50, %v18670_v5  ;;  %v18677_v30 = vld [vmem:[#allocation81_spill] sm:$0xff] }
 0x358   : > { %18672 = vst [vmem:[#allocation91_spill] sm:$0xff] %v14279_v3  ;;  %v2946_v23 = vshll.u32 %v18426_v50, %v18671_v63  ;;  %v2947_v34 = vshrl.u32 %v18427_v49, %v18670_v5  ;;  %v3916_v51 = vshll.u32 %v14279_v3, 30  ;;  %vm2908_vm7 = vcmp.lt.s32.totalorder %v2907_v16, 2  ;;  %v14305_v5 = vpop.permute.xlu0 %4560 }
 0x359   : > { %vm2909_vm3 = vcmp.eq.s32.totalorder %v2907_v16, 0  ;;  %v2942_v44 = vor.u32 %v2941_v33, %v2940_v21  ;;  %v2925_v11 = vor.u32 8388608, %v2924_v36  ;;  %v2945_v26 = vor.u32 %v2944_v54, %v2943_v24  ;;  %v9706_v20 = vpop.eup %9705 }
 0x35a   : > { %v2948_v9 = vor.u32 %v2947_v34, %v2946_v23  ;;  %vm2949_vm6 = vcmp.lt.s32.totalorder %v18673_v13, 1  ;;  %vm2808_vm13 = vcmp.eq.s32.totalorder %v14259_v7, 2  ;;  %vm2912_vm1 = vcmp.eq.s32.totalorder %v2907_v16, 2  ;;  %v9708_v52 = vpop.eup %9707 }
 0x35b   : > { %vm2950_vm10 = vcmp.lt.s32.totalorder %v18673_v13, 2  ;;  %vm2952_vm9 = vcmp.lt.s32.totalorder %v18673_v13, 4  ;;  %v2957_v53 = vsel %vm2949_vm6, %v2936_v59, %v2939_v61  ;;  %vm2805_vm12 = vcmp.eq.s32.totalorder %v14259_v7, 0 }
 0x35c   : > { %v2913_v28 = vxor.u32 2147483648, %v9706_v20  ;;  %vm2951_vm5 = vcmp.lt.s32.totalorder %v18673_v13, 3  ;;  %v2954_v18 = vsel %vm2952_vm9, %v2942_v44, 2102212464  ;;  %v2958_v58 = vsel %vm2952_vm9, %v2945_v26, 920167782 }
 0x35d   : > { %v14307_v17 = vsub.s32 %v3913_v46, %v3916_v51  ;;  %v2910_v63 = vxor.u32 2147483648, %v9708_v52  ;;  %v2959_v38 = vsel %vm2951_vm5, %v2942_v44, %v2958_v58  ;;  %v2961_v22 = vsel %vm2949_vm6, %v2939_v61, %v2942_v44 }
 0x35e   : > { %v18674_v36 = vand.u32 2147483647, %v12959_v8  ;;  %vm2801_vm8 = vweird.f32 %v18649_v6  ;;  %v2914_v45 = vsel %vm2912_vm1, %v2913_v28, %v9708_v52  ;;  %v2960_v46 = vsel %vm2950_vm10, %v2957_v53, %v2959_v38  ;;  %v4565_v38 = vpop.permute.xlu0 %4564 }
 0x35f   : > { %v2962_v21 = vsel %vm2952_vm9, %v2948_v9, 1326507024  ;;  %v14325_v33 = vshll.u32 %v2925_v11, 8  ;;  %v2911_v24 = vsel %vm2909_vm3, %v9706_v20, %v2910_v63  ;;  %v2953_v54 = vsel %vm2949_vm6, %v2933_v57, %v2936_v59  ;;  %v14342_v20 = vpop.permute.xlu1 %826  ;;  %v10290_v59 = vld [vmem:[%s18038_s1] ss:$0 sm:$0xff] }
 0x360   : > { %vm14315_vm4 = vcmp.le.f32.partialorder %v18674_v36, 0.7853982  ;;  %v2955_v23 = vsel %vm2951_vm5, %v2939_v61, %v2954_v18  ;;  %v2963_v34 = vsel %vm2951_vm5, %v2945_v26, %v2962_v21  ;;  %v2915_v51 = vsel %vm2908_vm7, %v2911_v24, %v2914_v45  ;;  %v9710_v53 = vpop.eup %9709  ;;  %v18678_v21 = vld [vmem:[#allocation9_spill] sm:$0xff]  ;;  %v18680_v24 = vld [vmem:[#allocation7_spill] sm:$0xff] }
 0x361   : > { %v2964_v44 = vsel %vm2950_vm10, %v2961_v22, %v2963_v34  ;;  %v14338_v9 = vmul.u32.u64.low %v14325_v33, %v2960_v46  ;;  %v14339_v11 = vmul.u32.u64.high %v14325_v33, %v2960_v46, %v14338_v9  ;;  %v2916_v57 = vsel %vm2905_vm14, nan, %v2915_v51  ;;  %v9712_v52 = vpop.eup %9711  ;;  %v18684_v34 = vld [vmem:[#allocation11_spill] sm:$0xff] }
 0x362   : > { %v512_v16 = vmul.f32 %v10290_v59, %v14261_v31  ;;  %v14351_v61 = vmul.u32.u64.low %v14325_v33, %v2964_v44  ;;  %v14352_v26 = vmul.u32.u64.high %v14325_v33, %v2964_v44, %v14351_v61  ;;  %v2809_v28 = vxor.u32 2147483648, %v9710_v53  ;;  %v14362_v31 = vld [vmem:[%s18038_s1 + $0x2] ss:$0 sm:$0xff]  ;;  %v18686_v44 = vld [vmem:[#allocation12_spill] sm:$0xff] }
 0x363   : > { %v3919_v18 = vsub.s32 0, %v14307_v17  ;;  %v8974_v58 = vpack.c.bf16 %v2916_v57, %v2916_v57  ;;  %v676_v63 = vmul.f32 %v13986_v40, %v639_v29  ;;  %vm3160_vm15 = vcmp.lt.s32.totalorder %v18677_v30, 4  ;;  %v18688_v59 = vld [vmem:[#allocation8_spill] sm:$0xff]  ;;  %v18690_v61 = vld [vmem:[#allocation10_spill] sm:$0xff] }
 0x364   : > { %v2806_v22 = vxor.u32 2147483648, %v9712_v52  ;;  %v2956_v36 = vsel %vm2950_vm10, %v2953_v54, %v2955_v23  ;;  %v872_v45 = vmul.f32 %v14362_v31, %v14277_v10  ;;  %vm4429_vm11 = vcmask 19456   ;;  %v18682_v10 = vld [vmem:[#allocation6_spill] sm:$0xff] }
 0x365   : > { %v2810_v46 = vsel %vm2808_vm13, %v2809_v28, %v9712_v52  ;;  %4594 = vrot.lane.b32.xlu1 %v8974_v58, %s10368_s21  ;;  %v2975_v40 = vadd.s32 1, %v14339_v11  ;;  %v708_v29 = vadd.f32 %v676_v63, %v512_v16  ;;  %v18679_v13 = vpack.c.bf16 %v18678_v21, %v18678_v21  ;;  %v18692_v28 = vld [vmem:[#allocation13_spill] sm:$0xff] }
 0x366   : > { %vm4654_vm14 = vcmask 314392   ;;  %v18681_v54 = vpack.c.bf16 %v18680_v24, %v18680_v24  ;;  %v18683_v23 = vpack.c.bf16 %v18682_v10, %v18682_v10  ;;  %v18685_v51 = vpack.c.bf16 %v18684_v34, %v18684_v34  ;;  %v18694_v63 = vld [vmem:[#allocation21_spill] sm:$0xff] }
 0x367   : > { %4431 = vst.msk [vmem:[#allocation2 + $0x4] sm:$0xf] %vm4429_vm11, %v18679_v13  ;;  %v18687_v57 = vpack.c.bf16 %v18686_v44, %v18686_v44  ;;  %v18689_v16 = vpack.c.bf16 %v18688_v59, %v18688_v59  ;;  %v18691_v52 = vpack.c.bf16 %v18690_v61, %v18690_v61  ;;  %v18693_v58 = vpack.c.bf16 %v18692_v28, %v18692_v28  ;;  %v18696_v13 = vld [vmem:[#allocation14_spill] sm:$0xff] }
 0x368   : > { %4430 = vst.msk [vmem:[#allocation2] sm:$0xf] %vm4429_vm11, %v18681_v54  ;;  %4432 = vst.msk [vmem:[#allocation2 + $0x8] sm:$0xf] %vm4429_vm11, %v18683_v23  ;;  %v18695_v21 = vpack.c.bf16 %v18694_v63, %v18694_v63  ;;  %v18697_v24 = vpack.c.bf16 %v18696_v13, %v18696_v13  ;;  %v18698_v54 = vld [vmem:[#allocation22_spill] sm:$0xff]  ;;  %v18700_v23 = vld [vmem:[#allocation23_spill] sm:$0xff]  ;;  %vm2974_vm3 = vc.u32 %v14352_v26, %v14338_v9  ;;  %v3623_v6 = vcvt.s32.f32 %v14109_v1 }
 0x369   : > { %4433 = vst.msk [vmem:[#allocation2 + $0xc] sm:$0xf] %vm4429_vm11, %v18685_v51  ;;  %4434 = vst.msk [vmem:[#allocation2 + $0x10] sm:$0xf] %vm4429_vm11, %v18687_v57  ;;  %v18699_v10 = vpack.c.bf16 %v18698_v54, %v18698_v54  ;;  %v18701_v34 = vpack.c.bf16 %v18700_v23, %v18700_v23  ;;  %v18702_v51 = vld [vmem:[#allocation15_spill] sm:$0xff]  ;;  %vm2804_vm7 = vcmp.lt.s32.totalorder %v14259_v7, 2  ;;  %v3317_v7 = vsel %vm14315_vm4, %v12959_v8, %v14097_v47 }
 0x36a   : > { %4435 = vst.msk [vmem:[#allocation2 + $0x14] sm:$0xf] %vm4429_vm11, %v18689_v16  ;;  %4436 = vst.msk [vmem:[#allocation2 + $0x18] sm:$0xf] %vm4429_vm11, %v18691_v52  ;;  %v18703_v44 = vpack.c.bf16 %v18702_v51, %v18702_v51  ;;  %v18704_v57 = vld [vmem:[#allocation27_spill] sm:$0xff]  ;;  %v18706_v16 = vld [vmem:[#allocation28_spill] sm:$0xff]  ;;  %v870_v47 = vmul.f32 %v14362_v31, %v14342_v20  ;;  %9713 = vcosq.f32 %v3317_v7 }
 0x36b   : > { %4437 = vst.msk [vmem:[#allocation2 + $0x1c] sm:$0xf] %vm4429_vm11, %v18693_v58  ;;  %4438 = vst.msk [vmem:[#allocation2 + $0x20] sm:$0xf] %vm4429_vm11, %v18695_v21  ;;  %v18705_v59 = vpack.c.bf16 %v18704_v57, %v18704_v57  ;;  %v18707_v61 = vpack.c.bf16 %v18706_v16, %v18706_v16  ;;  %v18708_v52 = vld [vmem:[#allocation16_spill] sm:$0xff]  ;;  %v18710_v58 = vld [vmem:[#allocation31_spill] sm:$0xff]  ;;  %9715 = vsinq.f32 %v3317_v7 }
 0x36c   : > { %4439 = vst.msk [vmem:[#allocation2 + $0x24] sm:$0xf] %vm4429_vm11, %v18697_v24  ;;  %4440 = vst.msk [vmem:[#allocation2 + $0x28] sm:$0xf] %vm4429_vm11, %v18699_v10  ;;  %v18709_v28 = vpack.c.bf16 %v18708_v52, %v18708_v52  ;;  %v18711_v63 = vpack.c.bf16 %v18710_v58, %v18710_v58  ;;  %v18712_v21 = vld [vmem:[#allocation17_spill] sm:$0xff]  ;;  %v18714_v24 = vld [vmem:[#allocation24_spill] sm:$0xff]  ;;  %v902_v20 = vadd.f32 %v870_v47, %v14047_v19 }
 0x36d   : > { %4441 = vst.msk [vmem:[#allocation2 + $0x2c] sm:$0xf] %vm4429_vm11, %v18701_v34  ;;  %4442 = vst.msk [vmem:[#allocation2 + $0x30] sm:$0xf] %vm4429_vm11, %v18703_v44  ;;  %v18713_v13 = vpack.c.bf16 %v18712_v21, %v18712_v21  ;;  %v18715_v54 = vpack.c.bf16 %v18714_v24, %v18714_v24  ;;  %v18716_v10 = vld [vmem:[#allocation35_spill] sm:$0xff]  ;;  %v18718_v34 = vld [vmem:[#allocation18_spill] sm:$0xff] }
 0x36e   : > { %4443 = vst.msk [vmem:[#allocation2 + $0x34] sm:$0xf] %vm4429_vm11, %v18705_v59  ;;  %4444 = vst.msk [vmem:[#allocation2 + $0x38] sm:$0xf] %vm4429_vm11, %v18707_v61  ;;  %v18717_v23 = vpack.c.bf16 %v18716_v10, %v18716_v10  ;;  %v18719_v51 = vpack.c.bf16 %v18718_v34, %v18718_v34  ;;  %v18720_v44 = vld [vmem:[#allocation29_spill] sm:$0xff]  ;;  %v18722_v59 = vld [vmem:[#allocation30_spill] sm:$0xff] }
 0x36f   : > { %4445 = vst.msk [vmem:[#allocation2 + $0x3c] sm:$0xf] %vm4429_vm11, %v18709_v28  ;;  %4446 = vst.msk [vmem:[#allocation2 + $0x40] sm:$0xf] %vm4429_vm11, %v18711_v63  ;;  %v18721_v57 = vpack.c.bf16 %v18720_v44, %v18720_v44  ;;  %v18723_v16 = vpack.c.bf16 %v18722_v59, %v18722_v59  ;;  %v18724_v61 = vld [vmem:[#allocation19_spill] sm:$0xff]  ;;  %v18726_v28 = vld [vmem:[#allocation52_spill] sm:$0xff] }
 0x370   : > { %4447 = vst.msk [vmem:[#allocation2 + $0x44] sm:$0xf] %vm4429_vm11, %v18713_v13  ;;  %4448 = vst.msk [vmem:[#allocation2 + $0x48] sm:$0xf] %vm4429_vm11, %v18715_v54  ;;  %v18725_v52 = vpack.c.bf16 %v18724_v61, %v18724_v61  ;;  %v18727_v58 = vpack.c.bf16 %v18726_v28, %v18726_v28  ;;  %v18728_v63 = vld [vmem:[#allocation20_spill] sm:$0xff]  ;;  %v18730_v13 = vld [vmem:[#allocation25_spill] sm:$0xff]  ;;  %v2807_v28 = vsel %vm2805_vm12, %v9710_v53, %v2806_v22 }
 0x371   : > { %4449 = vst.msk [vmem:[#allocation2 + $0x4c] sm:$0xf] %vm4429_vm11, %v18717_v23  ;;  %4450 = vst.msk [vmem:[#allocation2 + $0x50] sm:$0xf] %vm4429_vm11, %v18719_v51  ;;  %v18729_v21 = vpack.c.bf16 %v18728_v63, %v18728_v63  ;;  %v18731_v24 = vpack.c.bf16 %v18730_v13, %v18730_v13  ;;  %v18732_v54 = vld [vmem:[#allocation54_spill] sm:$0xff]  ;;  %v18736_v51 = vld [vmem:[#allocation32_spill] sm:$0xff]  ;;  %v2972_v63 = vmul.u32 %v14325_v33, %v2956_v36 }
 0x372   : > { %4451 = vst.msk [vmem:[#allocation2 + $0x54] sm:$0xf] %vm4429_vm11, %v18721_v57  ;;  %4452 = vst.msk [vmem:[#allocation2 + $0x58] sm:$0xf] %vm4429_vm11, %v18723_v16  ;;  %v18733_v10 = vpack.c.bf16 %v18732_v54, %v18732_v54  ;;  %v18734_v23 = vld [vmem:[#allocation26_spill] sm:$0xff]  ;;  %v18737_v44 = vpack.c.bf16 %v18736_v51, %v18736_v51  ;;  %v18738_v57 = vld [vmem:[#allocation33_spill] sm:$0xff]  ;;  %v904_v13 = vadd.f32 %v872_v45, %v708_v29 }
 0x373   : > { %4453 = vst.msk [vmem:[#allocation2 + $0x5c] sm:$0xf] %vm4429_vm11, %v18725_v52  ;;  %4454 = vst.msk [vmem:[#allocation2 + $0x60] sm:$0xf] %vm4429_vm11, %v18727_v58  ;;  %v18735_v34 = vpack.c.bf16 %v18734_v23, %v18734_v23  ;;  %v18739_v59 = vpack.c.bf16 %v18738_v57, %v18738_v57  ;;  %v18740_v16 = vld [vmem:[#allocation39_spill] sm:$0xff]  ;;  %v3817_v52 = vclz %v14254_v62  ;;  %v2811_v58 = vsel %vm2804_vm7, %v2807_v28, %v2810_v46  ;;  %v831_v62 = vpop.permute.xlu1 %830  ;;  %v18743_v23 = vld [vmem:[#allocation82_spill] sm:$0xff] }
 0x374   : > { %4455 = vst.msk [vmem:[#allocation2 + $0x64] sm:$0xf] %vm4429_vm11, %v18729_v21  ;;  %4456 = vst.msk [vmem:[#allocation2 + $0x68] sm:$0xf] %vm4429_vm11, %v18731_v24  ;;  %v18741_v61 = vpack.c.bf16 %v18740_v16, %v18740_v16  ;;  %v2976_v21 = vsel %vm2974_vm3, %v2975_v40, %v14339_v11  ;;  %v3621_v53 = vand.u32 2147483647, %v14227_v25  ;;  %v3727_v46 = vcvt.s32.f32 %v14242_v37 }
 0x375   : > { %4457 = vst.msk [vmem:[#allocation2 + $0x6c] sm:$0xf] %vm4429_vm11, %v18733_v10  ;;  %4458 = vst.msk [vmem:[#allocation2 + $0x70] sm:$0xf] %vm4429_vm11, %v18735_v34  ;;  %v2812_v22 = vsel %vm2801_vm8, nan, %v2811_v58  ;;  %v2977_v33 = vadd.s32 %v2976_v21, %v2972_v63  ;;  %v3521_v25 = vxor.u32 2147483648, %v14233_v42 }
 0x376   : > { %4459 = vst.msk [vmem:[#allocation2 + $0x74] sm:$0xf] %vm4429_vm11, %v18737_v44  ;;  %4460 = vst.msk [vmem:[#allocation2 + $0x78] sm:$0xf] %vm4429_vm11, %v18739_v59  ;;  %v14522_v11 = vld [vmem:[%s18038_s1 + $0x3] ss:$0 sm:$0xff]  ;;  %v14546_v37 = vmul.f32 %v3623_v6, %v3621_v53 }
 0x377   : > { %4461 = vst.msk [vmem:[#allocation2 + $0x7c] sm:$0xf] %vm4429_vm11, %v18741_v61  ;;  %v14525_v36 = vadd.f32 %v14522_v11, %v904_v13  ;;  %v3725_v45 = vand.u32 2147483647, %v14251_v15  ;;  %v8692_v40 = vadd.s32 4294967294, %v3817_v52  ;;  %v2978_v29 = vadd.s32 536870912, %v2977_v33 }
 0x378   : > { %4656 = vst.msk [vmem:[#allocation2 + $0x4] sm:$0xf] %vm4654_vm14, %v14305_v5  ;;  %4658 = vst.msk [vmem:[#allocation2 + $0xc] sm:$0xf] %vm4654_vm14, %v4565_v38  ;;  %v8695_v5 = vmin.u32 %v3919_v18, %v14307_v17  ;;  %v8973_v38 = vpack.c.bf16 %v2812_v22, %v2812_v22  ;;  %v871_v18 = vmul.f32 %v14362_v31, %v831_v62  ;;  %v14544_v15 = vsel %vm3160_vm15, %v18743_v23, 920167782 }
 0x379   : > { %18742 = vst [vmem:[#allocation34_spill] sm:$0xff] %v14525_v36  ;;  %v4168_v24 = vand.u32 2139095040, %v14525_v36  ;;  %v18295_v10 = vand.u32 2147483647, %v14525_v36  ;;  %v2979_v31 = vshrl.u32 %v2978_v29, 30  ;;  %v18744_v51 = vld [vmem:[#allocation69_spill] sm:$0xff]  ;;  %v3728_v44 = vmul.f32 %v3727_v46, %v3725_v45 }
 0x37a   : > { %4592 = vrot.lane.b32.xlu0 %v8973_v38, %s10368_s21  ;;  %v3921_v54 = vclz %v8695_v5  ;;  %v14539_v1 = vadd.f32 %v871_v18, %v14092_v32  ;;  %vm3439_vm6 = vcmp.lt.s32.totalorder %v18744_v51, 0  ;;  %v14550_v57 = vadd.f32 %v14522_v11, %v902_v20  ;;  %v18749_v62 = vld [vmem:[#allocation46_spill] sm:$0xff] }
 0x37b   : > { %v4169_v34 = vshrl.u32 %v4168_v24, 23  ;;  %v3522_v19 = vsel %vm3439_vm6, %v3521_v25, %v14233_v42  ;;  %v2980_v32 = vshll.u32 %v2979_v31, 30  ;;  %vm8693_vm13 = vcmp.lt.s32.totalorder %v8692_v40, 0 }
 0x37c   : > { %18745 = vst [vmem:[#allocation92_spill] sm:$0xff] %v14550_v57  ;;  %v8696_v16 = vadd.s32 4294967294, %v3921_v54  ;;  %v4172_v61 = vand.u32 8388607, %v18295_v10  ;;  %v3960_v52 = vand.u32 2139095040, %v14550_v57  ;;  %vm3647_vm10 = vcmp.lt.s32.totalorder %v18749_v62, 0 }
 0x37d   : > { %v8706_v59 = vadd.s32 4294967169, %v4169_v34  ;;  %v18746_v58 = vand.u32 2147483647, %v18744_v51  ;;  %v14565_v21 = vsub.s32 %v2977_v33, %v2980_v32  ;;  %v3729_v7 = vxor.u32 2147483648, %v3728_v44 }
 0x37e   : > { %v3961_v53 = vshrl.u32 %v3960_v52, 23  ;;  %v14573_v22 = vsel %vm8693_vm13, 0, %v8692_v40  ;;  %v3003_v38 = vsub.s32 4, %v2979_v31  ;;  %vm8697_vm12 = vcmp.lt.s32.totalorder %v8696_v16, 0  ;;  %v9582_v52 = vld [vmem:[%s18039_s2 + $0x10] sm:$0xff]  }
 0x37f   : > { %vm14561_vm1 = vcmp.le.f32.partialorder %v18746_v58, 0.7853982  ;;  %v4175_v42 = vadd.s32 1, %v8706_v59  ;;  %v2983_v5 = vsub.s32 0, %v14565_v21  ;;  %v4173_v47 = vor.u32 8388608, %v4172_v61  ;;  %v4559_v61 = vpop.permute.xlu1 %4558 }
 0x380   : > { %v14570_v13 = vsel %vm14561_vm1, %v18744_v51, %v3522_v19  ;;  %v8698_v6 = vadd.s32 4294967169, %v3961_v53  ;;  %v14579_v25 = vadd.s32 %v13953_v41, %v13963_v60  ;;  %v14584_v46 = vsel %vm3647_vm10, %v3729_v7, %v3728_v44  ;;  %4655 = vst.msk [vmem:[#allocation2] sm:$0xf] %vm4654_vm14, %v4559_v61 }
 0x381   : > { %vm4176_vm9 = vcmp.gt.s32.totalorder %v4175_v42, 0  ;;  %9717 = vcosq.f32 %v14570_v13  ;;  %v8659_v45 = vmin.u32 %v2983_v5, %v14565_v21  ;;  %vm2919_vm5 = vcmp.lt.s32.totalorder %v18668_v55, 0  ;;  %v14618_v5 = vpop.eup %9713 }
 0x382   : > { %v4177_v33 = vsel %vm4176_vm9, %v4175_v42, 0  ;;  %v2973_v29 = vadd.s32 %v14338_v9, %v14352_v26  ;;  %v14590_v24 = vsel %vm8697_vm12, 0, %v8696_v16  ;;  %v14594_v41 = vsel %vm2919_vm5, %v3003_v38, %v2979_v31  ;;  %v9581_v31 = vld [vmem:[%s18039_s2 + $0x18] sm:$0xff]   ;;  %v4569_v16 = vpop.permute.xlu0 %4568 }
 0x383   : > { %v4179_v18 = vand.u32 31, %v4177_v33  ;;  %v2985_v54 = vclz %v8659_v45  ;;  %v14597_v20 = vshrl.u32 %v4177_v33, 5  ;;  %v14599_v44 = vshll.u32 %v4173_v47, 8  ;;  %4660 = vst.msk [vmem:[#allocation2 + $0x14] sm:$0xf] %vm4654_vm14, %v4569_v16  ;;  %9137 = vmatprep.subr.bf16.mxu0 %v9581_v31  ;;  %v4563_v43 = vpop.permute.xlu1 %4562 }
 0x384   : > { %v14601_v19 = vadd.s32 1, %v8698_v6  ;;  %v14623_v6 = vpop.eup %9715  ;;  %9138 = vmatpush3.bf16.msra.mxu0 %v9581_v31  ;;  %4657 = vst.msk [vmem:[#allocation2 + $0x8] sm:$0xf] %vm4654_vm14, %v4563_v43  ;;  %v9584_v43 = vld [vmem:[%s18039_s2] sm:$0xff]  }
 0x385   : > { %v4180_v34 = vsub.s32 32, %v4179_v18  ;;  %v8660_v32 = vadd.s32 4294967294, %v2985_v54  ;;  %v4182_v59 = vshll.u32 %v18385_v2, %v4179_v18  ;;  %v4185_v9 = vshll.u32 %v18423_v12, %v4179_v18  ;;  %9139 = vmatprep.subr.bf16.mxu0 %v9582_v52 }
 0x386   : > { %v4188_v26 = vshll.u32 %v18456_v56, %v4179_v18  ;;  %v4191_v38 = vshll.u32 %v18425_v27, %v4179_v18  ;;  %v4194_v33 = vshll.u32 %v18426_v50, %v4179_v18  ;;  %v4573_v60 = vpop.permute.xlu0 %4572  ;;  %v9583_v18 = vld [vmem:[%s18039_s2 + $0x8] sm:$0xff]   ;;  %vm4197_vm11 = vcmp.lt.s32.totalorder %v14597_v20, 1 }
 0x387   : > { %v4181_v58 = vshrl.u32 %v18385_v2, %v4180_v34  ;;  %v4183_v42 = vshrl.u32 %v18423_v12, %v4180_v34  ;;  %v4186_v7 = vshrl.u32 %v18456_v56, %v4180_v34  ;;  %v4189_v53 = vshrl.u32 %v18425_v27, %v4180_v34  ;;  %4662 = vst.msk [vmem:[#allocation2 + $0x1c] sm:$0xf] %vm4654_vm14, %v4573_v60 }
 0x388   : > { %vm8661_vm8 = vcmp.lt.s32.totalorder %v8660_v32, 0  ;;  %v4192_v47 = vshrl.u32 %v18426_v50, %v4180_v34  ;;  %v4195_v36 = vshrl.u32 %v18427_v49, %v4180_v34  ;;  %vm4198_vm7 = vcmp.lt.s32.totalorder %v14597_v20, 2  ;;  %9140 = vmatpush3.bf16.msra.mxu0 %v9582_v52 }
 0x389   : > { %v2988_v45 = vsel %vm8661_vm8, 0, %v8660_v32  ;;  %v4184_v54 = vor.u32 %v4183_v42, %v4182_v59  ;;  %v4187_v10 = vor.u32 %v4186_v7, %v4185_v9  ;;  %v4190_v28 = vor.u32 %v4189_v53, %v4188_v26  ;;  %9141 = vmatprep.subr.bf16.mxu0 %v9583_v18  ;;  %v4567_v42 = vpop.permute.xlu1 %4566  ;;  %v9585_v7 = vld [vmem:[#allocation2] sm:$0xff]  }
 0x38a   : > { %v2989_v16 = vsub.s32 32, %v2988_v45  ;;  %v2990_v61 = vshll.u32 %v14565_v21, %v2988_v45  ;;  %v2993_v48 = vsub.s32 4294967266, %v2988_v45  ;;  %v4193_v40 = vor.u32 %v4192_v47, %v4191_v38  ;;  %4659 = vst.msk [vmem:[#allocation2 + $0x10] sm:$0xf] %vm4654_vm14, %v4567_v42  ;;  %9145 = vmatprep.mubr.bf16.mxu0 %v9585_v7 }
 0x38b   : > { %vm4199_vm3 = vcmp.lt.s32.totalorder %v14597_v20, 3  ;;  %vm4200_vm13 = vcmp.lt.s32.totalorder %v14597_v20, 4  ;;  %v4201_v59 = vsel %vm4197_vm11, %v4181_v58, %v4184_v54  ;;  %v4196_v9 = vor.u32 %v4195_v36, %v4194_v33  ;;  %v4577_v58 = vpop.permute.xlu0 %4576  ;;  %v9586_v42 = vld [vmem:[#allocation2 + $0x8] sm:$0xff]  }
 0x38c   : > { %v2991_v21 = vshrl.u32 %v2973_v29, %v2989_v16  ;;  %v2994_v32 = vadd.s32 127, %v2993_v48  ;;  %v4202_v34 = vsel %vm4200_vm13, %v4190_v28, 2102212464  ;;  %v4205_v26 = vsel %vm4197_vm11, %v4184_v54, %v4187_v10  ;;  %4664 = vst.msk [vmem:[#allocation2 + $0x24] sm:$0xf] %vm4654_vm14, %v4577_v58  ;;  %9142 = vmatpush3.bf16.msra.mxu0 %v9583_v18 }
 0x38d   : > { %v4206_v31 = vsel %vm4200_vm13, %v4193_v40, 920167782  ;;  %v4203_v60 = vsel %vm4199_vm3, %v4187_v10, %v4202_v34  ;;  %v4209_v38 = vsel %vm4197_vm11, %v4187_v10, %v4190_v28  ;;  %v4210_v47 = vsel %vm4200_vm13, %v4196_v9, 1326507024  ;;  %9143 = vmatprep.subr.bf16.mxu0 %v9584_v43 }
 0x38e   : > { %v2992_v48 = vor.u32 %v2991_v21, %v2990_v61  ;;  %v2995_v29 = vshll.u32 %v2994_v32, 23  ;;  %v4207_v36 = vsel %vm4199_vm3, %v4190_v28, %v4206_v31  ;;  %v14651_v53 = vpop.eup %9717  ;;  %v18750_v33 = vand.u32 2147483647, %v14550_v57 }
 0x38f   : > { %v4208_v52 = vsel %vm4198_vm7, %v4205_v26, %v4207_v36  ;;  %v4204_v61 = vsel %vm4198_vm7, %v4201_v59, %v4203_v60  ;;  %v4211_v21 = vsel %vm4199_vm3, %v4193_v40, %v4210_v47  ;;  %vm3968_vm9 = vcmp.gt.s32.totalorder %v14601_v19, 0  ;;  %v4571_v40 = vpop.permute.xlu1 %4570 }
 0x390   : > { %v14661_v45 = vand.u32 8388607, %v18750_v33  ;;  %v2996_v54 = vor.u32 4788187, %v2995_v29  ;;  %v2999_v16 = vcvt.s32.f32 %v2992_v48  ;;  %v4212_v10 = vsel %vm4198_vm7, %v4209_v38, %v4211_v21  ;;  %4661 = vst.msk [vmem:[#allocation2 + $0x18] sm:$0xf] %vm4654_vm14, %v4571_v40  ;;  %9144 = vmatpush3.bf16.msra.mxu0 %v9584_v43 }
 0x391   : > { %v14672_v28 = vmul.u32.u64.low %v14599_v44, %v4208_v52  ;;  %v14673_v32 = vmul.u32.u64.high %v14599_v44, %v4208_v52, %v14672_v28  ;;  %v14678_v34 = vmul.u32.u64.low %v14599_v44, %v4212_v10  ;;  %v14679_v26 = vmul.u32.u64.high %v14599_v44, %v4212_v10, %v14678_v34 }
 0x392   : > { %v2997_v9 = vand.u32 2147483647, %v2996_v54  ;;  %v3969_v59 = vsel %vm3968_vm9, %v14601_v19, 0  ;;  %v18751_v20 = vsub.s32 32, %v14573_v22  ;;  %v3825_v48 = vsub.s32 4294967266, %v14573_v22 }
 0x393   : > { %v18752_v29 = vand.u32 2147483647, %v18668_v55  ;;  %v3971_v60 = vand.u32 31, %v3969_v59  ;;  %v4220_v7 = vmul.u32 %v14599_v44, %v4204_v61  ;;  %v4223_v52 = vadd.s32 1, %v14673_v32  ;;  %9146 = vmatmul.mubr.bf16.vlgmr.msra.gmra.mxu0 %v9586_v42 }
 0x394   : > { %v14685_v31 = vshrl.u32 %v14579_v25, %v18751_v20  ;;  %v3000_v36 = vmul.f32 %v2999_v16, %v2997_v9  ;;  %v14701_v25 = vadd.f32 %v14522_v11, %v14539_v1  ;;  %v3965_v38 = vor.u32 8388608, %v14661_v45 }
 0x395   : > { %vm14690_vm12 = vcmp.le.f32.partialorder %v18752_v29, 0.7853982  ;;  %v3972_v47 = vsub.s32 32, %v3971_v60  ;;  %vm4222_vm8 = vc.u32 %v14679_v26, %v14672_v28  ;;  %v3970_v54 = vshrl.u32 %v3969_v59, 5 }
 0x396   : > { %v3006_v58 = vsel %vm14690_vm12, 0, %v14594_v41  ;;  %v3001_v33 = vxor.u32 2147483648, %v3000_v36  ;;  %v3974_v41 = vshll.u32 %v18385_v2, %v3971_v60  ;;  %v4224_v16 = vsel %vm4222_vm8, %v4223_v52, %v14673_v32 }
 0x397   : > { %v3975_v11 = vshrl.u32 %v18423_v12, %v3972_v47  ;;  %v3977_v1 = vshll.u32 %v18423_v12, %v3971_v60  ;;  %v3978_v44 = vshrl.u32 %v18456_v56, %v3972_v47  ;;  %v3980_v43 = vshll.u32 %v18456_v56, %v3971_v60 }
 0x398   : > { %v3002_v45 = vsel %vm2919_vm5, %v3001_v33, %v3000_v36  ;;  %v3981_v61 = vshrl.u32 %v18425_v27, %v3972_v47  ;;  %v3983_v21 = vshll.u32 %v18425_v27, %v3971_v60  ;;  %v3984_v34 = vshrl.u32 %v18426_v50, %v3972_v47 }
 0x399   : > { %v3005_v10 = vsel %vm14690_vm12, %v18668_v55, %v3002_v45  ;;  %v3976_v32 = vor.u32 %v3975_v11, %v3974_v41  ;;  %v3979_v9 = vor.u32 %v3978_v44, %v3977_v1  ;;  %v18755_v59 = vand.u32 2147483647, %v18749_v62 }
 0x39a   : > { %9719 = vcosq.f32 %v3005_v10  ;;  %v14728_v20 = vadd.s32 %v4224_v16, %v4220_v7  ;;  %v3982_v29 = vor.u32 %v3981_v61, %v3980_v43  ;;  %v4064_v36 = vand.u32 2139095040, %v14701_v25 }
 0x39b   : > { %vm14724_vm11 = vcmp.le.f32.partialorder %v18755_v59, 0.7853982  ;;  %9721 = vsinq.f32 %v3005_v10  ;;  %v3985_v42 = vor.u32 %v3984_v34, %v3983_v21  ;;  %v3986_v18 = vshll.u32 %v18426_v50, %v3971_v60 }
 0x39c   : > { %v3987_v52 = vshrl.u32 %v18427_v49, %v3972_v47  ;;  %v3010_v33 = vadd.s32 3, %v3006_v58  ;;  %vm3989_vm5 = vcmp.lt.s32.totalorder %v3970_v54, 1  ;;  %vm3992_vm7 = vcmp.lt.s32.totalorder %v3970_v54, 4 }
 0x39d   : > { %v4005_v41 = vshll.u32 %v3965_v38, 8  ;;  %v3973_v11 = vshrl.u32 %v18385_v2, %v3972_v47  ;;  %v3994_v44 = vsel %vm3992_vm7, %v3982_v29, 2102212464  ;;  %v3997_v45 = vsel %vm3989_vm5, %v3976_v32, %v3979_v9 }
 0x39e   : > { %v3988_v1 = vor.u32 %v3987_v52, %v3986_v18  ;;  %v4226_v7 = vadd.s32 536870912, %v14728_v20  ;;  %vm3991_vm3 = vcmp.lt.s32.totalorder %v3970_v54, 3  ;;  %v3998_v16 = vsel %vm3992_vm7, %v3985_v42, 920167782 }
 0x39f   : > { %v4001_v43 = vsel %vm3989_vm5, %v3979_v9, %v3982_v29  ;;  %vm3990_vm13 = vcmp.lt.s32.totalorder %v3970_v54, 2  ;;  %v3999_v61 = vsel %vm3991_vm3, %v3982_v29, %v3998_v16  ;;  %v4065_v60 = vshrl.u32 %v4064_v36, 23 }
 0x3a0   : > { %v4002_v21 = vsel %vm3992_vm7, %v3988_v1, 1326507024  ;;  %v3993_v10 = vsel %vm3989_vm5, %v3973_v11, %v3976_v32  ;;  %v3995_v34 = vsel %vm3991_vm3, %v3979_v9, %v3994_v44  ;;  %v4000_v58 = vsel %vm3990_vm13, %v3997_v45, %v3999_v61 }
 0x3a1   : > { %v4003_v59 = vsel %vm3991_vm3, %v3985_v42, %v4002_v21  ;;  %v14737_v47 = vmul.u32.u64.low %v4005_v41, %v4000_v58  ;;  %v14738_v18 = vmul.u32.u64.high %v4005_v41, %v4000_v58, %v14737_v47  ;;  %v8702_v52 = vadd.s32 4294967169, %v4065_v60 }
 0x3a2   : > { %v4004_v38 = vsel %vm3990_vm13, %v4001_v43, %v4003_v59  ;;  %v3822_v19 = vshll.u32 %v14154_v35, %v14573_v22  ;;  %v3826_v29 = vadd.s32 127, %v3825_v48  ;;  %v14752_v32 = vsel %vm14724_vm11, %v18749_v62, %v14584_v46 }
 0x3a3   : > { %v14745_v1 = vmul.u32.u64.low %v4005_v41, %v4004_v38  ;;  %v14746_v36 = vmul.u32.u64.high %v4005_v41, %v4004_v38, %v14745_v1  ;;  %v3925_v9 = vsub.s32 32, %v14590_v24  ;;  %v3996_v42 = vsel %vm3990_vm13, %v3993_v10, %v3995_v34 }
 0x3a4   : > { %v4071_v11 = vadd.s32 1, %v8702_v52  ;;  %v14757_v44 = vor.u32 %v14685_v31, %v3822_v19  ;;  %v3909_v35 = vadd.s32 %v14200_v0, %v14206_v14  ;;  %v18758_v22 = vsub.s32 4294967266, %v14590_v24 }
 0x3a5   : > { %v3011_v45 = vand.u32 3, %v3010_v33  ;;  %v14763_v16 = vshrl.u32 %v4226_v7, 30  ;;  %v4015_v46 = vadd.s32 1, %v14738_v18  ;;  %v18301_v43 = vand.u32 2147483647, %v14701_v25 }
 0x3a6   : > { %v3930_v48 = vadd.s32 127, %v18758_v22  ;;  %vm4072_vm9 = vcmp.gt.s32.totalorder %v4071_v11, 0  ;;  %v3827_v54 = vshll.u32 %v3826_v29, 23  ;;  %v4012_v61 = vmul.u32 %v4005_v41, %v3996_v42 }
 0x3a7   : > { %18759 = vst [vmem:[#allocation93_spill] sm:$0xff] %v14763_v16  ;;  %vm4014_vm12 = vc.u32 %v14746_v36, %v14737_v47  ;;  %v4073_v31 = vsel %vm4072_vm9, %v4071_v11, 0  ;;  %v9720_v19 = vpop.eup %9719  ;;  %v3926_v0 = vshll.u32 %v14307_v17, %v14590_v24  ;;  %v3927_v14 = vshrl.u32 %v3909_v35, %v3925_v9  ;;  %v18762_v17 = vld [vmem:[#allocation53_spill] sm:$0xff] }
 0x3a8   : > { %v4016_v33 = vsel %vm4014_vm12, %v4015_v46, %v14738_v18  ;;  %v4075_v7 = vand.u32 31, %v4073_v31  ;;  %v9722_v21 = vpop.eup %9721  ;;  %v3931_v60 = vshll.u32 %v3930_v48, 23  ;;  %vm3016_vm8 = vcmp.eq.s32.totalorder %v3011_v45, 2 }
 0x3a9   : > { %v3017_v10 = vxor.u32 2147483648, %v9720_v19  ;;  %v14772_v34 = vadd.s32 %v4016_v33, %v4012_v61  ;;  %v3014_v58 = vxor.u32 2147483648, %v9722_v21  ;;  %v4228_v41 = vshll.u32 %v14763_v16, 30 }
 0x3aa   : > { %v4068_v59 = vand.u32 8388607, %v18301_v43  ;;  %v4076_v38 = vsub.s32 32, %v4075_v7  ;;  %v14777_v52 = vor.u32 4788187, %v3827_v54  ;;  %vm3013_vm5 = vcmp.eq.s32.totalorder %v3011_v45, 0 }
 0x3ab   : > { %v3018_v24 = vsel %vm3016_vm8, %v3017_v10, %v9722_v21  ;;  %v14780_v18 = vor.u32 %v3927_v14, %v3926_v0  ;;  %vm3009_vm7 = vweird.f32 %v18668_v55  ;;  %vm3012_vm3 = vcmp.lt.s32.totalorder %v3011_v45, 2 }
 0x3ac   : > { %v3015_v29 = vsel %vm3013_vm5, %v9720_v19, %v3014_v58  ;;  %v14783_v1 = vor.u32 4788187, %v3931_v60  ;;  %v4018_v42 = vadd.s32 536870912, %v14772_v34  ;;  %v4079_v11 = vshrl.u32 %v18423_v12, %v4076_v38 }
 0x3ad   : > { %v3019_v9 = vsel %vm3012_vm3, %v3015_v29, %v3018_v24  ;;  %v14788_v22 = vsub.s32 %v14728_v20, %v4228_v41  ;;  %v4069_v48 = vor.u32 8388608, %v4068_v59  ;;  %v4082_v46 = vshrl.u32 %v18456_v56, %v4076_v38 }
 0x3ae   : > { %v3020_v35 = vsel %vm3009_vm7, nan, %v3019_v9  ;;  %v4078_v61 = vshll.u32 %v18385_v2, %v4075_v7  ;;  %v4081_v55 = vshll.u32 %v18423_v12, %v4075_v7  ;;  %v4085_v45 = vshrl.u32 %v18425_v27, %v4076_v38 }
 0x3af   : > { %v8975_v54 = vpack.c.bf16 %v3020_v35, %v3020_v35  ;;  %v4074_v19 = vshrl.u32 %v4073_v31, 5  ;;  %v4084_v0 = vshll.u32 %v18456_v56, %v4075_v7  ;;  %v4087_v14 = vshll.u32 %v18425_v27, %v4075_v7  ;;  %v18761_v35 = vld [vmem:[#allocation71_spill] sm:$0xff] }
 0x3b0   : > { %v4088_v33 = vshrl.u32 %v18426_v50, %v4076_v38  ;;  %v14799_v21 = vshrl.u32 %v4018_v42, 30  ;;  %v4080_v60 = vor.u32 %v4079_v11, %v4078_v61  ;;  %v4083_v10 = vor.u32 %v4082_v46, %v4081_v55  ;;  %v9587_v46 = vld [vmem:[#allocation2 + $0x10] sm:$0xff]   ;;  %v4581_v61 = vpop.permute.xlu0 %4580 }
 0x3b1   : > { %4596 = vrot.lane.b32.xlu0 %v8975_v54, %s10368_s21  ;;  %v4086_v58 = vor.u32 %v4085_v45, %v4084_v0  ;;  %v4090_v59 = vshll.u32 %v18426_v50, %v4075_v7  ;;  %v4091_v31 = vshrl.u32 %v18427_v49, %v4076_v38  ;;  %v3933_v24 = vand.u32 2147483647, %v14783_v1  ;;  %v4575_v54 = vpop.permute.xlu1 %4574  ;;  %v9588_v7 = vld [vmem:[#allocation2 + $0x18] sm:$0xff]   ;;  %4666 = vst.msk [vmem:[#allocation2 + $0x2c] sm:$0xf] %vm4654_vm14, %v4581_v61 }
 0x3b2   : > { %18760 = vst [vmem:[#allocation43_spill] sm:$0xff] %v14799_v21  ;;  %v4089_v41 = vor.u32 %v4088_v33, %v4087_v14  ;;  %v3935_v29 = vcvt.s32.f32 %v14780_v18  ;;  %v4231_v9 = vsub.s32 0, %v14788_v22  ;;  %vm18318_vm13 = vcmp.lt.s32.totalorder %v18762_v17, 0  ;;  %4663 = vst.msk [vmem:[#allocation2 + $0x20] sm:$0xf] %vm4654_vm14, %v4575_v54  ;;  %9149 = vmatprep.mubr.bf16.mxu0 %v9587_v46 }
 0x3b3   : > { %v4092_v42 = vor.u32 %v4091_v31, %v4090_v59  ;;  %vm4093_vm9 = vcmp.lt.s32.totalorder %v4074_v19, 1  ;;  %vm4096_vm12 = vcmp.lt.s32.totalorder %v4074_v19, 4  ;;  %v14808_v11 = vshll.u32 %v4069_v48, 8  ;;  %v18763_v31 = vld [vmem:[#allocation59_spill] sm:$0xff]  ;;  %9150 = vmatmul.mubr.bf16.gmra.mxu0 %v9588_v7 }
 0x3b4   : > { %v4020_v55 = vshll.u32 %v14799_v21, 30  ;;  %vm4095_vm8 = vcmp.lt.s32.totalorder %v4074_v19, 3  ;;  %v4101_v18 = vsel %vm4093_vm9, %v4080_v60, %v4083_v10  ;;  %v4102_v1 = vsel %vm4096_vm12, %v4089_v41, 920167782  ;;  %v4585_v16 = vpop.permute.xlu0 %4584  ;;  %v18766_v21 = vld [vmem:[#allocation68_spill] sm:$0xff] }
 0x3b5   : > { %vm4094_vm5 = vcmp.lt.s32.totalorder %v4074_v19, 2  ;;  %v4098_v45 = vsel %vm4096_vm12, %v4086_v58, 2102212464  ;;  %v4103_v48 = vsel %vm4095_vm8, %v4086_v58, %v4102_v1  ;;  %v4105_v0 = vsel %vm4093_vm9, %v4083_v10, %v4086_v58  ;;  %v4579_v46 = vpop.permute.xlu1 %4578  ;;  %v18764_v1 = vld [vmem:[#allocation73_spill] sm:$0xff]  ;;  %4668 = vst.msk [vmem:[#allocation2 + $0x34] sm:$0xf] %vm4654_vm14, %v4585_v16 }
 0x3b6   : > { %v4077_v14 = vshrl.u32 %v18385_v2, %v4076_v38  ;;  %v4104_v33 = vsel %vm4094_vm5, %v4101_v18, %v4103_v48  ;;  %v4106_v59 = vsel %vm4096_vm12, %v4092_v42, 1326507024  ;;  %v3039_v20 = vshrl.u32 %v18423_v12, %v18763_v31  ;;  %4665 = vst.msk [vmem:[#allocation2 + $0x28] sm:$0xf] %vm4654_vm14, %v4579_v46 }
 0x3b7   : > { %v4107_v54 = vsel %vm4095_vm8, %v4089_v41, %v4106_v59  ;;  %v14825_v61 = vmul.u32.u64.low %v14808_v11, %v4104_v33  ;;  %v14826_v43 = vmul.u32.u64.high %v14808_v11, %v4104_v33, %v14825_v61  ;;  %v3042_v58 = vshrl.u32 %v18456_v56, %v18763_v31 }
 0x3b8   : > { %v4097_v38 = vsel %vm4093_vm9, %v4077_v14, %v4080_v60  ;;  %v4099_v18 = vsel %vm4095_vm8, %v4083_v10, %v4098_v45  ;;  %v4108_v42 = vsel %vm4094_vm5, %v4105_v0, %v4107_v54  ;;  %v3038_v7 = vshll.u32 %v18385_v2, %v18764_v1 }
 0x3b9   : > { %v14838_v41 = vsub.s32 %v14772_v34, %v4020_v55  ;;  %v14841_v48 = vmul.u32.u64.low %v14808_v11, %v4108_v42  ;;  %v14842_v33 = vmul.u32.u64.high %v14808_v11, %v4108_v42, %v14841_v48  ;;  %v3041_v59 = vshll.u32 %v18423_v12, %v18764_v1  ;;  %v9589_v42 = vld [vmem:[#allocation2 + $0x20] sm:$0xff]  }
 0x3ba   : > { %v8707_v60 = vmin.u32 %v4231_v9, %v14788_v22  ;;  %v18765_v10 = vand.u32 2147483647, %v18761_v35  ;;  %v3044_v0 = vshll.u32 %v18456_v56, %v18764_v1  ;;  %v3045_v14 = vshrl.u32 %v18425_v27, %v18763_v31  ;;  %v4583_v48 = vpop.permute.xlu1 %4582  ;;  %v18767_v9 = vld [vmem:[#allocation49_spill] sm:$0xff]  ;;  %9153 = vmatprep.mubr.bf16.mxu0 %v9589_v42 }
 0x3bb   : > { %v4100_v34 = vsel %vm4094_vm5, %v4097_v38, %v4099_v18  ;;  %v4119_v55 = vadd.s32 1, %v14826_v43  ;;  %v3040_v54 = vor.u32 %v3039_v20, %v3038_v7  ;;  %v3043_v46 = vor.u32 %v3042_v58, %v3041_v59  ;;  %4667 = vst.msk [vmem:[#allocation2 + $0x30] sm:$0xf] %vm4654_vm14, %v4583_v48  ;;  %v18773_v7 = vld [vmem:[#allocation57_spill] sm:$0xff] }
 0x3bc   : > { %v3028_v45 = vand.u32 8388607, %v18765_v10  ;;  %v18768_v3 = vor.u32 %v18766_v21, %v18767_v9  ;;  %v18769_v1 = vxor.u32 2147483648, %v14546_v37  ;;  %9723 = vsinq.f32 %v14570_v13  ;;  %v18776_v42 = vld [vmem:[#allocation45_spill] sm:$0xff] }
 0x3bd   : > { %v3046_v20 = vor.u32 %v3045_v14, %v3044_v0  ;;  %9725 = vcosq.f32 %v14752_v32  ;;  %v18771_v21 = vand.u32 2147483647, %v14777_v52  ;;  %v3936_v38 = vmul.f32 %v3935_v29, %v3933_v24  ;;  %v9590_v24 = vld [vmem:[#allocation2 + $0x28] sm:$0xff]   ;;  %v4589_v29 = vpop.permute.xlu0 %4588 }
 0x3be   : > { %v14860_v10 = vsel %vm3160_vm15, %v18768_v3, 1326507024  ;;  %v14867_v19 = vsel %vm18318_vm13, %v18769_v1, %v14546_v37  ;;  %v18772_v3 = vcvt.s32.f32 %v14757_v44  ;;  %v4023_v18 = vsub.s32 0, %v14838_v41  ;;  %v4587_v59 = vpop.permute.xlu1 %4586  ;;  %4670 = vst.msk [vmem:[#allocation2 + $0x3c] sm:$0xf] %vm4654_vm14, %v4589_v29  ;;  %9154 = vmatmul.mubr.bf16.gmra.mxu0 %v9590_v24 }
 0x3bf   : > { %18770 = vst [vmem:[#allocation77_spill] sm:$0xff] %v14867_v19  ;;  %v4116_v37 = vmul.u32 %v14808_v11, %v4100_v34  ;;  %vm4118_vm7 = vc.u32 %v14842_v33, %v14825_v61  ;;  %v3029_v13 = vor.u32 8388608, %v3028_v45  ;;  %vm3053_vm3 = vcmp.lt.s32.totalorder %v18773_v7, 1  ;;  %v18774_v45 = vld [vmem:[#allocation60_spill] sm:$0xff]  ;;  %4669 = vst.msk [vmem:[#allocation2 + $0x38] sm:$0xf] %vm4654_vm14, %v4587_v59 }
 0x3c0   : > { %v14877_v58 = vmul.f32 %v18772_v3, %v18771_v21  ;;  %vm3855_vm9 = vcmp.lt.s32.totalorder %v14077_v39, 0  ;;  %v4233_v16 = vclz %v8707_v60  ;;  %v4120_v52 = vsel %vm4118_vm7, %v4119_v55, %v14826_v43  ;;  %v18775_v55 = vld [vmem:[#allocation36_spill] sm:$0xff] }
 0x3c1   : > { %vm3055_vm12 = vcmp.lt.s32.totalorder %v18773_v7, 3  ;;  %v3061_v44 = vsel %vm3053_vm3, %v3040_v54, %v3043_v46  ;;  %v4121_v11 = vadd.s32 %v4120_v52, %v4116_v37  ;;  %v3058_v0 = vsel %vm3056_vm0, %v3046_v20, 2102212464  ;;  %v18777_v37 = vld [vmem:[#allocation67_spill] sm:$0xff] }
 0x3c2   : > { %v3063_v14 = vsel %vm3055_vm12, %v3046_v20, %v18774_v45  ;;  %v3065_v60 = vsel %vm3053_vm3, %v3043_v46, %v3046_v20  ;;  %v8699_v43 = vmin.u32 %v4023_v18, %v14838_v41  ;;  %v3037_v34 = vshrl.u32 %v18385_v2, %v18763_v31  ;;  %v9591_v29 = vld [vmem:[#allocation2 + $0x30] sm:$0xff]  }
 0x3c3   : > { %vm3054_vm8 = vcmp.lt.s32.totalorder %v18773_v7, 2  ;;  %v3067_v48 = vsel %vm3055_vm12, %v18776_v42, %v18775_v55  ;;  %v4122_v9 = vadd.s32 536870912, %v4121_v11  ;;  %v3069_v21 = vshll.u32 %v3029_v13, 8  ;;  %9157 = vmatprep.mubr.bf16.mxu0 %v9591_v29  ;;  %v18783_v42 = vld [vmem:[#allocation80_spill] sm:$0xff] }
 0x3c4   : > { %v3064_v1 = vsel %vm3054_vm8, %v3061_v44, %v3063_v14  ;;  %v3068_v20 = vsel %vm3054_vm8, %v3065_v60, %v3067_v48  ;;  %v3937_v3 = vxor.u32 2147483648, %v3936_v38  ;;  %v3057_v31 = vsel %vm3053_vm3, %v3037_v34, %v3040_v54 }
 0x3c5   : > { %v3059_v18 = vsel %vm3055_vm12, %v3043_v46, %v3058_v0  ;;  %v18308_v52 = vand.u32 2147483647, %v18777_v37  ;;  %v8708_v59 = vadd.s32 4294967294, %v4233_v16  ;;  %v14915_v24 = vshrl.u32 %v4122_v9, 30  ;;  %v18784_v9 = vld [vmem:[#allocation88_spill] sm:$0xff] }
 0x3c6   : > { %v14917_v45 = vmul.u32.u64.low %v3069_v21, %v3068_v20  ;;  %v14918_v55 = vmul.u32.u64.high %v3069_v21, %v3068_v20, %v14917_v45  ;;  %v18779_v44 = vand.u32 2147483647, %v14077_v39  ;;  %v18780_v13 = vmov 0  ;;  %v9592_v29 = vld [vmem:[#allocation2 + $0x38] sm:$0xff]  }
 0x3c7   : > { %18778 = vst [vmem:[#allocation86_spill] sm:$0xff] %v14915_v24  ;;  %v4025_v14 = vclz %v8699_v43  ;;  %v14926_v54 = vmul.u32.u64.low %v3069_v21, %v3064_v1  ;;  %v14927_v60 = vmul.u32.u64.high %v3069_v21, %v3064_v1, %v14926_v54  ;;  %v3833_v46 = vxor.u32 2147483648, %v14877_v58  ;;  %9158 = vmatmul.mubr.bf16.gmra.mxu0 %v9592_v29 }
 0x3c8   : > { %vm14922_vm0 = vcmp.le.f32.partialorder %v18779_v44, 0.7853982  ;;  %v4124_v16 = vshll.u32 %v14915_v24, 30  ;;  %v3060_v0 = vsel %vm3054_vm8, %v3057_v31, %v3059_v18  ;;  %v3132_v34 = vand.u32 8388607, %v18308_v52 }
 0x3c9   : > { %v18781_v13 = vsel %vm14922_vm0, 4294967295, %v18780_v13  ;;  %v3142_v48 = vshll.u32 %v18385_v2, %v18783_v42  ;;  %v3143_v43 = vshrl.u32 %v18423_v12, %v18784_v9  ;;  %v3145_v1 = vshll.u32 %v18423_v12, %v18783_v42  ;;  %v14950_v18 = vpop.eup %9723 }
 0x3ca   : > { %18782 = vst [vmem:[#allocation47_spill] sm:$0xff] %v18781_v13  ;;  %v3146_v20 = vshrl.u32 %v18456_v56, %v18784_v9  ;;  %v3938_v7 = vsel %vm3855_vm9, %v3937_v3, %v3936_v38  ;;  %vm8709_vm5 = vcmp.lt.s32.totalorder %v8708_v59, 0  ;;  %v14946_v31 = vsub.s32 %v4121_v11, %v4124_v16  ;;  %v14953_v57 = vpop.eup %9725 }
 0x3cb   : > { %vm3078_vm7 = vc.u32 %v14918_v55, %v14926_v54  ;;  %v8700_v45 = vadd.s32 4294967294, %v4025_v14  ;;  %v3079_v44 = vadd.s32 1, %v14927_v60  ;;  %v3144_v52 = vor.u32 %v3143_v43, %v3142_v48 }
 0x3cc   : > { %v3147_v24 = vor.u32 %v3146_v20, %v3145_v1  ;;  %v4127_v19 = vsub.s32 0, %v14946_v31  ;;  %v3076_v17 = vmul.u32 %v3069_v21, %v3060_v0  ;;  %v3148_v38 = vshll.u32 %v18456_v56, %v18783_v42 }
 0x3cd   : > { %v3149_v11 = vshrl.u32 %v18425_v27, %v18784_v9  ;;  %v3941_v3 = vsel %vm14922_vm0, %v14077_v39, %v3938_v7  ;;  %v14963_v14 = vsel %vm8709_vm5, 0, %v8708_v59  ;;  %v3080_v16 = vsel %vm3078_vm7, %v3079_v44, %v14927_v60 }
 0x3ce   : > { %v3133_v48 = vor.u32 8388608, %v3132_v34  ;;  %v8703_v43 = vmin.u32 %v4127_v19, %v14946_v31  ;;  %v3081_v1 = vadd.s32 %v3080_v16, %v3076_v17  ;;  %vm3157_vm3 = vcmp.lt.s32.totalorder %v18677_v30, 1 }
 0x3cf   : > { %v3150_v20 = vor.u32 %v3149_v11, %v3148_v38  ;;  %vm8701_vm12 = vcmp.lt.s32.totalorder %v8700_v45, 0  ;;  %v3141_v21 = vshrl.u32 %v18385_v2, %v18784_v9  ;;  %vm3159_vm8 = vcmp.lt.s32.totalorder %v18677_v30, 3 }
 0x3d0   : > { %v3165_v0 = vsel %vm3157_vm3, %v3144_v52, %v3147_v24  ;;  %v4129_v42 = vclz %v8703_v43  ;;  %v3082_v29 = vadd.s32 536870912, %v3081_v1  ;;  %v3171_v60 = vsel %vm3159_vm8, %v18743_v23, %v14860_v10  ;;  %v18785_v23 = vld [vmem:[#allocation90_spill] sm:$0xff] }
 0x3d1   : > { %v3162_v59 = vsel %vm3160_vm15, %v3150_v20, 2102212464  ;;  %vm3158_vm5 = vcmp.lt.s32.totalorder %v18677_v30, 2  ;;  %v3167_v17 = vsel %vm3159_vm8, %v3150_v20, %v14544_v15  ;;  %v3169_v19 = vsel %vm3157_vm3, %v3147_v24, %v3150_v20 }
 0x3d2   : > { %v3173_v34 = vshll.u32 %v3133_v48, 8  ;;  %v3083_v7 = vshrl.u32 %v3082_v29, 30  ;;  %v3161_v44 = vsel %vm3157_vm3, %v3141_v21, %v3144_v52  ;;  %v3163_v9 = vsel %vm3159_vm8, %v3147_v24, %v3162_v59  ;;  %v4591_v52 = vpop.permute.xlu1 %4590 }
 0x3d3   : > { %v3168_v38 = vsel %vm3158_vm5, %v3165_v0, %v3167_v17  ;;  %v8704_v11 = vadd.s32 4294967294, %v4129_v42  ;;  %v3172_v16 = vsel %vm3158_vm5, %v3169_v19, %v3171_v60  ;;  %9727 = vsinq.f32 %v14752_v32  ;;  %4671 = vst.msk [vmem:[#allocation2 + $0x40] sm:$0xf] %vm4654_vm14, %v4591_v52 }
 0x3d4   : > { %v14981_v43 = vmul.u32.u64.low %v3173_v34, %v3168_v38  ;;  %v14982_v13 = vmul.u32.u64.high %v3173_v34, %v3168_v38, %v14981_v43  ;;  %vm18317_vm15 = vcmp.lt.s32.totalorder %v18785_v23, 0  ;;  %v4028_v15 = vsel %vm8701_vm12, 0, %v8700_v45 }
 0x3d5   : > { %v3084_v10 = vshll.u32 %v3083_v7, 30  ;;  %v14991_v24 = vsel %vm18317_vm15, %v3833_v46, %v14877_v58  ;;  %v4237_v48 = vsub.s32 32, %v14963_v14  ;;  %9729 = vcosq.f32 %v3941_v3 }
 0x3d6   : > { %v14994_v20 = vmul.u32.u64.low %v3173_v34, %v3172_v16  ;;  %v14995_v21 = vmul.u32.u64.high %v3173_v34, %v3172_v16, %v14994_v20  ;;  %v4241_v32 = vsub.s32 4294967266, %v14963_v14  ;;  %v3164_v45 = vsel %vm3158_vm5, %v3161_v44, %v3163_v9 }
 0x3d7   : > { %v14999_v0 = vsub.s32 %v3081_v1, %v3084_v10  ;;  %v4221_v42 = vadd.s32 %v14672_v28, %v14679_v26  ;;  %v4029_v58 = vsub.s32 32, %v4028_v15  ;;  %vm8705_vm7 = vcmp.lt.s32.totalorder %v8704_v11, 0 }
 0x3d8   : > { %v3183_v46 = vadd.s32 1, %v14982_v13  ;;  %9731 = vsinq.f32 %v3941_v3  ;;  %v4033_v29 = vsub.s32 4294967266, %v4028_v15  ;;  %v3107_v60 = vsub.s32 4, %v3083_v7 }
 0x3d9   : > { %v3087_v59 = vsub.s32 0, %v14999_v0  ;;  %v4239_v17 = vshrl.u32 %v4221_v42, %v4237_v48  ;;  %v4013_v1 = vadd.s32 %v14737_v47, %v14746_v36  ;;  %v3180_v19 = vmul.u32 %v3173_v34, %v3164_v45 }
 0x3da   : > { %vm3182_vm3 = vc.u32 %v14995_v21, %v14981_v43  ;;  %v15011_v30 = vadd.s32 127, %v4241_v32  ;;  %v15013_v28 = vsel %vm8705_vm7, 0, %v8704_v11  ;;  %v18786_v9 = vand.u32 2147483647, %v18761_v35 }
 0x3db   : > { %v8663_v26 = vmin.u32 %v3087_v59, %v14999_v0  ;;  %v3184_v3 = vsel %vm3182_vm3, %v3183_v46, %v14982_v13  ;;  %v4031_v44 = vshrl.u32 %v4013_v1, %v4029_v58  ;;  %vm3023_vm8 = vcmp.lt.s32.totalorder %v18761_v35, 0 }
 0x3dc   : > { %vm15019_vm12 = vcmp.le.f32.partialorder %v18786_v9, 0.7853982  ;;  %v3185_v47 = vadd.s32 %v3184_v3, %v3180_v19  ;;  %v4238_v36 = vshll.u32 %v14788_v22, %v14963_v14  ;;  %v15026_v34 = vadd.s32 127, %v4033_v29  ;;  %v18790_v9 = vld [vmem:[#allocation40_spill] sm:$0xff] }
 0x3dd   : > { %v3089_v11 = vclz %v8663_v26  ;;  %v3108_v16 = vsel %vm3023_vm8, %v3107_v60, %v3083_v7  ;;  %v4030_v13 = vshll.u32 %v14838_v41, %v4028_v15  ;;  %v4133_v10 = vsub.s32 32, %v15013_v28  ;;  %v18789_v41 = vld [vmem:[#allocation38_spill] sm:$0xff] }
 0x3de   : > { %v4137_v52 = vsub.s32 4294967266, %v15013_v28  ;;  %v3186_v48 = vadd.s32 536870912, %v3185_v47  ;;  %v15033_v20 = vor.u32 %v4239_v17, %v4238_v36  ;;  %v4117_v22 = vadd.s32 %v14825_v61, %v14842_v33 }
 0x3df   : > { %v8664_v14 = vadd.s32 4294967294, %v3089_v11  ;;  %v15038_v45 = vor.u32 %v4031_v44, %v4030_v13  ;;  %v3110_v7 = vsel %vm15019_vm12, 0, %v3108_v16  ;;  %v18315_v15 = vand.u32 2147483647, %v18789_v41  ;;  %v18792_v41 = vld [vmem:[#allocation65_spill] sm:$0xff] }
 0x3e0   : > { %v15042_v42 = vshrl.u32 %v3186_v48, 30  ;;  %v3077_v29 = vadd.s32 %v14926_v54, %v14918_v55  ;;  %v15050_v61 = vpop.eup %9727  ;;  %v15052_v33 = vshrl.u32 %v4117_v22, %v4133_v10  ;;  %v4138_v59 = vadd.s32 127, %v4137_v52  ;;  %v18791_v22 = vld [vmem:[#allocation84_spill] sm:$0xff] }
 0x3e1   : > { %vm8665_vm5 = vcmp.lt.s32.totalorder %v8664_v14, 0  ;;  %v15055_v26 = vadd.s32 3, %v3110_v7  ;;  %v15059_v3 = vadd.s32 %v14981_v43, %v14995_v21  ;;  %v3340_v54 = vand.u32 8388607, %v18315_v15 }
 0x3e2   : > { %v3092_v60 = vsel %vm8665_vm5, 0, %v8664_v14  ;;  %v3188_v17 = vshll.u32 %v15042_v42, 30  ;;  %v15061_v44 = vpop.eup %9729  ;;  %v3354_v36 = vshrl.u32 %v18456_v56, %v18790_v9  ;;  %v3357_v11 = vshrl.u32 %v18425_v27, %v18790_v9 }
 0x3e3   : > { %v3093_v1 = vsub.s32 32, %v3092_v60  ;;  %v3097_v19 = vsub.s32 4294967266, %v3092_v60  ;;  %v3094_v16 = vshll.u32 %v14999_v0, %v3092_v60  ;;  %v3360_v43 = vshrl.u32 %v18426_v50, %v18790_v9  ;;  %v4595_v60 = vpop.permute.xlu1 %4594 }
 0x3e4   : > { %v15063_v55 = vsub.s32 %v3185_v47, %v3188_v17  ;;  %v4139_v47 = vshll.u32 %v4138_v59, 23  ;;  %v3351_v48 = vshrl.u32 %v18423_v12, %v18790_v9  ;;  %v3353_v14 = vshll.u32 %v18423_v12, %v18791_v22  ;;  %4673 = vst.msk [vmem:[#allocation2 + $0x48] sm:$0xf] %vm4654_vm14, %v4595_v60 }
 0x3e5   : > { %v3095_v13 = vshrl.u32 %v3077_v29, %v3093_v1  ;;  %v3098_v10 = vadd.s32 127, %v3097_v19  ;;  %v15074_v21 = vpop.eup %9731  ;;  %v3356_v0 = vshll.u32 %v18456_v56, %v18791_v22  ;;  %v3359_v29 = vshll.u32 %v18425_v27, %v18791_v22 }
 0x3e6   : > { %v3191_v52 = vsub.s32 0, %v15063_v55  ;;  %v3350_v59 = vshll.u32 %v18385_v2, %v18791_v22  ;;  %v3355_v19 = vor.u32 %v3354_v36, %v3353_v14  ;;  %v3363_v15 = vshrl.u32 %v18427_v49, %v18790_v9 }
 0x3e7   : > { %v3096_v7 = vor.u32 %v3095_v13, %v3094_v16  ;;  %v3099_v17 = vshll.u32 %v3098_v10, 23  ;;  %v3358_v16 = vor.u32 %v3357_v11, %v3356_v0  ;;  %v3361_v13 = vor.u32 %v3360_v43, %v3359_v29 }
 0x3e8   : > { %v8667_v1 = vmin.u32 %v3191_v52, %v15063_v55  ;;  %v3362_v56 = vshll.u32 %v18426_v50, %v18791_v22  ;;  %v3341_v27 = vor.u32 8388608, %v3340_v54  ;;  %v3349_v52 = vshrl.u32 %v18385_v2, %v18790_v9 }
 0x3e9   : > { %v3100_v12 = vor.u32 4788187, %v3099_v17  ;;  %v3352_v32 = vor.u32 %v3351_v48, %v3350_v59  ;;  %v15095_v46 = vor.u32 4788187, %v4139_v47  ;;  %v3103_v14 = vcvt.s32.f32 %v3096_v7 }
 0x3ea   : > { %v3193_v10 = vclz %v8667_v1  ;;  %v3364_v58 = vor.u32 %v3363_v15, %v3362_v56  ;;  %vm3365_vm7 = vcmp.lt.s32.totalorder %v18792_v41, 1  ;;  %vm3366_vm3 = vcmp.lt.s32.totalorder %v18792_v41, 2 }
 0x3eb   : > { %v3101_v36 = vand.u32 2147483647, %v3100_v12  ;;  %vm3368_vm5 = vcmp.lt.s32.totalorder %v18792_v41, 4  ;;  %vm3367_vm15 = vcmp.lt.s32.totalorder %v18792_v41, 3  ;;  %v3377_v2 = vsel %vm3365_vm7, %v3355_v19, %v3358_v16  ;;  %v18793_v12 = vld [vmem:[#allocation50_spill] sm:$0xff] }
 0x3ec   : > { %v8668_v49 = vadd.s32 4294967294, %v3193_v10  ;;  %v3374_v50 = vsel %vm3368_vm5, %v3361_v13, 920167782  ;;  %v4593_v54 = vpop.permute.xlu0 %4592  ;;  %v3373_v9 = vsel %vm3365_vm7, %v3352_v32, %v3355_v19  ;;  %v3378_v43 = vsel %vm3368_vm5, %v3364_v58, 1326507024 }
 0x3ed   : > { %v3104_v11 = vmul.f32 %v3103_v14, %v3101_v36  ;;  %v3375_v15 = vsel %vm3367_vm15, %v3358_v16, %v3374_v50  ;;  %4672 = vst.msk [vmem:[#allocation2 + $0x44] sm:$0xf] %vm4654_vm14, %v4593_v54  ;;  %v3369_v22 = vsel %vm3365_vm7, %v3349_v52, %v3352_v32  ;;  %v3379_v7 = vsel %vm3367_vm15, %v3361_v13, %v3378_v43 }
 0x3ee   : > { %vm8669_vm13 = vcmp.lt.s32.totalorder %v8668_v49, 0  ;;  %v3370_v29 = vsel %vm3368_vm5, %v3358_v16, 2102212464  ;;  %v3380_v60 = vsel %vm3366_vm3, %v3377_v2, %v3379_v7  ;;  %v3376_v58 = vsel %vm3366_vm3, %v3373_v9, %v3375_v15 }
 0x3ef   : > { %v3105_v47 = vxor.u32 2147483648, %v3104_v11  ;;  %v3196_v48 = vsel %vm8669_vm13, 0, %v8668_v49  ;;  %v3381_v59 = vshll.u32 %v3341_v27, 8  ;;  %v3315_v32 = vsub.s32 4, %v18793_v12 }
 0x3f0   : > { %v3197_v17 = vsub.s32 32, %v3196_v48  ;;  %v3201_v0 = vsub.s32 4294967266, %v3196_v48  ;;  %v3198_v56 = vshll.u32 %v15063_v55, %v3196_v48  ;;  %v3371_v52 = vsel %vm3367_vm15, %v3355_v19, %v3370_v29 }
 0x3f1   : > { %v3106_v1 = vsel %vm3023_vm8, %v3105_v47, %v3104_v11  ;;  %v15126_v36 = vmul.u32.u64.low %v3381_v59, %v3380_v60  ;;  %v15127_v14 = vmul.u32.u64.high %v3381_v59, %v3380_v60, %v15126_v36  ;;  %v3316_v38 = vsel %vm3231_vm2, %v3315_v32, %v18793_v12 }
 0x3f2   : > { %v3109_v13 = vsel %vm15019_vm12, %v18761_v35, %v3106_v1  ;;  %v3199_v16 = vshrl.u32 %v15059_v3, %v3197_v17  ;;  %v3202_v10 = vadd.s32 127, %v3201_v0  ;;  %v18794_v11 = vshll.u32 %v15026_v34, 23 }
 0x3f3   : > { %9733 = vcosq.f32 %v3109_v13  ;;  %v15136_v3 = vmul.u32.u64.low %v3381_v59, %v3376_v58  ;;  %v15137_v50 = vmul.u32.u64.high %v3381_v59, %v3376_v58, %v15136_v3  ;;  %v3318_v19 = vsel %vm14315_vm4, 0, %v3316_v38 }
 0x3f4   : > { %9735 = vsinq.f32 %v3109_v13  ;;  %v3200_v27 = vor.u32 %v3199_v16, %v3198_v56  ;;  %v3203_v49 = vshll.u32 %v3202_v10, 23  ;;  %v15134_v55 = vor.u32 4788187, %v18794_v11  ;;  %v9593_v2 = vld [vmem:[#allocation2 + $0x40] sm:$0xff]  }
 0x3f5   : > { %v18795_v54 = vshll.u32 %v14946_v31, %v15013_v28  ;;  %v3211_v43 = vsub.s32 4, %v15042_v42  ;;  %v3322_v47 = vadd.s32 3, %v3318_v19  ;;  %v4039_v34 = vcvt.s32.f32 %v15038_v45  ;;  %9161 = vmatprep.mubr.bf16.mxu0 %v9593_v2 }
 0x3f6   : > { %v3204_v15 = vor.u32 4788187, %v3203_v49  ;;  %v15149_v48 = vand.u32 3, %v15055_v26  ;;  %vm3127_vm2 = vcmp.lt.s32.totalorder %v18777_v37, 0  ;;  %v3372_v4 = vsel %vm3366_vm3, %v3369_v22, %v3371_v52  ;;  %v18796_v26 = vld [vmem:[#allocation76_spill] sm:$0xff] }
 0x3f7   : > { %v4136_v9 = vor.u32 %v15052_v33, %v18795_v54  ;;  %v4141_v7 = vand.u32 2147483647, %v15095_v46  ;;  %v3207_v28 = vcvt.s32.f32 %v3200_v27  ;;  %vm3390_vm4 = vc.u32 %v15127_v14, %v15136_v3  ;;  %v18800_v54 = vld [vmem:[#allocation94_spill] sm:$0xff] }
 0x3f8   : > { %v3205_v31 = vand.u32 2147483647, %v3204_v15  ;;  %v4037_v33 = vand.u32 2147483647, %v15134_v55  ;;  %v3391_v17 = vadd.s32 1, %v15137_v50  ;;  %v3323_v0 = vand.u32 3, %v3322_v47 }
 0x3f9   : > { %v3523_v29 = vsub.s32 4, %v18796_v26  ;;  %v4143_v60 = vcvt.s32.f32 %v4136_v9  ;;  %v3212_v41 = vsel %vm3127_vm2, %v3211_v43, %v15042_v42  ;;  %v3388_v22 = vmul.u32 %v3381_v59, %v3372_v4  ;;  %v18833_v4 = vld [vmem:[#allocation93_spill] sm:$0xff] }
 0x3fa   : > { %v3208_v1 = vmul.f32 %v3207_v28, %v3205_v31  ;;  %v18797_v46 = vand.u32 2147483647, %v18777_v37  ;;  %v3392_v12 = vsel %vm3390_vm4, %v3391_v17, %v15137_v50  ;;  %v3326_v32 = vxor.u32 2147483648, %v14623_v6 }
 0x3fb   : > { %v3329_v13 = vxor.u32 2147483648, %v14618_v5  ;;  %v4144_v56 = vmul.f32 %v4143_v60, %v4141_v7  ;;  %vm3116_vm15 = vcmp.lt.s32.totalorder %v15149_v48, 2  ;;  %vm3117_vm12 = vcmp.eq.s32.totalorder %v15149_v48, 0 }
 0x3fc   : > { %vm15165_vm13 = vcmp.le.f32.partialorder %v18797_v46, 0.7853982  ;;  %v3209_v16 = vxor.u32 2147483648, %v3208_v1  ;;  %v3393_v42 = vadd.s32 %v3392_v12, %v3388_v22  ;;  %vm4063_vm8 = vcmp.lt.s32.totalorder %v14701_v25, 0 }
 0x3fd   : > { %vm3113_vm7 = vweird.f32 %v18761_v35  ;;  %vm3120_vm3 = vcmp.eq.s32.totalorder %v15149_v48, 2  ;;  %v3214_v59 = vsel %vm15165_vm13, 0, %v3212_v41  ;;  %vm3325_vm5 = vcmp.eq.s32.totalorder %v3323_v0, 0 }
 0x3fe   : > { %v3524_v10 = vsel %vm3439_vm6, %v3523_v29, %v18796_v26  ;;  %v3210_v52 = vsel %vm3127_vm2, %v3209_v16, %v3208_v1  ;;  %v3394_v36 = vadd.s32 536870912, %v3393_v42  ;;  %vm3328_vm4 = vcmp.eq.s32.totalorder %v3323_v0, 2 }
 0x3ff   : > { %v3526_v27 = vsel %vm14561_vm1, 0, %v3524_v10  ;;  %v3213_v49 = vsel %vm15165_vm13, %v18777_v37, %v3210_v52  ;;  %v3327_v38 = vsel %vm3325_vm5, %v14618_v5, %v3326_v32  ;;  %v3330_v11 = vsel %vm3328_vm4, %v3329_v13, %v14623_v6 }
 0x400   : > { %v3530_v55 = vadd.s32 3, %v3526_v27  ;;  %v9734_v50 = vpop.eup %9733  ;;  %v4145_v19 = vxor.u32 2147483648, %v4144_v56  ;;  %9737 = vcosq.f32 %v3213_v49  ;;  %v15191_v2 = vshrl.u32 %v3394_v36, 30 }
 0x401   : > { %v3731_v9 = vsub.s32 4, %v18800_v54  ;;  %v9736_v15 = vpop.eup %9735  ;;  %v3121_v43 = vxor.u32 2147483648, %v9734_v50  ;;  %9739 = vsinq.f32 %v3213_v49  ;;  %v3218_v63 = vadd.s32 3, %v3214_v59 }
 0x402   : > { %vm3324_vm6 = vcmp.lt.s32.totalorder %v3323_v0, 2  ;;  %v18801_v47 = vand.u32 2147483647, %v14701_v25  ;;  %v3118_v5 = vxor.u32 2147483648, %v9736_v15  ;;  %v3396_v6 = vshll.u32 %v15191_v2, 30 }
 0x403   : > { %v3331_v7 = vsel %vm3324_vm6, %v3327_v38, %v3330_v11  ;;  %v3534_v31 = vxor.u32 2147483648, %v14950_v18  ;;  %v3122_v28 = vsel %vm3120_vm3, %v3121_v43, %v9736_v15  ;;  %vm3321_vm2 = vweird.f32 %v12959_v8 }
 0x404   : > { %vm15196_vm1 = vcmp.le.f32.partialorder %v18801_v47, 0.7853982  ;;  %v3531_v17 = vand.u32 3, %v3530_v55  ;;  %v3732_v0 = vsel %vm3647_vm10, %v3731_v9, %v18800_v54  ;;  %v3119_v26 = vsel %vm3117_vm12, %v9734_v50, %v3118_v5 }
 0x405   : > { %v15210_v29 = vsub.s32 %v3393_v42, %v3396_v6  ;;  %v3537_v60 = vxor.u32 2147483648, %v14651_v53  ;;  %v3734_v1 = vsel %vm14724_vm11, 0, %v3732_v0  ;;  %v15217_v41 = vmul.f32 %v4039_v34, %v4037_v33 }
 0x406   : > { %v3123_v8 = vsel %vm3116_vm15, %v3119_v26, %v3122_v28  ;;  %v3332_v22 = vsel %vm3321_vm2, nan, %v3331_v7  ;;  %vm3533_vm13 = vcmp.eq.s32.totalorder %v3531_v17, 0  ;;  %v4146_v46 = vsel %vm4063_vm8, %v4145_v19, %v4144_v56  ;;  %v18808_v7 = vld [vmem:[#allocation53_spill] sm:$0xff] }
 0x407   : > { %v3124_v58 = vsel %vm3113_vm7, nan, %v3123_v8  ;;  %v3399_v12 = vsub.s32 0, %v15210_v29  ;;  %v3535_v40 = vsel %vm3533_vm13, %v14651_v53, %v3534_v31  ;;  %v3219_v13 = vand.u32 3, %v3218_v63  ;;  %v18812_v31 = vld [vmem:[#allocation77_spill] sm:$0xff] }
 0x408   : > { %v8976_v32 = vpack.c.bf16 %v3124_v58, %v3124_v58  ;;  %vm3536_vm10 = vcmp.eq.s32.totalorder %v3531_v17, 2  ;;  %v3738_v45 = vadd.s32 3, %v3734_v1  ;;  %v8978_v48 = vpack.c.bf16 %v3332_v22, %v3332_v22  ;;  %v18813_v1 = vld [vmem:[#allocation92_spill] sm:$0xff] }
 0x409   : > { %v8675_v34 = vmin.u32 %v3399_v12, %v15210_v29  ;;  %vm3532_vm11 = vcmp.lt.s32.totalorder %v3531_v17, 2  ;;  %v3538_v33 = vsel %vm3536_vm10, %v3537_v60, %v14950_v18  ;;  %v3742_v35 = vxor.u32 2147483648, %v15050_v61  ;;  %v18814_v12 = vld [vmem:[#allocation91_spill] sm:$0xff] }
 0x40a   : > { %4598 = vrot.lane.b32.xlu1 %v8976_v32, %s10368_s21  ;;  %v3539_v56 = vsel %vm3532_vm11, %v3535_v40, %v3538_v33  ;;  %v3739_v16 = vand.u32 3, %v3738_v45  ;;  %v3745_v42 = vxor.u32 2147483648, %v14953_v57  ;;  %v18804_v53 = vshll.u32 %v15011_v30, 23 }
 0x40b   : > { %v4041_v10 = vxor.u32 2147483648, %v15217_v41  ;;  %v3401_v52 = vclz %v8675_v34  ;;  %vm3529_vm15 = vweird.f32 %v18744_v51  ;;  %v4149_v18 = vsel %vm15196_vm1, %v14701_v25, %v4146_v46 }
 0x40c   : > { %v4244_v59 = vor.u32 4788187, %v18804_v53  ;;  %vm3217_vm12 = vweird.f32 %v18777_v37  ;;  %vm3221_vm7 = vcmp.eq.s32.totalorder %v3219_v13, 0  ;;  %v3540_v36 = vsel %vm3529_vm15, nan, %v3539_v56 }
 0x40d   : > { %vm3224_vm3 = vcmp.eq.s32.totalorder %v3219_v13, 2  ;;  %v8676_v27 = vadd.s32 4294967294, %v3401_v52  ;;  %vm3741_vm5 = vcmp.eq.s32.totalorder %v3739_v16, 0  ;;  %vm3744_vm4 = vcmp.eq.s32.totalorder %v3739_v16, 2  ;;  %v9738_v49 = vpop.eup %9737 }
 0x40e   : > { %v18805_v30 = vand.u32 2147483647, %v18785_v23  ;;  %4602 = vrot.lane.b32.xlu1 %v8978_v48, %s10368_s21  ;;  %v8980_v51 = vpack.c.bf16 %v3540_v36, %v3540_v36  ;;  %vm3740_vm2 = vcmp.lt.s32.totalorder %v3739_v16, 2  ;;  %v3743_v11 = vsel %vm3741_vm5, %v14953_v57, %v3742_v35  ;;  %v9740_v50 = vpop.eup %9739 }
 0x40f   : > { %v3746_v55 = vsel %vm3744_vm4, %v3745_v42, %v15050_v61  ;;  %v3225_v19 = vxor.u32 2147483648, %v9738_v49  ;;  %vm8677_vm13 = vcmp.lt.s32.totalorder %v8676_v27, 0  ;;  %vm3737_vm10 = vweird.f32 %v18749_v62 }
 0x410   : > { %vm15242_vm6 = vcmp.le.f32.partialorder %v18805_v30, 0.7853982  ;;  %v3747_v54 = vsel %vm3740_vm2, %v3743_v11, %v3746_v55  ;;  %v3222_v9 = vxor.u32 2147483648, %v9740_v50  ;;  %v3389_v15 = vadd.s32 %v15136_v3, %v15127_v14  ;;  %v18822_v30 = vld [vmem:[#allocation38_spill] sm:$0xff] }
 0x411   : > { %v3404_v43 = vsel %vm8677_vm13, 0, %v8676_v27  ;;  %v3748_v63 = vsel %vm3737_vm10, nan, %v3747_v54  ;;  %v3226_v47 = vsel %vm3224_vm3, %v3225_v19, %v9740_v50  ;;  %v18809_v57 = vand.u32 2147483647, %v18808_v7  ;;  %v18823_v50 = vld [vmem:[#allocation89_spill] sm:$0xff] }
 0x412   : > { %v3405_v5 = vsub.s32 32, %v3404_v43  ;;  %v3409_v6 = vsub.s32 4294967266, %v3404_v43  ;;  %vm3220_vm15 = vcmp.lt.s32.totalorder %v3219_v13, 2  ;;  %v3223_v62 = vsel %vm3221_vm7, %v9738_v49, %v3222_v9  ;;  %4606 = vrot.lane.b32.xlu1 %v8980_v51, %s10368_s21  ;;  %v18815_v13 = vld [vmem:[#allocation42_spill] sm:$0xff] }
 0x413   : > { %vm15255_vm11 = vcmp.le.f32.partialorder %v18809_v57, 0.7853982  ;;  %v8982_v3 = vpack.c.bf16 %v3748_v63, %v3748_v63  ;;  %v3227_v28 = vsel %vm3220_vm15, %v3223_v62, %v3226_v47  ;;  %v3406_v17 = vshll.u32 %v15210_v29, %v3404_v43 }
 0x414   : > { %v3629_v14 = vsel %vm15255_vm11, %v18808_v7, %v18812_v31  ;;  %v3407_v0 = vshrl.u32 %v3389_v15, %v3405_v5  ;;  %v3410_v26 = vadd.s32 127, %v3409_v6  ;;  %v4245_v60 = vand.u32 2147483647, %v4244_v59 }
 0x415   : > { %vm3959_vm3 = vcmp.lt.s32.totalorder %v18813_v1, 0  ;;  %9741 = vcosq.f32 %v4149_v18  ;;  %v3228_v8 = vsel %vm3217_vm12, nan, %v3227_v28  ;;  %v3939_v40 = vsub.s32 4, %v18814_v12  ;;  %v18831_v28 = vld [vmem:[#allocation43_spill] sm:$0xff] }
 0x416   : > { %v8977_v22 = vpack.c.bf16 %v3228_v8, %v3228_v8  ;;  %v3408_v46 = vor.u32 %v3407_v0, %v3406_v17  ;;  %v3411_v58 = vshll.u32 %v3410_v26, 23  ;;  %v4247_v32 = vcvt.s32.f32 %v15033_v20  ;;  %4610 = vrot.lane.b32.xlu1 %v8982_v3, %s10368_s21  ;;  %v18832_v0 = vld [vmem:[#allocation86_spill] sm:$0xff] }
 0x417   : > { %v4042_v29 = vsel %vm3959_vm3, %v4041_v10, %v15217_v41  ;;  %v3627_v45 = vsub.s32 4, %v18815_v13  ;;  %9743 = vcosq.f32 %v3629_v14  ;;  %v3837_v37 = vsel %vm15242_vm6, %v18785_v23, %v14991_v24 }
 0x418   : > { %4600 = vrot.lane.b32.xlu0 %v8977_v22, %s10368_s21  ;;  %v3412_v34 = vor.u32 4788187, %v3411_v58  ;;  %9745 = vsinq.f32 %v3629_v14  ;;  %v3940_v20 = vsel %vm3855_vm9, %v3939_v40, %v18814_v12  ;;  %v4248_v48 = vmul.f32 %v4247_v32, %v4245_v60 }
 0x419   : > { %v18816_v41 = vand.u32 2147483647, %v18813_v1  ;;  %9747 = vsinq.f32 %v4149_v18  ;;  %v3942_v16 = vsel %vm14922_vm0, 0, %v3940_v20  ;;  %v3415_v42 = vcvt.s32.f32 %v3408_v46  ;;  %v18821_v18 = vld [vmem:[#allocation34_spill] sm:$0xff] }
 0x41a   : > { %v3413_v35 = vand.u32 2147483647, %v3412_v34  ;;  %v3946_v53 = vadd.s32 3, %v3942_v16  ;;  %9749 = vcosq.f32 %v3837_v37  ;;  %vm18820_vm9 = vcmp.lt.s32.totalorder %v18808_v7, 0 }
 0x41b   : > { %vm15286_vm12 = vcmp.le.f32.partialorder %v18816_v41, 0.7853982  ;;  %v3628_v59 = vsel %vm18820_vm9, %v3627_v45, %v18815_v13  ;;  %v3950_v10 = vxor.u32 2147483648, %v15074_v21  ;;  %v3953_v52 = vxor.u32 2147483648, %v15061_v44 }
 0x41c   : > { %v4045_v24 = vsel %vm15286_vm12, %v18813_v1, %v4042_v29  ;;  %9751 = vsinq.f32 %v3837_v37  ;;  %vm4167_vm7 = vcmp.lt.s32.totalorder %v18821_v18, 0  ;;  %v3416_v36 = vmul.f32 %v3415_v42, %v3413_v35 }
 0x41d   : > { %v3947_v27 = vand.u32 3, %v3946_v53  ;;  %v4249_v49 = vxor.u32 2147483648, %v4248_v48  ;;  %9753 = vcosq.f32 %v4045_v24  ;;  %vm3335_vm0 = vcmp.lt.s32.totalorder %v18822_v30, 0 }
 0x41e   : > { %v3419_v51 = vsub.s32 4, %v15191_v2  ;;  %v3417_v11 = vxor.u32 2147483648, %v3416_v36  ;;  %v3630_v55 = vsel %vm15255_vm11, 0, %v3628_v59  ;;  %v3835_v19 = vsub.s32 4, %v18823_v50 }
 0x41f   : > { %vm3949_vm5 = vcmp.eq.s32.totalorder %v3947_v27, 0  ;;  %vm3952_vm4 = vcmp.eq.s32.totalorder %v3947_v27, 2  ;;  %vm3948_vm2 = vcmp.lt.s32.totalorder %v3947_v27, 2  ;;  %v18824_v15 = vand.u32 2147483647, %v18822_v30 }
 0x420   : > { %v3951_v54 = vsel %vm3949_vm5, %v15061_v44, %v3950_v10  ;;  %v3954_v9 = vsel %vm3952_vm4, %v3953_v52, %v15074_v21  ;;  %v3418_v63 = vsel %vm3335_vm0, %v3417_v11, %v3416_v36  ;;  %vm3945_vm10 = vweird.f32 %v14077_v39 }
 0x421   : > { %vm15310_vm13 = vcmp.le.f32.partialorder %v18824_v15, 0.7853982  ;;  %v3955_v47 = vsel %vm3948_vm2, %v3951_v54, %v3954_v9  ;;  %9755 = vsinq.f32 %v4045_v24  ;;  %v3420_v5 = vsel %vm3335_vm0, %v3419_v51, %v15191_v2 }
 0x422   : > { %v3421_v6 = vsel %vm15310_vm13, %v18822_v30, %v3418_v63  ;;  %v3956_v44 = vsel %vm3945_vm10, nan, %v3955_v47  ;;  %v9742_v57 = vpop.eup %9741  ;;  %v4250_v21 = vsel %vm4167_vm7, %v4249_v49, %v4248_v48  ;;  %v3634_v61 = vadd.s32 3, %v3630_v55 }
 0x423   : > { %9757 = vcosq.f32 %v3421_v6  ;;  %v8984_v62 = vpack.c.bf16 %v3956_v44, %v3956_v44  ;;  %vm18827_vm11 = vcmp.lt.s32.totalorder %v18785_v23, 0  ;;  %v18828_v2 = vand.u32 2147483647, %v18821_v18  ;;  %v4597_v13 = vpop.permute.xlu0 %4596 }
 0x424   : > { %9759 = vsinq.f32 %v3421_v6  ;;  %v3836_v39 = vsel %vm18827_vm11, %v3835_v19, %v18823_v50  ;;  %v9744_v31 = vpop.eup %9743  ;;  %v3422_v3 = vsel %vm15310_vm13, 0, %v3420_v5  ;;  %v4043_v17 = vsub.s32 4, %v18831_v28  ;;  %4674 = vst.msk [vmem:[#allocation2 + $0x4c] sm:$0xf] %vm4654_vm14, %v4597_v13 }
 0x425   : > { %vm15326_vm15 = vcmp.le.f32.partialorder %v18828_v2, 0.7853982  ;;  %4614 = vrot.lane.b32.xlu1 %v8984_v62, %s10368_s21  ;;  %v4147_v26 = vsub.s32 4, %v18832_v0  ;;  %v9746_v60 = vpop.eup %9745  ;;  %v3635_v46 = vand.u32 3, %v3634_v61  ;;  %v3838_v58 = vsel %vm15242_vm6, 0, %v3836_v39 }
 0x426   : > { %v4253_v8 = vsel %vm15326_vm15, %v18821_v18, %v4250_v21  ;;  %v9748_v22 = vpop.eup %9747  ;;  %v3426_v40 = vadd.s32 3, %v3422_v3  ;;  %v3641_v32 = vxor.u32 2147483648, %v9744_v31  ;;  %v3638_v37 = vxor.u32 2147483648, %v9746_v60 }
 0x427   : > { %v4148_v12 = vsel %vm4063_vm8, %v4147_v26, %v18832_v0  ;;  %v9750_v45 = vpop.eup %9749  ;;  %9761 = vcosq.f32 %v4253_v8  ;;  %v4044_v34 = vsel %vm3959_vm3, %v4043_v17, %v18831_v28  ;;  %v3842_v48 = vadd.s32 3, %v3838_v58 }
 0x428   : > { %v4150_v29 = vsel %vm15196_vm1, 0, %v4148_v12  ;;  %9763 = vsinq.f32 %v4253_v8  ;;  %v4158_v41 = vxor.u32 2147483648, %v9748_v22  ;;  %v4161_v56 = vxor.u32 2147483648, %v9742_v57 }
 0x429   : > { %v4154_v20 = vadd.s32 3, %v4150_v29  ;;  %v9752_v38 = vpop.eup %9751  ;;  %vm3636_vm8 = vcmp.lt.s32.totalorder %v3635_v46, 2  ;;  %vm3640_vm6 = vcmp.eq.s32.totalorder %v3635_v46, 2  ;;  %v4251_v24 = vsub.s32 4, %v18833_v4 }
 0x42a   : > { %v9754_v16 = vpop.eup %9753  ;;  %v3427_v42 = vand.u32 3, %v3426_v40  ;;  %vm3637_vm1 = vcmp.eq.s32.totalorder %v3635_v46, 0  ;;  %v3642_v53 = vsel %vm3640_vm6, %v3641_v32, %v9746_v60  ;;  %v4046_v59 = vsel %vm15286_vm12, 0, %v4044_v34  ;;  %v9601_v34 = vld [vmem:[%s18040_s3 + $0x18] sm:$0xff]  }
 0x42b   : > { %v4155_v35 = vand.u32 3, %v4154_v20  ;;  %v3639_v10 = vsel %vm3637_vm1, %v9744_v31, %v3638_v37  ;;  %v3846_v52 = vxor.u32 2147483648, %v9752_v38  ;;  %v3843_v36 = vand.u32 3, %v3842_v48  ;;  %v9594_v9 = vld [vmem:[#allocation2 + $0x48] sm:$0xff]   ;;  %9177 = vmatprep.subr.bf16.mxu0 %v9601_v34  ;;  %9345 = vmatprep.subr.bf16.mxu1 %v9601_v34 }
 0x42c   : > { %v4050_v11 = vadd.s32 3, %v4046_v59  ;;  %v4252_v55 = vsel %vm4167_vm7, %v4251_v24, %v18833_v4  ;;  %vm4153_vm5 = vweird.f32 %v14701_v25  ;;  %vm3428_vm4 = vcmp.lt.s32.totalorder %v3427_v42, 2  ;;  %9162 = vmatmul.mubr.bf16.gmra.mxu0 %v9594_v9  ;;  %9349 = vmatpush3.bf16.msra.mxu1 %v9601_v34 }
 0x42d   : > { %vm4157_vm3 = vcmp.eq.s32.totalorder %v4155_v35, 0  ;;  %vm4160_vm9 = vcmp.eq.s32.totalorder %v4155_v35, 2  ;;  %vm4156_vm0 = vcmp.lt.s32.totalorder %v4155_v35, 2  ;;  %v3849_v33 = vxor.u32 2147483648, %v9750_v45  ;;  %9178 = vmatpush3.bf16.msra.mxu0 %v9601_v34 }
 0x42e   : > { %v4159_v27 = vsel %vm4157_vm3, %v9742_v57, %v4158_v41  ;;  %v4162_v49 = vsel %vm4160_vm9, %v4161_v56, %v9748_v22  ;;  %v9756_v51 = vpop.eup %9755  ;;  %vm3429_vm12 = vcmp.eq.s32.totalorder %v3427_v42, 0  ;;  %vm3432_vm2 = vcmp.eq.s32.totalorder %v3427_v42, 2  ;;  %v15386_v56 = vld [vmem:[%s18038_s1 + $0x4] ss:$0 sm:$0xff] }
 0x42f   : > { %v4163_v50 = vsel %vm4156_vm0, %v4159_v27, %v4162_v49  ;;  %v3643_v5 = vsel %vm3636_vm8, %v3639_v10, %v3642_v53  ;;  %vm3845_vm13 = vcmp.eq.s32.totalorder %v3843_v36, 0  ;;  %v4254_v6 = vsel %vm15326_vm15, 0, %v4252_v55  ;;  %18834 = vst [vmem:[#allocation62_spill] sm:$0xff] %v15386_v56 }
 0x430   : > { %v9758_v19 = vpop.eup %9757  ;;  %v4164_v54 = vsel %vm4153_vm5, nan, %v4163_v50  ;;  %v3847_v44 = vsel %vm3845_vm13, %v9750_v45, %v3846_v52  ;;  %vm3848_vm7 = vcmp.eq.s32.totalorder %v3843_v36, 2  ;;  %v4051_v57 = vand.u32 3, %v4050_v11 }
 0x431   : > { %v9760_v15 = vpop.eup %9759  ;;  %v3433_v43 = vxor.u32 2147483648, %v9758_v19  ;;  %v8986_v63 = vpack.c.bf16 %v4164_v54, %v4164_v54  ;;  %v3850_v61 = vsel %vm3848_vm7, %v3849_v33, %v9752_v38  ;;  %v4054_v62 = vxor.u32 2147483648, %v9756_v51  ;;  %v9604_v38 = vld [vmem:[%s18040_s3] sm:$0xff]  }
 0x432   : > { %v3430_v47 = vxor.u32 2147483648, %v9760_v15  ;;  %v4057_v39 = vxor.u32 2147483648, %v9754_v16  ;;  %vm3425_vm10 = vweird.f32 %v18822_v30  ;;  %vm3633_vm11 = vweird.f32 %v18808_v7 }
 0x433   : > { %v3434_v25 = vsel %vm3432_vm2, %v3433_v43, %v9760_v15  ;;  %4618 = vrot.lane.b32.xlu1 %v8986_v63, %s10368_s21  ;;  %v4258_v2 = vadd.s32 3, %v4254_v6  ;;  %v3644_v28 = vsel %vm3633_vm11, nan, %v3643_v5  ;;  %vm3844_vm15 = vcmp.lt.s32.totalorder %v3843_v36, 2 }
 0x434   : > { %v3431_v21 = vsel %vm3429_vm12, %v9758_v19, %v3430_v47  ;;  %v9762_v14 = vpop.eup %9761  ;;  %v3851_v26 = vsel %vm3844_vm15, %v3847_v44, %v3850_v61  ;;  %vm4053_vm8 = vcmp.eq.s32.totalorder %v4051_v57, 0  ;;  %vm4056_vm6 = vcmp.eq.s32.totalorder %v4051_v57, 2 }
 0x435   : > { %v3435_v31 = vsel %vm3428_vm4, %v3431_v21, %v3434_v25  ;;  %v9764_v17 = vpop.eup %9763  ;;  %v4055_v60 = vsel %vm4053_vm8, %v9754_v16, %v4054_v62  ;;  %v4058_v8 = vsel %vm4056_vm6, %v4057_v39, %v9756_v51  ;;  %v8981_v22 = vpack.c.bf16 %v3644_v28, %v3644_v28 }
 0x436   : > { %v3436_v3 = vsel %vm3425_vm10, nan, %v3435_v31  ;;  %vm3841_vm1 = vweird.f32 %v18785_v23  ;;  %v4259_v30 = vand.u32 3, %v4258_v2  ;;  %vm4052_vm3 = vcmp.lt.s32.totalorder %v4051_v57, 2 }
 0x437   : > { %v8979_v0 = vpack.c.bf16 %v3436_v3, %v3436_v3  ;;  %v3852_v46 = vsel %vm3841_vm1, nan, %v3851_v26  ;;  %v4262_v7 = vxor.u32 2147483648, %v9764_v17  ;;  %v4265_v58 = vxor.u32 2147483648, %v9762_v14 }
 0x438   : > { %v4059_v12 = vsel %vm4052_vm3, %v4055_v60, %v4058_v8  ;;  %v8983_v40 = vpack.c.bf16 %v3852_v46, %v3852_v46  ;;  %vm4049_vm9 = vweird.f32 %v18813_v1  ;;  %vm4261_vm0 = vcmp.eq.s32.totalorder %v4259_v30, 0  ;;  %v9602_v1 = vld [vmem:[%s18040_s3 + $0x10] sm:$0xff]  }
 0x439   : > { %4604 = vrot.lane.b32.xlu0 %v8979_v0, %s10368_s21  ;;  %vm4264_vm5 = vcmp.eq.s32.totalorder %v4259_v30, 2  ;;  %v4060_v32 = vsel %vm4049_vm9, nan, %v4059_v12  ;;  %v4263_v29 = vsel %vm4261_vm0, %v9762_v14, %v4262_v7  ;;  %vm4260_vm4 = vcmp.lt.s32.totalorder %v4259_v30, 2  ;;  %9179 = vmatprep.subr.bf16.mxu0 %v9602_v1 }
 0x43a   : > { %v4266_v13 = vsel %vm4264_vm5, %v4265_v58, %v9764_v17  ;;  %v8985_v23 = vpack.c.bf16 %v4060_v32, %v4060_v32  ;;  %vm4257_vm12 = vweird.f32 %v18821_v18  ;;  %v9603_v18 = vld [vmem:[%s18040_s3 + $0x8] sm:$0xff]   ;;  %9346 = vmatprep.subr.bf16.mxu1 %v9602_v1  ;;  %9180 = vmatpush3.bf16.msra.mxu0 %v9602_v1  ;;  %vm5613_vm9 = vcmask 523264  }
 0x43b   : > { %v4267_v45 = vsel %vm4260_vm4, %v4263_v29, %v4266_v13  ;;  %9350 = vmatpush3.bf16.msra.mxu1 %v9602_v1  ;;  %9181 = vmatprep.subr.bf16.mxu0 %v9603_v18 }
 0x43c   : > { %v4268_v37 = vsel %vm4257_vm12, nan, %v4267_v45  ;;  %9347 = vmatprep.subr.bf16.mxu1 %v9603_v18 }
 0x43d   : > { %4608 = vrot.lane.b32.xlu0 %v8981_v22, %s10368_s21  ;;  %v8987_v20 = vpack.c.bf16 %v4268_v37, %v4268_v37 }
 0x43e   : > { %9182 = vmatpush3.bf16.msra.mxu0 %v9603_v18 }
 0x43f   : > { %9351 = vmatpush3.bf16.msra.mxu1 %v9603_v18  ;;  %9183 = vmatprep.subr.bf16.mxu0 %v9604_v38 }
 0x440   : > { %9348 = vmatprep.subr.bf16.mxu1 %v9604_v38 }
 0x441   : > { %4612 = vrot.lane.b32.xlu0 %v8983_v40, %s10368_s21 }
 0x442   : > { %9184 = vmatpush3.bf16.msra.mxu0 %v9604_v38 }
 0x443   : > { %9352 = vmatpush3.bf16.msra.mxu1 %v9604_v38 }
 0x445   : > { %4616 = vrot.lane.b32.xlu0 %v8985_v23, %s10368_s21 }
 0x449   : > { %4620 = vrot.lane.b32.xlu0 %v8987_v20, %s10368_s21  ;;  %s8509_s21 = sshll.u32 %s17902_s15, 4  ;;  %s17990_s21 = int_to_ptr.vmem [resolvable:$true] %s8509_s21 }
 0x44a   : > { %s10297_s20 = scalar_lea.vmem %s17990_s21, 4096 }
 0x44b   : > { %p10298_p11 = scmp.ne.s32.totalorder %s17990_s21, %s10297_s20 }
 0x44d   : > { %p10299_p12 = pnand %p10298_p11, %p10451_p5 }
 0x44f   : > { %p10300_p13 = pneg %p10299_p12 }
 0x453   : > { %v9147_v48 = vpop.f32.mrf.mxu0 }
 0x454   : > { %v15389_v4 = vadd.f32 %v9147_v48, %v15386_v56 }
 0x455   : > { %v4922_v41 = vpop.f32.mrf.mxu0 }
 0x456   : > { %v15392_v24 = vadd.f32 %v15386_v56, %v4922_v41  ;;  %v15398_v53 = vmul.f32 100.0, %v15389_v4 }
 0x457   : > { %v9148_v16 = vpop.f32.mrf.mxu0 }
 0x458   : > { %v15395_v35 = vadd.f32 %v9148_v16, %v15386_v56  ;;  %v15401_v59 = vmul.f32 100.0, %v15392_v24  ;;  %v5083_v36 = vmin.f32 %v15398_v53, 20.0  ;;  %vm5115_vm7 = vcmp.gt.f32.partialorder %v15398_v53, 20.0 }
 0x459   : > { %v4925_v42 = vpop.f32.mrf.mxu0 }
 0x45a   : > { %v15404_v10 = vmul.f32 100.0, %v15395_v35  ;;  %v15407_v52 = vadd.f32 %v15386_v56, %v4925_v42  ;;  %v5081_v27 = vmin.f32 %v15401_v59, 20.0  ;;  %v5149_v19 = vmul.f32 1.442695, %v5083_v36 }
 0x45b   : > { %vm5113_vm10 = vcmp.gt.f32.partialorder %v15401_v59, 20.0 }
 0x45c   : > { %v5084_v51 = vmin.f32 %v15404_v10, 20.0  ;;  %v15413_v11 = vmul.f32 100.0, %v15407_v52  ;;  %v5145_v33 = vmul.f32 1.442695, %v5081_v27  ;;  %9765 = vpow2.f32 %v5149_v19 }
 0x45d   : > { %vm5116_vm8 = vcmp.gt.f32.partialorder %v15404_v10, 20.0 }
 0x45e   : > { %v5151_v9 = vmul.f32 1.442695, %v5084_v51  ;;  %v5082_v15 = vmin.f32 %v15413_v11, 20.0  ;;  %9767 = vpow2.f32 %v5145_v33  ;;  %vm5114_vm6 = vcmp.gt.f32.partialorder %v15413_v11, 20.0 }
 0x460   : > { %9769 = vpow2.f32 %v5151_v9  ;;  %v5147_v47 = vmul.f32 1.442695, %v5082_v15 }
 0x462   : > { %9771 = vpow2.f32 %v5147_v47 }
 0x469   : > { %v15447_v8 = vpop.eup %9765 }
 0x46a   : > { %v5227_v45 = vadd.f32 1.0, %v15447_v8 }
 0x46b   : > { %v15452_v30 = vpop.eup %9767 }
 0x46c   : > { %v5209_v37 = vadd.f32 1.0, %v15452_v30 }
 0x46d   : > { %v15457_v58 = vpop.eup %9769 }
 0x46e   : > { %v5236_v1 = vadd.f32 1.0, %v15457_v58 }
 0x46f   : > { %v15473_v18 = vpop.eup %9771 }
 0x473   : > { %v9151_v49 = vpop.f32.mrf.mxu0 }
 0x474   : > { %v15429_v62 = vadd.f32 %v9151_v49, %v15386_v56 }
 0x475   : > { %v4938_v50 = vpop.f32.mrf.mxu0 }
 0x476   : > { %v15419_v5 = vadd.f32 %v15386_v56, %v4938_v50  ;;  %18835 = vst [vmem:[#allocation51_spill] sm:$0xff] %v15429_v62  ;;  %v15441_v17 = vmul.f32 100.0, %v15429_v62 }
 0x477   : > { %v9152_v54 = vpop.f32.mrf.mxu0 }
 0x478   : > { %v15426_v57 = vmul.f32 100.0, %v15419_v5  ;;  %v15437_v14 = vadd.f32 %v9152_v54, %v15386_v56  ;;  %v5087_v12 = vmin.f32 %v15441_v17, 20.0 }
 0x479   : > { %v4941_v63 = vpop.f32.mrf.mxu0 }
 0x47a   : > { %v15422_v25 = vadd.f32 %v15386_v56, %v4941_v63  ;;  %18836 = vst [vmem:[#allocation41_spill] sm:$0xff] %v15437_v14  ;;  %v5085_v3 = vmin.f32 %v15426_v57, 20.0  ;;  %v15450_v22 = vmul.f32 100.0, %v15437_v14  ;;  %v5157_v38 = vmul.f32 1.442695, %v5087_v12 }
 0x47c   : > { %v4599_v55 = vpop.permute.xlu1 %4598  ;;  %v15432_v39 = vmul.f32 100.0, %v15422_v25  ;;  %v5153_v46 = vmul.f32 1.442695, %v5085_v3  ;;  %v5088_v34 = vmin.f32 %v15450_v22, 20.0 }
 0x47d   : > { %4675 = vst.msk [vmem:[#allocation2 + $0x50] sm:$0xf] %vm4654_vm14, %v4599_v55  ;;  %v5218_v55 = vadd.f32 1.0, %v15473_v18 }
 0x47e   : > { %v9155_v44 = vpop.f32.mrf.mxu0  ;;  %v5086_v0 = vmin.f32 %v15432_v39, 20.0  ;;  %9773 = vpow2.f32 %v5153_v46  ;;  %v5159_v49 = vmul.f32 1.442695, %v5088_v34  ;;  %vm5118_vm0 = vcmp.gt.f32.partialorder %v15432_v39, 20.0 }
 0x47f   : > { %v15487_v51 = vadd.f32 %v9155_v44, %v15386_v56 }
 0x480   : > { %v4603_v43 = vpop.permute.xlu1 %4602  ;;  %v4954_v21 = vpop.f32.mrf.mxu0  ;;  %v5155_v40 = vmul.f32 1.442695, %v5086_v0 }
 0x481   : > { %4677 = vst.msk [vmem:[#allocation2 + $0x58] sm:$0xf] %vm4654_vm14, %v4603_v43  ;;  %v15455_v7 = vadd.f32 %v15386_v56, %v4954_v21  ;;  %18840 = vst [vmem:[#allocation72_spill] sm:$0xff] %v15487_v51  ;;  %v15502_v47 = vmul.f32 100.0, %v15487_v51 }
 0x482   : > { %v9156_v2 = vpop.f32.mrf.mxu0  ;;  %9775 = vpow2.f32 %v5155_v40  ;;  %v5230_v40 = vmul.f32 -0.5, %v15447_v8 }
 0x483   : > { %18837 = vst [vmem:[#allocation66_spill] sm:$0xff] %v15455_v7  ;;  %v15471_v20 = vmul.f32 100.0, %v15455_v7  ;;  %9777 = vlog2.f32 %v5227_v45  ;;  %v15480_v36 = vadd.f32 %v9156_v2, %v15386_v56  ;;  %18842 = vst [vmem:[#allocation74_spill] sm:$0xff] %v15502_v47  ;;  %v5091_v2 = vmin.f32 %v15502_v47, 20.0 }
 0x484   : > { %v4607_v6 = vpop.permute.xlu1 %4606  ;;  %v4957_v28 = vpop.f32.mrf.mxu0  ;;  %9779 = vlog2.f32 %v5209_v37 }
 0x485   : > { %4679 = vst.msk [vmem:[#allocation2 + $0x60] sm:$0xf] %vm4654_vm14, %v4607_v6  ;;  %v15445_v26 = vadd.f32 %v15386_v56, %v4957_v28  ;;  %18839 = vst [vmem:[#allocation83_spill] sm:$0xff] %v15480_v36  ;;  %9781 = vlog2.f32 %v5236_v1  ;;  %v5089_v50 = vmin.f32 %v15471_v20, 20.0  ;;  %v15493_v9 = vmul.f32 100.0, %v15480_v36 }
 0x486   : > { %9783 = vpow2.f32 %v5157_v38  ;;  %v5165_v37 = vmul.f32 1.442695, %v5091_v2  ;;  %v5212_v38 = vmul.f32 -0.5, %v15452_v30 }
 0x487   : > { %v9159_v60 = vpop.f32.mrf.mxu0  ;;  %v15461_v32 = vmul.f32 100.0, %v15445_v26  ;;  %18841 = vst [vmem:[#allocation48_spill] sm:$0xff] %v15493_v9  ;;  %9785 = vpow2.f32 %v5159_v49  ;;  %v5161_v6 = vmul.f32 1.442695, %v5089_v50  ;;  %v5233_v49 = vand.u32 2147483647, %v15447_v8 }
 0x488   : > { %v4611_v61 = vpop.permute.xlu1 %4610  ;;  %v15464_v29 = vadd.f32 %v9159_v60, %v15386_v56  ;;  %9787 = vlog2.f32 %v5218_v55 }
 0x489   : > { %4681 = vst.msk [vmem:[#allocation2 + $0x68] sm:$0xf] %vm4654_vm14, %v4611_v61  ;;  %v4970_v13 = vpop.f32.mrf.mxu0  ;;  %v5090_v48 = vmin.f32 %v15461_v32, 20.0  ;;  %vm15535_vm2 = vcmp.lt.f32.partialorder %v5233_v49, 0.0004427343 }
 0x48a   : > { %v4601_v31 = vpop.permute.xlu0 %4600  ;;  %18838 = vst [vmem:[#allocation78_spill] sm:$0xff] %v15464_v29  ;;  %v15477_v41 = vmul.f32 100.0, %v15464_v29  ;;  %v15483_v27 = vadd.f32 %v15386_v56, %v4970_v13  ;;  %v5239_v13 = vmul.f32 -0.5, %v15457_v58 }
 0x48b   : > { %4676 = vst.msk [vmem:[#allocation2 + $0x54] sm:$0xf] %vm4654_vm14, %v4601_v31  ;;  %v9160_v16 = vpop.f32.mrf.mxu0  ;;  %v5163_v33 = vmul.f32 1.442695, %v5090_v48  ;;  %v5092_v31 = vmin.f32 %v15493_v9, 20.0  ;;  %v15517_v60 = vpop.eup %9773 }
 0x48c   : > { %v5095_v19 = vmin.f32 %v15477_v41, 20.0  ;;  %v15496_v43 = vmul.f32 100.0, %v15483_v27  ;;  %v15499_v63 = vadd.f32 %v9160_v16, %v15386_v56  ;;  %v5245_v48 = vadd.f32 1.0, %v15517_v60 }
 0x48d   : > { %v4973_v54 = vpop.f32.mrf.mxu0  ;;  %9789 = vpow2.f32 %v5163_v33  ;;  %v5240_v33 = vadd.f32 1.0, %v5239_v13 }
 0x48e   : > { %v5173_v15 = vmul.f32 1.442695, %v5095_v19  ;;  %v5093_v44 = vmin.f32 %v15496_v43, 20.0  ;;  %v15506_v21 = vadd.f32 %v15386_v56, %v4973_v54  ;;  %v15509_v61 = vmul.f32 100.0, %v15499_v63 }
 0x48f   : > { %v15519_v12 = vpop.eup %9775  ;;  %v5231_v19 = vadd.f32 1.0, %v5230_v40  ;;  %v5221_v54 = vmul.f32 -0.5, %v15473_v18 }
 0x490   : > { %9791 = vpow2.f32 %v5173_v15  ;;  %v5169_v3 = vmul.f32 1.442695, %v5093_v44  ;;  %v5096_v28 = vmin.f32 %v15509_v61, 20.0  ;;  %v15515_v0 = vmul.f32 100.0, %v15506_v21  ;;  %v9778_v45 = vpop.eup %9777 }
 0x491   : > { %9793 = vpow2.f32 %v5161_v6  ;;  %v9780_v34 = vpop.eup %9779  ;;  %v5254_v55 = vadd.f32 1.0, %v15519_v12  ;;  %v5213_v6 = vadd.f32 1.0, %v5212_v38  ;;  %v5242_v44 = vand.u32 2147483647, %v15457_v58 }
 0x492   : > { %v9595_v23 = vld [vmem:[#allocation2 + $0x50] sm:$0xff]   ;;  %9795 = vpow2.f32 %v5169_v3  ;;  %v5175_v46 = vmul.f32 1.442695, %v5096_v28  ;;  %v5094_v16 = vmin.f32 %v15515_v0, 20.0  ;;  %v5229_v3 = vmul.f32 0.6931472, %v9778_v45 }
 0x493   : > { %9165 = vmatprep.mubr.bf16.mxu0 %v9595_v23  ;;  %v5167_v23 = vmul.f32 1.442695, %v5092_v31  ;;  %v5211_v45 = vmul.f32 0.6931472, %v9780_v34  ;;  %v5214_v49 = vmul.f32 %v15452_v30, %v5213_v6  ;;  %vm15550_vm13 = vcmp.lt.f32.partialorder %v5242_v44, 0.0004427343 }
 0x494   : > { %9797 = vpow2.f32 %v5175_v46  ;;  %v5171_v31 = vmul.f32 1.442695, %v5094_v16  ;;  %v5222_v16 = vadd.f32 1.0, %v5221_v54 }
 0x495   : > { %9799 = vpow2.f32 %v5167_v23  ;;  %v5232_v23 = vmul.f32 %v15447_v8, %v5231_v19  ;;  %v5224_v8 = vand.u32 2147483647, %v15473_v18 }
 0x496   : > { %9801 = vpow2.f32 %v5165_v37  ;;  %v5215_v37 = vand.u32 2147483647, %v15452_v30 }
 0x497   : > { %v4615_v42 = vpop.permute.xlu1 %4614  ;;  %9803 = vlog2.f32 %v5245_v48  ;;  %v5235_v19 = vsel %vm15535_vm2, %v5232_v23, %v5229_v3  ;;  %vm15576_vm15 = vcmp.lt.f32.partialorder %v5224_v8, 0.0004427343 }
 0x498   : > { %4683 = vst.msk [vmem:[#allocation2 + $0x70] sm:$0xf] %vm4654_vm14, %v4615_v42  ;;  %v9782_v42 = vpop.eup %9781  ;;  %9805 = vlog2.f32 %v5254_v55  ;;  %vm15566_vm11 = vcmp.lt.f32.partialorder %v5215_v37, 0.0004427343 }
 0x499   : > { %v15529_v50 = vpop.eup %9783  ;;  %v5238_v46 = vmul.f32 0.6931472, %v9782_v42  ;;  %9807 = vpow2.f32 %v5171_v31  ;;  %v5217_v3 = vsel %vm15566_vm11, %v5214_v49, %v5211_v45 }
 0x49a   : > { %v15532_v15 = vpop.eup %9785  ;;  %v5263_v38 = vadd.f32 1.0, %v15529_v50  ;;  %v5266_v8 = vmul.f32 -0.5, %v15529_v50  ;;  %v5269_v53 = vand.u32 2147483647, %v15529_v50 }
 0x49b   : > { %v9788_v2 = vpop.eup %9787  ;;  %v5272_v42 = vadd.f32 1.0, %v15532_v15  ;;  %v5275_v10 = vmul.f32 -0.5, %v15532_v15 }
 0x49c   : > { %v15539_v40 = vpop.eup %9789  ;;  %9809 = vlog2.f32 %v5263_v38  ;;  %v5248_v38 = vmul.f32 -0.5, %v15517_v60  ;;  %vm15676_vm2 = vcmp.lt.f32.partialorder %v5269_v53, 0.0004427343 }
 0x49d   : > { %v15545_v48 = vpop.eup %9791  ;;  %v5290_v54 = vadd.f32 1.0, %v15539_v40  ;;  %9811 = vlog2.f32 %v5272_v42  ;;  %v5497_v42 = vmul.f32 0.01, %v5217_v3 }
 0x49e   : > { %v5335_v31 = vadd.f32 1.0, %v15545_v48 }
 0x49f   : > { %9813 = vlog2.f32 %v5290_v54 }
 0x4a0   : > { %9815 = vlog2.f32 %v5335_v31  ;;  %v5249_v31 = vadd.f32 1.0, %v5248_v38 }
 0x4a2   : > { %v5250_v38 = vmul.f32 %v15517_v60, %v5249_v31 }
 0x4a5   : > { %v4619_v1 = vpop.permute.xlu1 %4618 }
 0x4a6   : > { %4685 = vst.msk [vmem:[#allocation2 + $0x78] sm:$0xf] %vm4654_vm14, %v4619_v1  ;;  %v5241_v1 = vmul.f32 %v15457_v58, %v5240_v33  ;;  %v15555_v58 = vpop.eup %9793  ;;  %v5220_v33 = vmul.f32 0.6931472, %v9788_v2  ;;  %v5223_v2 = vmul.f32 %v15473_v18, %v5222_v16 }
 0x4a7   : > { %v15563_v30 = vpop.eup %9795  ;;  %v5281_v45 = vadd.f32 1.0, %v15555_v58 }
 0x4a8   : > { %v5244_v34 = vsel %vm15550_vm13, %v5241_v1, %v5238_v46  ;;  %v5317_v28 = vadd.f32 1.0, %v15563_v30  ;;  %v5499_v46 = vmul.f32 0.01, %v5235_v19  ;;  %v15580_v37 = vpop.eup %9797  ;;  %v5226_v1 = vsel %vm15576_vm15, %v5223_v2, %v5220_v33 }
 0x4a9   : > { %v5344_v49 = vadd.f32 1.0, %v15580_v37  ;;  %v15587_v55 = vpop.eup %9799  ;;  %v5257_v19 = vmul.f32 -0.5, %v15519_v12  ;;  %v5498_v54 = vmul.f32 0.01, %v5226_v1  ;;  %vm5128_vm13 = vcmp.gt.f32.partialorder %v15509_v61, 20.0  ;;  %v18873_v61 = vld [vmem:[#allocation78_spill] sm:$0xff] }
 0x4aa   : > { %9817 = vlog2.f32 %v5317_v28  ;;  %v15604_v23 = vsel %vm5115_vm7, %v15389_v4, %v5499_v46  ;;  %v5308_v1 = vadd.f32 1.0, %v15587_v55  ;;  %v5311_v51 = vmul.f32 -0.5, %v15587_v55 }
 0x4ab   : > { %v4605_v13 = vpop.permute.xlu0 %4604  ;;  %9819 = vlog2.f32 %v5344_v49  ;;  %v5258_v4 = vadd.f32 1.0, %v5257_v19  ;;  %vm5122_vm7 = vcmp.gt.f32.partialorder %v15461_v32, 20.0  ;;  %vm5120_vm15 = vcmp.gt.f32.partialorder %v15450_v22, 20.0 }
 0x4ac   : > { %4678 = vst.msk [vmem:[#allocation2 + $0x5c] sm:$0xf] %vm4654_vm14, %v4605_v13  ;;  %v5500_v13 = vmul.f32 0.01, %v5244_v34  ;;  %v15593_v34 = vpop.eup %9801  ;;  %9821 = vlog2.f32 %v5281_v45  ;;  %v15616_v45 = vadd.f32 1.0, %v5266_v8 }
 0x4ad   : > { %18851 = vst [vmem:[#allocation85_spill] sm:$0xff] %v15593_v34  ;;  %v9804_v44 = vpop.eup %9803  ;;  %v5302_v8 = vmul.f32 -0.5, %v15593_v34  ;;  %v5299_v11 = vadd.f32 1.0, %v15593_v34  ;;  %9823 = vlog2.f32 %v5308_v1  ;;  %v5347_v1 = vmul.f32 -0.5, %v15580_v37 }
 0x4ae   : > { %v15596_v33 = vsel %vm5116_vm8, %v15395_v35, %v5500_v13  ;;  %v9806_v3 = vpop.eup %9805  ;;  %v15609_v35 = vsel %vm5113_vm10, %v15392_v24, %v5497_v42  ;;  %v5260_v13 = vand.u32 2147483647, %v15519_v12  ;;  %v15624_v24 = vsel %vm5114_vm6, %v15407_v52, %v5498_v54 }
 0x4af   : > { %v4609_v6 = vpop.permute.xlu0 %4608  ;;  %v15619_v46 = vpop.eup %9807  ;;  %v5247_v59 = vmul.f32 0.6931472, %v9804_v44  ;;  %v5276_v42 = vadd.f32 1.0, %v5275_v10  ;;  %v5256_v49 = vmul.f32 0.6931472, %v9806_v3  ;;  %v5284_v44 = vmul.f32 -0.5, %v15555_v58 }
 0x4b0   : > { %4680 = vst.msk [vmem:[#allocation2 + $0x64] sm:$0xf] %vm4654_vm14, %v4609_v6  ;;  %v5251_v6 = vand.u32 2147483647, %v15517_v60  ;;  %v5326_v19 = vadd.f32 1.0, %v15619_v46  ;;  %v9810_v54 = vpop.eup %9809  ;;  %v5293_v3 = vmul.f32 -0.5, %v15539_v40 }
 0x4b1   : > { %vm15634_vm3 = vcmp.lt.f32.partialorder %v5260_v13, 0.0004427343  ;;  %v5287_v10 = vand.u32 2147483647, %v15555_v58  ;;  %v9812_v60 = vpop.eup %9811  ;;  %v5296_v13 = vand.u32 2147483647, %v15539_v40 }
 0x4b2   : > { %vm15626_vm1 = vcmp.lt.f32.partialorder %v5251_v6, 0.0004427343  ;;  %v5259_v6 = vmul.f32 %v15519_v12, %v5258_v4  ;;  %9825 = vlog2.f32 %v5326_v19  ;;  %v15651_v12 = vadd.f32 1.0, %v5302_v8  ;;  %v9814_v56 = vpop.eup %9813 }
 0x4b3   : > { %v9596_v18 = vld [vmem:[#allocation2 + $0x58] sm:$0xff]   ;;  %v4613_v16 = vpop.permute.xlu0 %4612  ;;  %v5253_v31 = vsel %vm15626_vm1, %v5250_v38, %v5247_v59  ;;  %v5320_v19 = vmul.f32 -0.5, %v15563_v30  ;;  %v5561_v38 = vpack.c.bf16 %v15624_v24, %v15609_v35  ;;  %v15657_v59 = vmul.f32 0.6931472, %v9810_v54  ;;  %v9816_v52 = vpop.eup %9815 }
 0x4b4   : > { %4682 = vst.msk [vmem:[#allocation2 + $0x6c] sm:$0xf] %vm4654_vm14, %v4613_v16  ;;  %9166 = vmatmul.mubr.bf16.gmra.mxu0 %v9596_v18  ;;  %v5278_v16 = vand.u32 2147483647, %v15532_v15  ;;  %18856 = vst [vmem:[#allocation64_spill] sm:$0xff] %v15651_v12  ;;  %9827 = vlog2.f32 %v5299_v11  ;;  %v5338_v18 = vmul.f32 -0.5, %v15545_v48 }
 0x4b5   : > { %v15661_v8 = vmul.f32 0.6931472, %v9812_v60  ;;  %v5285_v4 = vadd.f32 1.0, %v5284_v44  ;;  %vm15668_vm4 = vcmp.lt.f32.partialorder %v5287_v10, 0.0004427343  ;;  %v5294_v11 = vadd.f32 1.0, %v5293_v3 }
 0x4b6   : > { %vm15663_vm5 = vcmp.lt.f32.partialorder %v5278_v16, 0.0004427343  ;;  %vm15672_vm12 = vcmp.lt.f32.partialorder %v5296_v13, 0.0004427343  ;;  %v5348_v60 = vadd.f32 1.0, %v5347_v1  ;;  %v5321_v36 = vadd.f32 1.0, %v5320_v19 }
 0x4b7   : > { %v9597_v2 = vld [vmem:[#allocation2 + $0x60] sm:$0xff]   ;;  %v4617_v28 = vpop.permute.xlu0 %4616  ;;  %v9818_v47 = vpop.eup %9817  ;;  %v5350_v44 = vand.u32 2147483647, %v15580_v37  ;;  %v5329_v10 = vmul.f32 -0.5, %v15619_v46  ;;  %v5268_v3 = vmul.f32 %v15529_v50, %v15616_v45  ;;  %v5277_v13 = vmul.f32 %v15532_v15, %v5276_v42 }
 0x4b8   : > { %4684 = vst.msk [vmem:[#allocation2 + $0x74] sm:$0xf] %vm4654_vm14, %v4617_v28  ;;  %9169 = vmatprep.mubr.bf16.mxu0 %v9597_v2  ;;  %v9820_v16 = vpop.eup %9819  ;;  %v5339_v1 = vadd.f32 1.0, %v5338_v18  ;;  %v5286_v53 = vmul.f32 %v15555_v58, %v5285_v4  ;;  %v5292_v7 = vmul.f32 0.6931472, %v9814_v56  ;;  %v5295_v29 = vmul.f32 %v15539_v40, %v5294_v11  ;;  %v18882_v56 = vld [vmem:[#allocation72_spill] sm:$0xff] }
 0x4b9   : > { %v5346_v62 = vmul.f32 0.6931472, %v9820_v16  ;;  %v5341_v34 = vand.u32 2147483647, %v15545_v48  ;;  %v5319_v12 = vmul.f32 0.6931472, %v9818_v47  ;;  %v5349_v50 = vmul.f32 %v15580_v37, %v5348_v60 }
 0x4ba   : > { %v5337_v14 = vmul.f32 0.6931472, %v9816_v52  ;;  %vm5125_vm10 = vcmp.gt.f32.partialorder %v15496_v43, 20.0  ;;  %vm15697_vm11 = vcmp.lt.f32.partialorder %v5350_v44, 0.0004427343  ;;  %v5330_v39 = vadd.f32 1.0, %v5329_v10 }
 0x4bb   : > { %v9598_v28 = vld [vmem:[#allocation2 + $0x68] sm:$0xff]   ;;  %v4621_v2 = vpop.permute.xlu0 %4620  ;;  %vm5127_vm8 = vcmp.gt.f32.partialorder %v15477_v41, 20.0  ;;  %v5352_v47 = vsel %vm15697_vm11, %v5349_v50, %v5346_v62  ;;  %v5332_v58 = vand.u32 2147483647, %v15619_v46  ;;  %vm5121_vm1 = vcmp.gt.f32.partialorder %v15471_v20, 20.0  ;;  %v18875_v10 = vld [vmem:[#allocation85_spill] sm:$0xff] }
 0x4bc   : > { %4686 = vst.msk [vmem:[#allocation2 + $0x7c] sm:$0xf] %vm4654_vm14, %v4621_v2  ;;  %9170 = vmatmul.mubr.bf16.gmra.mxu0 %v9598_v28  ;;  %v5262_v2 = vsel %vm15634_vm3, %v5259_v6, %v5256_v49  ;;  %vm5117_vm14 = vcmp.gt.f32.partialorder %v15426_v57, 20.0  ;;  %v5501_v49 = vmul.f32 0.01, %v5253_v31  ;;  %v5280_v57 = vsel %vm15663_vm5, %v5277_v13, %v15661_v8 }
 0x4bd   : > { %v5502_v35 = vmul.f32 0.01, %v5262_v2  ;;  %v5323_v2 = vand.u32 2147483647, %v15563_v30  ;;  %vm15718_vm3 = vcmp.lt.f32.partialorder %v5341_v34, 0.0004427343  ;;  %v18871_v11 = vpack.c.bf16 %v15596_v33, %v15604_v23 }
 0x4be   : > { %v5312_v42 = vadd.f32 1.0, %v5311_v51  ;;  %v5504_v8 = vmul.f32 0.01, %v5280_v57  ;;  %v5314_v51 = vand.u32 2147483647, %v15587_v55  ;;  %vm5126_vm5 = vcmp.gt.f32.partialorder %v15515_v0, 20.0 }
 0x4bf   : > { %v9599_v28 = vld [vmem:[#allocation2 + $0x70] sm:$0xff]   ;;  %v5534_v19 = vsel %vm5118_vm0, %v15422_v25, %v5502_v35  ;;  %v5322_v25 = vmul.f32 %v15563_v30, %v5321_v36  ;;  %vm15707_vm6 = vcmp.lt.f32.partialorder %v5323_v2, 0.0004427343  ;;  %v5533_v36 = vsel %vm5117_vm14, %v15419_v5, %v5501_v49 }
 0x4c0   : > { %9173 = vmatprep.mubr.bf16.mxu0 %v9599_v28  ;;  %v9822_v28 = vpop.eup %9821  ;;  %v5298_v30 = vsel %vm15672_vm12, %v5295_v29, %v5292_v7  ;;  %vm5119_vm0 = vcmp.gt.f32.partialorder %v15441_v17, 20.0  ;;  %v5563_v5 = vpack.c.bf16 %v5534_v19, %v5533_v36  ;;  %v5512_v29 = vmul.f32 0.01, %v5352_v47  ;;  %v18874_v2 = vld [vmem:[#allocation64_spill] sm:$0xff]  ;;  %v18880_v17 = vld [vmem:[#allocation83_spill] sm:$0xff]  ;;  %v18883_v47 = vld [vmem:[#allocation62_spill] sm:$0xff] }
 0x4c1   : > { %v5283_v15 = vmul.f32 0.6931472, %v9822_v28  ;;  %v9824_v37 = vpop.eup %9823  ;;  %v5325_v62 = vsel %vm15707_vm6, %v5322_v25, %v5319_v12  ;;  %v5271_v12 = vsel %vm15676_vm2, %v5268_v3, %v15657_v59  ;;  %v5506_v18 = vmul.f32 0.01, %v5298_v30  ;;  %v18879_v19 = vld [vmem:[#allocation48_spill] sm:$0xff] }
 0x4c2   : > { %v9826_v45 = vpop.eup %9825  ;;  %vm5333_vm14 = vcmp.lt.f32.partialorder %v5332_v58, 0.0004427343  ;;  %v5509_v52 = vmul.f32 0.01, %v5325_v62  ;;  %v5310_v24 = vmul.f32 0.6931472, %v9824_v37  ;;  %v5313_v59 = vmul.f32 %v15587_v55, %v5312_v42 }
 0x4c3   : > { %v9600_v9 = vld [vmem:[#allocation2 + $0x78] sm:$0xff]   ;;  %v5289_v7 = vsel %vm15668_vm4, %v5286_v53, %v5283_v15  ;;  %v5328_v34 = vmul.f32 0.6931472, %v9826_v45  ;;  %v9828_v49 = vpop.eup %9827  ;;  %v5503_v54 = vmul.f32 0.01, %v5271_v12  ;;  %v5544_v60 = vsel %vm5128_vm13, %v15499_v63, %v5512_v29  ;;  %v18881_v15 = vld [vmem:[#allocation74_spill] sm:$0xff] }
 0x4c4   : > { %9174 = vmatmul.mubr.bf16.gmra.mxu0 %v9600_v9  ;;  %v5340_v9 = vmul.f32 %v15545_v48, %v5339_v1  ;;  %v5505_v35 = vmul.f32 0.01, %v5289_v7  ;;  %v5301_v16 = vmul.f32 0.6931472, %v9828_v49  ;;  %v5538_v31 = vsel %vm5122_vm7, %v15445_v26, %v5506_v18  ;;  %v18872_v55 = vld [vmem:[#allocation41_spill] sm:$0xff]  ;;  %v18876_v26 = vld [vmem:[#allocation66_spill] sm:$0xff] }
 0x4c5   : > { %9185 = vmatprep.mubr.msk.bf16.mxu0 %vm5613_vm9, %v5561_v38  ;;  %v5331_v38 = vmul.f32 %v15619_v46, %v5330_v39  ;;  %v5541_v33 = vsel %vm5125_vm10, %v15483_v27, %v5509_v52  ;;  %v5536_v44 = vsel %vm5120_vm15, %v18872_v55, %v5504_v8  ;;  %vm5315_vm4 = vcmp.lt.f32.partialorder %v5314_v51, 0.0004427343 }
 0x4c6   : > { %v5343_v4 = vsel %vm15718_vm3, %v5340_v9, %v5337_v14  ;;  %v5304_v32 = vmul.f32 %v18875_v10, %v18874_v2  ;;  %v5537_v43 = vsel %vm5121_vm1, %v18876_v26, %v5505_v35  ;;  %v5316_v27 = vsel %vm5315_vm4, %v5313_v59, %v5310_v24 }
 0x4c7   : > { %v5511_v6 = vmul.f32 0.01, %v5343_v4  ;;  %v5334_v14 = vsel %vm5333_vm14, %v5331_v38, %v5328_v34  ;;  %v18878_v3 = vand.u32 2147483647, %v18875_v10  ;;  %v5565_v13 = vpack.c.bf16 %v5538_v31, %v5537_v43 }
 0x4c8   : > { %v5510_v46 = vmul.f32 0.01, %v5334_v14  ;;  %v5508_v53 = vmul.f32 0.01, %v5316_v27  ;;  %vm5124_vm2 = vcmp.gt.f32.partialorder %v18879_v19, 20.0  ;;  %vm5123_vm13 = vcmp.gt.f32.partialorder %v18881_v15, 20.0 }
 0x4c9   : > { %v5543_v63 = vsel %vm5127_vm8, %v18873_v61, %v5511_v6  ;;  %vm5306_vm12 = vcmp.lt.f32.partialorder %v18878_v3, 0.0004427343 }
 0x4ca   : > { %v5542_v23 = vsel %vm5126_vm5, %v15506_v21, %v5510_v46  ;;  %v5568_v28 = vpack.c.bf16 %v5544_v60, %v5543_v63  ;;  %v18877_v21 = vld [vmem:[#allocation51_spill] sm:$0xff]  ;;  %v5307_v1 = vsel %vm5306_vm12, %v5304_v32, %v5301_v16  ;;  %v5540_v50 = vsel %vm5124_vm2, %v18880_v17, %v5508_v53 }
 0x4cb   : > { %v5567_v0 = vpack.c.bf16 %v5542_v23, %v5541_v33  ;;  %v5535_v22 = vsel %vm5119_vm0, %v18877_v21, %v5503_v54  ;;  %v5507_v20 = vmul.f32 0.01, %v5307_v1 }
 0x4cc   : > { %9186 = vmatmul.mubr.msk.bf16.vlgmr.msra.gmra.mxu0 %vm5613_vm9, %v18871_v11  ;;  %v5564_v41 = vpack.c.bf16 %v5536_v44, %v5535_v22 }
 0x4cd   : > { %9189 = vmatprep.mubr.msk.bf16.mxu0 %vm5613_vm9, %v5563_v5  ;;  %9197 = vmatprep.mubr.msk.bf16.mxu1 %vm5613_vm9, %v5567_v0  ;;  %v5539_v25 = vsel %vm5123_vm13, %v18882_v56, %v5507_v20 }
 0x4ce   : > { %9198 = vmatmul.mubr.msk.bf16.vlgmr.msra.gmra.mxu1 %vm5613_vm9, %v5568_v28  ;;  %v5566_v39 = vpack.c.bf16 %v5540_v50, %v5539_v25 }
 0x4d4   : > { %9190 = vmatmul.mubr.msk.bf16.gmra.mxu0 %vm5613_vm9, %v5564_v41 }
 0x4d5   : > { %9193 = vmatprep.mubr.msk.bf16.mxu0 %vm5613_vm9, %v5565_v13 }
 0x4dc   : > { %9194 = vmatmul.mubr.msk.bf16.gmra.mxu0 %vm5613_vm9, %v5566_v39 }
 0x4ec   : > { %v9163_v9 = vpop.f32.mrf.mxu0 }
 0x4ed   : > { %v15780_v40 = vadd.f32 %v9163_v9, %v18883_v47 }
 0x4ee   : > { %v4986_v58 = vpop.f32.mrf.mxu0 }
 0x4ef   : > { %v15783_v37 = vmul.f32 100.0, %v15780_v40  ;;  %v15786_v36 = vadd.f32 %v18883_v47, %v4986_v58 }
 0x4f0   : > { %v9164_v30 = vpop.f32.mrf.mxu0 }
 0x4f1   : > { %v5099_v48 = vmin.f32 %v15783_v37, 20.0  ;;  %v15790_v62 = vmul.f32 100.0, %v15786_v36  ;;  %v15793_v45 = vadd.f32 %v9164_v30, %v18883_v47  ;;  %vm5131_vm3 = vcmp.gt.f32.partialorder %v15783_v37, 20.0 }
 0x4f2   : > { %v4989_v57 = vpop.f32.mrf.mxu0 }
 0x4f3   : > { %v5181_v5 = vmul.f32 1.442695, %v5099_v48  ;;  %v5097_v42 = vmin.f32 %v15790_v62, 20.0  ;;  %v15797_v4 = vmul.f32 100.0, %v15793_v45  ;;  %v15800_v7 = vadd.f32 %v18883_v47, %v4989_v57 }
 0x4f4   : > { %vm5129_vm6 = vcmp.gt.f32.partialorder %v15790_v62, 20.0 }
 0x4f5   : > { %9829 = vpow2.f32 %v5181_v5  ;;  %v5177_v29 = vmul.f32 1.442695, %v5097_v42  ;;  %v5100_v34 = vmin.f32 %v15797_v4, 20.0  ;;  %v15804_v38 = vmul.f32 100.0, %v15800_v7 }
 0x4f6   : > { %vm5132_vm8 = vcmp.gt.f32.partialorder %v15797_v4, 20.0 }
 0x4f7   : > { %9831 = vpow2.f32 %v5177_v29  ;;  %v5183_v12 = vmul.f32 1.442695, %v5100_v34  ;;  %v5098_v18 = vmin.f32 %v15804_v38, 20.0  ;;  %vm5130_vm1 = vcmp.gt.f32.partialorder %v15804_v38, 20.0 }
 0x4f9   : > { %9833 = vpow2.f32 %v5183_v12  ;;  %v5179_v52 = vmul.f32 1.442695, %v5098_v18 }
 0x4fb   : > { %9835 = vpow2.f32 %v5179_v52 }
 0x502   : > { %v9830_v49 = vpop.eup %9829 }
 0x503   : > { %v5371_v8 = vadd.f32 1.0, %v9830_v49  ;;  %v5374_v46 = vmul.f32 -0.5, %v9830_v49  ;;  %v5377_v61 = vand.u32 2147483647, %v9830_v49 }
 0x504   : > { %v9832_v51 = vpop.eup %9831 }
 0x505   : > { %9837 = vlog2.f32 %v5371_v8  ;;  %v5353_v6 = vadd.f32 1.0, %v9832_v51  ;;  %v5356_v54 = vmul.f32 -0.5, %v9832_v51  ;;  %v5375_v16 = vadd.f32 1.0, %v5374_v46 }
 0x506   : > { %v9834_v14 = vpop.eup %9833  ;;  %v5359_v23 = vand.u32 2147483647, %v9832_v51  ;;  %vm5378_vm10 = vcmp.lt.f32.partialorder %v5377_v61, 0.0004427343 }
 0x507   : > { %9839 = vlog2.f32 %v5353_v6  ;;  %v5380_v35 = vadd.f32 1.0, %v9834_v14  ;;  %v5383_v59 = vmul.f32 -0.5, %v9834_v14  ;;  %v5357_v31 = vadd.f32 1.0, %v5356_v54 }
 0x508   : > { %v9836_v24 = vpop.eup %9835  ;;  %v5386_v63 = vand.u32 2147483647, %v9834_v14  ;;  %v5376_v32 = vmul.f32 %v9830_v49, %v5375_v16  ;;  %vm5360_vm7 = vcmp.lt.f32.partialorder %v5359_v23, 0.0004427343 }
 0x509   : > { %9841 = vlog2.f32 %v5380_v35  ;;  %v5362_v11 = vadd.f32 1.0, %v9836_v24  ;;  %v5365_v33 = vmul.f32 -0.5, %v9836_v24  ;;  %v5384_v55 = vadd.f32 1.0, %v5383_v59 }
 0x50a   : > { %v5358_v26 = vmul.f32 %v9832_v51, %v5357_v31  ;;  %v5368_v21 = vand.u32 2147483647, %v9836_v24  ;;  %vm5387_vm11 = vcmp.lt.f32.partialorder %v5386_v63, 0.0004427343 }
 0x50b   : > { %9843 = vlog2.f32 %v5362_v11  ;;  %v5366_v43 = vadd.f32 1.0, %v5365_v33  ;;  %v5385_v28 = vmul.f32 %v9834_v14, %v5384_v55 }
 0x50c   : > { %vm5369_vm15 = vcmp.lt.f32.partialorder %v5368_v21, 0.0004427343 }
 0x50d   : > { %v5367_v20 = vmul.f32 %v9836_v24, %v5366_v43 }
 0x512   : > { %v9838_v60 = vpop.eup %9837 }
 0x513   : > { %v5373_v0 = vmul.f32 0.6931472, %v9838_v60 }
 0x514   : > { %v9840_v44 = vpop.eup %9839 }
 0x515   : > { %v5355_v2 = vmul.f32 0.6931472, %v9840_v44  ;;  %v5379_v13 = vsel %vm5378_vm10, %v5376_v32, %v5373_v0 }
 0x516   : > { %v9842_v10 = vpop.eup %9841  ;;  %v5515_v17 = vmul.f32 0.01, %v5379_v13 }
 0x517   : > { %v5382_v27 = vmul.f32 0.6931472, %v9842_v10  ;;  %v5361_v22 = vsel %vm5360_vm7, %v5358_v26, %v5355_v2 }
 0x518   : > { %v9844_v3 = vpop.eup %9843  ;;  %v5513_v19 = vmul.f32 0.01, %v5361_v22  ;;  %v5547_v9 = vsel %vm5131_vm3, %v15780_v40, %v5515_v17 }
 0x519   : > { %v5388_v41 = vsel %vm5387_vm11, %v5385_v28, %v5382_v27  ;;  %v5364_v53 = vmul.f32 0.6931472, %v9844_v3  ;;  %v10293_v27 = vld [vmem:[%s18038_s1 + $0x4] ss:$0 sm:$0xff] }
 0x51a   : > { %v5516_v1 = vmul.f32 0.01, %v5388_v41  ;;  %v5545_v25 = vsel %vm5129_vm6, %v15786_v36, %v5513_v19 }
 0x51b   : > { %v5370_v50 = vsel %vm5369_vm15, %v5367_v20, %v5364_v53 }
 0x51c   : > { %v5514_v15 = vmul.f32 0.01, %v5370_v50  ;;  %v5548_v56 = vsel %vm5132_vm8, %v15793_v45, %v5516_v1 }
 0x51d   : > { %v5570_v30 = vpack.c.bf16 %v5548_v56, %v5547_v9 }
 0x51e   : > { %v5546_v39 = vsel %vm5130_vm1, %v15800_v7, %v5514_v15 }
 0x51f   : > { %v5569_v58 = vpack.c.bf16 %v5546_v39, %v5545_v25 }
 0x521   : > { %9201 = vmatprep.mubr.msk.bf16.mxu1 %vm5613_vm9, %v5569_v58 }
 0x522   : > { %9202 = vmatmul.mubr.msk.bf16.gmra.mxu1 %vm5613_vm9, %v5570_v30 }
 0x574   : > { %v9167_v48 = vpop.f32.mrf.mxu0 }
 0x575   : > { %v15818_v62 = vadd.f32 %v9167_v48, %v18883_v47 }
 0x576   : > { %v5002_v45 = vpop.f32.mrf.mxu0 }
 0x577   : > { %v15821_v57 = vmul.f32 100.0, %v15818_v62  ;;  %v15824_v37 = vadd.f32 %v18883_v47, %v5002_v45 }
 0x578   : > { %v9168_v36 = vpop.f32.mrf.mxu0 }
 0x579   : > { %v5103_v40 = vmin.f32 %v15821_v57, 20.0  ;;  %v15828_v5 = vmul.f32 100.0, %v15824_v37  ;;  %v15831_v42 = vadd.f32 %v9168_v36, %v18883_v47  ;;  %vm5135_vm12 = vcmp.gt.f32.partialorder %v15821_v57, 20.0 }
 0x57a   : > { %v5005_v4 = vpop.f32.mrf.mxu0 }
 0x57b   : > { %v5189_v7 = vmul.f32 1.442695, %v5103_v40  ;;  %v5101_v29 = vmin.f32 %v15828_v5, 20.0  ;;  %v15835_v34 = vmul.f32 100.0, %v15831_v42  ;;  %v15838_v38 = vadd.f32 %v18883_v47, %v5005_v4 }
 0x57c   : > { %v9171_v12 = vpop.f32.mrf.mxu0  ;;  %vm5133_vm2 = vcmp.gt.f32.partialorder %v15828_v5, 20.0 }
 0x57d   : > { %9845 = vpow2.f32 %v5189_v7  ;;  %v5185_v18 = vmul.f32 1.442695, %v5101_v29  ;;  %v5104_v52 = vmin.f32 %v15835_v34, 20.0  ;;  %v15842_v49 = vmul.f32 100.0, %v15838_v38 }
 0x57e   : > { %v15845_v8 = vadd.f32 %v9171_v12, %v18883_v47  ;;  %v5018_v51 = vpop.f32.mrf.mxu0  ;;  %vm5136_vm5 = vcmp.gt.f32.partialorder %v15835_v34, 20.0 }
 0x57f   : > { %9847 = vpow2.f32 %v5185_v18  ;;  %v5191_v6 = vmul.f32 1.442695, %v5104_v52  ;;  %v15848_v14 = vadd.f32 %v18883_v47, %v5018_v51  ;;  %v5102_v35 = vmin.f32 %v15842_v49, 20.0 }
 0x580   : > { %v15852_v24 = vmul.f32 100.0, %v15845_v8  ;;  %v9172_v11 = vpop.f32.mrf.mxu0  ;;  %vm5134_vm13 = vcmp.gt.f32.partialorder %v15842_v49, 20.0 }
 0x581   : > { %9849 = vpow2.f32 %v5191_v6  ;;  %v15855_v46 = vmul.f32 100.0, %v15848_v14  ;;  %v15858_v54 = vadd.f32 %v9172_v11, %v18883_v47  ;;  %v5187_v59 = vmul.f32 1.442695, %v5102_v35 }
 0x582   : > { %v5107_v60 = vmin.f32 %v15852_v24, 20.0  ;;  %v5021_v16 = vpop.f32.mrf.mxu0  ;;  %vm5139_vm6 = vcmp.gt.f32.partialorder %v15852_v24, 20.0 }
 0x583   : > { %v5105_v31 = vmin.f32 %v15855_v46, 20.0  ;;  %v15863_v33 = vmul.f32 100.0, %v15858_v54  ;;  %v15866_v23 = vadd.f32 %v18883_v47, %v5021_v16  ;;  %9851 = vpow2.f32 %v5187_v59 }
 0x584   : > { %v5197_v55 = vmul.f32 1.442695, %v5107_v60  ;;  %v9175_v44 = vpop.f32.mrf.mxu0  ;;  %vm5137_vm1 = vcmp.gt.f32.partialorder %v15855_v46, 20.0 }
 0x585   : > { %v5193_v61 = vmul.f32 1.442695, %v5105_v31  ;;  %v5108_v63 = vmin.f32 %v15863_v33, 20.0  ;;  %v15870_v0 = vmul.f32 100.0, %v15866_v23  ;;  %v15873_v2 = vadd.f32 %v9175_v44, %v18883_v47 }
 0x586   : > { %9853 = vpow2.f32 %v5197_v55  ;;  %v5034_v10 = vpop.f32.mrf.mxu0  ;;  %vm5140_vm3 = vcmp.gt.f32.partialorder %v15863_v33, 20.0 }
 0x587   : > { %9855 = vpow2.f32 %v5193_v61  ;;  %v5199_v32 = vmul.f32 1.442695, %v5108_v63  ;;  %v5106_v26 = vmin.f32 %v15870_v0, 20.0  ;;  %v15877_v43 = vmul.f32 100.0, %v15873_v2 }
 0x588   : > { %v15882_v28 = vadd.f32 %v10293_v27, %v5034_v10  ;;  %v9176_v21 = vpop.f32.mrf.mxu0 }
 0x589   : > { %9857 = vpow2.f32 %v5199_v32  ;;  %v5195_v22 = vmul.f32 1.442695, %v5106_v26  ;;  %v5111_v47 = vmin.f32 %v15877_v43, 20.0  ;;  %v15888_v41 = vadd.f32 %v10293_v27, %v9176_v21 }
 0x58a   : > { %v9846_v3 = vpop.eup %9845  ;;  %v15886_v13 = vmul.f32 100.0, %v15882_v28  ;;  %v5037_v4 = vpop.f32.mrf.mxu0 }
 0x58b   : > { %v5407_v1 = vadd.f32 1.0, %v9846_v3  ;;  %9859 = vpow2.f32 %v5195_v22  ;;  %v5205_v20 = vmul.f32 1.442695, %v5111_v47  ;;  %v15894_v15 = vmul.f32 100.0, %v15888_v41 }
 0x58c   : > { %v9848_v53 = vpop.eup %9847  ;;  %v5109_v19 = vmin.f32 %v15886_v13, 20.0  ;;  %v5410_v56 = vmul.f32 -0.5, %v9846_v3  ;;  %v5413_v30 = vand.u32 2147483647, %v9846_v3  ;;  %v15908_v6 = vpop.f32.mrf.mxu0  ;;  %v15928_v22 = vadd.f32 %v10293_v27, %v5037_v4 }
 0x58d   : > { %9861 = vlog2.f32 %v5407_v1  ;;  %v5389_v17 = vadd.f32 1.0, %v9848_v53  ;;  %v5392_v58 = vmul.f32 -0.5, %v9848_v53  ;;  %v5112_v45 = vmin.f32 %v15894_v15, 20.0 }
 0x58e   : > { %v15891_v50 = vpop.eup %9849  ;;  %9863 = vpow2.f32 %v5205_v20  ;;  %v5201_v39 = vmul.f32 1.442695, %v5109_v19  ;;  %v5411_v40 = vadd.f32 1.0, %v5410_v56  ;;  %v5395_v29 = vand.u32 2147483647, %v9848_v53 }
 0x58f   : > { %9865 = vlog2.f32 %v5389_v17  ;;  %v5416_v25 = vadd.f32 1.0, %v15891_v50  ;;  %v5419_v12 = vmul.f32 -0.5, %v15891_v50  ;;  %v5393_v52 = vadd.f32 1.0, %v5392_v58 }
 0x590   : > { %v15897_v9 = vpop.eup %9851  ;;  %vm15912_vm0 = vcmp.lt.f32.partialorder %v5413_v30, 0.0004427343  ;;  %v5207_v60 = vmul.f32 1.442695, %v5112_v45  ;;  %v5412_v16 = vmul.f32 %v9846_v3, %v5411_v40  ;;  %v5422_v31 = vand.u32 2147483647, %v15891_v50  ;;  %v15930_v3 = vpop.f32.mrf.mxu0 }
 0x591   : > { %9867 = vlog2.f32 %v5416_v25  ;;  %v5398_v48 = vadd.f32 1.0, %v15897_v9  ;;  %v5401_v59 = vmul.f32 -0.5, %v15897_v9  ;;  %vm15921_vm14 = vcmp.lt.f32.partialorder %v5395_v29, 0.0004427343 }
 0x592   : > { %9869 = vpow2.f32 %v5201_v39  ;;  %v5420_v63 = vadd.f32 1.0, %v5419_v12  ;;  %v5394_v26 = vmul.f32 %v9848_v53, %v5393_v52  ;;  %v5404_v20 = vand.u32 2147483647, %v15897_v9  ;;  %v15951_v12 = vpop.f32.mrf.mxu0 }
 0x593   : > { %v15901_v36 = vpop.eup %9853  ;;  %9871 = vlog2.f32 %v5398_v48  ;;  %v5402_v1 = vadd.f32 1.0, %v5401_v59  ;;  %vm15937_vm4 = vcmp.lt.f32.partialorder %v5422_v31, 0.0004427343  ;;  %v15949_v29 = vmul.f32 100.0, %v15928_v22 }
 0x594   : > { %v15903_v7 = vpop.eup %9855  ;;  %v5443_v18 = vadd.f32 1.0, %v15901_v36  ;;  %v5446_v10 = vmul.f32 -0.5, %v15901_v36  ;;  %v5449_v27 = vand.u32 2147483647, %v15901_v36  ;;  %v5421_v40 = vmul.f32 %v15891_v50, %v5420_v63 }
 0x595   : > { %v5425_v51 = vadd.f32 1.0, %v15903_v7  ;;  %v5428_v32 = vmul.f32 -0.5, %v15903_v7  ;;  %v5431_v30 = vand.u32 2147483647, %v15903_v7  ;;  %vm15957_vm7 = vcmp.lt.f32.partialorder %v5404_v20, 0.0004427343  ;;  %v15989_v20 = vpop.f32.mrf.mxu0 }
 0x596   : > { %v15910_v35 = vpop.eup %9857  ;;  %9873 = vlog2.f32 %v5443_v18  ;;  %v5447_v39 = vadd.f32 1.0, %v5446_v10  ;;  %vm15968_vm10 = vcmp.lt.f32.partialorder %v5449_v27, 0.0004427343 }
 0x597   : > { %9875 = vlog2.f32 %v5425_v51  ;;  %v5452_v55 = vadd.f32 1.0, %v15910_v35  ;;  %v5455_v19 = vmul.f32 -0.5, %v15910_v35  ;;  %v5429_v58 = vadd.f32 1.0, %v5428_v32 }
 0x598   : > { %v15919_v44 = vpop.eup %9859  ;;  %v5458_v48 = vand.u32 2147483647, %v15910_v35  ;;  %v5403_v51 = vmul.f32 %v15897_v9, %v5402_v1  ;;  %v5448_v11 = vmul.f32 %v15901_v36, %v5447_v39  ;;  %vm15973_vm11 = vcmp.lt.f32.partialorder %v5431_v30, 0.0004427343 }
 0x599   : > { %9877 = vlog2.f32 %v5452_v55  ;;  %v5434_v21 = vadd.f32 1.0, %v15919_v44  ;;  %v5437_v4 = vmul.f32 -0.5, %v15919_v44  ;;  %v5456_v50 = vadd.f32 1.0, %v5455_v19 }
 0x59a   : > { %v9862_v47 = vpop.eup %9861  ;;  %9879 = vpow2.f32 %v5207_v60  ;;  %v5440_v55 = vand.u32 2147483647, %v15919_v44  ;;  %v5430_v9 = vmul.f32 %v15903_v7, %v5429_v58  ;;  %vm15977_vm15 = vcmp.lt.f32.partialorder %v5458_v48, 0.0004427343 }
 0x59b   : > { %v15934_v17 = vpop.eup %9863  ;;  %v5409_v56 = vmul.f32 0.6931472, %v9862_v47  ;;  %9881 = vlog2.f32 %v5434_v21  ;;  %v5438_v1 = vadd.f32 1.0, %v5437_v4  ;;  %v5110_v7 = vmin.f32 %v15949_v29, 20.0 }
 0x59c   : > { %v9866_v25 = vpop.eup %9865  ;;  %v5479_v63 = vadd.f32 1.0, %v15934_v17  ;;  %vm15992_vm8 = vcmp.lt.f32.partialorder %v5440_v55, 0.0004427343  ;;  %v5482_v59 = vmul.f32 -0.5, %v15934_v17 }
 0x59d   : > { %v5391_v45 = vmul.f32 0.6931472, %v9866_v25  ;;  %v5415_v52 = vsel %vm15912_vm0, %v5412_v16, %v5409_v56  ;;  %v5457_v25 = vmul.f32 %v15910_v35, %v5456_v50  ;;  %v5203_v30 = vmul.f32 1.442695, %v5110_v7 }
 0x59e   : > { %v9868_v18 = vpop.eup %9867  ;;  %v5519_v21 = vmul.f32 0.01, %v5415_v52  ;;  %9883 = vlog2.f32 %v5479_v63  ;;  %vm5138_vm0 = vcmp.gt.f32.partialorder %v15870_v0, 20.0 }
 0x59f   : > { %v5397_v60 = vsel %vm15921_vm14, %v5394_v26, %v5391_v45  ;;  %v5418_v31 = vmul.f32 0.6931472, %v9868_v18  ;;  %v15965_v10 = vpop.eup %9869  ;;  %v15984_v26 = vld [vmem:[%s18038_s1 + $0x5] ss:$0 sm:$0xff]  ;;  %9885 = vpow2.f32 %v5203_v30 }
 0x5a0   : > { %v9872_v36 = vpop.eup %9871  ;;  %v5517_v19 = vmul.f32 0.01, %v5397_v60  ;;  %v15998_v53 = vadd.f32 %v15908_v6, %v15984_v26  ;;  %v5461_v4 = vadd.f32 1.0, %v15965_v10  ;;  %v16008_v50 = vadd.f32 %v15984_v26, %v15930_v3  ;;  %v9191_v6 = vpop.f32.mrf.mxu0 }
 0x5a1   : > { %v5424_v47 = vsel %vm15937_vm4, %v5421_v40, %v5418_v31  ;;  %v5400_v27 = vmul.f32 0.6931472, %v9872_v36  ;;  %v5551_v34 = vsel %vm5135_vm12, %v15818_v62, %v5519_v21  ;;  %vm5143_vm4 = vcmp.gt.f32.partialorder %v15877_v43, 20.0 }
 0x5a2   : > { %v5520_v56 = vmul.f32 0.01, %v5424_v47  ;;  %v16026_v62 = vmul.f32 100.0, %v15998_v53  ;;  %9887 = vlog2.f32 %v5461_v4  ;;  %v16034_v32 = vmul.f32 100.0, %v16008_v50 }
 0x5a3   : > { %v9874_v39 = vpop.eup %9873  ;;  %v5406_v40 = vsel %vm15957_vm7, %v5403_v51, %v5400_v27  ;;  %v5439_v51 = vmul.f32 %v15919_v44, %v5438_v1  ;;  %v16039_v1 = vadd.f32 %v15951_v12, %v15984_v26  ;;  %v5485_v12 = vand.u32 2147483647, %v15934_v17 }
 0x5a4   : > { %v9876_v48 = vpop.eup %9875  ;;  %v5552_v45 = vsel %vm5136_vm5, %v15831_v42, %v5520_v56  ;;  %v5445_v35 = vmul.f32 0.6931472, %v9874_v39  ;;  %v5518_v18 = vmul.f32 0.01, %v5406_v40  ;;  %v5549_v42 = vsel %vm5133_vm2, %v15824_v37, %v5517_v19 }
 0x5a5   : > { %v5427_v52 = vmul.f32 0.6931472, %v9876_v48  ;;  %v5572_v5 = vpack.c.bf16 %v5552_v45, %v5551_v34  ;;  %v5857_v16 = vmin.f32 %v16026_v62, 20.0  ;;  %v5483_v19 = vadd.f32 1.0, %v5482_v59 }
 0x5a6   : > { %v9878_v60 = vpop.eup %9877  ;;  %v5550_v3 = vsel %vm5134_vm13, %v15838_v38, %v5518_v18  ;;  %v5451_v36 = vsel %vm15968_vm10, %v5448_v11, %v5445_v35  ;;  %v5855_v27 = vmin.f32 %v16034_v32, 20.0  ;;  %v16055_v30 = vmul.f32 100.0, %v16039_v1 }
 0x5a7   : > { %v16018_v31 = vpop.eup %9879  ;;  %v5433_v55 = vsel %vm15973_vm11, %v5430_v9, %v5427_v52  ;;  %v5454_v63 = vmul.f32 0.6931472, %v9878_v60  ;;  %v5571_v37 = vpack.c.bf16 %v5550_v3, %v5549_v42  ;;  %v5712_v9 = vpop.f32.mrf.mxu0  ;;  %v5523_v61 = vmul.f32 0.01, %v5451_v36 }
 0x5a8   : > { %v9882_v57 = vpop.eup %9881  ;;  %v5488_v44 = vadd.f32 1.0, %v16018_v31  ;;  %v5521_v21 = vmul.f32 0.01, %v5433_v55  ;;  %v5923_v56 = vmul.f32 1.442695, %v5857_v16  ;;  %v5491_v0 = vmul.f32 -0.5, %v16018_v31 }
 0x5a9   : > { %v5460_v49 = vsel %vm15977_vm15, %v5457_v25, %v5454_v63  ;;  %v5436_v38 = vmul.f32 0.6931472, %v9882_v57  ;;  %9205 = vmatprep.mubr.msk.bf16.mxu1 %vm5613_vm9, %v5571_v37  ;;  %v9192_v46 = vpop.f32.mrf.mxu0  ;;  %v5919_v48 = vmul.f32 1.442695, %v5855_v27  ;;  %v5555_v40 = vsel %vm5139_vm6, %v15845_v8, %v5523_v61 }
 0x5aa   : > { %v5524_v47 = vmul.f32 0.01, %v5460_v49  ;;  %9889 = vlog2.f32 %v5488_v44  ;;  %9206 = vmatmul.mubr.msk.bf16.gmra.mxu1 %vm5613_vm9, %v5572_v5  ;;  %v5553_v25 = vsel %vm5137_vm1, %v15848_v14, %v5521_v21  ;;  %v5464_v35 = vmul.f32 -0.5, %v15965_v10 }
 0x5ab   : > { %v5442_v11 = vsel %vm15992_vm8, %v5439_v51, %v5436_v38  ;;  %9891 = vpow2.f32 %v5923_v56  ;;  %v9884_v45 = vpop.eup %9883  ;;  %v5858_v14 = vmin.f32 %v16055_v30, 20.0  ;;  %v5494_v4 = vand.u32 2147483647, %v16018_v31  ;;  %v5715_v52 = vpop.f32.mrf.mxu0 }
 0x5ac   : > { %v5522_v7 = vmul.f32 0.01, %v5442_v11  ;;  %v5556_v39 = vsel %vm5140_vm3, %v15858_v54, %v5524_v47  ;;  %v16065_v54 = vadd.f32 %v15984_v26, %v15989_v20  ;;  %9893 = vpow2.f32 %v5919_v48  ;;  %v16072_v24 = vpop.eup %9885 }
 0x5ad   : > { %v16070_v18 = vadd.f32 %v9191_v6, %v15984_v26  ;;  %v5925_v8 = vmul.f32 1.442695, %v5858_v14  ;;  %v16078_v34 = vadd.f32 %v15984_v26, %v5712_v9  ;;  %v16081_v20 = vadd.f32 %v9192_v46, %v15984_v26  ;;  %v9195_v3 = vpop.f32.mrf.mxu0 }
 0x5ae   : > { %v5554_v58 = vsel %vm5138_vm0, %v15866_v23, %v5522_v7  ;;  %v5574_v23 = vpack.c.bf16 %v5556_v39, %v5555_v40  ;;  %v16075_v60 = vmul.f32 100.0, %v16065_v54  ;;  %v5481_v42 = vmul.f32 0.6931472, %v9884_v45 }
 0x5af   : > { %v5573_v33 = vpack.c.bf16 %v5554_v58, %v5553_v25  ;;  %vm16083_vm14 = vcmp.lt.f32.partialorder %v5485_v12, 0.0004427343  ;;  %v5492_v6 = vadd.f32 1.0, %v5491_v0  ;;  %v5470_v59 = vadd.f32 1.0, %v16072_v24  ;;  %v9888_v5 = vpop.eup %9887  ;;  %v5728_v7 = vpop.f32.mrf.mxu0 }
 0x5b0   : > { %v5484_v55 = vmul.f32 %v15934_v17, %v5483_v19  ;;  %9895 = vpow2.f32 %v5925_v8  ;;  %v5856_v63 = vmin.f32 %v16075_v60, 20.0  ;;  %v16092_v57 = vmul.f32 100.0, %v16070_v18 }
 0x5b1   : > { %9209 = vmatprep.mubr.msk.bf16.mxu1 %vm5613_vm9, %v5573_v33  ;;  %v5465_v37 = vadd.f32 1.0, %v5464_v35  ;;  %v5467_v44 = vand.u32 2147483647, %v15965_v10  ;;  %9897 = vlog2.f32 %v5470_v59  ;;  %v16096_v36 = vmul.f32 100.0, %v16078_v34 }
 0x5b2   : > { %9210 = vmatmul.mubr.msk.bf16.gmra.mxu1 %vm5613_vm9, %v5574_v23  ;;  %vm16098_vm5 = vcmp.lt.f32.partialorder %v5494_v4, 0.0004427343  ;;  %v5921_v38 = vmul.f32 1.442695, %v5856_v63  ;;  %v5861_v17 = vmin.f32 %v16092_v57, 20.0  ;;  %v16104_v9 = vmul.f32 100.0, %v16081_v20 }
 0x5b3   : > { %v5487_v47 = vsel %vm16083_vm14, %v5484_v55, %v5481_v42  ;;  %v5493_v11 = vmul.f32 %v16018_v31, %v5492_v6  ;;  %v5859_v16 = vmin.f32 %v16096_v36, 20.0  ;;  %v16112_v61 = vadd.f32 %v15984_v26, %v5715_v52 }
 0x5b4   : > { %9899 = vpow2.f32 %v5921_v38  ;;  %v5931_v12 = vmul.f32 1.442695, %v5861_v17  ;;  %v5862_v56 = vmin.f32 %v16104_v9, 20.0  ;;  %v5463_v27 = vmul.f32 0.6931472, %v9888_v5  ;;  %v9196_v38 = vpop.f32.mrf.mxu0 }
 0x5b5   : > { %v5927_v46 = vmul.f32 1.442695, %v5859_v16  ;;  %v16116_v25 = vmul.f32 100.0, %v16112_v61  ;;  %v16119_v39 = vadd.f32 %v9195_v3, %v15984_v26  ;;  %v5473_v31 = vmul.f32 -0.5, %v16072_v24 }
 0x5b6   : > { %9901 = vpow2.f32 %v5931_v12  ;;  %v5933_v58 = vmul.f32 1.442695, %v5862_v56  ;;  %v16123_v33 = vadd.f32 %v15984_v26, %v5728_v7  ;;  %v5466_v0 = vmul.f32 %v15965_v10, %v5465_v37 }
 0x5b7   : > { %v9890_v21 = vpop.eup %9889  ;;  %9903 = vpow2.f32 %v5927_v46  ;;  %v5860_v45 = vmin.f32 %v16116_v25, 20.0  ;;  %v5527_v35 = vmul.f32 0.01, %v5487_v47  ;;  %vm16131_vm12 = vcmp.lt.f32.partialorder %v5467_v44, 0.0004427343 }
 0x5b8   : > { %v5490_v19 = vmul.f32 0.6931472, %v9890_v21  ;;  %v16129_v40 = vpop.eup %9891  ;;  %9905 = vpow2.f32 %v5933_v58  ;;  %v16136_v23 = vmul.f32 100.0, %v16119_v39  ;;  %vm5141_vm2 = vcmp.gt.f32.partialorder %v15886_v13, 20.0 }
 0x5b9   : > { %v5469_v10 = vsel %vm16131_vm12, %v5466_v0, %v5463_v27  ;;  %v6001_v4 = vadd.f32 1.0, %v16129_v40  ;;  %v16143_v52 = vmul.f32 100.0, %v16123_v33  ;;  %v16145_v8 = vpop.eup %9893  ;;  %v5474_v51 = vadd.f32 1.0, %v5473_v31 }
 0x5ba   : > { %v5496_v48 = vsel %vm16098_vm5, %v5493_v11, %v5490_v19  ;;  %v5929_v6 = vmul.f32 1.442695, %v5860_v45  ;;  %v5865_v59 = vmin.f32 %v16136_v23, 20.0  ;;  %vm5144_vm13 = vcmp.gt.f32.partialorder %v15894_v15, 20.0 }
 0x5bb   : > { %v5528_v42 = vmul.f32 0.01, %v5496_v48  ;;  %vm5142_vm7 = vcmp.gt.f32.partialorder %v15949_v29, 20.0  ;;  %9907 = vlog2.f32 %v6001_v4  ;;  %v5983_v3 = vadd.f32 1.0, %v16145_v8  ;;  %v5731_v4 = vpop.f32.mrf.mxu0 }
 0x5bc   : > { %v16154_v55 = vsel %vm5143_vm4, %v15873_v2, %v5527_v35  ;;  %v5476_v63 = vand.u32 2147483647, %v16072_v24  ;;  %9909 = vpow2.f32 %v5929_v6  ;;  %v5939_v5 = vmul.f32 1.442695, %v5865_v59 }
 0x5bd   : > { %v9896_v37 = vpop.eup %9895  ;;  %v5525_v44 = vmul.f32 0.01, %v5469_v10  ;;  %v6004_v49 = vmul.f32 -0.5, %v16129_v40  ;;  %9911 = vlog2.f32 %v5983_v3  ;;  %v5863_v15 = vmin.f32 %v16143_v52, 20.0 }
 0x5be   : > { %v9898_v17 = vpop.eup %9897  ;;  %v5560_v21 = vsel %vm5144_vm13, %v15888_v41, %v5528_v42  ;;  %v5475_v47 = vmul.f32 %v16072_v24, %v5474_v51  ;;  %v6007_v2 = vand.u32 2147483647, %v16129_v40  ;;  %v6010_v43 = vadd.f32 1.0, %v9896_v37 }
 0x5bf   : > { %v5472_v11 = vmul.f32 0.6931472, %v9898_v17  ;;  %v5986_v16 = vmul.f32 -0.5, %v16145_v8  ;;  %9913 = vpow2.f32 %v5939_v5  ;;  %v5935_v7 = vmul.f32 1.442695, %v5863_v15 }
 0x5c0   : > { %vm5477_vm10 = vcmp.lt.f32.partialorder %v5476_v63, 0.0004427343  ;;  %9915 = vlog2.f32 %v6010_v43  ;;  %v6013_v19 = vmul.f32 -0.5, %v9896_v37  ;;  %v16164_v12 = vadd.f32 %v9196_v38, %v15984_v26 }
 0x5c1   : > { %v9900_v56 = vpop.eup %9899  ;;  %v5478_v27 = vsel %vm5477_vm10, %v5475_v47, %v5472_v11  ;;  %v6005_v46 = vadd.f32 1.0, %v6004_v49  ;;  %v5989_v41 = vand.u32 2147483647, %v16145_v8  ;;  %9917 = vpow2.f32 %v5935_v7 }
 0x5c2   : > { %v5557_v24 = vsel %vm5141_vm2, %v15882_v28, %v5525_v44  ;;  %v5576_v31 = vpack.c.bf16 %v5560_v21, %v16154_v55  ;;  %v5526_v58 = vmul.f32 0.01, %v5478_v27  ;;  %v5992_v0 = vadd.f32 1.0, %v9900_v56 }
 0x5c3   : > { %v16171_v48 = vpop.eup %9901  ;;  %vm16173_vm11 = vcmp.lt.f32.partialorder %v6007_v2, 0.0004427343  ;;  %v5987_v35 = vadd.f32 1.0, %v5986_v16  ;;  %v6016_v14 = vand.u32 2147483647, %v9896_v37  ;;  %v5995_v10 = vmul.f32 -0.5, %v9900_v56 }
 0x5c4   : > { %v16177_v42 = vpop.eup %9903  ;;  %v5558_v28 = vsel %vm5142_vm7, %v15928_v22, %v5526_v58  ;;  %v6014_v13 = vadd.f32 1.0, %v6013_v19  ;;  %9919 = vlog2.f32 %v5992_v0  ;;  %v6037_v51 = vadd.f32 1.0, %v16171_v48 }
 0x5c5   : > { %v16183_v6 = vpop.eup %9905  ;;  %v5575_v59 = vpack.c.bf16 %v5558_v28, %v5557_v24  ;;  %v6006_v3 = vmul.f32 %v16129_v40, %v6005_v46  ;;  %vm16186_vm15 = vcmp.lt.f32.partialorder %v5989_v41, 0.0004427343  ;;  %v16191_v63 = vmul.f32 100.0, %v16164_v12 }
 0x5c6   : > { %vm5889_vm8 = vcmp.gt.f32.partialorder %v16026_v62, 20.0  ;;  %9921 = vlog2.f32 %v6037_v51  ;;  %v6040_v22 = vmul.f32 -0.5, %v16171_v48  ;;  %v6019_v29 = vadd.f32 1.0, %v16177_v42 }
 0x5c7   : > { %v16197_v5 = vadd.f32 %v15984_v26, %v5731_v4  ;;  %vm5887_vm6 = vcmp.gt.f32.partialorder %v16034_v32, 20.0  ;;  %v5988_v40 = vmul.f32 %v16145_v8, %v5987_v35  ;;  %9213 = vmatprep.mubr.msk.bf16.mxu1 %vm5613_vm9, %v5575_v59  ;;  %v5996_v44 = vadd.f32 1.0, %v5995_v10 }
 0x5c8   : > { %v5998_v49 = vand.u32 2147483647, %v9900_v56  ;;  %v6046_v15 = vadd.f32 1.0, %v16183_v6  ;;  %v9908_v38 = vpop.eup %9907  ;;  %v6015_v17 = vmul.f32 %v9896_v37, %v6014_v13  ;;  %vm16203_vm1 = vcmp.lt.f32.partialorder %v6016_v14, 0.0004427343  ;;  %9214 = vmatmul.mubr.msk.bf16.gmra.mxu1 %vm5613_vm9, %v5576_v31 }
 0x5c9   : > { %9923 = vlog2.f32 %v6019_v29  ;;  %v6022_v47 = vmul.f32 -0.5, %v16177_v42  ;;  %v9910_v2 = vpop.eup %9909  ;;  %v6003_v43 = vmul.f32 0.6931472, %v9908_v38  ;;  %v6043_v8 = vand.u32 2147483647, %v16171_v48 }
 0x5ca   : > { %9925 = vlog2.f32 %v6046_v15  ;;  %v6049_v11 = vmul.f32 -0.5, %v16183_v6  ;;  %v9912_v16 = vpop.eup %9911  ;;  %v6041_v7 = vadd.f32 1.0, %v6040_v22  ;;  %v6028_v19 = vadd.f32 1.0, %v9910_v2  ;;  %v9199_v15 = vpop.f32.mrf.mxu1 }
 0x5cb   : > { %v5866_v37 = vmin.f32 %v16191_v63, 20.0  ;;  %v16213_v27 = vmul.f32 100.0, %v16197_v5  ;;  %v6009_v46 = vsel %vm16173_vm11, %v6006_v3, %v6003_v43  ;;  %v5985_v41 = vmul.f32 0.6931472, %v9912_v16 }
 0x5cc   : > { %v5997_v24 = vmul.f32 %v9900_v56, %v5996_v44  ;;  %vm16217_vm3 = vcmp.lt.f32.partialorder %v5998_v49, 0.0004427343  ;;  %v6031_v58 = vmul.f32 -0.5, %v9910_v2  ;;  %v16221_v0 = vpop.eup %9913  ;;  %v6273_v35 = vmul.f32 0.01, %v6009_v46  ;;  %v5744_v46 = vpop.f32.mrf.mxu1 }
 0x5cd   : > { %vm5890_vm0 = vcmp.gt.f32.partialorder %v16055_v30, 20.0  ;;  %v6023_v14 = vadd.f32 1.0, %v6022_v47  ;;  %v6025_v10 = vand.u32 2147483647, %v16177_v42  ;;  %9927 = vlog2.f32 %v6028_v19  ;;  %v9916_v4 = vpop.eup %9915 }
 0x5ce   : > { %v5991_v45 = vsel %vm16186_vm15, %v5988_v40, %v5985_v41  ;;  %vm16227_vm14 = vcmp.lt.f32.partialorder %v6043_v8, 0.0004427343  ;;  %v6050_v28 = vadd.f32 1.0, %v6049_v11  ;;  %v6052_v13 = vand.u32 2147483647, %v16183_v6  ;;  %v16233_v59 = vpop.eup %9917  ;;  %v9200_v56 = vpop.f32.mrf.mxu1 }
 0x5cf   : > { %v6073_v51 = vadd.f32 1.0, %v16221_v0  ;;  %v6271_v3 = vmul.f32 0.01, %v5991_v45  ;;  %v6012_v22 = vmul.f32 0.6931472, %v9916_v4  ;;  %vm5888_vm5 = vcmp.gt.f32.partialorder %v16075_v60, 20.0 }
 0x5d0   : > { %v6042_v29 = vmul.f32 %v16171_v48, %v6041_v7  ;;  %v6034_v44 = vand.u32 2147483647, %v9910_v2  ;;  %v6305_v55 = vsel %vm5889_vm8, %v15998_v53, %v6273_v35  ;;  %v6032_v40 = vadd.f32 1.0, %v6031_v58  ;;  %v5747_v62 = vpop.f32.mrf.mxu1 }
 0x5d1   : > { %9929 = vlog2.f32 %v6073_v51  ;;  %v5941_v49 = vmul.f32 1.442695, %v5866_v37  ;;  %v6303_v38 = vsel %vm5887_vm6, %v16008_v50, %v6271_v3  ;;  %v6018_v47 = vsel %vm16203_vm1, %v6015_v17, %v6012_v22  ;;  %v9920_v8 = vpop.eup %9919 }
 0x5d2   : > { %v6076_v43 = vmul.f32 -0.5, %v16221_v0  ;;  %v6055_v48 = vadd.f32 1.0, %v16233_v59  ;;  %v8988_v11 = vpack.c.bf16 %v6303_v38, %v6303_v38  ;;  %v6274_v16 = vmul.f32 0.01, %v6018_v47 }
 0x5d3   : > { %v6024_v53 = vmul.f32 %v16177_v42, %v6023_v14  ;;  %vm16248_vm4 = vcmp.lt.f32.partialorder %v6025_v10, 0.0004427343  ;;  %v5994_v7 = vmul.f32 0.6931472, %v9920_v8  ;;  %vm5893_vm12 = vcmp.gt.f32.partialorder %v16092_v57, 20.0  ;;  %v9922_v17 = vpop.eup %9921 }
 0x5d4   : > { %vm5891_vm2 = vcmp.gt.f32.partialorder %v16096_v36, 20.0  ;;  %v6051_v50 = vmul.f32 %v16183_v6, %v6050_v28  ;;  %vm16255_vm13 = vcmp.lt.f32.partialorder %v6052_v13, 0.0004427343  ;;  %9931 = vlog2.f32 %v6055_v48  ;;  %6431 = vrot.lane.b32.xlu1 %v8988_v11, %s10369_s23 }
 0x5d5   : > { %v8990_v21 = vpack.c.bf16 %v6305_v55, %v6305_v55  ;;  %v6033_v19 = vmul.f32 %v9910_v2, %v6032_v40  ;;  %vm16259_vm7 = vcmp.lt.f32.partialorder %v6034_v44, 0.0004427343  ;;  %9933 = vpow2.f32 %v5941_v49 }
 0x5d6   : > { %v5864_v37 = vmin.f32 %v16213_v27, 20.0  ;;  %v6000_v6 = vsel %vm16217_vm3, %v5997_v24, %v5994_v7  ;;  %v6039_v41 = vmul.f32 0.6931472, %v9922_v17  ;;  %v6077_v58 = vadd.f32 1.0, %v6076_v43  ;;  %v9924_v14 = vpop.eup %9923 }
 0x5d7   : > { %v6079_v35 = vand.u32 2147483647, %v16221_v0  ;;  %v6306_v2 = vsel %vm5890_vm0, %v16039_v1, %v6274_v16  ;;  %v6272_v10 = vmul.f32 0.01, %v6000_v6  ;;  %v6058_v4 = vmul.f32 -0.5, %v16233_v59  ;;  %v9926_v28 = vpop.eup %9925 }
 0x5d8   : > { %v5937_v45 = vmul.f32 1.442695, %v5864_v37  ;;  %v6045_v13 = vsel %vm16227_vm14, %v6042_v29, %v6039_v41  ;;  %v6021_v51 = vmul.f32 0.6931472, %v9924_v14  ;;  %vm5892_vm10 = vcmp.gt.f32.partialorder %v16116_v25, 20.0  ;;  %6435 = vrot.lane.b32.xlu1 %v8990_v21, %s10369_s23 }
 0x5d9   : > { %v16276_v24 = vadd.f32 %v9199_v15, %v15984_v26  ;;  %v16279_v31 = vadd.f32 %v15984_v26, %v5744_v46  ;;  %v6304_v1 = vsel %vm5888_vm5, %v16065_v54, %v6272_v10  ;;  %v6277_v30 = vmul.f32 0.01, %v6045_v13 }
 0x5da   : > { %v6048_v3 = vmul.f32 0.6931472, %v9926_v28  ;;  %9935 = vpow2.f32 %v5937_v45  ;;  %v8989_v22 = vpack.c.bf16 %v6304_v1, %v6304_v1  ;;  %v6027_v29 = vsel %vm16248_vm4, %v6024_v53, %v6021_v51  ;;  %v9928_v60 = vpop.eup %9927 }
 0x5db   : > { %vm5894_vm11 = vcmp.gt.f32.partialorder %v16104_v9, 20.0  ;;  %v16289_v44 = vmul.f32 100.0, %v16276_v24  ;;  %v16292_v55 = vmul.f32 100.0, %v16279_v31  ;;  %v6275_v54 = vmul.f32 0.01, %v6027_v29 }
 0x5dc   : > { %v6054_v40 = vsel %vm16255_vm13, %v6051_v50, %v6048_v3  ;;  %vm16296_vm15 = vcmp.lt.f32.partialorder %v6079_v35, 0.0004427343  ;;  %v6061_v15 = vand.u32 2147483647, %v16233_v59  ;;  %v6030_v38 = vmul.f32 0.6931472, %v9928_v60  ;;  %6433 = vrot.lane.b32.xlu0 %v8989_v22, %s10369_s23 }
 0x5dd   : > { %v6059_v47 = vadd.f32 1.0, %v6058_v4  ;;  %v5869_v43 = vmin.f32 %v16289_v44, 20.0  ;;  %v16304_v48 = vadd.f32 %v9200_v56, %v15984_v26  ;;  %v8991_v8 = vpack.c.bf16 %v6306_v2, %v6306_v2 }
 0x5de   : > { %v6309_v11 = vsel %vm5893_vm12, %v16070_v18, %v6277_v30  ;;  %v6307_v16 = vsel %vm5891_vm2, %v16078_v34, %v6275_v54  ;;  %v5867_v53 = vmin.f32 %v16292_v55, 20.0  ;;  %v9930_v7 = vpop.eup %9929  ;;  %v6278_v32 = vmul.f32 0.01, %v6054_v40 }
 0x5df   : > { %v8992_v50 = vpack.c.bf16 %v6307_v16, %v6307_v16  ;;  %v6036_v17 = vsel %vm16259_vm7, %v6033_v19, %v6030_v38  ;;  %v5947_v21 = vmul.f32 1.442695, %v5869_v43  ;;  %v6075_v46 = vmul.f32 0.6931472, %v9930_v7 }
 0x5e0   : > { %v6276_v37 = vmul.f32 0.01, %v6036_v17  ;;  %v5943_v6 = vmul.f32 1.442695, %v5867_v53  ;;  %v6078_v57 = vmul.f32 %v16221_v0, %v6077_v58  ;;  %6437 = vrot.lane.b32.xlu0 %v8991_v8, %s10369_s23  ;;  %v16319_v18 = vmul.f32 100.0, %v16304_v48 }
 0x5e1   : > { %6439 = vrot.lane.b32.xlu1 %v8992_v50, %s10369_s23  ;;  %9937 = vpow2.f32 %v5947_v21  ;;  %v16322_v34 = vadd.f32 %v15984_v26, %v5747_v62  ;;  %v9932_v36 = vpop.eup %9931  ;;  %v8994_v42 = vpack.c.bf16 %v6309_v11, %v6309_v11  ;;  %v6060_v41 = vmul.f32 %v16233_v59, %v6059_v47 }
 0x5e2   : > { %v6308_v19 = vsel %vm5892_vm10, %v16112_v61, %v6276_v37  ;;  %9939 = vpow2.f32 %v5943_v6  ;;  %v16328_v0 = vpop.eup %9933  ;;  %v6081_v35 = vsel %vm16296_vm15, %v6078_v57, %v6075_v46  ;;  %v6057_v14 = vmul.f32 0.6931472, %v9932_v36  ;;  %v9203_v9 = vpop.f32.mrf.mxu1 }
 0x5e3   : > { %v8993_v58 = vpack.c.bf16 %v6308_v19, %v6308_v19  ;;  %v5870_v2 = vmin.f32 %v16319_v18, 20.0  ;;  %v6310_v10 = vsel %vm5894_vm11, %v16081_v20, %v6278_v32  ;;  %vm6062_vm8 = vcmp.lt.f32.partialorder %v6061_v15, 0.0004427343 }
 0x5e4   : > { %v6082_v25 = vadd.f32 1.0, %v16328_v0  ;;  %v6063_v61 = vsel %vm6062_vm8, %v6060_v41, %v6057_v14  ;;  %v16340_v4 = vmul.f32 100.0, %v16322_v34  ;;  %v6281_v45 = vmul.f32 0.01, %v6081_v35  ;;  %v5760_v29 = vpop.f32.mrf.mxu1 }
 0x5e5   : > { %6441 = vrot.lane.b32.xlu0 %v8993_v58, %s10369_s23  ;;  %6443 = vrot.lane.b32.xlu1 %v8994_v42, %s10369_s23  ;;  %v5949_v59 = vmul.f32 1.442695, %v5870_v2  ;;  %v6279_v28 = vmul.f32 0.01, %v6063_v61  ;;  %v8995_v51 = vpack.c.bf16 %v6310_v10, %v6310_v10  ;;  %vm5895_vm6 = vcmp.gt.f32.partialorder %v16143_v52, 20.0 }
 0x5e6   : > { %9941 = vlog2.f32 %v6082_v25  ;;  %v5868_v20 = vmin.f32 %v16340_v4, 20.0  ;;  %vm5897_vm1 = vcmp.gt.f32.partialorder %v16136_v23, 20.0  ;;  %v16351_v22 = vadd.f32 %v9203_v9, %v15984_v26  ;;  %v9204_v23 = vpop.f32.mrf.mxu1 }
 0x5e7   : > { %v16342_v13 = vpop.eup %9935  ;;  %9943 = vpow2.f32 %v5949_v59  ;;  %v6311_v1 = vsel %vm5895_vm6, %v16123_v33, %v6279_v28  ;;  %v6313_v52 = vsel %vm5897_vm1, %v16119_v39, %v6281_v45  ;;  %v16355_v60 = vadd.f32 %v15984_v26, %v5760_v29 }
 0x5e8   : > { %v6064_v30 = vadd.f32 1.0, %v16342_v13  ;;  %v8996_v3 = vpack.c.bf16 %v6311_v1, %v6311_v1  ;;  %v5945_v56 = vmul.f32 1.442695, %v5868_v20  ;;  %v16359_v33 = vmul.f32 100.0, %v16351_v22  ;;  %v5763_v15 = vpop.f32.mrf.mxu1 }
 0x5e9   : > { %6445 = vrot.lane.b32.xlu0 %v8995_v51, %s10369_s23  ;;  %v16362_v54 = vmul.f32 100.0, %v16355_v60  ;;  %v16365_v40 = vadd.f32 %v9204_v23, %v15984_v26  ;;  %v8998_v49 = vpack.c.bf16 %v6313_v52, %v6313_v52  ;;  %v6085_v47 = vmul.f32 -0.5, %v16328_v0 }
 0x5ea   : > { %9945 = vlog2.f32 %v6064_v30  ;;  %6447 = vrot.lane.b32.xlu1 %v8996_v3, %s10369_s23  ;;  %v5873_v39 = vmin.f32 %v16359_v33, 20.0  ;;  %v6067_v16 = vmul.f32 -0.5, %v16342_v13  ;;  %v16378_v7 = vadd.f32 %v15984_v26, %v5763_v15 }
 0x5eb   : > { %9947 = vpow2.f32 %v5945_v56  ;;  %v5871_v43 = vmin.f32 %v16362_v54, 20.0  ;;  %v16371_v8 = vmul.f32 100.0, %v16365_v40  ;;  %v6086_v21 = vadd.f32 1.0, %v6085_v47 }
 0x5ec   : > { %v5955_v62 = vmul.f32 1.442695, %v5873_v39  ;;  %v6088_v37 = vand.u32 2147483647, %v16328_v0  ;;  %v6068_v6 = vadd.f32 1.0, %v6067_v16  ;;  %v16384_v36 = vmul.f32 100.0, %v16378_v7 }
 0x5ed   : > { %v5951_v32 = vmul.f32 1.442695, %v5871_v43  ;;  %v5874_v17 = vmin.f32 %v16371_v8, 20.0  ;;  %v6070_v19 = vand.u32 2147483647, %v16342_v13  ;;  %v6087_v58 = vmul.f32 %v16328_v0, %v6086_v21 }
 0x5ee   : > { %v9938_v38 = vpop.eup %9937  ;;  %6451 = vrot.lane.b32.xlu1 %v8998_v49, %s10369_s23  ;;  %v5872_v35 = vmin.f32 %v16384_v36, 20.0  ;;  %vm6089_vm3 = vcmp.lt.f32.partialorder %v6088_v37, 0.0004427343  ;;  %v6069_v2 = vmul.f32 %v16342_v13, %v6068_v6  ;;  %vm5896_vm14 = vcmp.gt.f32.partialorder %v16213_v27, 20.0 }
 0x5ef   : > { %v16373_v11 = vpop.eup %9939  ;;  %v6109_v53 = vadd.f32 1.0, %v9938_v38  ;;  %v5957_v57 = vmul.f32 1.442695, %v5874_v17  ;;  %v6112_v10 = vmul.f32 -0.5, %v9938_v38  ;;  %vm6071_vm0 = vcmp.lt.f32.partialorder %v6070_v19, 0.0004427343 }
 0x5f0   : > { %v6091_v50 = vadd.f32 1.0, %v16373_v11  ;;  %v6094_v45 = vmul.f32 -0.5, %v16373_v11  ;;  %v5953_v28 = vmul.f32 1.442695, %v5872_v35  ;;  %v6115_v13 = vand.u32 2147483647, %v9938_v38 }
 0x5f1   : > { %9949 = vlog2.f32 %v6109_v53  ;;  %v6113_v1 = vadd.f32 1.0, %v6112_v10  ;;  %v6097_v56 = vand.u32 2147483647, %v16373_v11  ;;  %vm5898_vm5 = vcmp.gt.f32.partialorder %v16191_v63, 20.0 }
 0x5f2   : > { %9951 = vlog2.f32 %v6091_v50  ;;  %v6095_v30 = vadd.f32 1.0, %v6094_v45  ;;  %vm6116_vm4 = vcmp.lt.f32.partialorder %v6115_v13, 0.0004427343  ;;  %vm5899_vm2 = vcmp.gt.f32.partialorder %v16292_v55, 20.0 }
 0x5f3   : > { %v9942_v46 = vpop.eup %9941  ;;  %9953 = vpow2.f32 %v5955_v62  ;;  %v6114_v15 = vmul.f32 %v9938_v38, %v6113_v1  ;;  %vm6098_vm12 = vcmp.lt.f32.partialorder %v6097_v56, 0.0004427343  ;;  %vm5901_vm13 = vcmp.gt.f32.partialorder %v16289_v44, 20.0 }
 0x5f4   : > { %v16386_v42 = vpop.eup %9943  ;;  %v6084_v26 = vmul.f32 0.6931472, %v9942_v46  ;;  %9955 = vpow2.f32 %v5951_v32  ;;  %v6096_v16 = vmul.f32 %v16373_v11, %v6095_v30  ;;  %vm5900_vm11 = vcmp.gt.f32.partialorder %v16340_v4, 20.0 }
 0x5f5   : > { %v6118_v41 = vadd.f32 1.0, %v16386_v42  ;;  %9957 = vpow2.f32 %v5957_v57  ;;  %v6121_v47 = vmul.f32 -0.5, %v16386_v42  ;;  %v6124_v46 = vand.u32 2147483647, %v16386_v42 }
 0x5f6   : > { %v6090_v61 = vsel %vm6089_vm3, %v6087_v58, %v6084_v26  ;;  %vm5902_vm15 = vcmp.gt.f32.partialorder %v16319_v18, 20.0  ;;  %vm5903_vm1 = vcmp.gt.f32.partialorder %v16362_v54, 20.0  ;;  %vm5905_vm3 = vcmp.gt.f32.partialorder %v16359_v33, 20.0 }
 0x5f7   : > { %v9946_v14 = vpop.eup %9945  ;;  %9959 = vlog2.f32 %v6118_v41  ;;  %v6282_v20 = vmul.f32 0.01, %v6090_v61  ;;  %v6122_v37 = vadd.f32 1.0, %v6121_v47  ;;  %vm6125_vm7 = vcmp.lt.f32.partialorder %v6124_v46, 0.0004427343 }
 0x5f8   : > { %v16393_v25 = vpop.eup %9947  ;;  %v6066_v59 = vmul.f32 0.6931472, %v9946_v14  ;;  %9961 = vpow2.f32 %v5953_v28 }
 0x5f9   : > { %v6100_v51 = vadd.f32 1.0, %v16393_v25  ;;  %v6314_v49 = vsel %vm5898_vm5, %v16164_v12, %v6282_v20  ;;  %v6103_v63 = vmul.f32 -0.5, %v16393_v25  ;;  %v6106_v41 = vand.u32 2147483647, %v16393_v25 }
 0x5fa   : > { %v6072_v0 = vsel %vm6071_vm0, %v6069_v2, %v6066_v59  ;;  %v8999_v62 = vpack.c.bf16 %v6314_v49, %v6314_v49  ;;  %v6123_v14 = vmul.f32 %v16386_v42, %v6122_v37  ;;  %vm5904_vm5 = vcmp.gt.f32.partialorder %v16384_v36, 20.0 }
 0x5fb   : > { %v6280_v9 = vmul.f32 0.01, %v6072_v0  ;;  %9963 = vlog2.f32 %v6100_v51  ;;  %v6104_v26 = vadd.f32 1.0, %v6103_v63  ;;  %vm6107_vm10 = vcmp.lt.f32.partialorder %v6106_v41, 0.0004427343 }
 0x5fd   : > { %v6312_v3 = vsel %vm5896_vm14, %v16197_v5, %v6280_v9  ;;  %v6105_v61 = vmul.f32 %v16393_v25, %v6104_v26 }
 0x5fe   : > { %v9950_v29 = vpop.eup %9949  ;;  %v8997_v52 = vpack.c.bf16 %v6312_v3, %v6312_v3 }
 0x5ff   : > { %v9952_v23 = vpop.eup %9951  ;;  %v6111_v39 = vmul.f32 0.6931472, %v9950_v29 }
 0x600   : > { %v16403_v43 = vpop.eup %9953  ;;  %v6093_v27 = vmul.f32 0.6931472, %v9952_v23  ;;  %6449 = vrot.lane.b32.xlu0 %v8997_v52, %s10369_s23 }
 0x601   : > { %v16407_v5 = vpop.eup %9955  ;;  %v6117_v53 = vsel %vm6116_vm4, %v6114_v15, %v6111_v39  ;;  %v6145_v12 = vadd.f32 1.0, %v16403_v43  ;;  %v6148_v59 = vmul.f32 -0.5, %v16403_v43  ;;  %v6151_v9 = vand.u32 2147483647, %v16403_v43 }
 0x602   : > { %v6099_v38 = vsel %vm6098_vm12, %v6096_v16, %v6093_v27  ;;  %v6127_v50 = vadd.f32 1.0, %v16407_v5  ;;  %v16412_v32 = vpop.eup %9957  ;;  %v6285_v17 = vmul.f32 0.01, %v6117_v53  ;;  %v6130_v28 = vmul.f32 -0.5, %v16407_v5 }
 0x603   : > { %v6283_v21 = vmul.f32 0.01, %v6099_v38  ;;  %9965 = vlog2.f32 %v6145_v12  ;;  %v6154_v58 = vadd.f32 1.0, %v16412_v32  ;;  %v6149_v0 = vadd.f32 1.0, %v6148_v59 }
 0x604   : > { %v9960_v11 = vpop.eup %9959  ;;  %6453 = vrot.lane.b32.xlu0 %v8999_v62, %s10369_s23  ;;  %9967 = vlog2.f32 %v6127_v50  ;;  %v6317_v55 = vsel %vm5901_vm13, %v16276_v24, %v6285_v17  ;;  %v6131_v25 = vadd.f32 1.0, %v6130_v28  ;;  %v6157_v1 = vmul.f32 -0.5, %v16412_v32  ;;  %v9606_v17 = vld [vmem:[%s18041_s4 + $0x30] sm:$0xff]  }
 0x605   : > { %v6315_v6 = vsel %vm5899_vm2, %v16279_v31, %v6283_v21  ;;  %v6120_v57 = vmul.f32 0.6931472, %v9960_v11  ;;  %v16421_v35 = vpop.eup %9961  ;;  %9969 = vlog2.f32 %v6154_v58  ;;  %v9002_v45 = vpack.c.bf16 %v6317_v55, %v6317_v55  ;;  %v9612_v58 = vld [vmem:[%s18041_s4] sm:$0xff]  }
 0x606   : > { %v9000_v19 = vpack.c.bf16 %v6315_v6, %v6315_v6  ;;  %v6136_v31 = vadd.f32 1.0, %v16421_v35  ;;  %v6133_v30 = vand.u32 2147483647, %v16407_v5  ;;  %v6139_v29 = vmul.f32 -0.5, %v16421_v35  ;;  %v9607_v6 = vld [vmem:[%s18041_s4 + $0x28] sm:$0xff]  }
 0x607   : > { %v6126_v10 = vsel %vm6125_vm7, %v6123_v14, %v6120_v57  ;;  %v6150_v23 = vmul.f32 %v16403_v43, %v6149_v0  ;;  %vm6152_vm8 = vcmp.lt.f32.partialorder %v6151_v9, 0.0004427343  ;;  %v6132_v49 = vmul.f32 %v16407_v5, %v6131_v25 }
 0x608   : > { %v9964_v2 = vpop.eup %9963  ;;  %6455 = vrot.lane.b32.xlu1 %v9000_v19, %s10369_s23  ;;  %9971 = vlog2.f32 %v6136_v31  ;;  %v6286_v42 = vmul.f32 0.01, %v6126_v10  ;;  %v6158_v39 = vadd.f32 1.0, %v6157_v1  ;;  %vm6134_vm6 = vcmp.lt.f32.partialorder %v6133_v30, 0.0004427343  ;;  %v9608_v19 = vld [vmem:[%s18041_s4 + $0x20] sm:$0xff]  }
 0x609   : > { %v6102_v44 = vmul.f32 0.6931472, %v9964_v2  ;;  %v6160_v47 = vand.u32 2147483647, %v16412_v32  ;;  %v6140_v16 = vadd.f32 1.0, %v6139_v29  ;;  %vm5906_vm4 = vcmp.gt.f32.partialorder %v16371_v8, 20.0 }
 0x60a   : > { %v6318_v56 = vsel %vm5902_vm15, %v16304_v48, %v6286_v42  ;;  %v9605_v48 = vld [vmem:[%s18041_s4 + $0x38] sm:$0xff]   ;;  %v6142_v12 = vand.u32 2147483647, %v16421_v35  ;;  %v6159_v62 = vmul.f32 %v16412_v32, %v6158_v39  ;;  %v9610_v8 = vld [vmem:[%s18041_s4 + $0x10] sm:$0xff]   ;;  %vm6527_vm12 = vcmask 519480  }
 0x60b   : > { %v6108_v24 = vsel %vm6107_vm10, %v6105_v61, %v6102_v44  ;;  %v9003_v18 = vpack.c.bf16 %v6318_v56, %v6318_v56  ;;  %9217 = vmatprep.subr.bf16.mxu1 %v9605_v48  ;;  %vm6161_vm0 = vcmp.lt.f32.partialorder %v6160_v47, 0.0004427343  ;;  %v6141_v46 = vmul.f32 %v16421_v35, %v6140_v16 }
 0x60c   : > { %v6284_v51 = vmul.f32 0.01, %v6108_v24  ;;  %6459 = vrot.lane.b32.xlu1 %v9002_v45, %s10369_s23  ;;  %9218 = vmatpush3.bf16.msra.mxu1 %v9605_v48  ;;  %vm6143_vm14 = vcmp.lt.f32.partialorder %v6142_v12, 0.0004427343 }
 0x60d   : > { %9219 = vmatprep.subr.bf16.mxu1 %v9606_v17 }
 0x60e   : > { %v6316_v20 = vsel %vm5900_vm11, %v16322_v34, %v6284_v51 }
 0x60f   : > { %v9001_v13 = vpack.c.bf16 %v6316_v20, %v6316_v20  ;;  %v16496_v20 = vld [vmem:[%s18038_s1 + $0x5] ss:$0 sm:$0xff] }
 0x610   : > { %v9966_v3 = vpop.eup %9965  ;;  %9220 = vmatpush3.bf16.msra.mxu1 %v9606_v17 }
 0x611   : > { %v9968_v52 = vpop.eup %9967  ;;  %v6147_v4 = vmul.f32 0.6931472, %v9966_v3  ;;  %6457 = vrot.lane.b32.xlu0 %v9001_v13, %s10369_s23  ;;  %9221 = vmatprep.subr.bf16.mxu1 %v9607_v6 }
 0x612   : > { %v6129_v34 = vmul.f32 0.6931472, %v9968_v52  ;;  %v9970_v53 = vpop.eup %9969 }
 0x613   : > { %v6153_v15 = vsel %vm6152_vm8, %v6150_v23, %v6147_v4  ;;  %v6156_v5 = vmul.f32 0.6931472, %v9970_v53 }
 0x614   : > { %v6135_v27 = vsel %vm6134_vm6, %v6132_v49, %v6129_v34  ;;  %v6289_v43 = vmul.f32 0.01, %v6153_v15  ;;  %9222 = vmatpush3.bf16.msra.mxu1 %v9607_v6 }
 0x615   : > { %v6287_v63 = vmul.f32 0.01, %v6135_v27  ;;  %6461 = vrot.lane.b32.xlu0 %v9003_v18, %s10369_s23  ;;  %v9972_v38 = vpop.eup %9971  ;;  %v6162_v37 = vsel %vm6161_vm0, %v6159_v62, %v6156_v5  ;;  %9223 = vmatprep.subr.bf16.mxu1 %v9608_v19 }
 0x616   : > { %v6138_v11 = vmul.f32 0.6931472, %v9972_v38  ;;  %v6321_v54 = vsel %vm5905_vm3, %v16351_v22, %v6289_v43  ;;  %v6290_v33 = vmul.f32 0.01, %v6162_v37 }
 0x617   : > { %v6319_v50 = vsel %vm5903_vm1, %v16355_v60, %v6287_v63  ;;  %v9006_v57 = vpack.c.bf16 %v6321_v54, %v6321_v54 }
 0x618   : > { %v9004_v21 = vpack.c.bf16 %v6319_v50, %v6319_v50  ;;  %v6144_v32 = vsel %vm6143_vm14, %v6141_v46, %v6138_v11  ;;  %v6322_v41 = vsel %vm5906_vm4, %v16365_v40, %v6290_v33  ;;  %9224 = vmatpush3.bf16.msra.mxu1 %v9608_v19  ;;  %v9611_v40 = vld [vmem:[%s18041_s4 + $0x8] sm:$0xff]  }
 0x619   : > { %v6288_v60 = vmul.f32 0.01, %v6144_v32  ;;  %v9007_v36 = vpack.c.bf16 %v6322_v41, %v6322_v41 }
 0x61a   : > { %6463 = vrot.lane.b32.xlu1 %v9004_v21, %s10369_s23 }
 0x61b   : > { %v6320_v26 = vsel %vm5904_vm5, %v16378_v7, %v6288_v60  ;;  %v9609_v7 = vld [vmem:[%s18041_s4 + $0x18] sm:$0xff]  }
 0x61c   : > { %v9005_v22 = vpack.c.bf16 %v6320_v26, %v6320_v26  ;;  %9225 = vmatprep.subr.bf16.mxu1 %v9609_v7 }
 0x61d   : > { %9226 = vmatpush3.bf16.msra.mxu1 %v9609_v7 }
 0x61e   : > { %6467 = vrot.lane.b32.xlu1 %v9006_v57, %s10369_s23  ;;  %6465 = vrot.lane.b32.xlu0 %v9005_v22, %s10369_s23 }
 0x61f   : > { %9227 = vmatprep.subr.bf16.mxu1 %v9610_v8 }
 0x621   : > { %9228 = vmatpush3.bf16.msra.mxu1 %v9610_v8 }
 0x622   : > { %6469 = vrot.lane.b32.xlu0 %v9007_v36, %s10369_s23  ;;  %9229 = vmatprep.subr.bf16.mxu1 %v9611_v40 }
 0x625   : > { %9230 = vmatpush3.bf16.msra.mxu1 %v9611_v40 }
 0x626   : > { %9231 = vmatprep.subr.bf16.mxu1 %v9612_v58 }
 0x629   : > { %9232 = vmatpush3.bf16.msra.mxu1 %v9612_v58 }
 0x646   : > { %v6432_v35 = vpop.permute.xlu1 %6431 }
 0x647   : > { %6528 = vst.msk [vmem:[#allocation2] sm:$0xf] %vm6527_vm12, %v6432_v35 }
 0x64a   : > { %v6436_v55 = vpop.permute.xlu1 %6435 }
 0x64b   : > { %6530 = vst.msk [vmem:[#allocation2 + $0x8] sm:$0xf] %vm6527_vm12, %v6436_v55 }
 0x64e   : > { %v6434_v14 = vpop.permute.xlu0 %6433 }
 0x64f   : > { %6529 = vst.msk [vmem:[#allocation2 + $0x4] sm:$0xf] %vm6527_vm12, %v6434_v14 }
 0x652   : > { %v6438_v2 = vpop.permute.xlu0 %6437 }
 0x653   : > { %v6440_v31 = vpop.permute.xlu1 %6439  ;;  %6531 = vst.msk [vmem:[#allocation2 + $0xc] sm:$0xf] %vm6527_vm12, %v6438_v2 }
 0x654   : > { %6532 = vst.msk [vmem:[#allocation2 + $0x10] sm:$0xf] %vm6527_vm12, %v6440_v31 }
 0x656   : > { %v9613_v61 = vld [vmem:[#allocation2] sm:$0xff]  }
 0x657   : > { %v6442_v10 = vpop.permute.xlu0 %6441  ;;  %v6444_v44 = vpop.permute.xlu1 %6443  ;;  %9233 = vmatprep.mubr.bf16.mxu1 %v9613_v61 }
 0x658   : > { %6533 = vst.msk [vmem:[#allocation2 + $0x14] sm:$0xf] %vm6527_vm12, %v6442_v10  ;;  %6534 = vst.msk [vmem:[#allocation2 + $0x18] sm:$0xf] %vm6527_vm12, %v6444_v44 }
 0x65a   : > { %v9614_v45 = vld [vmem:[#allocation2 + $0x8] sm:$0xff]  }
 0x65b   : > { %v6446_v59 = vpop.permute.xlu0 %6445  ;;  %9234 = vmatmul.mubr.bf16.vlgmr.msra.gmra.mxu1 %v9614_v45 }
 0x65c   : > { %6535 = vst.msk [vmem:[#allocation2 + $0x1c] sm:$0xf] %vm6527_vm12, %v6446_v59  ;;  %v6448_v28 = vpop.permute.xlu1 %6447 }
 0x65d   : > { %6536 = vst.msk [vmem:[#allocation2 + $0x20] sm:$0xf] %vm6527_vm12, %v6448_v28 }
 0x65f   : > { %v9615_v24 = vld [vmem:[#allocation2 + $0x10] sm:$0xff]  }
 0x660   : > { %9237 = vmatprep.mubr.bf16.mxu1 %v9615_v24  ;;  %v6452_v42 = vpop.permute.xlu1 %6451 }
 0x661   : > { %6538 = vst.msk [vmem:[#allocation2 + $0x28] sm:$0xf] %vm6527_vm12, %v6452_v42 }
 0x663   : > { %v9616_v51 = vld [vmem:[#allocation2 + $0x18] sm:$0xff]  }
 0x664   : > { %9238 = vmatmul.mubr.bf16.gmra.mxu1 %v9616_v51 }
 0x66a   : > { %v9207_v0 = vpop.f32.mrf.mxu1 }
 0x66b   : > { %v16499_v9 = vadd.f32 %v16496_v20, %v9207_v0 }
 0x66c   : > { %v5776_v25 = vpop.f32.mrf.mxu1 }
 0x66d   : > { %v16502_v1 = vmul.f32 100.0, %v16499_v9  ;;  %v16505_v13 = vadd.f32 %v16496_v20, %v5776_v25 }
 0x66e   : > { %v9208_v30 = vpop.f32.mrf.mxu1 }
 0x66f   : > { %v5877_v3 = vmin.f32 %v16502_v1, 20.0  ;;  %v16509_v56 = vmul.f32 100.0, %v16505_v13  ;;  %v16512_v29 = vadd.f32 %v16496_v20, %v9208_v30  ;;  %vm5909_vm13 = vcmp.gt.f32.partialorder %v16502_v1, 20.0 }
 0x670   : > { %v5779_v52 = vpop.f32.mrf.mxu1 }
 0x671   : > { %v5963_v4 = vmul.f32 1.442695, %v5877_v3  ;;  %v5875_v23 = vmin.f32 %v16509_v56, 20.0  ;;  %v16516_v34 = vmul.f32 100.0, %v16512_v29  ;;  %v16519_v49 = vadd.f32 %v16496_v20, %v5779_v52 }
 0x672   : > { %v9211_v39 = vpop.f32.mrf.mxu1  ;;  %v6450_v18 = vpop.permute.xlu0 %6449  ;;  %vm5907_vm10 = vcmp.gt.f32.partialorder %v16509_v56, 20.0 }
 0x673   : > { %9973 = vpow2.f32 %v5963_v4  ;;  %v5959_v15 = vmul.f32 1.442695, %v5875_v23  ;;  %v5878_v47 = vmin.f32 %v16516_v34, 20.0  ;;  %6537 = vst.msk [vmem:[#allocation2 + $0x24] sm:$0xf] %vm6527_vm12, %v6450_v18  ;;  %v16524_v48 = vmul.f32 100.0, %v16519_v49 }
 0x674   : > { %v16527_v27 = vadd.f32 %v16496_v20, %v9211_v39  ;;  %v5792_v16 = vpop.f32.mrf.mxu1  ;;  %vm5910_vm3 = vcmp.gt.f32.partialorder %v16516_v34, 20.0 }
 0x675   : > { %9975 = vpow2.f32 %v5959_v15  ;;  %v5965_v53 = vmul.f32 1.442695, %v5878_v47  ;;  %v16530_v43 = vadd.f32 %v16496_v20, %v5792_v16  ;;  %v5876_v63 = vmin.f32 %v16524_v48, 20.0 }
 0x676   : > { %v16534_v12 = vmul.f32 100.0, %v16527_v27  ;;  %v9212_v5 = vpop.f32.mrf.mxu1  ;;  %v6454_v62 = vpop.permute.xlu0 %6453  ;;  %vm5908_vm6 = vcmp.gt.f32.partialorder %v16524_v48, 20.0 }
 0x677   : > { %9977 = vpow2.f32 %v5965_v53  ;;  %v16537_v38 = vmul.f32 100.0, %v16530_v43  ;;  %v16540_v50 = vadd.f32 %v16496_v20, %v9212_v5  ;;  %6539 = vst.msk [vmem:[#allocation2 + $0x2c] sm:$0xf] %vm6527_vm12, %v6454_v62  ;;  %v5961_v17 = vmul.f32 1.442695, %v5876_v63 }
 0x678   : > { %v5881_v21 = vmin.f32 %v16534_v12, 20.0  ;;  %v5795_v37 = vpop.f32.mrf.mxu1  ;;  %vm5913_vm4 = vcmp.gt.f32.partialorder %v16534_v12, 20.0 }
 0x679   : > { %v5879_v11 = vmin.f32 %v16537_v38, 20.0  ;;  %v16546_v46 = vmul.f32 100.0, %v16540_v50  ;;  %v16549_v54 = vadd.f32 %v16496_v20, %v5795_v37  ;;  %9979 = vpow2.f32 %v5961_v17 }
 0x67a   : > { %v5971_v32 = vmul.f32 1.442695, %v5881_v21  ;;  %v9617_v33 = vld [vmem:[#allocation2 + $0x20] sm:$0xff]   ;;  %v6456_v60 = vpop.permute.xlu1 %6455  ;;  %vm5911_vm0 = vcmp.gt.f32.partialorder %v16537_v38, 20.0 }
 0x67b   : > { %v5967_v6 = vmul.f32 1.442695, %v5879_v11  ;;  %v5882_v57 = vmin.f32 %v16546_v46, 20.0  ;;  %v16553_v26 = vmul.f32 100.0, %v16549_v54  ;;  %6540 = vst.msk [vmem:[#allocation2 + $0x30] sm:$0xf] %vm6527_vm12, %v6456_v60  ;;  %9241 = vmatprep.mubr.bf16.mxu1 %v9617_v33 }
 0x67c   : > { %9981 = vpow2.f32 %v5971_v32 }
 0x67d   : > { %9983 = vpow2.f32 %v5967_v6  ;;  %v5973_v22 = vmul.f32 1.442695, %v5882_v57  ;;  %v5880_v19 = vmin.f32 %v16553_v26, 20.0 }
 0x67e   : > { %v9618_v41 = vld [vmem:[#allocation2 + $0x28] sm:$0xff]   ;;  %v6460_v7 = vpop.permute.xlu1 %6459 }
 0x67f   : > { %9985 = vpow2.f32 %v5973_v22  ;;  %v5969_v36 = vmul.f32 1.442695, %v5880_v19  ;;  %6542 = vst.msk [vmem:[#allocation2 + $0x38] sm:$0xf] %vm6527_vm12, %v6460_v7  ;;  %9242 = vmatmul.mubr.bf16.gmra.mxu1 %v9618_v41 }
 0x680   : > { %v9974_v8 = vpop.eup %9973 }
 0x681   : > { %v6181_v40 = vadd.f32 1.0, %v9974_v8  ;;  %9987 = vpow2.f32 %v5969_v36  ;;  %v6184_v2 = vmul.f32 -0.5, %v9974_v8  ;;  %v6187_v44 = vand.u32 2147483647, %v9974_v8 }
 0x682   : > { %v9976_v58 = vpop.eup %9975 }
 0x683   : > { %9989 = vlog2.f32 %v6181_v40  ;;  %v6163_v35 = vadd.f32 1.0, %v9976_v58  ;;  %v6458_v55 = vpop.permute.xlu0 %6457  ;;  %v6166_v61 = vmul.f32 -0.5, %v9976_v58  ;;  %v6185_v42 = vadd.f32 1.0, %v6184_v2 }
 0x684   : > { %v9978_v14 = vpop.eup %9977  ;;  %6541 = vst.msk [vmem:[#allocation2 + $0x34] sm:$0xf] %vm6527_vm12, %v6458_v55  ;;  %v6169_v0 = vand.u32 2147483647, %v9976_v58  ;;  %vm16565_vm2 = vcmp.lt.f32.partialorder %v6187_v44, 0.0004427343 }
 0x685   : > { %9991 = vlog2.f32 %v6163_v35  ;;  %v6190_v31 = vadd.f32 1.0, %v9978_v14  ;;  %v6193_v45 = vmul.f32 -0.5, %v9978_v14  ;;  %v6167_v52 = vadd.f32 1.0, %v6166_v61 }
 0x686   : > { %v9980_v10 = vpop.eup %9979  ;;  %v6196_v15 = vand.u32 2147483647, %v9978_v14  ;;  %v6186_v21 = vmul.f32 %v9974_v8, %v6185_v42  ;;  %vm16578_vm7 = vcmp.lt.f32.partialorder %v6169_v0, 0.0004427343 }
 0x687   : > { %9993 = vlog2.f32 %v6190_v31  ;;  %v6462_v59 = vpop.permute.xlu0 %6461  ;;  %v6172_v28 = vadd.f32 1.0, %v9980_v10  ;;  %v6175_v25 = vmul.f32 -0.5, %v9980_v10  ;;  %v6194_v18 = vadd.f32 1.0, %v6193_v45 }
 0x688   : > { %6543 = vst.msk [vmem:[#allocation2 + $0x3c] sm:$0xf] %vm6527_vm12, %v6462_v59  ;;  %v9215_v23 = vpop.f32.mrf.mxu1  ;;  %v6178_v53 = vand.u32 2147483647, %v9980_v10  ;;  %v6168_v33 = vmul.f32 %v9976_v58, %v6167_v52  ;;  %vm16588_vm11 = vcmp.lt.f32.partialorder %v6196_v15, 0.0004427343 }
 0x689   : > { %v16560_v24 = vpop.eup %9981  ;;  %9995 = vlog2.f32 %v6172_v28  ;;  %v6176_v11 = vadd.f32 1.0, %v6175_v25  ;;  %v16586_v41 = vmul.f32 %v9978_v14, %v6194_v18  ;;  %v16594_v8 = vadd.f32 %v16496_v20, %v9215_v23 }
 0x68a   : > { %v16562_v51 = vpop.eup %9983  ;;  %v6217_v30 = vadd.f32 1.0, %v16560_v24  ;;  %v6220_v63 = vmul.f32 -0.5, %v16560_v24  ;;  %v5808_v62 = vpop.f32.mrf.mxu1  ;;  %v6223_v60 = vand.u32 2147483647, %v16560_v24  ;;  %vm16596_vm15 = vcmp.lt.f32.partialorder %v6178_v53, 0.0004427343 }
 0x68b   : > { %v6199_v4 = vadd.f32 1.0, %v16562_v51  ;;  %v9619_v47 = vld [vmem:[#allocation2 + $0x30] sm:$0xff]   ;;  %v6202_v32 = vmul.f32 -0.5, %v16562_v51  ;;  %v6205_v36 = vand.u32 2147483647, %v16562_v51  ;;  %v16601_v14 = vadd.f32 %v16496_v20, %v5808_v62 }
 0x68c   : > { %v16570_v39 = vpop.eup %9985  ;;  %9997 = vlog2.f32 %v6217_v30  ;;  %v6464_v16 = vpop.permute.xlu1 %6463  ;;  %9245 = vmatprep.mubr.bf16.mxu1 %v9619_v47  ;;  %v6221_v55 = vadd.f32 1.0, %v6220_v63  ;;  %v6177_v31 = vmul.f32 %v9980_v10, %v6176_v11  ;;  %v16605_v61 = vmul.f32 100.0, %v16594_v8 }
 0x68d   : > { %9999 = vlog2.f32 %v6199_v4  ;;  %v6226_v5 = vadd.f32 1.0, %v16570_v39  ;;  %6544 = vst.msk [vmem:[#allocation2 + $0x40] sm:$0xf] %vm6527_vm12, %v6464_v16  ;;  %v9216_v57 = vpop.f32.mrf.mxu1  ;;  %v6203_v44 = vadd.f32 1.0, %v6202_v32  ;;  %vm16612_vm8 = vcmp.lt.f32.partialorder %v6223_v60, 0.0004427343 }
 0x68e   : > { %v16575_v17 = vpop.eup %9987  ;;  %v16608_v59 = vadd.f32 %v16496_v20, %v9216_v57  ;;  %v6229_v25 = vmul.f32 -0.5, %v16570_v39  ;;  %v16618_v10 = vmul.f32 100.0, %v16601_v14  ;;  %vm16622_vm1 = vcmp.lt.f32.partialorder %v6205_v36, 0.0004427343 }
 0x68f   : > { %10001 = vlog2.f32 %v6226_v5  ;;  %v6208_v6 = vadd.f32 1.0, %v16575_v17  ;;  %v9620_v22 = vld [vmem:[#allocation2 + $0x38] sm:$0xff]   ;;  %v5885_v3 = vmin.f32 %v16605_v61, 20.0  ;;  %v6222_v47 = vmul.f32 %v16560_v24, %v6221_v55 }
 0x690   : > { %v9990_v19 = vpop.eup %9989  ;;  %v6468_v40 = vpop.permute.xlu1 %6467  ;;  %9246 = vmatmul.mubr.bf16.gmra.mxu1 %v9620_v22  ;;  %v16628_v23 = vmul.f32 100.0, %v16608_v59  ;;  %v5883_v16 = vmin.f32 %v16618_v10, 20.0  ;;  %v6211_v63 = vmul.f32 -0.5, %v16575_v17  ;;  %v6230_v24 = vadd.f32 1.0, %v6229_v25 }
 0x691   : > { %v6183_v58 = vmul.f32 0.6931472, %v9990_v19  ;;  %10003 = vlog2.f32 %v6208_v6  ;;  %6546 = vst.msk [vmem:[#allocation2 + $0x48] sm:$0xf] %vm6527_vm12, %v6468_v40  ;;  %v6466_v45 = vpop.permute.xlu0 %6465  ;;  %v5979_v5 = vmul.f32 1.442695, %v5885_v3 }
 0x692   : > { %v9992_v2 = vpop.eup %9991  ;;  %6545 = vst.msk [vmem:[#allocation2 + $0x44] sm:$0xf] %vm6527_vm12, %v6466_v45  ;;  %v5886_v62 = vmin.f32 %v16628_v23, 20.0  ;;  %v5975_v60 = vmul.f32 1.442695, %v5883_v16  ;;  %v6212_v56 = vadd.f32 1.0, %v6211_v63  ;;  %v6231_v0 = vmul.f32 %v16570_v39, %v6230_v24 }
 0x693   : > { %v6189_v28 = vsel %vm16565_vm2, %v6186_v21, %v6183_v58  ;;  %v6165_v42 = vmul.f32 0.6931472, %v9992_v2  ;;  %v5811_v21 = vpop.f32.mrf.mxu1  ;;  %10005 = vpow2.f32 %v5979_v5  ;;  %v6214_v25 = vand.u32 2147483647, %v16575_v17 }
 0x694   : > { %v9994_v30 = vpop.eup %9993  ;;  %v6293_v52 = vmul.f32 0.01, %v6189_v28  ;;  %10007 = vpow2.f32 %v5975_v60  ;;  %v5981_v19 = vmul.f32 1.442695, %v5886_v62  ;;  %v16650_v36 = vadd.f32 %v16496_v20, %v5811_v21 }
 0x695   : > { %v6171_v18 = vsel %vm16578_vm7, %v6168_v33, %v6165_v42  ;;  %v6192_v15 = vmul.f32 0.6931472, %v9994_v30  ;;  %v6470_v11 = vpop.permute.xlu0 %6469  ;;  %v6232_v33 = vand.u32 2147483647, %v16570_v39  ;;  %v6213_v48 = vmul.f32 %v16575_v17, %v6212_v56 }
 0x696   : > { %v6291_v53 = vmul.f32 0.01, %v6171_v18  ;;  %v9996_v32 = vpop.eup %9995  ;;  %v6325_v37 = vsel %vm5909_vm13, %v16499_v9, %v6293_v52  ;;  %6547 = vst.msk [vmem:[#allocation2 + $0x4c] sm:$0xf] %vm6527_vm12, %v6470_v11  ;;  %10009 = vpow2.f32 %v5981_v19  ;;  %v16660_v35 = vmul.f32 100.0, %v16650_v36 }
 0x697   : > { %v6198_v57 = vsel %vm16588_vm11, %v16586_v41, %v6192_v15  ;;  %v6174_v22 = vmul.f32 0.6931472, %v9996_v32  ;;  %v9010_v42 = vpack.c.bf16 %v6325_v37, %v6325_v37  ;;  %vm16672_vm14 = vcmp.lt.f32.partialorder %v6232_v33, 0.0004427343 }
 0x698   : > { %v6323_v6 = vsel %vm5907_vm10, %v16505_v13, %v6291_v53  ;;  %v6204_v13 = vmul.f32 %v16562_v51, %v6203_v44  ;;  %v6294_v7 = vmul.f32 0.01, %v6198_v57  ;;  %v5884_v15 = vmin.f32 %v16660_v35, 20.0 }
 0x699   : > { %v9998_v1 = vpop.eup %9997  ;;  %v9008_v9 = vpack.c.bf16 %v6323_v6, %v6323_v6  ;;  %v6180_v58 = vsel %vm16596_vm15, %v6177_v31, %v6174_v22  ;;  %v9621_v2 = vld [vmem:[#allocation2 + $0x40] sm:$0xff]   ;;  %vm6215_vm5 = vcmp.lt.f32.partialorder %v6214_v25, 0.0004427343  ;;  %vm5912_vm2 = vcmp.gt.f32.partialorder %v16553_v26, 20.0 }
 0x69a   : > { %v10000_v40 = vpop.eup %9999  ;;  %v6219_v55 = vmul.f32 0.6931472, %v9998_v1  ;;  %v6292_v41 = vmul.f32 0.01, %v6180_v58  ;;  %9249 = vmatprep.mubr.bf16.mxu1 %v9621_v2  ;;  %vm5914_vm13 = vcmp.gt.f32.partialorder %v16546_v46, 20.0  ;;  %vm5915_vm11 = vcmp.gt.f32.partialorder %v16618_v10, 20.0 }
 0x69b   : > { %v6201_v45 = vmul.f32 0.6931472, %v10000_v40  ;;  %6471 = vrot.lane.b32.xlu1 %v9008_v9, %s10369_s23  ;;  %vm5917_vm15 = vcmp.gt.f32.partialorder %v16605_v61, 20.0 }
 0x69c   : > { %v10002_v28 = vpop.eup %10001  ;;  %v6225_v20 = vsel %vm16612_vm8, %v6222_v47, %v6219_v55  ;;  %v6324_v51 = vsel %vm5908_vm6, %v16519_v49, %v6292_v41  ;;  %v6326_v47 = vsel %vm5910_vm3, %v16512_v29, %v6294_v7  ;;  %v5977_v29 = vmul.f32 1.442695, %v5884_v15 }
 0x69d   : > { %v6297_v31 = vmul.f32 0.01, %v6225_v20  ;;  %v6207_v44 = vsel %vm16622_vm1, %v6204_v13, %v6201_v45  ;;  %v6228_v30 = vmul.f32 0.6931472, %v10002_v28  ;;  %v9009_v3 = vpack.c.bf16 %v6324_v51, %v6324_v51  ;;  %v9622_v4 = vld [vmem:[#allocation2 + $0x48] sm:$0xff]  }
 0x69e   : > { %v10004_v52 = vpop.eup %10003  ;;  %v6295_v18 = vmul.f32 0.01, %v6207_v44  ;;  %9250 = vmatmul.mubr.bf16.gmra.mxu1 %v9622_v4  ;;  %v9011_v17 = vpack.c.bf16 %v6326_v47, %v6326_v47  ;;  %10011 = vpow2.f32 %v5977_v29  ;;  %vm5916_vm1 = vcmp.gt.f32.partialorder %v16660_v35, 20.0  ;;  %v9629_v29 = vld [vmem:[%s18042_s5 + $0x18] sm:$0xff]  }
 0x69f   : > { %v6210_v49 = vmul.f32 0.6931472, %v10004_v52  ;;  %6475 = vrot.lane.b32.xlu1 %v9010_v42, %s10369_s23  ;;  %v6234_v53 = vsel %vm16672_vm14, %v6231_v0, %v6228_v30  ;;  %6473 = vrot.lane.b32.xlu0 %v9009_v3, %s10369_s23  ;;  %v6329_v5 = vsel %vm5913_vm4, %v16527_v27, %v6297_v31  ;;  %vm5918_vm3 = vcmp.gt.f32.partialorder %v16628_v23, 20.0  ;;  %v9632_v23 = vld [vmem:[%s18042_s5] sm:$0xff]  }
 0x6a0   : > { %v6327_v39 = vsel %vm5911_vm0, %v16530_v43, %v6295_v18  ;;  %v6298_v21 = vmul.f32 0.01, %v6234_v53  ;;  %v10006_v38 = vpop.eup %10005  ;;  %v9014_v11 = vpack.c.bf16 %v6329_v5, %v6329_v5  ;;  %9265 = vmatprep.subr.bf16.mxu0 %v9629_v29 }
 0x6a1   : > { %v9012_v34 = vpack.c.bf16 %v6327_v39, %v6327_v39  ;;  %v6216_v63 = vsel %vm6215_vm5, %v6213_v48, %v6210_v49  ;;  %v10008_v32 = vpop.eup %10007  ;;  %v6253_v37 = vadd.f32 1.0, %v10006_v38  ;;  %v6256_v60 = vmul.f32 -0.5, %v10006_v38  ;;  %9266 = vmatpush3.bf16.msra.mxu0 %v9629_v29 }
 0x6a2   : > { %v6296_v62 = vmul.f32 0.01, %v6216_v63  ;;  %v6330_v27 = vsel %vm5914_vm13, %v16540_v50, %v6298_v21  ;;  %v6235_v24 = vadd.f32 1.0, %v10008_v32  ;;  %v6238_v57 = vmul.f32 -0.5, %v10008_v32 }
 0x6a3   : > { %6479 = vrot.lane.b32.xlu1 %v9012_v34, %s10369_s23  ;;  %6477 = vrot.lane.b32.xlu0 %v9011_v17, %s10369_s23  ;;  %v10010_v33 = vpop.eup %10009  ;;  %10013 = vlog2.f32 %v6253_v37  ;;  %v9015_v26 = vpack.c.bf16 %v6330_v27, %v6330_v27  ;;  %v6257_v22 = vadd.f32 1.0, %v6256_v60  ;;  %v6259_v50 = vand.u32 2147483647, %v10006_v38 }
 0x6a4   : > { %v6328_v43 = vsel %vm5912_vm2, %v16549_v54, %v6296_v62  ;;  %10015 = vlog2.f32 %v6235_v24  ;;  %v6262_v54 = vadd.f32 1.0, %v10010_v33  ;;  %v6239_v1 = vadd.f32 1.0, %v6238_v57 }
 0x6a5   : > { %v9013_v12 = vpack.c.bf16 %v6328_v43, %v6328_v43  ;;  %v6241_v9 = vand.u32 2147483647, %v10008_v32  ;;  %v6258_v55 = vmul.f32 %v10006_v38, %v6257_v22  ;;  %v6265_v13 = vmul.f32 -0.5, %v10010_v33  ;;  %v16729_v38 = vld [vmem:[%s18038_s1 + $0x6] ss:$0 sm:$0xff] }
 0x6a6   : > { %10017 = vlog2.f32 %v6262_v54  ;;  %vm6260_vm7 = vcmp.lt.f32.partialorder %v6259_v50, 0.0004427343  ;;  %v6240_v2 = vmul.f32 %v10008_v32, %v6239_v1  ;;  %v6268_v51 = vand.u32 2147483647, %v10010_v33 }
 0x6a7   : > { %6483 = vrot.lane.b32.xlu1 %v9014_v11, %s10369_s23  ;;  %6481 = vrot.lane.b32.xlu0 %v9013_v12, %s10369_s23  ;;  %vm6242_vm10 = vcmp.lt.f32.partialorder %v6241_v9, 0.0004427343  ;;  %v6266_v25 = vadd.f32 1.0, %v6265_v13 }
 0x6a8   : > { %vm6269_vm8 = vcmp.lt.f32.partialorder %v6268_v51, 0.0004427343 }
 0x6a9   : > { %v6267_v0 = vmul.f32 %v10010_v33, %v6266_v25 }
 0x6ab   : > { %6485 = vrot.lane.b32.xlu0 %v9015_v26, %s10369_s23  ;;  %v10012_v6 = vpop.eup %10011 }
 0x6ac   : > { %v6244_v46 = vadd.f32 1.0, %v10012_v6  ;;  %v6247_v41 = vmul.f32 -0.5, %v10012_v6  ;;  %v6250_v3 = vand.u32 2147483647, %v10012_v6 }
 0x6ae   : > { %10019 = vlog2.f32 %v6244_v46  ;;  %v6248_v30 = vadd.f32 1.0, %v6247_v41  ;;  %vm6251_vm6 = vcmp.lt.f32.partialorder %v6250_v3, 0.0004427343 }
 0x6b0   : > { %v10014_v19 = vpop.eup %10013  ;;  %v6249_v49 = vmul.f32 %v10012_v6, %v6248_v30 }
 0x6b1   : > { %v10016_v40 = vpop.eup %10015  ;;  %v6255_v58 = vmul.f32 0.6931472, %v10014_v19 }
 0x6b2   : > { %v6237_v56 = vmul.f32 0.6931472, %v10016_v40 }
 0x6b3   : > { %v6261_v7 = vsel %vm6260_vm7, %v6258_v55, %v6255_v58  ;;  %v10018_v45 = vpop.eup %10017 }
 0x6b4   : > { %v6243_v28 = vsel %vm6242_vm10, %v6240_v2, %v6237_v56  ;;  %v6301_v42 = vmul.f32 0.01, %v6261_v7  ;;  %v6264_v44 = vmul.f32 0.6931472, %v10018_v45 }
 0x6b5   : > { %v6299_v20 = vmul.f32 0.01, %v6243_v28 }
 0x6b6   : > { %v6333_v18 = vsel %vm5917_vm15, %v16594_v8, %v6301_v42  ;;  %v6270_v47 = vsel %vm6269_vm8, %v6267_v0, %v6264_v44 }
 0x6b7   : > { %v6331_v31 = vsel %vm5915_vm11, %v16601_v14, %v6299_v20  ;;  %v9018_v10 = vpack.c.bf16 %v6333_v18, %v6333_v18  ;;  %v6302_v14 = vmul.f32 0.01, %v6270_v47 }
 0x6b8   : > { %v9016_v52 = vpack.c.bf16 %v6331_v31, %v6331_v31 }
 0x6b9   : > { %v6334_v39 = vsel %vm5918_vm3, %v16608_v59, %v6302_v14  ;;  %v9631_v59 = vld [vmem:[%s18042_s5 + $0x8] sm:$0xff]  }
 0x6ba   : > { %6487 = vrot.lane.b32.xlu1 %v9016_v52, %s10369_s23  ;;  %v9019_v53 = vpack.c.bf16 %v6334_v39, %v6334_v39 }
 0x6bb   : > { %v10020_v15 = vpop.eup %10019 }
 0x6bc   : > { %v6246_v16 = vmul.f32 0.6931472, %v10020_v15 }
 0x6be   : > { %v6252_v48 = vsel %vm6251_vm6, %v6249_v49, %v6246_v16  ;;  %6491 = vrot.lane.b32.xlu1 %v9018_v10, %s10369_s23 }
 0x6bf   : > { %v6300_v4 = vmul.f32 0.01, %v6252_v48 }
 0x6c1   : > { %v6332_v61 = vsel %vm5916_vm1, %v16650_v36, %v6300_v4  ;;  %v9630_v36 = vld [vmem:[%s18042_s5 + $0x10] sm:$0xff]  }
 0x6c2   : > { %v9017_v8 = vpack.c.bf16 %v6332_v61, %v6332_v61  ;;  %9267 = vmatprep.subr.bf16.mxu0 %v9630_v36 }
 0x6c3   : > { %9268 = vmatpush3.bf16.msra.mxu0 %v9630_v36 }
 0x6c4   : > { %6489 = vrot.lane.b32.xlu0 %v9017_v8, %s10369_s23  ;;  %9269 = vmatprep.subr.bf16.mxu0 %v9631_v59 }
 0x6c7   : > { %9270 = vmatpush3.bf16.msra.mxu0 %v9631_v59 }
 0x6c8   : > { %6493 = vrot.lane.b32.xlu0 %v9019_v53, %s10369_s23  ;;  %9271 = vmatprep.subr.bf16.mxu0 %v9632_v23  ;;  %s10301_s23 = sshll.u32 %s10370_s22, 4  ;;  %s10302_s23 = int_to_ptr.vmem [resolvable:$false] %s10301_s23 }
 0x6c9   : > { %s10303_s29 = scalar_lea.vmem %s10302_s23, 8192  ;;  %p10304_p0 = scmp.lt.s32.totalorder %s17990_s21, %s10302_s23 }
 0x6ca   : > { %p10305_p1 = scmp.lt.s32.totalorder %s10303_s29, %s10297_s20 }
 0x6cb   : > { %9272 = vmatpush3.bf16.msra.mxu0 %v9632_v23 }
 0x6cc   : > { %p10306_p2 = por %p10305_p1, %p10304_p0 }
 0x6ce   : > { %p10307_p3 = pnand %p10306_p2, %p10300_p13 }
 0x70d   : > { %v6472_v35 = vpop.permute.xlu1 %6471 }
 0x70e   : > { %6548 = vst.msk [vmem:[#allocation2 + $0x50] sm:$0xf] %vm6527_vm12, %v6472_v35 }
 0x711   : > { %v6476_v34 = vpop.permute.xlu1 %6475  ;;  %v6474_v63 = vpop.permute.xlu0 %6473 }
 0x712   : > { %6550 = vst.msk [vmem:[#allocation2 + $0x58] sm:$0xf] %vm6527_vm12, %v6476_v34  ;;  %6549 = vst.msk [vmem:[#allocation2 + $0x54] sm:$0xf] %vm6527_vm12, %v6474_v63 }
 0x715   : > { %v6480_v17 = vpop.permute.xlu1 %6479  ;;  %v6478_v5 = vpop.permute.xlu0 %6477 }
 0x716   : > { %6552 = vst.msk [vmem:[#allocation2 + $0x60] sm:$0xf] %vm6527_vm12, %v6480_v17  ;;  %6551 = vst.msk [vmem:[#allocation2 + $0x5c] sm:$0xf] %vm6527_vm12, %v6478_v5 }
 0x719   : > { %v6484_v62 = vpop.permute.xlu1 %6483  ;;  %v9623_v21 = vld [vmem:[#allocation2 + $0x50] sm:$0xff]   ;;  %v6482_v43 = vpop.permute.xlu0 %6481 }
 0x71a   : > { %6554 = vst.msk [vmem:[#allocation2 + $0x68] sm:$0xf] %vm6527_vm12, %v6484_v62  ;;  %6553 = vst.msk [vmem:[#allocation2 + $0x64] sm:$0xf] %vm6527_vm12, %v6482_v43  ;;  %9253 = vmatprep.mubr.bf16.mxu1 %v9623_v21 }
 0x71b   : > { %v9235_v11 = vpop.f32.mrf.mxu1 }
 0x71c   : > { %v16732_v37 = vadd.f32 %v9235_v11, %v16729_v38 }
 0x71d   : > { %v9624_v12 = vld [vmem:[#allocation2 + $0x58] sm:$0xff]   ;;  %v6486_v32 = vpop.permute.xlu0 %6485  ;;  %v6790_v27 = vpop.f32.mrf.mxu1 }
 0x71e   : > { %6555 = vst.msk [vmem:[#allocation2 + $0x6c] sm:$0xf] %vm6527_vm12, %v6486_v32  ;;  %9254 = vmatmul.mubr.bf16.gmra.mxu1 %v9624_v12  ;;  %v16736_v24 = vmul.f32 100.0, %v16732_v37  ;;  %v16739_v33 = vadd.f32 %v16729_v38, %v6790_v27 }
 0x71f   : > { %v9236_v54 = vpop.f32.mrf.mxu1 }
 0x720   : > { %v6951_v60 = vmin.f32 %v16736_v24, 20.0  ;;  %v16743_v6 = vmul.f32 100.0, %v16739_v33  ;;  %v16746_v57 = vadd.f32 %v9236_v54, %v16729_v38  ;;  %vm6983_vm2 = vcmp.gt.f32.partialorder %v16736_v24, 20.0 }
 0x721   : > { %v9625_v26 = vld [vmem:[#allocation2 + $0x60] sm:$0xff]   ;;  %v6793_v46 = vpop.f32.mrf.mxu1 }
 0x722   : > { %9257 = vmatprep.mubr.bf16.mxu1 %v9625_v26  ;;  %v7017_v22 = vmul.f32 1.442695, %v6951_v60  ;;  %v6949_v50 = vmin.f32 %v16743_v6, 20.0  ;;  %v16750_v1 = vmul.f32 100.0, %v16746_v57  ;;  %v16753_v9 = vadd.f32 %v16729_v38, %v6793_v46 }
 0x723   : > { %vm6981_vm13 = vcmp.gt.f32.partialorder %v16743_v6, 20.0 }
 0x724   : > { %v9239_v19 = vpop.f32.mrf.mxu1  ;;  %10021 = vpow2.f32 %v7017_v22  ;;  %v7013_v58 = vmul.f32 1.442695, %v6949_v50  ;;  %v6952_v55 = vmin.f32 %v16750_v1, 20.0  ;;  %v16760_v56 = vmul.f32 100.0, %v16753_v9 }
 0x725   : > { %v9626_v40 = vld [vmem:[#allocation2 + $0x68] sm:$0xff]   ;;  %v16757_v13 = vadd.f32 %v9239_v19, %v16729_v38  ;;  %vm6984_vm4 = vcmp.gt.f32.partialorder %v16750_v1, 20.0 }
 0x726   : > { %v6806_v2 = vpop.f32.mrf.mxu1  ;;  %9258 = vmatmul.mubr.bf16.gmra.mxu1 %v9626_v40  ;;  %10023 = vpow2.f32 %v7013_v58  ;;  %v7019_v7 = vmul.f32 1.442695, %v6952_v55  ;;  %v6950_v28 = vmin.f32 %v16760_v56, 20.0  ;;  %vm6982_vm7 = vcmp.gt.f32.partialorder %v16760_v56, 20.0 }
 0x727   : > { %v16763_v41 = vmul.f32 100.0, %v16757_v13  ;;  %v16766_v45 = vadd.f32 %v16729_v38, %v6806_v2 }
 0x728   : > { %v9240_v42 = vpop.f32.mrf.mxu1  ;;  %10025 = vpow2.f32 %v7019_v7  ;;  %v7015_v51 = vmul.f32 1.442695, %v6950_v28 }
 0x729   : > { %v6955_v20 = vmin.f32 %v16763_v41, 20.0  ;;  %v16771_v25 = vmul.f32 100.0, %v16766_v45  ;;  %v16774_v31 = vadd.f32 %v9240_v42, %v16729_v38  ;;  %vm6987_vm8 = vcmp.gt.f32.partialorder %v16763_v41, 20.0 }
 0x72a   : > { %v6809_v44 = vpop.f32.mrf.mxu1  ;;  %10027 = vpow2.f32 %v7015_v51 }
 0x72b   : > { %v7025_v30 = vmul.f32 1.442695, %v6955_v20  ;;  %v6953_v52 = vmin.f32 %v16771_v25, 20.0  ;;  %v16778_v3 = vadd.f32 %v16729_v38, %v6809_v44  ;;  %v16781_v18 = vmul.f32 100.0, %v16774_v31 }
 0x72c   : > { %v6488_v49 = vpop.permute.xlu1 %6487  ;;  %vm6985_vm1 = vcmp.gt.f32.partialorder %v16771_v25, 20.0 }
 0x72d   : > { %10029 = vpow2.f32 %v7025_v30  ;;  %v7021_v0 = vmul.f32 1.442695, %v6953_v52  ;;  %v16784_v15 = vmul.f32 100.0, %v16778_v3  ;;  %v6956_v47 = vmin.f32 %v16781_v18, 20.0  ;;  %6556 = vst.msk [vmem:[#allocation2 + $0x70] sm:$0xf] %vm6527_vm12, %v6488_v49 }
 0x72e   : > { %vm6988_vm3 = vcmp.gt.f32.partialorder %v16781_v18, 20.0 }
 0x72f   : > { %10031 = vpow2.f32 %v7021_v0  ;;  %v6954_v16 = vmin.f32 %v16784_v15, 20.0  ;;  %v7027_v10 = vmul.f32 1.442695, %v6956_v47 }
 0x730   : > { %v6492_v8 = vpop.permute.xlu1 %6491 }
 0x731   : > { %v7023_v48 = vmul.f32 1.442695, %v6954_v16  ;;  %v10022_v14 = vpop.eup %10021  ;;  %10033 = vpow2.f32 %v7027_v10  ;;  %6558 = vst.msk [vmem:[#allocation2 + $0x78] sm:$0xf] %vm6527_vm12, %v6492_v8 }
 0x732   : > { %v7095_v4 = vadd.f32 1.0, %v10022_v14  ;;  %v7098_v36 = vmul.f32 -0.5, %v10022_v14  ;;  %v7101_v17 = vand.u32 2147483647, %v10022_v14 }
 0x733   : > { %10035 = vpow2.f32 %v7023_v48  ;;  %v10024_v61 = vpop.eup %10023 }
 0x734   : > { %10037 = vlog2.f32 %v7095_v4  ;;  %v7077_v39 = vadd.f32 1.0, %v10024_v61  ;;  %v7080_v35 = vmul.f32 -0.5, %v10024_v61  ;;  %v7099_v21 = vadd.f32 1.0, %v7098_v36 }
 0x735   : > { %v10026_v53 = vpop.eup %10025  ;;  %v7083_v43 = vand.u32 2147483647, %v10024_v61  ;;  %vm16805_vm0 = vcmp.lt.f32.partialorder %v7101_v17, 0.0004427343 }
 0x736   : > { %10039 = vlog2.f32 %v7077_v39  ;;  %v7104_v29 = vadd.f32 1.0, %v10026_v53  ;;  %v6490_v23 = vpop.permute.xlu0 %6489  ;;  %v7107_v11 = vmul.f32 -0.5, %v10026_v53  ;;  %v7081_v32 = vadd.f32 1.0, %v7080_v35 }
 0x737   : > { %v16790_v59 = vpop.eup %10027  ;;  %6557 = vst.msk [vmem:[#allocation2 + $0x74] sm:$0xf] %vm6527_vm12, %v6490_v23  ;;  %v7110_v27 = vand.u32 2147483647, %v10026_v53  ;;  %v7100_v58 = vmul.f32 %v10022_v14, %v7099_v21  ;;  %vm16812_vm14 = vcmp.lt.f32.partialorder %v7083_v43, 0.0004427343 }
 0x738   : > { %10041 = vlog2.f32 %v7104_v29  ;;  %v7086_v63 = vadd.f32 1.0, %v16790_v59  ;;  %v7089_v26 = vmul.f32 -0.5, %v16790_v59  ;;  %v7092_v50 = vand.u32 2147483647, %v16790_v59 }
 0x739   : > { %v7108_v2 = vadd.f32 1.0, %v7107_v11  ;;  %v7082_v28 = vmul.f32 %v10024_v61, %v7081_v32 }
 0x73a   : > { %v16792_v34 = vpop.eup %10029  ;;  %10043 = vlog2.f32 %v7086_v63  ;;  %v6494_v12 = vpop.permute.xlu0 %6493  ;;  %v7090_v0 = vadd.f32 1.0, %v7089_v26  ;;  %vm16826_vm5 = vcmp.lt.f32.partialorder %v7092_v50, 0.0004427343 }
 0x73b   : > { %v7131_v5 = vadd.f32 1.0, %v16792_v34  ;;  %6559 = vst.msk [vmem:[#allocation2 + $0x7c] sm:$0xf] %vm6527_vm12, %v6494_v12  ;;  %v7134_v60 = vmul.f32 -0.5, %v16792_v34  ;;  %vm16817_vm12 = vcmp.lt.f32.partialorder %v7110_v27, 0.0004427343  ;;  %v7109_v35 = vmul.f32 %v10026_v53, %v7108_v2 }
 0x73c   : > { %v16797_v62 = vpop.eup %10031  ;;  %v7137_v48 = vand.u32 2147483647, %v16792_v34  ;;  %v7091_v43 = vmul.f32 %v16790_v59, %v7090_v0 }
 0x73d   : > { %10045 = vlog2.f32 %v7131_v5  ;;  %v7113_v54 = vadd.f32 1.0, %v16797_v62  ;;  %v7135_v47 = vadd.f32 1.0, %v7134_v60  ;;  %v7116_v16 = vmul.f32 -0.5, %v16797_v62 }
 0x73e   : > { %v16803_v46 = vpop.eup %10033  ;;  %v9627_v42 = vld [vmem:[#allocation2 + $0x70] sm:$0xff]   ;;  %v7119_v14 = vand.u32 2147483647, %v16797_v62  ;;  %vm16855_vm10 = vcmp.lt.f32.partialorder %v7137_v48, 0.0004427343 }
 0x73f   : > { %10047 = vlog2.f32 %v7113_v54  ;;  %v9243_v19 = vpop.f32.mrf.mxu1  ;;  %v7140_v7 = vadd.f32 1.0, %v16803_v46  ;;  %9261 = vmatprep.mubr.bf16.mxu1 %v9627_v42  ;;  %v7143_v8 = vmul.f32 -0.5, %v16803_v46  ;;  %v7146_v39 = vand.u32 2147483647, %v16803_v46 }
 0x740   : > { %v16810_v40 = vpop.eup %10035  ;;  %v16823_v44 = vadd.f32 %v9243_v19, %v16729_v38  ;;  %v16850_v11 = vmul.f32 %v16792_v34, %v7135_v47  ;;  %v7117_v12 = vadd.f32 1.0, %v7116_v16  ;;  %vm16859_vm11 = vcmp.lt.f32.partialorder %v7119_v14, 0.0004427343 }
 0x741   : > { %v7122_v51 = vadd.f32 1.0, %v16810_v40  ;;  %v6822_v30 = vpop.f32.mrf.mxu1  ;;  %v10038_v52 = vpop.eup %10037  ;;  %10049 = vlog2.f32 %v7140_v7  ;;  %v7125_v17 = vmul.f32 -0.5, %v16810_v40  ;;  %v7144_v50 = vadd.f32 1.0, %v7143_v8 }
 0x742   : > { %v7097_v49 = vmul.f32 0.6931472, %v10038_v52  ;;  %v16836_v29 = vmul.f32 100.0, %v16823_v44  ;;  %v16839_v36 = vadd.f32 %v16729_v38, %v6822_v30  ;;  %v9628_v63 = vld [vmem:[#allocation2 + $0x78] sm:$0xff]   ;;  %vm16873_vm15 = vcmp.lt.f32.partialorder %v7146_v39, 0.0004427343 }
 0x743   : > { %10051 = vlog2.f32 %v7122_v51  ;;  %v9244_v4 = vpop.f32.mrf.mxu1  ;;  %v10040_v61 = vpop.eup %10039  ;;  %9262 = vmatmul.mubr.bf16.gmra.mxu1 %v9628_v63  ;;  %v7126_v42 = vadd.f32 1.0, %v7125_v17  ;;  %v7118_v16 = vmul.f32 %v16797_v62, %v7117_v12  ;;  %v7145_v62 = vmul.f32 %v16803_v46, %v7144_v50 }
 0x744   : > { %v7079_v23 = vmul.f32 0.6931472, %v10040_v61  ;;  %v16843_v5 = vadd.f32 %v9244_v4, %v16729_v38  ;;  %v6959_v53 = vmin.f32 %v16836_v29, 20.0  ;;  %v7103_v27 = vsel %vm16805_vm0, %v7100_v58, %v7097_v49 }
 0x745   : > { %v10042_v21 = vpop.eup %10041  ;;  %v6825_v32 = vpop.f32.mrf.mxu1  ;;  %v16864_v59 = vmul.f32 100.0, %v16839_v36  ;;  %v7128_v61 = vand.u32 2147483647, %v16810_v40  ;;  %v7127_v63 = vmul.f32 %v16810_v40, %v7126_v42  ;;  %vm6986_vm0 = vcmp.gt.f32.partialorder %v16784_v15, 20.0 }
 0x746   : > { %v7106_v54 = vmul.f32 0.6931472, %v10042_v21  ;;  %v7085_v34 = vsel %vm16812_vm14, %v7082_v28, %v7079_v23  ;;  %v7033_v19 = vmul.f32 1.442695, %v6959_v53  ;;  %v16869_v22 = vmul.f32 100.0, %v16843_v5 }
 0x747   : > { %v10044_v58 = vpop.eup %10043  ;;  %v6957_v51 = vmin.f32 %v16864_v59, 20.0  ;;  %v16879_v30 = vadd.f32 %v16729_v38, %v6825_v32  ;;  %v7367_v28 = vmul.f32 0.01, %v7103_v27  ;;  %v7365_v47 = vmul.f32 0.01, %v7085_v34 }
 0x748   : > { %v7112_v2 = vsel %vm16817_vm12, %v7109_v35, %v7106_v54  ;;  %v7088_v0 = vmul.f32 0.6931472, %v10044_v58  ;;  %10053 = vpow2.f32 %v7033_v19  ;;  %v6960_v49 = vmin.f32 %v16869_v22, 20.0 }
 0x749   : > { %v7368_v52 = vmul.f32 0.01, %v7112_v2  ;;  %v7029_v20 = vmul.f32 1.442695, %v6957_v51  ;;  %v16887_v8 = vmul.f32 100.0, %v16879_v30  ;;  %v7397_v1 = vsel %vm6981_vm13, %v16739_v33, %v7365_v47 }
 0x74a   : > { %v10046_v55 = vpop.eup %10045  ;;  %v7094_v14 = vsel %vm16826_vm5, %v7091_v43, %v7088_v0  ;;  %v7035_v17 = vmul.f32 1.442695, %v6960_v49  ;;  %v7399_v43 = vsel %vm6983_vm2, %v16732_v37, %v7367_v28  ;;  %vm7129_vm6 = vcmp.lt.f32.partialorder %v7128_v61, 0.0004427343 }
 0x74b   : > { %v7133_v4 = vmul.f32 0.6931472, %v10046_v55  ;;  %v7400_v39 = vsel %vm6984_vm4, %v16746_v57, %v7368_v52  ;;  %v7366_v23 = vmul.f32 0.01, %v7094_v14  ;;  %10055 = vpow2.f32 %v7029_v20 }
 0x74c   : > { %v10048_v48 = vpop.eup %10047  ;;  %v6958_v10 = vmin.f32 %v16887_v8, 20.0  ;;  %v7430_v12 = vpack.c.bf16 %v7400_v39, %v7399_v43  ;;  %10057 = vpow2.f32 %v7035_v17  ;;  %vm6989_vm12 = vcmp.gt.f32.partialorder %v16864_v59, 20.0 }
 0x74d   : > { %v7115_v35 = vmul.f32 0.6931472, %v10048_v48  ;;  %v7398_v57 = vsel %vm6982_vm7, %v16753_v9, %v7366_v23  ;;  %v7139_v32 = vsel %vm16855_vm10, %v16850_v11, %v7133_v4  ;;  %vm6992_vm13 = vcmp.gt.f32.partialorder %v16869_v22, 20.0 }
 0x74e   : > { %v10050_v21 = vpop.eup %10049  ;;  %v7429_v53 = vpack.c.bf16 %v7398_v57, %v7397_v1  ;;  %v7031_v6 = vmul.f32 1.442695, %v6958_v10  ;;  %v7371_v34 = vmul.f32 0.01, %v7139_v32  ;;  %vm6990_vm7 = vcmp.gt.f32.partialorder %v16887_v8, 20.0 }
 0x74f   : > { %v7121_v46 = vsel %vm16859_vm11, %v7118_v16, %v7115_v35  ;;  %v7142_v24 = vmul.f32 0.6931472, %v10050_v21  ;;  %vm6991_vm10 = vcmp.gt.f32.partialorder %v16836_v29, 20.0 }
 0x750   : > { %v10052_v40 = vpop.eup %10051  ;;  %v9247_v37 = vpop.f32.mrf.mxu1  ;;  %v7369_v9 = vmul.f32 0.01, %v7121_v46  ;;  %9273 = vmatprep.mubr.msk.bf16.mxu0 %vm5613_vm9, %v7429_v53  ;;  %10059 = vpow2.f32 %v7031_v6 }
 0x751   : > { %v7124_v27 = vmul.f32 0.6931472, %v10052_v40  ;;  %v16910_v33 = vadd.f32 %v9247_v37, %v16729_v38  ;;  %v7148_v56 = vsel %vm16873_vm15, %v7145_v62, %v7142_v24  ;;  %9274 = vmatmul.mubr.msk.bf16.vlgmr.msra.gmra.mxu0 %vm5613_vm9, %v7430_v12 }
 0x752   : > { %v6838_v54 = vpop.f32.mrf.mxu1  ;;  %v7372_v26 = vmul.f32 0.01, %v7148_v56  ;;  %v7401_v42 = vsel %vm6985_vm1, %v16766_v45, %v7369_v9  ;;  %v7403_v45 = vsel %vm6987_vm8, %v16757_v13, %v7371_v34 }
 0x753   : > { %v7130_v11 = vsel %vm7129_vm6, %v7127_v63, %v7124_v27  ;;  %v16918_v60 = vmul.f32 100.0, %v16910_v33  ;;  %v16922_v19 = vadd.f32 %v16729_v38, %v6838_v54 }
 0x754   : > { %v7370_v50 = vmul.f32 0.01, %v7130_v11  ;;  %v9248_v58 = vpop.f32.mrf.mxu1  ;;  %v7404_v51 = vsel %vm6988_vm3, %v16774_v31, %v7372_v26 }
 0x755   : > { %v6963_v2 = vmin.f32 %v16918_v60, 20.0  ;;  %v16928_v7 = vadd.f32 %v9248_v58, %v16729_v38  ;;  %v16934_v55 = vmul.f32 100.0, %v16922_v19  ;;  %v16936_v52 = vpop.eup %10053  ;;  %v7432_v16 = vpack.c.bf16 %v7404_v51, %v7403_v45 }
 0x756   : > { %v7402_v25 = vsel %vm6986_vm0, %v16778_v3, %v7370_v50  ;;  %v6841_v28 = vpop.f32.mrf.mxu1  ;;  %v7167_v31 = vadd.f32 1.0, %v16936_v52  ;;  %v7170_v53 = vmul.f32 -0.5, %v16936_v52  ;;  %v7173_v32 = vand.u32 2147483647, %v16936_v52 }
 0x757   : > { %v7431_v18 = vpack.c.bf16 %v7402_v25, %v7401_v42  ;;  %v7041_v0 = vmul.f32 1.442695, %v6963_v2  ;;  %v16939_v15 = vmul.f32 100.0, %v16928_v7  ;;  %v16942_v47 = vadd.f32 %v16729_v38, %v6841_v28 }
 0x758   : > { %v6961_v3 = vmin.f32 %v16934_v55, 20.0  ;;  %v10056_v48 = vpop.eup %10055  ;;  %v7171_v34 = vadd.f32 1.0, %v7170_v53  ;;  %vm16991_vm14 = vcmp.lt.f32.partialorder %v7173_v32, 0.0004427343  ;;  %vm6993_vm3 = vcmp.gt.f32.partialorder %v16934_v55, 20.0 }
 0x759   : > { %10061 = vpow2.f32 %v7041_v0  ;;  %9277 = vmatprep.mubr.msk.bf16.mxu0 %vm5613_vm9, %v7431_v18  ;;  %v6964_v20 = vmin.f32 %v16939_v15, 20.0  ;;  %v16953_v4 = vmul.f32 100.0, %v16942_v47  ;;  %v7149_v13 = vadd.f32 1.0, %v10056_v48  ;;  %v16956_v61 = vpop.eup %10057 }
 0x75a   : > { %v7037_v49 = vmul.f32 1.442695, %v6961_v3  ;;  %9278 = vmatmul.mubr.msk.bf16.gmra.mxu0 %vm5613_vm9, %v7432_v16  ;;  %10063 = vlog2.f32 %v7167_v31  ;;  %v7176_v39 = vadd.f32 1.0, %v16956_v61  ;;  %v7152_v43 = vmul.f32 -0.5, %v10056_v48 }
 0x75b   : > { %v7043_v14 = vmul.f32 1.442695, %v6964_v20  ;;  %v6962_v41 = vmin.f32 %v16953_v4, 20.0  ;;  %v7179_v24 = vmul.f32 -0.5, %v16956_v61  ;;  %v7155_v58 = vand.u32 2147483647, %v10056_v48 }
 0x75c   : > { %10065 = vpow2.f32 %v7037_v49  ;;  %v7153_v27 = vadd.f32 1.0, %v7152_v43  ;;  %v7182_v51 = vand.u32 2147483647, %v16956_v61  ;;  %vm6996_vm1 = vcmp.gt.f32.partialorder %v16939_v15, 20.0 }
 0x75d   : > { %10067 = vlog2.f32 %v7149_v13  ;;  %v16959_v23 = vpop.eup %10059  ;;  %v7039_v35 = vmul.f32 1.442695, %v6962_v41  ;;  %v7180_v2 = vadd.f32 1.0, %v7179_v24  ;;  %v7172_v13 = vmul.f32 %v16936_v52, %v7171_v34 }
 0x75e   : > { %10069 = vpow2.f32 %v7043_v14  ;;  %v9251_v62 = vpop.f32.mrf.mxu1  ;;  %v7158_v63 = vadd.f32 1.0, %v16959_v23  ;;  %v7161_v54 = vmul.f32 -0.5, %v16959_v23  ;;  %v7154_v31 = vmul.f32 %v10056_v48, %v7153_v27 }
 0x75f   : > { %10071 = vlog2.f32 %v7176_v39  ;;  %v16963_v17 = vadd.f32 %v9251_v62, %v16729_v38  ;;  %vm17003_vm5 = vcmp.lt.f32.partialorder %v7155_v58, 0.0004427343  ;;  %v7181_v39 = vmul.f32 %v16956_v61, %v7180_v2 }
 0x760   : > { %10073 = vpow2.f32 %v7039_v35  ;;  %v6854_v10 = vpop.f32.mrf.mxu1  ;;  %v7162_v16 = vadd.f32 1.0, %v7161_v54  ;;  %v7164_v35 = vand.u32 2147483647, %v16959_v23  ;;  %vm7183_vm4 = vcmp.lt.f32.partialorder %v7182_v51, 0.0004427343 }
 0x761   : > { %10075 = vlog2.f32 %v7158_v63  ;;  %v16966_v21 = vadd.f32 %v16729_v38, %v6854_v10  ;;  %v16969_v57 = vmul.f32 100.0, %v16963_v17  ;;  %vm6994_vm0 = vcmp.gt.f32.partialorder %v16953_v4, 20.0 }
 0x762   : > { %v9252_v1 = vpop.f32.mrf.mxu1  ;;  %v7163_v24 = vmul.f32 %v16959_v23, %v7162_v16  ;;  %vm7165_vm2 = vcmp.lt.f32.partialorder %v7164_v35, 0.0004427343 }
 0x763   : > { %v16972_v46 = vmul.f32 100.0, %v16966_v21  ;;  %v16975_v40 = vadd.f32 %v9252_v1, %v16729_v38  ;;  %v6967_v26 = vmin.f32 %v16969_v57, 20.0 }
 0x764   : > { %v6857_v53 = vpop.f32.mrf.mxu1 }
 0x765   : > { %v6965_v6 = vmin.f32 %v16972_v46, 20.0  ;;  %v16985_v9 = vmul.f32 100.0, %v16975_v40  ;;  %v7049_v49 = vmul.f32 1.442695, %v6967_v26  ;;  %v17018_v54 = vadd.f32 %v16729_v38, %v6857_v53 }
 0x766   : > { %v16977_v12 = vpop.eup %10061 }
 0x767   : > { %v7203_v37 = vadd.f32 1.0, %v16977_v12  ;;  %v10064_v56 = vpop.eup %10063  ;;  %v6968_v28 = vmin.f32 %v16985_v9, 20.0  ;;  %v7045_v3 = vmul.f32 1.442695, %v6965_v6  ;;  %v7206_v34 = vmul.f32 -0.5, %v16977_v12 }
 0x768   : > { %v7169_v0 = vmul.f32 0.6931472, %v10064_v56  ;;  %v17027_v2 = vmul.f32 100.0, %v17018_v54 }
 0x769   : > { %v16989_v11 = vpop.eup %10065  ;;  %10077 = vlog2.f32 %v7203_v37  ;;  %v7051_v10 = vmul.f32 1.442695, %v6968_v28 }
 0x76a   : > { %v10068_v42 = vpop.eup %10067  ;;  %v7185_v25 = vadd.f32 1.0, %v16989_v11  ;;  %v7175_v52 = vsel %vm16991_vm14, %v7172_v13, %v7169_v0  ;;  %v7188_v50 = vmul.f32 -0.5, %v16989_v11  ;;  %v7207_v0 = vadd.f32 1.0, %v7206_v34 }
 0x76b   : > { %v16998_v18 = vpop.eup %10069  ;;  %v7151_v45 = vmul.f32 0.6931472, %v10068_v42  ;;  %v7375_v6 = vmul.f32 0.01, %v7175_v52  ;;  %vm6995_vm14 = vcmp.gt.f32.partialorder %v16918_v60, 20.0 }
 0x76c   : > { %10079 = vlog2.f32 %v7185_v25  ;;  %v7212_v20 = vadd.f32 1.0, %v16998_v18  ;;  %v10072_v14 = vpop.eup %10071  ;;  %v7215_v58 = vmul.f32 -0.5, %v16998_v18 }
 0x76d   : > { %v17009_v48 = vpop.eup %10073  ;;  %v7157_v62 = vsel %vm17003_vm5, %v7154_v31, %v7151_v45  ;;  %v7178_v63 = vmul.f32 0.6931472, %v10072_v14  ;;  %v7407_v51 = vsel %vm6991_vm10, %v16823_v44, %v7375_v6  ;;  %v7189_v45 = vadd.f32 1.0, %v7188_v50 }
 0x76e   : > { %10081 = vlog2.f32 %v7212_v20  ;;  %v10076_v43 = vpop.eup %10075  ;;  %v7194_v1 = vadd.f32 1.0, %v17009_v48  ;;  %v7373_v37 = vmul.f32 0.01, %v7157_v62  ;;  %v7197_v31 = vmul.f32 -0.5, %v17009_v48 }
 0x76f   : > { %10083 = vpow2.f32 %v7045_v3  ;;  %v7184_v61 = vsel %vm7183_vm4, %v7181_v39, %v7178_v63  ;;  %v7160_v32 = vmul.f32 0.6931472, %v10076_v43  ;;  %v7191_v3 = vand.u32 2147483647, %v16989_v11 }
 0x770   : > { %10085 = vpow2.f32 %v7049_v49  ;;  %v7376_v27 = vmul.f32 0.01, %v7184_v61  ;;  %v7405_v22 = vsel %vm6989_vm12, %v16839_v36, %v7373_v37  ;;  %v7216_v29 = vadd.f32 1.0, %v7215_v58 }
 0x771   : > { %10087 = vlog2.f32 %v7194_v1  ;;  %v7166_v56 = vsel %vm7165_vm2, %v7163_v24, %v7160_v32  ;;  %v7218_v44 = vand.u32 2147483647, %v16998_v18  ;;  %v7208_v14 = vmul.f32 %v16977_v12, %v7207_v0 }
 0x772   : > { %10089 = vpow2.f32 %v7051_v10  ;;  %v7374_v26 = vmul.f32 0.01, %v7166_v56  ;;  %v7408_v23 = vsel %vm6992_vm13, %v16843_v5, %v7376_v27  ;;  %v6966_v5 = vmin.f32 %v17027_v2, 20.0 }
 0x773   : > { %v7434_v8 = vpack.c.bf16 %v7408_v23, %v7407_v51  ;;  %v7190_v13 = vmul.f32 %v16989_v11, %v7189_v45  ;;  %v7198_v41 = vadd.f32 1.0, %v7197_v31  ;;  %vm17046_vm11 = vcmp.lt.f32.partialorder %v7191_v3, 0.0004427343 }
 0x774   : > { %v7406_v42 = vsel %vm6990_vm7, %v16879_v30, %v7374_v26  ;;  %v7047_v59 = vmul.f32 1.442695, %v6966_v5  ;;  %v7209_v30 = vand.u32 2147483647, %v16977_v12  ;;  %v7217_v63 = vmul.f32 %v16998_v18, %v7216_v29 }
 0x775   : > { %v7433_v25 = vpack.c.bf16 %v7406_v42, %v7405_v22  ;;  %v7200_v10 = vand.u32 2147483647, %v17009_v48  ;;  %vm7219_vm8 = vcmp.lt.f32.partialorder %v7218_v44, 0.0004427343  ;;  %v7199_v24 = vmul.f32 %v17009_v48, %v7198_v41 }
 0x776   : > { %v10078_v28 = vpop.eup %10077  ;;  %10091 = vpow2.f32 %v7047_v59  ;;  %vm7210_vm15 = vcmp.lt.f32.partialorder %v7209_v30, 0.0004427343  ;;  %vm7000_vm13 = vcmp.gt.f32.partialorder %v16985_v9, 20.0  ;;  %vm6997_vm7 = vcmp.gt.f32.partialorder %v16972_v46, 20.0 }
 0x777   : > { %9281 = vmatprep.mubr.msk.bf16.mxu0 %vm5613_vm9, %v7433_v25  ;;  %v7205_v16 = vmul.f32 0.6931472, %v10078_v28  ;;  %vm7201_vm6 = vcmp.lt.f32.partialorder %v7200_v10, 0.0004427343  ;;  %vm6998_vm10 = vcmp.gt.f32.partialorder %v17027_v2, 20.0 }
 0x778   : > { %9282 = vmatmul.mubr.msk.bf16.gmra.mxu0 %vm5613_vm9, %v7434_v8 }
 0x779   : > { %v10080_v36 = vpop.eup %10079  ;;  %v7211_v52 = vsel %vm7210_vm15, %v7208_v14, %v7205_v16 }
 0x77a   : > { %v7187_v20 = vmul.f32 0.6931472, %v10080_v36  ;;  %v7379_v56 = vmul.f32 0.01, %v7211_v52 }
 0x77b   : > { %v10082_v49 = vpop.eup %10081 }
 0x77c   : > { %v17044_v39 = vpop.eup %10083  ;;  %v7214_v62 = vmul.f32 0.6931472, %v10082_v49  ;;  %v7193_v12 = vsel %vm17046_vm11, %v7190_v13, %v7187_v20  ;;  %v7411_v58 = vsel %vm6995_vm14, %v16910_v33, %v7379_v56  ;;  %vm6999_vm11 = vcmp.gt.f32.partialorder %v16969_v57, 20.0 }
 0x77d   : > { %v10086_v43 = vpop.eup %10085  ;;  %v7221_v37 = vadd.f32 1.0, %v17044_v39  ;;  %v7377_v27 = vmul.f32 0.01, %v7193_v12  ;;  %v7224_v4 = vmul.f32 -0.5, %v17044_v39  ;;  %v7227_v0 = vand.u32 2147483647, %v17044_v39 }
 0x77e   : > { %v10088_v11 = vpop.eup %10087  ;;  %v7220_v1 = vsel %vm7219_vm8, %v7217_v63, %v7214_v62  ;;  %v7239_v18 = vadd.f32 1.0, %v10086_v43  ;;  %v7242_v60 = vmul.f32 -0.5, %v10086_v43  ;;  %v7245_v31 = vand.u32 2147483647, %v10086_v43 }
 0x77f   : > { %v10090_v53 = vpop.eup %10089  ;;  %v7380_v61 = vmul.f32 0.01, %v7220_v1  ;;  %v7196_v32 = vmul.f32 0.6931472, %v10088_v11  ;;  %v7409_v48 = vsel %vm6993_vm3, %v16922_v19, %v7377_v27  ;;  %v7225_v5 = vadd.f32 1.0, %v7224_v4 }
 0x780   : > { %v7248_v6 = vadd.f32 1.0, %v10090_v53  ;;  %v7251_v55 = vmul.f32 -0.5, %v10090_v53  ;;  %v7254_v28 = vand.u32 2147483647, %v10090_v53  ;;  %v7243_v8 = vadd.f32 1.0, %v7242_v60 }
 0x781   : > { %v7202_v26 = vsel %vm7201_vm6, %v7199_v24, %v7196_v32  ;;  %v7412_v50 = vsel %vm6996_vm1, %v16928_v7, %v7380_v61  ;;  %v7226_v36 = vmul.f32 %v17044_v39, %v7225_v5  ;;  %vm7228_vm5 = vcmp.lt.f32.partialorder %v7227_v0, 0.0004427343 }
 0x782   : > { %v7378_v34 = vmul.f32 0.01, %v7202_v26  ;;  %10093 = vlog2.f32 %v7248_v6  ;;  %v7436_v15 = vpack.c.bf16 %v7412_v50, %v7411_v58  ;;  %v7252_v25 = vadd.f32 1.0, %v7251_v55  ;;  %v9633_v50 = vld [vmem:[%s18043_s6 + $0x18] sm:$0xff]  }
 0x783   : > { %10095 = vlog2.f32 %v7221_v37  ;;  %v10092_v42 = vpop.eup %10091  ;;  %vm7255_vm12 = vcmp.lt.f32.partialorder %v7254_v28, 0.0004427343  ;;  %v7244_v44 = vmul.f32 %v10086_v43, %v7243_v8  ;;  %vm7246_vm4 = vcmp.lt.f32.partialorder %v7245_v31, 0.0004427343  ;;  %9305 = vmatprep.subr.bf16.mxu1 %v9633_v50  ;;  %v9634_v8 = vld [vmem:[%s18043_s6 + $0x10] sm:$0xff]  }
 0x784   : > { %v7410_v23 = vsel %vm6994_vm0, %v16942_v47, %v7378_v34  ;;  %10097 = vlog2.f32 %v7239_v18  ;;  %v7230_v7 = vadd.f32 1.0, %v10092_v42  ;;  %v7233_v33 = vmul.f32 -0.5, %v10092_v42  ;;  %9306 = vmatpush3.bf16.msra.mxu1 %v9633_v50 }
 0x785   : > { %v7435_v22 = vpack.c.bf16 %v7410_v23, %v7409_v48  ;;  %v7253_v59 = vmul.f32 %v10090_v53, %v7252_v25  ;;  %v7236_v20 = vand.u32 2147483647, %v10092_v42  ;;  %9307 = vmatprep.subr.bf16.mxu1 %v9634_v8 }
 0x786   : > { %10099 = vlog2.f32 %v7230_v7  ;;  %v7234_v30 = vadd.f32 1.0, %v7233_v33 }
 0x787   : > { %9285 = vmatprep.mubr.msk.bf16.mxu0 %vm5613_vm9, %v7435_v22  ;;  %vm7237_vm2 = vcmp.lt.f32.partialorder %v7236_v20, 0.0004427343 }
 0x788   : > { %9286 = vmatmul.mubr.msk.bf16.gmra.mxu0 %vm5613_vm9, %v7436_v15  ;;  %v7235_v62 = vmul.f32 %v10092_v42, %v7234_v30  ;;  %9308 = vmatpush3.bf16.msra.mxu1 %v9634_v8 }
 0x78f   : > { %v10094_v51 = vpop.eup %10093 }
 0x790   : > { %v10096_v19 = vpop.eup %10095  ;;  %v7250_v45 = vmul.f32 0.6931472, %v10094_v51 }
 0x791   : > { %v10098_v47 = vpop.eup %10097  ;;  %v7223_v3 = vmul.f32 0.6931472, %v10096_v19 }
 0x792   : > { %v7241_v29 = vmul.f32 0.6931472, %v10098_v47  ;;  %v7256_v16 = vsel %vm7255_vm12, %v7253_v59, %v7250_v45  ;;  %v9635_v59 = vld [vmem:[%s18043_s6 + $0x8] sm:$0xff]  }
 0x793   : > { %v7229_v49 = vsel %vm7228_vm5, %v7226_v36, %v7223_v3  ;;  %v10100_v14 = vpop.eup %10099  ;;  %v7384_v41 = vmul.f32 0.01, %v7256_v16  ;;  %v9636_v36 = vld [vmem:[%s18043_s6] sm:$0xff]   ;;  %9309 = vmatprep.subr.bf16.mxu1 %v9635_v59 }
 0x794   : > { %v7247_v13 = vsel %vm7246_vm4, %v7244_v44, %v7241_v29  ;;  %v7232_v35 = vmul.f32 0.6931472, %v10100_v14  ;;  %v7381_v63 = vmul.f32 0.01, %v7229_v49  ;;  %9310 = vmatpush3.bf16.msra.mxu1 %v9635_v59 }
 0x795   : > { %v7383_v10 = vmul.f32 0.01, %v7247_v13  ;;  %v7416_v43 = vsel %vm7000_vm13, %v16975_v40, %v7384_v41  ;;  %9311 = vmatprep.subr.bf16.mxu1 %v9636_v36 }
 0x796   : > { %v7238_v12 = vsel %vm7237_vm2, %v7235_v62, %v7232_v35  ;;  %v7413_v11 = vsel %vm6997_vm7, %v16966_v21, %v7381_v63 }
 0x797   : > { %v7382_v39 = vmul.f32 0.01, %v7238_v12  ;;  %v7415_v1 = vsel %vm6999_vm11, %v16963_v17, %v7383_v10 }
 0x798   : > { %v7438_v61 = vpack.c.bf16 %v7416_v43, %v7415_v1  ;;  %9312 = vmatpush3.bf16.msra.mxu1 %v9636_v36 }
 0x799   : > { %v7414_v52 = vsel %vm6998_vm10, %v17018_v54, %v7382_v39 }
 0x79a   : > { %v7437_v53 = vpack.c.bf16 %v7414_v52, %v7413_v11 }
 0x79c   : > { %9289 = vmatprep.mubr.msk.bf16.mxu0 %vm5613_vm9, %v7437_v53 }
 0x79d   : > { %9290 = vmatmul.mubr.msk.bf16.gmra.mxu0 %vm5613_vm9, %v7438_v61 }
 0x7de   : > { %v9255_v9 = vpop.f32.mrf.mxu1 }
 0x7df   : > { %v17080_v46 = vadd.f32 %v9255_v9, %v16729_v38 }
 0x7e0   : > { %v6870_v40 = vpop.f32.mrf.mxu1 }
 0x7e1   : > { %v17083_v2 = vmul.f32 100.0, %v17080_v46  ;;  %v17086_v21 = vadd.f32 %v16729_v38, %v6870_v40 }
 0x7e2   : > { %v9256_v57 = vpop.f32.mrf.mxu1 }
 0x7e3   : > { %v6971_v17 = vmin.f32 %v17083_v2, 20.0  ;;  %v17090_v54 = vmul.f32 100.0, %v17086_v21  ;;  %v17093_v32 = vadd.f32 %v9256_v57, %v16729_v38  ;;  %vm7003_vm3 = vcmp.gt.f32.partialorder %v17083_v2, 20.0 }
 0x7e4   : > { %v6873_v24 = vpop.f32.mrf.mxu1 }
 0x7e5   : > { %v7057_v37 = vmul.f32 1.442695, %v6971_v17  ;;  %v6969_v27 = vmin.f32 %v17090_v54, 20.0  ;;  %v17097_v18 = vmul.f32 100.0, %v17093_v32  ;;  %v17100_v6 = vadd.f32 %v16729_v38, %v6873_v24 }
 0x7e6   : > { %v9259_v56 = vpop.f32.mrf.mxu1  ;;  %vm7001_vm14 = vcmp.gt.f32.partialorder %v17090_v54, 20.0 }
 0x7e7   : > { %10101 = vpow2.f32 %v7057_v37  ;;  %v7053_v26 = vmul.f32 1.442695, %v6969_v27  ;;  %v6972_v34 = vmin.f32 %v17097_v18, 20.0  ;;  %v17107_v48 = vmul.f32 100.0, %v17100_v6 }
 0x7e8   : > { %v17110_v23 = vadd.f32 %v9259_v56, %v16729_v38  ;;  %v6886_v58 = vpop.f32.mrf.mxu1  ;;  %vm7004_vm6 = vcmp.gt.f32.partialorder %v17097_v18, 20.0 }
 0x7e9   : > { %10103 = vpow2.f32 %v7053_v26  ;;  %v7059_v22 = vmul.f32 1.442695, %v6972_v34  ;;  %v17113_v15 = vadd.f32 %v16729_v38, %v6886_v58  ;;  %v6970_v42 = vmin.f32 %v17107_v48, 20.0 }
 0x7ea   : > { %v17117_v7 = vmul.f32 100.0, %v17110_v23  ;;  %v9260_v55 = vpop.f32.mrf.mxu1  ;;  %vm7002_vm12 = vcmp.gt.f32.partialorder %v17107_v48, 20.0 }
 0x7eb   : > { %10105 = vpow2.f32 %v7059_v22  ;;  %v17120_v4 = vmul.f32 100.0, %v17113_v15  ;;  %v17123_v60 = vadd.f32 %v9260_v55, %v16729_v38  ;;  %v7055_v51 = vmul.f32 1.442695, %v6970_v42 }
 0x7ec   : > { %v6975_v19 = vmin.f32 %v17117_v7, 20.0  ;;  %v6889_v25 = vpop.f32.mrf.mxu1 }
 0x7ed   : > { %v6973_v47 = vmin.f32 %v17120_v4, 20.0  ;;  %v17128_v5 = vmul.f32 100.0, %v17123_v60  ;;  %v17131_v28 = vadd.f32 %v16729_v38, %v6889_v25  ;;  %10107 = vpow2.f32 %v7055_v51 }
 0x7ee   : > { %v7065_v33 = vmul.f32 1.442695, %v6975_v19  ;;  %vm7005_vm7 = vcmp.gt.f32.partialorder %v17120_v4, 20.0 }
 0x7ef   : > { %v7061_v0 = vmul.f32 1.442695, %v6973_v47  ;;  %v6976_v45 = vmin.f32 %v17128_v5, 20.0  ;;  %v17138_v31 = vmul.f32 100.0, %v17131_v28  ;;  %vm7008_vm10 = vcmp.gt.f32.partialorder %v17128_v5, 20.0 }
 0x7f0   : > { %10109 = vpow2.f32 %v7065_v33 }
 0x7f1   : > { %10111 = vpow2.f32 %v7061_v0  ;;  %v7067_v3 = vmul.f32 1.442695, %v6976_v45  ;;  %v6974_v29 = vmin.f32 %v17138_v31, 20.0  ;;  %vm7006_vm11 = vcmp.gt.f32.partialorder %v17138_v31, 20.0 }
 0x7f3   : > { %10113 = vpow2.f32 %v7067_v3  ;;  %v7063_v38 = vmul.f32 1.442695, %v6974_v29 }
 0x7f4   : > { %v10102_v30 = vpop.eup %10101 }
 0x7f5   : > { %v7275_v44 = vadd.f32 1.0, %v10102_v30  ;;  %10115 = vpow2.f32 %v7063_v38  ;;  %v7278_v13 = vmul.f32 -0.5, %v10102_v30  ;;  %v7281_v10 = vand.u32 2147483647, %v10102_v30 }
 0x7f6   : > { %v10104_v16 = vpop.eup %10103 }
 0x7f7   : > { %10117 = vlog2.f32 %v7275_v44  ;;  %v7257_v20 = vadd.f32 1.0, %v10104_v16  ;;  %v7260_v35 = vmul.f32 -0.5, %v10104_v16  ;;  %v7279_v39 = vadd.f32 1.0, %v7278_v13  ;;  %v10295_v44 = vld [vmem:[%s18038_s1 + $0x6] ss:$0 sm:$0xff] }
 0x7f8   : > { %v10106_v49 = vpop.eup %10105  ;;  %v7263_v52 = vand.u32 2147483647, %v10104_v16  ;;  %vm17152_vm15 = vcmp.lt.f32.partialorder %v7281_v10, 0.0004427343 }
 0x7f9   : > { %10119 = vlog2.f32 %v7257_v20  ;;  %v7284_v14 = vadd.f32 1.0, %v10106_v49  ;;  %v7287_v43 = vmul.f32 -0.5, %v10106_v49  ;;  %v7261_v61 = vadd.f32 1.0, %v7260_v35 }
 0x7fa   : > { %v10108_v41 = vpop.eup %10107  ;;  %v7290_v57 = vand.u32 2147483647, %v10106_v49  ;;  %v7280_v37 = vmul.f32 %v10102_v30, %v7279_v39  ;;  %vm17156_vm8 = vcmp.lt.f32.partialorder %v7263_v52, 0.0004427343 }
 0x7fb   : > { %10121 = vlog2.f32 %v7284_v14  ;;  %v7266_v62 = vadd.f32 1.0, %v10108_v41  ;;  %v7269_v9 = vmul.f32 -0.5, %v10108_v41  ;;  %v7288_v56 = vadd.f32 1.0, %v7287_v43 }
 0x7fc   : > { %v7272_v50 = vand.u32 2147483647, %v10108_v41  ;;  %v7262_v42 = vmul.f32 %v10104_v16, %v7261_v61  ;;  %vm17163_vm1 = vcmp.lt.f32.partialorder %v7290_v57, 0.0004427343 }
 0x7fd   : > { %v10110_v63 = vpop.eup %10109  ;;  %10123 = vlog2.f32 %v7266_v62  ;;  %v7270_v55 = vadd.f32 1.0, %v7269_v9  ;;  %v7289_v0 = vmul.f32 %v10106_v49, %v7288_v56 }
 0x7fe   : > { %v10112_v12 = vpop.eup %10111  ;;  %v7311_v11 = vadd.f32 1.0, %v10110_v63  ;;  %v7314_v40 = vmul.f32 -0.5, %v10110_v63  ;;  %v7317_v33 = vand.u32 2147483647, %v10110_v63  ;;  %vm17169_vm0 = vcmp.lt.f32.partialorder %v7272_v50, 0.0004427343 }
 0x7ff   : > { %v7293_v1 = vadd.f32 1.0, %v10112_v12  ;;  %v7296_v26 = vmul.f32 -0.5, %v10112_v12  ;;  %v7299_v3 = vand.u32 2147483647, %v10112_v12  ;;  %v7271_v49 = vmul.f32 %v10108_v41, %v7270_v55 }
 0x800   : > { %v17147_v53 = vpop.eup %10113  ;;  %10125 = vlog2.f32 %v7311_v11  ;;  %v7315_v51 = vadd.f32 1.0, %v7314_v40  ;;  %vm17193_vm5 = vcmp.lt.f32.partialorder %v7317_v33, 0.0004427343 }
 0x801   : > { %10127 = vlog2.f32 %v7293_v1  ;;  %v7320_v17 = vadd.f32 1.0, %v17147_v53  ;;  %v7323_v19 = vmul.f32 -0.5, %v17147_v53  ;;  %v7297_v45 = vadd.f32 1.0, %v7296_v26 }
 0x802   : > { %v17150_v24 = vpop.eup %10115  ;;  %v7326_v29 = vand.u32 2147483647, %v17147_v53  ;;  %v17181_v14 = vmul.f32 %v10110_v63, %v7315_v51  ;;  %vm17197_vm4 = vcmp.lt.f32.partialorder %v7299_v3, 0.0004427343 }
 0x803   : > { %10129 = vlog2.f32 %v7320_v17  ;;  %v7302_v58 = vadd.f32 1.0, %v17150_v24  ;;  %v9263_v38 = vpop.f32.mrf.mxu1  ;;  %v7305_v30 = vmul.f32 -0.5, %v17150_v24  ;;  %v7324_v13 = vadd.f32 1.0, %v7323_v19 }
 0x804   : > { %v10118_v22 = vpop.eup %10117  ;;  %v17177_v16 = vadd.f32 %v10295_v44, %v9263_v38  ;;  %v7308_v35 = vand.u32 2147483647, %v17150_v24  ;;  %v7298_v63 = vmul.f32 %v10112_v12, %v7297_v45  ;;  %vm17201_vm2 = vcmp.lt.f32.partialorder %v7326_v29, 0.0004427343 }
 0x805   : > { %v7277_v25 = vmul.f32 0.6931472, %v10118_v22  ;;  %10131 = vlog2.f32 %v7302_v58  ;;  %v6902_v62 = vpop.f32.mrf.mxu1  ;;  %v7306_v17 = vadd.f32 1.0, %v7305_v30  ;;  %v7325_v55 = vmul.f32 %v17147_v53, %v7324_v13 }
 0x806   : > { %v10120_v8 = vpop.eup %10119  ;;  %v17187_v43 = vmul.f32 100.0, %v17177_v16  ;;  %v17189_v11 = vadd.f32 %v10295_v44, %v6902_v62  ;;  %vm17211_vm13 = vcmp.lt.f32.partialorder %v7308_v35, 0.0004427343 }
 0x807   : > { %v7259_v59 = vmul.f32 0.6931472, %v10120_v8  ;;  %v7283_v10 = vsel %vm17152_vm15, %v7280_v37, %v7277_v25  ;;  %v9264_v9 = vpop.f32.mrf.mxu1  ;;  %v7307_v18 = vmul.f32 %v17150_v24, %v7306_v17  ;;  %vm7007_vm15 = vcmp.gt.f32.partialorder %v17117_v7, 20.0 }
 0x808   : > { %v10122_v20 = vpop.eup %10121  ;;  %v6979_v37 = vmin.f32 %v17187_v43, 20.0  ;;  %v17209_v27 = vmul.f32 100.0, %v17189_v11  ;;  %v7387_v12 = vmul.f32 0.01, %v7283_v10  ;;  %v17215_v50 = vadd.f32 %v10295_v44, %v9264_v9 }
 0x809   : > { %v7286_v39 = vmul.f32 0.6931472, %v10122_v20  ;;  %v7265_v52 = vsel %vm17156_vm8, %v7262_v42, %v7259_v59  ;;  %v6905_v58 = vpop.f32.mrf.mxu1 }
 0x80a   : > { %v10124_v40 = vpop.eup %10123  ;;  %v7385_v42 = vmul.f32 0.01, %v7265_v52  ;;  %v7073_v51 = vmul.f32 1.442695, %v6979_v37  ;;  %v6977_v19 = vmin.f32 %v17209_v27, 20.0  ;;  %v17225_v8 = vmul.f32 100.0, %v17215_v50 }
 0x80b   : > { %v7292_v57 = vsel %vm17163_vm1, %v7289_v0, %v7286_v39  ;;  %v7268_v26 = vmul.f32 0.6931472, %v10124_v40  ;;  %v17227_v0 = vadd.f32 %v10295_v44, %v6905_v58  ;;  %v7419_v38 = vsel %vm7003_vm3, %v17080_v46, %v7387_v12  ;;  %v17245_v46 = vld [vmem:[%s18038_s1 + $0x7] ss:$0 sm:$0xff] }
 0x80c   : > { %v7388_v56 = vmul.f32 0.01, %v7292_v57  ;;  %10133 = vpow2.f32 %v7073_v51  ;;  %v6980_v59 = vmin.f32 %v17225_v8, 20.0  ;;  %v7417_v36 = vsel %vm7001_vm14, %v17086_v21, %v7385_v42 }
 0x80d   : > { %v10126_v22 = vpop.eup %10125  ;;  %v7274_v33 = vsel %vm17169_vm0, %v7271_v49, %v7268_v26  ;;  %v17253_v35 = vmul.f32 100.0, %v17227_v0  ;;  %vm7011_vm1 = vcmp.gt.f32.partialorder %v17187_v43, 20.0  ;;  %vm7012_vm3 = vcmp.gt.f32.partialorder %v17225_v8, 20.0 }
 0x80e   : > { %v10128_v25 = vpop.eup %10127  ;;  %v7420_v47 = vsel %vm7004_vm6, %v17093_v32, %v7388_v56  ;;  %v7386_v45 = vmul.f32 0.01, %v7274_v33  ;;  %v7313_v3 = vmul.f32 0.6931472, %v10126_v22  ;;  %v7069_v32 = vmul.f32 1.442695, %v6977_v19 }
 0x80f   : > { %v7295_v29 = vmul.f32 0.6931472, %v10128_v25  ;;  %v7440_v24 = vpack.c.bf16 %v7420_v47, %v7419_v38  ;;  %v7075_v13 = vmul.f32 1.442695, %v6980_v59  ;;  %v6978_v41 = vmin.f32 %v17253_v35, 20.0 }
 0x810   : > { %v10130_v53 = vpop.eup %10129  ;;  %v7418_v30 = vsel %vm7002_vm12, %v17100_v6, %v7386_v45  ;;  %10135 = vpow2.f32 %v7069_v32  ;;  %v7319_v21 = vsel %vm17193_vm5, %v17181_v14, %v7313_v3  ;;  %vm7009_vm0 = vcmp.gt.f32.partialorder %v17209_v27, 20.0 }
 0x811   : > { %v7301_v44 = vsel %vm17197_vm4, %v7298_v63, %v7295_v29  ;;  %v7322_v20 = vmul.f32 0.6931472, %v10130_v53  ;;  %v7439_v49 = vpack.c.bf16 %v7418_v30, %v7417_v36  ;;  %v9275_v54 = vpop.f32.mrf.mxu0  ;;  %10137 = vpow2.f32 %v7075_v13 }
 0x812   : > { %v10132_v2 = vpop.eup %10131  ;;  %v7389_v62 = vmul.f32 0.01, %v7301_v44  ;;  %v17257_v39 = vadd.f32 %v9275_v54, %v17245_v46  ;;  %v7391_v1 = vmul.f32 0.01, %v7319_v21  ;;  %v7071_v4 = vmul.f32 1.442695, %v6978_v41 }
 0x813   : > { %v7328_v6 = vsel %vm17201_vm2, %v7325_v55, %v7322_v20  ;;  %v7304_v48 = vmul.f32 0.6931472, %v10132_v2  ;;  %9293 = vmatprep.mubr.msk.bf16.mxu0 %vm5613_vm9, %v7439_v49  ;;  %v7563_v52 = vpop.f32.mrf.mxu0  ;;  %vm7010_vm12 = vcmp.gt.f32.partialorder %v17253_v35, 20.0 }
 0x814   : > { %v7392_v10 = vmul.f32 0.01, %v7328_v6  ;;  %9294 = vmatmul.mubr.msk.bf16.gmra.mxu0 %vm5613_vm9, %v7440_v24  ;;  %v17265_v63 = vadd.f32 %v17245_v46, %v7563_v52  ;;  %v17269_v9 = vmul.f32 100.0, %v17257_v39  ;;  %v7421_v37 = vsel %vm7005_vm7, %v17113_v15, %v7389_v62 }
 0x815   : > { %v7310_v14 = vsel %vm17211_vm13, %v7307_v18, %v7304_v48  ;;  %v9276_v40 = vpop.f32.mrf.mxu0  ;;  %10139 = vpow2.f32 %v7071_v4  ;;  %v7423_v58 = vsel %vm7007_vm15, %v17110_v23, %v7391_v1 }
 0x816   : > { %v7390_v61 = vmul.f32 0.01, %v7310_v14  ;;  %v17273_v57 = vmul.f32 100.0, %v17265_v63  ;;  %v17276_v17 = vadd.f32 %v9276_v40, %v17245_v46  ;;  %v7424_v12 = vsel %vm7008_vm10, %v17123_v60, %v7392_v10 }
 0x817   : > { %v7724_v56 = vmin.f32 %v17269_v9, 20.0  ;;  %v7566_v26 = vpop.f32.mrf.mxu0 }
 0x818   : > { %v7422_v5 = vsel %vm7006_vm11, %v17131_v28, %v7390_v61  ;;  %v7722_v31 = vmin.f32 %v17273_v57, 20.0  ;;  %v17286_v42 = vmul.f32 100.0, %v17276_v17  ;;  %v17289_v15 = vadd.f32 %v17245_v46, %v7566_v26 }
 0x819   : > { %v7441_v34 = vpack.c.bf16 %v7422_v5, %v7421_v37  ;;  %v7790_v22 = vmul.f32 1.442695, %v7724_v56  ;;  %v7442_v28 = vpack.c.bf16 %v7424_v12, %v7423_v58  ;;  %v17292_v51 = vpop.eup %10133  ;;  %vm7754_vm10 = vcmp.gt.f32.partialorder %v17273_v57, 20.0 }
 0x81a   : > { %v9279_v60 = vpop.f32.mrf.mxu0  ;;  %v7786_v55 = vmul.f32 1.442695, %v7722_v31  ;;  %v7725_v7 = vmin.f32 %v17286_v42, 20.0  ;;  %v17296_v19 = vmul.f32 100.0, %v17289_v15  ;;  %v7347_v23 = vadd.f32 1.0, %v17292_v51 }
 0x81b   : > { %9297 = vmatprep.mubr.msk.bf16.mxu0 %vm5613_vm9, %v7441_v34  ;;  %10141 = vpow2.f32 %v7790_v22  ;;  %v17302_v45 = vadd.f32 %v9279_v60, %v17245_v46  ;;  %v7350_v21 = vmul.f32 -0.5, %v17292_v51  ;;  %v7353_v10 = vand.u32 2147483647, %v17292_v51 }
 0x81c   : > { %9298 = vmatmul.mubr.msk.bf16.gmra.mxu0 %vm5613_vm9, %v7442_v28  ;;  %10143 = vpow2.f32 %v7786_v55  ;;  %v7579_v25 = vpop.f32.mrf.mxu0  ;;  %v7792_v47 = vmul.f32 1.442695, %v7725_v7  ;;  %v7723_v33 = vmin.f32 %v17296_v19, 20.0  ;;  %vm7757_vm11 = vcmp.gt.f32.partialorder %v17286_v42, 20.0 }
 0x81d   : > { %v17304_v3 = vpop.eup %10135  ;;  %10145 = vlog2.f32 %v7347_v23  ;;  %v17308_v53 = vadd.f32 %v17245_v46, %v7579_v25  ;;  %v17314_v36 = vmul.f32 100.0, %v17302_v45  ;;  %v7351_v12 = vadd.f32 1.0, %v7350_v21 }
 0x81e   : > { %v7329_v29 = vadd.f32 1.0, %v17304_v3  ;;  %10147 = vpow2.f32 %v7792_v47  ;;  %v17310_v38 = vpop.eup %10137  ;;  %v7788_v18 = vmul.f32 1.442695, %v7723_v33  ;;  %v9280_v32 = vpop.f32.mrf.mxu0  ;;  %v7332_v52 = vmul.f32 -0.5, %v17304_v3 }
 0x81f   : > { %v7356_v59 = vadd.f32 1.0, %v17310_v38  ;;  %v17317_v30 = vmul.f32 100.0, %v17308_v53  ;;  %v17320_v44 = vadd.f32 %v9280_v32, %v17245_v46  ;;  %v7728_v2 = vmin.f32 %v17314_v36, 20.0 }
 0x820   : > { %10149 = vlog2.f32 %v7329_v29  ;;  %v7582_v54 = vpop.f32.mrf.mxu0  ;;  %v7359_v41 = vmul.f32 -0.5, %v17310_v38  ;;  %v7335_v5 = vand.u32 2147483647, %v17304_v3  ;;  %vm17347_vm8 = vcmp.lt.f32.partialorder %v7353_v10, 0.0004427343 }
 0x821   : > { %10151 = vpow2.f32 %v7788_v18  ;;  %v7726_v24 = vmin.f32 %v17317_v30, 20.0  ;;  %v17327_v49 = vmul.f32 100.0, %v17320_v44  ;;  %v7798_v61 = vmul.f32 1.442695, %v7728_v2 }
 0x822   : > { %10153 = vlog2.f32 %v7356_v59  ;;  %v17322_v20 = vpop.eup %10139  ;;  %v17341_v40 = vadd.f32 %v17245_v46, %v7582_v54  ;;  %v7333_v31 = vadd.f32 1.0, %v7332_v52  ;;  %v7360_v58 = vadd.f32 1.0, %v7359_v41 }
 0x823   : > { %v7338_v13 = vadd.f32 1.0, %v17322_v20  ;;  %v7794_v6 = vmul.f32 1.442695, %v7726_v24  ;;  %v7729_v48 = vmin.f32 %v17327_v49, 20.0  ;;  %v7362_v7 = vand.u32 2147483647, %v17310_v38 }
 0x824   : > { %v17353_v60 = vmul.f32 100.0, %v17341_v40  ;;  %v7341_v23 = vmul.f32 -0.5, %v17322_v20  ;;  %v7352_v47 = vmul.f32 %v17292_v51, %v7351_v12  ;;  %vm17360_vm6 = vcmp.lt.f32.partialorder %v7335_v5, 0.0004427343 }
 0x825   : > { %10155 = vlog2.f32 %v7338_v13  ;;  %v7800_v56 = vmul.f32 1.442695, %v7729_v48  ;;  %v7344_v59 = vand.u32 2147483647, %v17322_v20  ;;  %v7334_v13 = vmul.f32 %v17304_v3, %v7333_v31 }
 0x826   : > { %10157 = vpow2.f32 %v7794_v6  ;;  %v7361_v54 = vmul.f32 %v17310_v38, %v7360_v58  ;;  %v7727_v21 = vmin.f32 %v17353_v60, 20.0  ;;  %vm17376_vm14 = vcmp.lt.f32.partialorder %v7362_v7, 0.0004427343 }
 0x827   : > { %v7342_v10 = vadd.f32 1.0, %v7341_v23  ;;  %vm17387_vm5 = vcmp.lt.f32.partialorder %v7344_v59, 0.0004427343  ;;  %vm7755_vm15 = vcmp.gt.f32.partialorder %v17296_v19, 20.0 }
 0x828   : > { %v17332_v62 = vpop.eup %10141  ;;  %v7796_v34 = vmul.f32 1.442695, %v7727_v21 }
 0x829   : > { %v17336_v14 = vpop.eup %10143  ;;  %v7868_v1 = vadd.f32 1.0, %v17332_v62  ;;  %v7871_v29 = vmul.f32 -0.5, %v17332_v62  ;;  %v7874_v38 = vand.u32 2147483647, %v17332_v62 }
 0x82a   : > { %v7850_v4 = vadd.f32 1.0, %v17336_v14  ;;  %v10146_v37 = vpop.eup %10145  ;;  %v7853_v2 = vmul.f32 -0.5, %v17336_v14  ;;  %v7856_v41 = vand.u32 2147483647, %v17336_v14 }
 0x82b   : > { %10159 = vlog2.f32 %v7868_v1  ;;  %v17345_v26 = vpop.eup %10147  ;;  %v7349_v55 = vmul.f32 0.6931472, %v10146_v37  ;;  %v7872_v52 = vadd.f32 1.0, %v7871_v29  ;;  %vm17398_vm4 = vcmp.lt.f32.partialorder %v7874_v38, 0.0004427343 }
 0x82c   : > { %10161 = vlog2.f32 %v7850_v4  ;;  %v7877_v22 = vadd.f32 1.0, %v17345_v26  ;;  %v7854_v4 = vadd.f32 1.0, %v7853_v2  ;;  %v7880_v37 = vmul.f32 -0.5, %v17345_v26 }
 0x82d   : > { %10163 = vpow2.f32 %v7798_v61  ;;  %v10150_v28 = vpop.eup %10149  ;;  %v7355_v6 = vsel %vm17347_vm8, %v7352_v47, %v7349_v55  ;;  %v7873_v23 = vmul.f32 %v17332_v62, %v7872_v52  ;;  %vm17402_vm2 = vcmp.lt.f32.partialorder %v7856_v41, 0.0004427343 }
 0x82e   : > { %10165 = vpow2.f32 %v7800_v56  ;;  %v17357_v25 = vpop.eup %10151  ;;  %v7331_v32 = vmul.f32 0.6931472, %v10150_v28  ;;  %v7395_v5 = vmul.f32 0.01, %v7355_v6  ;;  %v7883_v56 = vand.u32 2147483647, %v17345_v26 }
 0x82f   : > { %10167 = vlog2.f32 %v7877_v22  ;;  %v10154_v18 = vpop.eup %10153  ;;  %v7859_v24 = vadd.f32 1.0, %v17357_v25  ;;  %v7343_v22 = vmul.f32 %v17322_v20, %v7342_v10  ;;  %v7862_v28 = vmul.f32 -0.5, %v17357_v25 }
 0x830   : > { %v7358_v51 = vmul.f32 0.6931472, %v10154_v18  ;;  %v7337_v1 = vsel %vm17360_vm6, %v7334_v13, %v7331_v32  ;;  %v7855_v20 = vmul.f32 %v17336_v14, %v7854_v4  ;;  %v7881_v32 = vadd.f32 1.0, %v7880_v37 }
 0x831   : > { %10169 = vlog2.f32 %v7859_v24  ;;  %v7393_v7 = vmul.f32 0.01, %v7337_v1  ;;  %v7427_v62 = vsel %vm7011_vm1, %v17177_v16, %v7395_v5  ;;  %vm17412_vm13 = vcmp.lt.f32.partialorder %v7883_v56, 0.0004427343 }
 0x832   : > { %v7364_v3 = vsel %vm17376_vm14, %v7361_v54, %v7358_v51  ;;  %v10156_v12 = vpop.eup %10155  ;;  %10171 = vpow2.f32 %v7796_v34  ;;  %v7865_v51 = vand.u32 2147483647, %v17357_v25  ;;  %v7863_v6 = vadd.f32 1.0, %v7862_v28 }
 0x833   : > { %v7396_v31 = vmul.f32 0.01, %v7364_v3  ;;  %v7340_v58 = vmul.f32 0.6931472, %v10156_v12  ;;  %v17395_v55 = vpop.eup %10157  ;;  %v7425_v10 = vsel %vm7009_vm0, %v17189_v11, %v7393_v7  ;;  %v7882_v41 = vmul.f32 %v17345_v26, %v7881_v32 }
 0x834   : > { %v7886_v1 = vadd.f32 1.0, %v17395_v55  ;;  %v7864_v12 = vmul.f32 %v17357_v25, %v7863_v6  ;;  %vm17447_vm7 = vcmp.lt.f32.partialorder %v7865_v51, 0.0004427343  ;;  %vm7756_vm8 = vcmp.gt.f32.partialorder %v17269_v9, 20.0 }
 0x835   : > { %v7346_v18 = vsel %vm17387_vm5, %v7343_v22, %v7340_v58  ;;  %v7428_v14 = vsel %vm7012_vm3, %v17215_v50, %v7396_v31  ;;  %vm7761_vm14 = vcmp.gt.f32.partialorder %v17327_v49, 20.0  ;;  %vm7759_vm5 = vcmp.gt.f32.partialorder %v17353_v60, 20.0 }
 0x836   : > { %v7394_v24 = vmul.f32 0.01, %v7346_v18  ;;  %v7444_v4 = vpack.c.bf16 %v7428_v14, %v7427_v62 }
 0x838   : > { %v10160_v29 = vpop.eup %10159  ;;  %v9283_v59 = vpop.f32.mrf.mxu0  ;;  %v7426_v3 = vsel %vm7010_vm12, %v17227_v0, %v7394_v24  ;;  %vm7758_vm12 = vcmp.gt.f32.partialorder %v17317_v30, 20.0 }
 0x839   : > { %v10162_v2 = vpop.eup %10161  ;;  %v17423_v48 = vadd.f32 %v9283_v59, %v17245_v46  ;;  %v7870_v52 = vmul.f32 0.6931472, %v10160_v29  ;;  %v7443_v38 = vpack.c.bf16 %v7426_v3, %v7425_v10  ;;  %v7889_v10 = vmul.f32 -0.5, %v17395_v55 }
 0x83a   : > { %v17417_v54 = vpop.eup %10163  ;;  %v7852_v21 = vmul.f32 0.6931472, %v10162_v2  ;;  %v7595_v43 = vpop.f32.mrf.mxu0  ;;  %v7892_v3 = vand.u32 2147483647, %v17395_v55 }
 0x83b   : > { %v17425_v16 = vpop.eup %10165  ;;  %v17434_v8 = vadd.f32 %v17245_v46, %v7595_v43  ;;  %v7904_v11 = vadd.f32 1.0, %v17417_v54  ;;  %v17441_v27 = vmul.f32 100.0, %v17423_v48  ;;  %9301 = vmatprep.mubr.msk.bf16.mxu0 %vm5613_vm9, %v7443_v38  ;;  %v7876_v34 = vsel %vm17398_vm4, %v7873_v23, %v7870_v52 }
 0x83c   : > { %v10168_v50 = vpop.eup %10167  ;;  %v7913_v61 = vadd.f32 1.0, %v17425_v16  ;;  %v9284_v0 = vpop.f32.mrf.mxu0  ;;  %v7858_v35 = vsel %vm17402_vm2, %v7855_v20, %v7852_v21  ;;  %9302 = vmatmul.mubr.msk.bf16.gmra.mxu0 %vm5613_vm9, %v7444_v4  ;;  %v8140_v29 = vmul.f32 0.01, %v7876_v34  ;;  %v7907_v21 = vmul.f32 -0.5, %v17417_v54 }
 0x83d   : > { %v7879_v37 = vmul.f32 0.6931472, %v10168_v50  ;;  %v17452_v5 = vmul.f32 100.0, %v17434_v8  ;;  %v7732_v58 = vmin.f32 %v17441_v27, 20.0  ;;  %v17461_v28 = vadd.f32 %v9284_v0, %v17245_v46 }
 0x83e   : > { %v10170_v56 = vpop.eup %10169  ;;  %10173 = vlog2.f32 %v7913_v61  ;;  %v8138_v7 = vmul.f32 0.01, %v7858_v35  ;;  %v7598_v23 = vpop.f32.mrf.mxu0  ;;  %v8172_v19 = vsel %vm7756_vm8, %v17257_v39, %v8140_v29  ;;  %v7916_v39 = vmul.f32 -0.5, %v17425_v16 }
 0x83f   : > { %v7885_v31 = vsel %vm17412_vm13, %v7882_v41, %v7879_v37  ;;  %v7861_v22 = vmul.f32 0.6931472, %v10170_v56  ;;  %10175 = vlog2.f32 %v7886_v1  ;;  %v7806_v33 = vmul.f32 1.442695, %v7732_v58  ;;  %v17477_v57 = vpop.eup %10171 }
 0x840   : > { %v8141_v25 = vmul.f32 0.01, %v7885_v31  ;;  %10177 = vlog2.f32 %v7904_v11  ;;  %v7730_v47 = vmin.f32 %v17452_v5, 20.0  ;;  %v17468_v20 = vmul.f32 100.0, %v17461_v28 }
 0x841   : > { %v7867_v18 = vsel %vm17447_vm7, %v7864_v12, %v7861_v22  ;;  %10179 = vpow2.f32 %v7806_v33  ;;  %v17475_v24 = vadd.f32 %v17245_v46, %v7598_v23  ;;  %v8170_v13 = vsel %vm7754_vm10, %v17265_v63, %v8138_v7 }
 0x842   : > { %v8139_v32 = vmul.f32 0.01, %v7867_v18  ;;  %v8173_v59 = vsel %vm7757_vm11, %v17276_v17, %v8141_v25  ;;  %v7802_v2 = vmul.f32 1.442695, %v7730_v47  ;;  %v7733_v62 = vmin.f32 %v17468_v20, 20.0 }
 0x843   : > { %v7895_v14 = vadd.f32 1.0, %v17477_v57  ;;  %v8203_v17 = vpack.c.bf16 %v8173_v59, %v8172_v19  ;;  %v17488_v63 = vmul.f32 100.0, %v17475_v24  ;;  %v7908_v50 = vadd.f32 1.0, %v7907_v21 }
 0x844   : > { %v8171_v42 = vsel %vm7755_vm15, %v17289_v15, %v8139_v32  ;;  %10181 = vpow2.f32 %v7802_v2  ;;  %v7808_v6 = vmul.f32 1.442695, %v7733_v62  ;;  %v7910_v38 = vand.u32 2147483647, %v17417_v54 }
 0x845   : > { %v8202_v51 = vpack.c.bf16 %v8171_v42, %v8170_v13  ;;  %10183 = vlog2.f32 %v7895_v14  ;;  %v7731_v52 = vmin.f32 %v17488_v63, 20.0  ;;  %v7890_v37 = vadd.f32 1.0, %v7889_v10 }
 0x846   : > { %10185 = vpow2.f32 %v7808_v6  ;;  %vm17504_vm6 = vcmp.lt.f32.partialorder %v7892_v3, 0.0004427343  ;;  %v7917_v26 = vadd.f32 1.0, %v7916_v39  ;;  %v7898_v56 = vmul.f32 -0.5, %v17477_v57 }
 0x847   : > { %9313 = vmatprep.mubr.msk.bf16.mxu1 %vm5613_vm9, %v8202_v51  ;;  %v7804_v0 = vmul.f32 1.442695, %v7731_v52  ;;  %v7919_v22 = vand.u32 2147483647, %v17425_v16  ;;  %v7909_v47 = vmul.f32 %v17417_v54, %v7908_v50  ;;  %v7891_v2 = vmul.f32 %v17395_v55, %v7890_v37 }
 0x848   : > { %v9287_v43 = vpop.f32.mrf.mxu0  ;;  %9314 = vmatmul.mubr.msk.bf16.vlgmr.msra.gmra.mxu1 %vm5613_vm9, %v8203_v17  ;;  %v7918_v19 = vmul.f32 %v17425_v16, %v7917_v26  ;;  %v7899_v51 = vadd.f32 1.0, %v7898_v56  ;;  %v7901_v6 = vand.u32 2147483647, %v17477_v57  ;;  %vm17544_vm3 = vcmp.lt.f32.partialorder %v7910_v38, 0.0004427343 }
 0x849   : > { %v17494_v9 = vadd.f32 %v9287_v43, %v17245_v46  ;;  %10187 = vpow2.f32 %v7804_v0  ;;  %vm17534_vm1 = vcmp.lt.f32.partialorder %v7919_v22, 0.0004427343  ;;  %vm7760_vm4 = vcmp.gt.f32.partialorder %v17314_v36, 20.0 }
 0x84a   : > { %v7611_v15 = vpop.f32.mrf.mxu0  ;;  %v7900_v52 = vmul.f32 %v17477_v57, %v7899_v51  ;;  %vm7902_vm0 = vcmp.lt.f32.partialorder %v7901_v6, 0.0004427343  ;;  %vm7764_vm13 = vcmp.gt.f32.partialorder %v17441_v27, 20.0  ;;  %vm7765_vm10 = vcmp.gt.f32.partialorder %v17468_v20, 20.0 }
 0x84b   : > { %v17499_v41 = vmul.f32 100.0, %v17494_v9  ;;  %v17502_v1 = vadd.f32 %v17245_v46, %v7611_v15  ;;  %v10174_v4 = vpop.eup %10173  ;;  %vm7762_vm11 = vcmp.gt.f32.partialorder %v17452_v5, 20.0  ;;  %vm7763_vm8 = vcmp.gt.f32.partialorder %v17488_v63, 20.0 }
 0x84c   : > { %v9288_v61 = vpop.f32.mrf.mxu0  ;;  %v10176_v12 = vpop.eup %10175  ;;  %v7915_v23 = vmul.f32 0.6931472, %v10174_v4 }
 0x84d   : > { %v17509_v35 = vadd.f32 %v9288_v61, %v17245_v46  ;;  %v7736_v34 = vmin.f32 %v17499_v41, 20.0  ;;  %v17514_v31 = vmul.f32 100.0, %v17502_v1  ;;  %v10178_v25 = vpop.eup %10177  ;;  %v7888_v59 = vmul.f32 0.6931472, %v10176_v12 }
 0x84e   : > { %v7614_v58 = vpop.f32.mrf.mxu0  ;;  %v17525_v32 = vpop.eup %10179  ;;  %v7906_v42 = vmul.f32 0.6931472, %v10178_v25  ;;  %v7921_v55 = vsel %vm17534_vm1, %v7918_v19, %v7915_v23 }
 0x84f   : > { %v17518_v7 = vmul.f32 100.0, %v17509_v35  ;;  %v17521_v33 = vadd.f32 %v17245_v46, %v7614_v58  ;;  %v7814_v29 = vmul.f32 1.442695, %v7736_v34  ;;  %v7734_v18 = vmin.f32 %v17514_v31, 20.0 }
 0x850   : > { %v7940_v54 = vadd.f32 1.0, %v17525_v32  ;;  %v7894_v3 = vsel %vm17504_vm6, %v7891_v2, %v7888_v59  ;;  %v7912_v15 = vsel %vm17544_vm3, %v7909_v47, %v7906_v42  ;;  %v8145_v4 = vmul.f32 0.01, %v7921_v55 }
 0x851   : > { %v7737_v62 = vmin.f32 %v17518_v7, 20.0  ;;  %v17530_v13 = vmul.f32 100.0, %v17521_v33  ;;  %10189 = vpow2.f32 %v7814_v29  ;;  %v7810_v17 = vmul.f32 1.442695, %v7734_v18  ;;  %v17542_v10 = vpop.eup %10181 }
 0x852   : > { %10191 = vlog2.f32 %v7940_v54  ;;  %v10184_v39 = vpop.eup %10183  ;;  %v7922_v50 = vadd.f32 1.0, %v17542_v10  ;;  %v8142_v0 = vmul.f32 0.01, %v7894_v3  ;;  %v8144_v12 = vmul.f32 0.01, %v7912_v15 }
 0x853   : > { %v7816_v21 = vmul.f32 1.442695, %v7737_v62  ;;  %v7735_v43 = vmin.f32 %v17530_v13, 20.0  ;;  %10193 = vpow2.f32 %v7810_v17  ;;  %v17554_v61 = vpop.eup %10185  ;;  %v7897_v37 = vmul.f32 0.6931472, %v10184_v39 }
 0x854   : > { %v7949_v11 = vadd.f32 1.0, %v17554_v61  ;;  %v8177_v57 = vsel %vm7761_vm14, %v17320_v44, %v8145_v4  ;;  %v8174_v58 = vsel %vm7758_vm12, %v17308_v53, %v8142_v0  ;;  %v7943_v22 = vmul.f32 -0.5, %v17525_v32 }
 0x855   : > { %10195 = vpow2.f32 %v7816_v21  ;;  %v7812_v38 = vmul.f32 1.442695, %v7735_v43  ;;  %v7903_v26 = vsel %vm7902_vm0, %v7900_v52, %v7897_v37  ;;  %v8176_v49 = vsel %vm7760_vm4, %v17302_v45, %v8144_v12 }
 0x856   : > { %10197 = vlog2.f32 %v7922_v50  ;;  %v8143_v56 = vmul.f32 0.01, %v7903_v26  ;;  %v17561_v34 = vpop.eup %10187  ;;  %v8205_v30 = vpack.c.bf16 %v8177_v57, %v8176_v49  ;;  %v7946_v44 = vand.u32 2147483647, %v17525_v32 }
 0x857   : > { %10199 = vpow2.f32 %v7812_v38  ;;  %v7931_v23 = vadd.f32 1.0, %v17561_v34  ;;  %v7944_v36 = vadd.f32 1.0, %v7943_v22  ;;  %v7925_v53 = vmul.f32 -0.5, %v17542_v10 }
 0x858   : > { %10201 = vlog2.f32 %v7949_v11  ;;  %v8175_v25 = vsel %vm7759_vm5, %v17341_v40, %v8143_v56  ;;  %v7928_v40 = vand.u32 2147483647, %v17542_v10  ;;  %v7952_v29 = vmul.f32 -0.5, %v17554_v61 }
 0x859   : > { %v8204_v47 = vpack.c.bf16 %v8175_v25, %v8174_v58  ;;  %10203 = vlog2.f32 %v7931_v23  ;;  %v7934_v62 = vmul.f32 -0.5, %v17561_v34  ;;  %vm17582_vm2 = vcmp.lt.f32.partialorder %v7946_v44, 0.0004427343 }
 0x85a   : > { %v7945_v17 = vmul.f32 %v17525_v32, %v7944_v36  ;;  %v7926_v21 = vadd.f32 1.0, %v7925_v53  ;;  %vm17591_vm7 = vcmp.lt.f32.partialorder %v7928_v40, 0.0004427343  ;;  %v7953_v6 = vadd.f32 1.0, %v7952_v29 }
 0x85b   : > { %9317 = vmatprep.mubr.msk.bf16.mxu1 %vm5613_vm9, %v8204_v47  ;;  %v7955_v3 = vand.u32 2147483647, %v17554_v61  ;;  %v7937_v39 = vand.u32 2147483647, %v17561_v34  ;;  %v7935_v50 = vadd.f32 1.0, %v7934_v62  ;;  %vm7769_vm12 = vcmp.gt.f32.partialorder %v17518_v7, 20.0 }
 0x85c   : > { %9318 = vmatmul.mubr.msk.bf16.gmra.mxu1 %vm5613_vm9, %v8205_v30  ;;  %v7927_v56 = vmul.f32 %v17542_v10, %v7926_v21  ;;  %v7954_v58 = vmul.f32 %v17554_v61, %v7953_v6  ;;  %vm7766_vm5 = vcmp.gt.f32.partialorder %v17514_v31, 20.0  ;;  %vm7767_vm4 = vcmp.gt.f32.partialorder %v17530_v13, 20.0 }
 0x85d   : > { %v9291_v19 = vpop.f32.mrf.mxu0  ;;  %vm17612_vm15 = vcmp.lt.f32.partialorder %v7955_v3, 0.0004427343  ;;  %vm17617_vm6 = vcmp.lt.f32.partialorder %v7937_v39, 0.0004427343  ;;  %v7936_v61 = vmul.f32 %v17561_v34, %v7935_v50 }
 0x85e   : > { %v17571_v60 = vpop.eup %10189  ;;  %v17603_v37 = vadd.f32 %v9291_v19, %v17245_v46 }
 0x85f   : > { %v10192_v45 = vpop.eup %10191  ;;  %v7976_v18 = vadd.f32 1.0, %v17571_v60  ;;  %v7979_v42 = vmul.f32 -0.5, %v17571_v60  ;;  %v7627_v43 = vpop.f32.mrf.mxu0  ;;  %v7982_v23 = vand.u32 2147483647, %v17571_v60 }
 0x860   : > { %v17578_v59 = vpop.eup %10193  ;;  %v7942_v2 = vmul.f32 0.6931472, %v10192_v45  ;;  %v17626_v30 = vmul.f32 100.0, %v17603_v37  ;;  %v17632_v40 = vadd.f32 %v17245_v46, %v7627_v43 }
 0x861   : > { %10205 = vlog2.f32 %v7976_v18  ;;  %v7958_v54 = vadd.f32 1.0, %v17578_v59  ;;  %v7980_v4 = vadd.f32 1.0, %v7979_v42  ;;  %v7961_v11 = vmul.f32 -0.5, %v17578_v59  ;;  %v9292_v26 = vpop.f32.mrf.mxu0 }
 0x862   : > { %v17587_v14 = vpop.eup %10195  ;;  %v7948_v32 = vsel %vm17582_vm2, %v7945_v17, %v7942_v2  ;;  %v7964_v25 = vand.u32 2147483647, %v17578_v59  ;;  %v7740_v2 = vmin.f32 %v17626_v30, 20.0  ;;  %v17641_v62 = vadd.f32 %v9292_v26, %v17245_v46 }
 0x863   : > { %v10198_v16 = vpop.eup %10197  ;;  %10207 = vlog2.f32 %v7958_v54  ;;  %v7985_v15 = vadd.f32 1.0, %v17587_v14  ;;  %v8148_v22 = vmul.f32 0.01, %v7948_v32  ;;  %v7981_v36 = vmul.f32 %v17571_v60, %v7980_v4  ;;  %v7630_v29 = vpop.f32.mrf.mxu0 }
 0x864   : > { %v17598_v52 = vpop.eup %10199  ;;  %v7924_v0 = vmul.f32 0.6931472, %v10198_v16  ;;  %v7962_v53 = vadd.f32 1.0, %v7961_v11  ;;  %vm17634_vm1 = vcmp.lt.f32.partialorder %v7964_v25, 0.0004427343  ;;  %v7988_v34 = vmul.f32 -0.5, %v17587_v14 }
 0x865   : > { %v10202_v38 = vpop.eup %10201  ;;  %10209 = vlog2.f32 %v7985_v15  ;;  %v7967_v12 = vadd.f32 1.0, %v17598_v52  ;;  %v8180_v60 = vsel %vm7764_vm13, %v17423_v48, %v8148_v22  ;;  %v17647_v51 = vmul.f32 100.0, %v17632_v40 }
 0x866   : > { %v7951_v57 = vmul.f32 0.6931472, %v10202_v38  ;;  %v7930_v44 = vsel %vm17591_vm7, %v7927_v56, %v7924_v0  ;;  %v10204_v45 = vpop.eup %10203  ;;  %v7822_v17 = vmul.f32 1.442695, %v7740_v2  ;;  %v17650_v21 = vmul.f32 100.0, %v17641_v62 }
 0x867   : > { %10211 = vlog2.f32 %v7967_v12  ;;  %v7933_v19 = vmul.f32 0.6931472, %v10204_v45  ;;  %v8146_v54 = vmul.f32 0.01, %v7930_v44  ;;  %v17653_v55 = vadd.f32 %v17245_v46, %v7630_v29 }
 0x868   : > { %v7957_v10 = vsel %vm17612_vm15, %v7954_v58, %v7951_v57  ;;  %v7991_v43 = vand.u32 2147483647, %v17587_v14  ;;  %v7970_v48 = vmul.f32 -0.5, %v17598_v52  ;;  %v7738_v27 = vmin.f32 %v17647_v51, 20.0 }
 0x869   : > { %v8149_v42 = vmul.f32 0.01, %v7957_v10  ;;  %v7939_v6 = vsel %vm17617_vm6, %v7936_v61, %v7933_v19  ;;  %v7963_v39 = vmul.f32 %v17578_v59, %v7962_v53  ;;  %10213 = vpow2.f32 %v7822_v17 }
 0x86a   : > { %v8147_v3 = vmul.f32 0.01, %v7939_v6  ;;  %v7741_v15 = vmin.f32 %v17650_v21, 20.0  ;;  %v7989_v32 = vadd.f32 1.0, %v7988_v34  ;;  %v7818_v50 = vmul.f32 1.442695, %v7738_v27 }
 0x86b   : > { %v8181_v46 = vsel %vm7765_vm10, %v17461_v28, %v8149_v42  ;;  %v17666_v4 = vmul.f32 100.0, %v17653_v55  ;;  %v8178_v0 = vsel %vm7762_vm11, %v17434_v8, %v8146_v54  ;;  %v7971_v20 = vadd.f32 1.0, %v7970_v48 }
 0x86c   : > { %v8179_v59 = vsel %vm7763_vm8, %v17475_v24, %v8147_v3  ;;  %v7824_v12 = vmul.f32 1.442695, %v7741_v15  ;;  %10215 = vpow2.f32 %v7818_v50  ;;  %v8207_v57 = vpack.c.bf16 %v8181_v46, %v8180_v60 }
 0x86d   : > { %v8206_v26 = vpack.c.bf16 %v8179_v59, %v8178_v0  ;;  %v7973_v58 = vand.u32 2147483647, %v17598_v52  ;;  %v7739_v25 = vmin.f32 %v17666_v4, 20.0  ;;  %vm17676_vm3 = vcmp.lt.f32.partialorder %v7982_v23, 0.0004427343 }
 0x86e   : > { %v10206_v16 = vpop.eup %10205  ;;  %10217 = vpow2.f32 %v7824_v12  ;;  %v7990_v63 = vmul.f32 %v17587_v14, %v7989_v32  ;;  %vm7992_vm0 = vcmp.lt.f32.partialorder %v7991_v43, 0.0004427343  ;;  %v7972_v23 = vmul.f32 %v17598_v52, %v7971_v20 }
 0x86f   : > { %v7978_v11 = vmul.f32 0.6931472, %v10206_v16  ;;  %9321 = vmatprep.mubr.msk.bf16.mxu1 %vm5613_vm9, %v8206_v26  ;;  %v7820_v47 = vmul.f32 1.442695, %v7739_v25  ;;  %vm7974_vm14 = vcmp.lt.f32.partialorder %v7973_v58, 0.0004427343 }
 0x870   : > { %v10208_v38 = vpop.eup %10207  ;;  %9322 = vmatmul.mubr.msk.bf16.gmra.mxu1 %vm5613_vm9, %v8207_v57  ;;  %vm7768_vm2 = vcmp.gt.f32.partialorder %v17499_v41, 20.0  ;;  %vm7773_vm15 = vcmp.gt.f32.partialorder %v17650_v21, 20.0  ;;  %vm7770_vm8 = vcmp.gt.f32.partialorder %v17647_v51, 20.0  ;;  %vm7771_vm6 = vcmp.gt.f32.partialorder %v17666_v4, 20.0 }
 0x871   : > { %v7960_v56 = vmul.f32 0.6931472, %v10208_v38  ;;  %v7984_v49 = vsel %vm17676_vm3, %v7981_v36, %v7978_v11  ;;  %10219 = vpow2.f32 %v7820_v47 }
 0x872   : > { %v10210_v28 = vpop.eup %10209  ;;  %v8152_v29 = vmul.f32 0.01, %v7984_v49 }
 0x873   : > { %v7966_v8 = vsel %vm17634_vm1, %v7963_v39, %v7960_v56  ;;  %v7987_v24 = vmul.f32 0.6931472, %v10210_v28  ;;  %vm7772_vm1 = vcmp.gt.f32.partialorder %v17626_v30, 20.0 }
 0x874   : > { %v10212_v22 = vpop.eup %10211  ;;  %v8150_v44 = vmul.f32 0.01, %v7966_v8  ;;  %v8184_v2 = vsel %vm7768_vm2, %v17494_v9, %v8152_v29 }
 0x875   : > { %v7993_v10 = vsel %vm7992_vm0, %v7990_v63, %v7987_v24  ;;  %v7969_v61 = vmul.f32 0.6931472, %v10212_v22 }
 0x876   : > { %v8153_v53 = vmul.f32 0.01, %v7993_v10  ;;  %v8182_v18 = vsel %vm7766_vm5, %v17502_v1, %v8150_v44  ;;  %v10214_v34 = vpop.eup %10213 }
 0x877   : > { %v7975_v14 = vsel %vm7974_vm14, %v7972_v23, %v7969_v61  ;;  %v8012_v19 = vadd.f32 1.0, %v10214_v34  ;;  %v8015_v9 = vmul.f32 -0.5, %v10214_v34  ;;  %v8018_v15 = vand.u32 2147483647, %v10214_v34 }
 0x878   : > { %v8151_v45 = vmul.f32 0.01, %v7975_v14  ;;  %v8185_v36 = vsel %vm7769_vm12, %v17509_v35, %v8153_v53 }
 0x879   : > { %v8209_v42 = vpack.c.bf16 %v8185_v36, %v8184_v2  ;;  %v10216_v7 = vpop.eup %10215  ;;  %10221 = vlog2.f32 %v8012_v19  ;;  %v8016_v27 = vadd.f32 1.0, %v8015_v9  ;;  %vm8019_vm10 = vcmp.lt.f32.partialorder %v8018_v15, 0.0004427343 }
 0x87a   : > { %v8183_v52 = vsel %vm7767_vm4, %v17521_v33, %v8151_v45  ;;  %v7994_v31 = vadd.f32 1.0, %v10216_v7  ;;  %v7997_v33 = vmul.f32 -0.5, %v10216_v7  ;;  %v8000_v16 = vand.u32 2147483647, %v10216_v7 }
 0x87b   : > { %v8208_v60 = vpack.c.bf16 %v8183_v52, %v8182_v18  ;;  %v10218_v35 = vpop.eup %10217  ;;  %v8017_v12 = vmul.f32 %v10214_v34, %v8016_v27 }
 0x87c   : > { %v8021_v13 = vadd.f32 1.0, %v10218_v35  ;;  %10223 = vlog2.f32 %v7994_v31  ;;  %v8024_v54 = vmul.f32 -0.5, %v10218_v35  ;;  %v7998_v6 = vadd.f32 1.0, %v7997_v33 }
 0x87d   : > { %9325 = vmatprep.mubr.msk.bf16.mxu1 %vm5613_vm9, %v8208_v60  ;;  %v8027_v3 = vand.u32 2147483647, %v10218_v35  ;;  %vm8001_vm13 = vcmp.lt.f32.partialorder %v8000_v16, 0.0004427343 }
 0x87e   : > { %9326 = vmatmul.mubr.msk.bf16.gmra.mxu1 %vm5613_vm9, %v8209_v42  ;;  %10225 = vlog2.f32 %v8021_v13  ;;  %v10220_v41 = vpop.eup %10219  ;;  %v8025_v43 = vadd.f32 1.0, %v8024_v54  ;;  %v7999_v38 = vmul.f32 %v10216_v7, %v7998_v6 }
 0x87f   : > { %v8003_v1 = vadd.f32 1.0, %v10220_v41  ;;  %v8006_v48 = vmul.f32 -0.5, %v10220_v41  ;;  %vm8028_vm7 = vcmp.lt.f32.partialorder %v8027_v3, 0.0004427343  ;;  %v8009_v26 = vand.u32 2147483647, %v10220_v41 }
 0x880   : > { %v8026_v59 = vmul.f32 %v10218_v35, %v8025_v43 }
 0x881   : > { %10227 = vlog2.f32 %v8003_v1  ;;  %v8007_v11 = vadd.f32 1.0, %v8006_v48  ;;  %vm8010_vm11 = vcmp.lt.f32.partialorder %v8009_v26, 0.0004427343 }
 0x883   : > { %v8008_v5 = vmul.f32 %v10220_v41, %v8007_v11 }
 0x886   : > { %v10222_v17 = vpop.eup %10221 }
 0x887   : > { %v8014_v32 = vmul.f32 0.6931472, %v10222_v17 }
 0x889   : > { %v10224_v39 = vpop.eup %10223  ;;  %v8020_v57 = vsel %vm8019_vm10, %v8017_v12, %v8014_v32 }
 0x88a   : > { %v7996_v50 = vmul.f32 0.6931472, %v10224_v39  ;;  %v8156_v24 = vmul.f32 0.01, %v8020_v57 }
 0x88b   : > { %v10226_v46 = vpop.eup %10225 }
 0x88c   : > { %v8023_v0 = vmul.f32 0.6931472, %v10226_v46  ;;  %v8002_v56 = vsel %vm8001_vm13, %v7999_v38, %v7996_v50  ;;  %v8188_v61 = vsel %vm7772_vm1, %v17603_v37, %v8156_v24 }
 0x88d   : > { %v8154_v8 = vmul.f32 0.01, %v8002_v56 }
 0x88e   : > { %v8029_v20 = vsel %vm8028_vm7, %v8026_v59, %v8023_v0  ;;  %v10228_v28 = vpop.eup %10227 }
 0x88f   : > { %v8157_v58 = vmul.f32 0.01, %v8029_v20  ;;  %v8005_v25 = vmul.f32 0.6931472, %v10228_v28  ;;  %v8186_v47 = vsel %vm7770_vm8, %v17632_v40, %v8154_v8 }
 0x891   : > { %v8011_v63 = vsel %vm8010_vm11, %v8008_v5, %v8005_v25  ;;  %v8189_v49 = vsel %vm7773_vm15, %v17641_v62, %v8157_v58  ;;  %v17711_v62 = vld [vmem:[%s18038_s1 + $0x7] ss:$0 sm:$0xff] }
 0x892   : > { %v8155_v22 = vmul.f32 0.01, %v8011_v63  ;;  %v8211_v44 = vpack.c.bf16 %v8189_v49, %v8188_v61 }
 0x894   : > { %v8187_v10 = vsel %vm7771_vm6, %v17653_v55, %v8155_v22 }
 0x895   : > { %v8210_v23 = vpack.c.bf16 %v8187_v10, %v8186_v47 }
 0x897   : > { %9329 = vmatprep.mubr.msk.bf16.mxu1 %vm5613_vm9, %v8210_v23 }
 0x898   : > { %9330 = vmatmul.mubr.msk.bf16.gmra.mxu1 %vm5613_vm9, %v8211_v44 }
 0x8d4   : > { %v9295_v21 = vpop.f32.mrf.mxu0 }
 0x8d5   : > { %v17714_v30 = vadd.f32 %v17711_v62, %v9295_v21 }
 0x8d6   : > { %v7643_v40 = vpop.f32.mrf.mxu0 }
 0x8d7   : > { %v17717_v51 = vmul.f32 100.0, %v17714_v30  ;;  %v17720_v37 = vadd.f32 %v17711_v62, %v7643_v40 }
 0x8d8   : > { %v9296_v55 = vpop.f32.mrf.mxu0 }
 0x8d9   : > { %v7744_v4 = vmin.f32 %v17717_v51, 20.0  ;;  %v17724_v53 = vmul.f32 100.0, %v17720_v37  ;;  %v17727_v29 = vadd.f32 %v17711_v62, %v9296_v55  ;;  %vm7776_vm5 = vcmp.gt.f32.partialorder %v17717_v51, 20.0 }
 0x8da   : > { %v7646_v14 = vpop.f32.mrf.mxu0 }
 0x8db   : > { %v7830_v45 = vmul.f32 1.442695, %v7744_v4  ;;  %v7742_v36 = vmin.f32 %v17724_v53, 20.0  ;;  %v17731_v18 = vmul.f32 100.0, %v17727_v29  ;;  %v17734_v52 = vadd.f32 %v17711_v62, %v7646_v14 }
 0x8dc   : > { %v9299_v34 = vpop.f32.mrf.mxu0  ;;  %vm7774_vm4 = vcmp.gt.f32.partialorder %v17724_v53, 20.0  ;;  %v17876_v53 = vld [vmem:[%s18038_s1 + $0x8] ss:$0 sm:$0xff] }
 0x8dd   : > { %10229 = vpow2.f32 %v7830_v45  ;;  %v7826_v2 = vmul.f32 1.442695, %v7742_v36  ;;  %v7745_v60 = vmin.f32 %v17731_v18, 20.0  ;;  %v17738_v42 = vmul.f32 100.0, %v17734_v52 }
 0x8de   : > { %v17741_v19 = vadd.f32 %v17711_v62, %v9299_v34  ;;  %v7659_v7 = vpop.f32.mrf.mxu0  ;;  %vm7777_vm14 = vcmp.gt.f32.partialorder %v17731_v18, 20.0 }
 0x8df   : > { %10231 = vpow2.f32 %v7826_v2  ;;  %v7832_v35 = vmul.f32 1.442695, %v7745_v60  ;;  %v17744_v31 = vadd.f32 %v17711_v62, %v7659_v7  ;;  %v7743_v13 = vmin.f32 %v17738_v42, 20.0 }
 0x8e0   : > { %v17748_v41 = vmul.f32 100.0, %v17741_v19  ;;  %v9300_v1 = vpop.f32.mrf.mxu0  ;;  %vm7775_vm2 = vcmp.gt.f32.partialorder %v17738_v42, 20.0 }
 0x8e1   : > { %10233 = vpow2.f32 %v7832_v35  ;;  %v17751_v33 = vmul.f32 100.0, %v17744_v31  ;;  %v17754_v54 = vadd.f32 %v17711_v62, %v9300_v1  ;;  %v7828_v9 = vmul.f32 1.442695, %v7743_v13 }
 0x8e2   : > { %v7748_v17 = vmin.f32 %v17748_v41, 20.0  ;;  %v7662_v6 = vpop.f32.mrf.mxu0 }
 0x8e3   : > { %v7746_v43 = vmin.f32 %v17751_v33, 20.0  ;;  %v17759_v48 = vmul.f32 100.0, %v17754_v54  ;;  %v17762_v27 = vadd.f32 %v17711_v62, %v7662_v6  ;;  %10235 = vpow2.f32 %v7828_v9 }
 0x8e4   : > { %v7838_v16 = vmul.f32 1.442695, %v7748_v17  ;;  %vm7778_vm8 = vcmp.gt.f32.partialorder %v17751_v33, 20.0 }
 0x8e5   : > { %v7834_v3 = vmul.f32 1.442695, %v7746_v43  ;;  %v7749_v39 = vmin.f32 %v17759_v48, 20.0  ;;  %v17766_v15 = vmul.f32 100.0, %v17762_v27  ;;  %vm7781_vm6 = vcmp.gt.f32.partialorder %v17759_v48, 20.0 }
 0x8e6   : > { %10237 = vpow2.f32 %v7838_v16 }
 0x8e7   : > { %10239 = vpow2.f32 %v7834_v3  ;;  %v7840_v46 = vmul.f32 1.442695, %v7749_v39  ;;  %v7747_v32 = vmin.f32 %v17766_v15, 20.0  ;;  %vm7779_vm1 = vcmp.gt.f32.partialorder %v17766_v15, 20.0 }
 0x8e9   : > { %10241 = vpow2.f32 %v7840_v46  ;;  %v7836_v50 = vmul.f32 1.442695, %v7747_v32 }
 0x8ea   : > { %v10230_v38 = vpop.eup %10229 }
 0x8eb   : > { %v8048_v0 = vadd.f32 1.0, %v10230_v38  ;;  %10243 = vpow2.f32 %v7836_v50  ;;  %v8051_v58 = vmul.f32 -0.5, %v10230_v38  ;;  %v8054_v25 = vand.u32 2147483647, %v10230_v38 }
 0x8ec   : > { %v10232_v59 = vpop.eup %10231 }
 0x8ed   : > { %10245 = vlog2.f32 %v8048_v0  ;;  %v8030_v11 = vadd.f32 1.0, %v10232_v59  ;;  %v8033_v8 = vmul.f32 -0.5, %v10232_v59  ;;  %v8036_v22 = vand.u32 2147483647, %v10232_v59 }
 0x8ee   : > { %v10234_v12 = vpop.eup %10233  ;;  %v8052_v23 = vadd.f32 1.0, %v8051_v58  ;;  %vm17780_vm3 = vcmp.lt.f32.partialorder %v8054_v25, 0.0004427343 }
 0x8ef   : > { %10247 = vlog2.f32 %v8030_v11  ;;  %v8057_v26 = vadd.f32 1.0, %v10234_v12  ;;  %v8060_v49 = vmul.f32 -0.5, %v10234_v12  ;;  %v8063_v21 = vand.u32 2147483647, %v10234_v12 }
 0x8f0   : > { %v10236_v56 = vpop.eup %10235  ;;  %v8034_v40 = vadd.f32 1.0, %v8033_v8  ;;  %vm17786_vm0 = vcmp.lt.f32.partialorder %v8036_v22, 0.0004427343  ;;  %v8053_v1 = vmul.f32 %v10230_v38, %v8052_v23 }
 0x8f1   : > { %10249 = vlog2.f32 %v8057_v26  ;;  %v8039_v20 = vadd.f32 1.0, %v10236_v56  ;;  %v8042_v47 = vmul.f32 -0.5, %v10236_v56  ;;  %v8061_v36 = vadd.f32 1.0, %v8060_v49 }
 0x8f2   : > { %v8045_v34 = vand.u32 2147483647, %v10236_v56  ;;  %vm17793_vm12 = vcmp.lt.f32.partialorder %v8063_v21, 0.0004427343  ;;  %v8035_v16 = vmul.f32 %v10232_v59, %v8034_v40 }
 0x8f3   : > { %v17769_v28 = vpop.eup %10237  ;;  %10251 = vlog2.f32 %v8039_v20  ;;  %v8043_v7 = vadd.f32 1.0, %v8042_v47  ;;  %v8062_v50 = vmul.f32 %v10234_v12, %v8061_v36 }
 0x8f4   : > { %v17771_v57 = vpop.eup %10239  ;;  %v8084_v5 = vadd.f32 1.0, %v17769_v28  ;;  %v8087_v55 = vmul.f32 -0.5, %v17769_v28  ;;  %v8090_v17 = vand.u32 2147483647, %v17769_v28  ;;  %vm17805_vm13 = vcmp.lt.f32.partialorder %v8045_v34, 0.0004427343 }
 0x8f5   : > { %v8066_v24 = vadd.f32 1.0, %v17771_v57  ;;  %v8069_v2 = vmul.f32 -0.5, %v17771_v57  ;;  %v8072_v39 = vand.u32 2147483647, %v17771_v57  ;;  %v8044_v26 = vmul.f32 %v10236_v56, %v8043_v7 }
 0x8f6   : > { %v17775_v63 = vpop.eup %10241  ;;  %10253 = vlog2.f32 %v8084_v5  ;;  %v8088_v3 = vadd.f32 1.0, %v8087_v55  ;;  %vm17812_vm7 = vcmp.lt.f32.partialorder %v8090_v17, 0.0004427343 }
 0x8f7   : > { %10255 = vlog2.f32 %v8066_v24  ;;  %v8093_v10 = vadd.f32 1.0, %v17775_v63  ;;  %v8096_v35 = vmul.f32 -0.5, %v17775_v63  ;;  %v8070_v0 = vadd.f32 1.0, %v8069_v2 }
 0x8f8   : > { %v17778_v61 = vpop.eup %10243  ;;  %v8099_v20 = vand.u32 2147483647, %v17775_v63  ;;  %v8089_v47 = vmul.f32 %v17769_v28, %v8088_v3  ;;  %vm17823_vm10 = vcmp.lt.f32.partialorder %v8072_v39, 0.0004427343 }
 0x8f9   : > { %10257 = vlog2.f32 %v8093_v10  ;;  %v8075_v4 = vadd.f32 1.0, %v17778_v61  ;;  %v8078_v6 = vmul.f32 -0.5, %v17778_v61  ;;  %v8097_v59 = vadd.f32 1.0, %v8096_v35 }
 0x8fa   : > { %v10246_v14 = vpop.eup %10245  ;;  %v8081_v8 = vand.u32 2147483647, %v17778_v61  ;;  %v8071_v40 = vmul.f32 %v17771_v57, %v8070_v0  ;;  %vm17832_vm11 = vcmp.lt.f32.partialorder %v8099_v20, 0.0004427343 }
 0x8fb   : > { %v8050_v60 = vmul.f32 0.6931472, %v10246_v14  ;;  %10259 = vlog2.f32 %v8075_v4  ;;  %v8079_v12 = vadd.f32 1.0, %v8078_v6  ;;  %v8098_v45 = vmul.f32 %v17775_v63, %v8097_v59 }
 0x8fc   : > { %v10248_v13 = vpop.eup %10247  ;;  %v9303_v58 = vpop.f32.mrf.mxu0  ;;  %vm17843_vm15 = vcmp.lt.f32.partialorder %v8081_v8, 0.0004427343 }
 0x8fd   : > { %v8032_v43 = vmul.f32 0.6931472, %v10248_v13  ;;  %v8056_v32 = vsel %vm17780_vm3, %v8053_v1, %v8050_v60  ;;  %v17818_v24 = vadd.f32 %v17711_v62, %v9303_v58  ;;  %v8080_v60 = vmul.f32 %v17778_v61, %v8079_v12 }
 0x8fe   : > { %v10250_v46 = vpop.eup %10249  ;;  %v8160_v56 = vmul.f32 0.01, %v8056_v32  ;;  %v7675_v23 = vpop.f32.mrf.mxu0  ;;  %vm7780_vm3 = vcmp.gt.f32.partialorder %v17748_v41, 20.0 }
 0x8ff   : > { %v8059_v11 = vmul.f32 0.6931472, %v10250_v46  ;;  %v8038_v25 = vsel %vm17786_vm0, %v8035_v16, %v8032_v43  ;;  %v17829_v55 = vmul.f32 100.0, %v17818_v24  ;;  %v17837_v28 = vadd.f32 %v17711_v62, %v7675_v23 }
 0x900   : > { %v10252_v22 = vpop.eup %10251  ;;  %v8158_v14 = vmul.f32 0.01, %v8038_v25  ;;  %v9304_v34 = vpop.f32.mrf.mxu0  ;;  %v8192_v6 = vsel %vm7776_vm5, %v17714_v30, %v8160_v56 }
 0x901   : > { %v8065_v49 = vsel %vm17793_vm12, %v8062_v50, %v8059_v11  ;;  %v8041_v21 = vmul.f32 0.6931472, %v10252_v22  ;;  %v7752_v63 = vmin.f32 %v17829_v55, 20.0  ;;  %v17855_v61 = vmul.f32 100.0, %v17837_v28 }
 0x902   : > { %v8161_v44 = vmul.f32 0.01, %v8065_v49  ;;  %v17858_v16 = vadd.f32 %v17711_v62, %v9304_v34  ;;  %v7678_v50 = vpop.f32.mrf.mxu0 }
 0x903   : > { %v10254_v4 = vpop.eup %10253  ;;  %v8047_v57 = vsel %vm17805_vm13, %v8044_v26, %v8041_v21  ;;  %v7846_v43 = vmul.f32 1.442695, %v7752_v63  ;;  %v7750_v32 = vmin.f32 %v17855_v61, 20.0  ;;  %v17892_v58 = vadd.f32 %v17711_v62, %v7678_v50 }
 0x904   : > { %v10256_v2 = vpop.eup %10255  ;;  %v8193_v35 = vsel %vm7777_vm14, %v17727_v29, %v8161_v44  ;;  %v8159_v13 = vmul.f32 0.01, %v8047_v57  ;;  %v8086_v1 = vmul.f32 0.6931472, %v10254_v4  ;;  %v8190_v29 = vsel %vm7774_vm4, %v17720_v37, %v8158_v14 }
 0x905   : > { %v8068_v9 = vmul.f32 0.6931472, %v10256_v2  ;;  %v8213_v39 = vpack.c.bf16 %v8193_v35, %v8192_v6  ;;  %10261 = vpow2.f32 %v7846_v43  ;;  %v7842_v26 = vmul.f32 1.442695, %v7750_v32 }
 0x906   : > { %v10258_v17 = vpop.eup %10257  ;;  %v8191_v18 = vsel %vm7775_vm2, %v17734_v52, %v8159_v13  ;;  %v8092_v37 = vsel %vm17812_vm7, %v8089_v47, %v8086_v1  ;;  %v17885_v59 = vmul.f32 100.0, %v17858_v16  ;;  %v17899_v56 = vmul.f32 100.0, %v17892_v58 }
 0x907   : > { %v8074_v30 = vsel %vm17823_vm10, %v8071_v40, %v8068_v9  ;;  %v8095_v51 = vmul.f32 0.6931472, %v10258_v17  ;;  %v8212_v46 = vpack.c.bf16 %v8191_v18, %v8190_v29  ;;  %v8164_v5 = vmul.f32 0.01, %v8092_v37 }
 0x908   : > { %v10260_v3 = vpop.eup %10259  ;;  %v8162_v52 = vmul.f32 0.01, %v8074_v30  ;;  %v9315_v0 = vpop.f32.mrf.mxu1  ;;  %10263 = vpow2.f32 %v7842_v26  ;;  %v7753_v8 = vmin.f32 %v17885_v59, 20.0  ;;  %v7751_v44 = vmin.f32 %v17899_v56, 20.0 }
 0x909   : > { %v8101_v42 = vsel %vm17832_vm11, %v8098_v45, %v8095_v51  ;;  %v8077_v38 = vmul.f32 0.6931472, %v10260_v3  ;;  %9333 = vmatprep.mubr.msk.bf16.mxu1 %vm5613_vm9, %v8212_v46  ;;  %v8345_v33 = vadd.f32 %v9315_v0, %v17876_v53  ;;  %v8196_v40 = vsel %vm7780_vm3, %v17741_v19, %v8164_v5 }
 0x90a   : > { %v8165_v11 = vmul.f32 0.01, %v8101_v42  ;;  %9334 = vmatmul.mubr.msk.bf16.gmra.mxu1 %vm5613_vm9, %v8213_v39  ;;  %v8336_v25 = vpop.f32.mrf.mxu1  ;;  %v8194_v22 = vsel %vm7778_vm8, %v17744_v31, %v8162_v52  ;;  %v7848_v15 = vmul.f32 1.442695, %v7753_v8  ;;  %v7844_v4 = vmul.f32 1.442695, %v7751_v44 }
 0x90b   : > { %v8083_v20 = vsel %vm17843_vm15, %v8080_v60, %v8077_v38  ;;  %8465 = vst [vmem:[%s17902_s15 + $0x10] sm:$0xff] %v8345_v33  ;;  %v8337_v62 = vadd.f32 %v17876_v53, %v8336_v25  ;;  %vm7785_vm4 = vcmp.gt.f32.partialorder %v17885_v59, 20.0  ;;  %vm7782_vm2 = vcmp.gt.f32.partialorder %v17855_v61, 20.0 }
 0x90c   : > { %v8163_v12 = vmul.f32 0.01, %v8083_v20  ;;  %v9316_v49 = vpop.f32.mrf.mxu1  ;;  %v8197_v47 = vsel %vm7781_vm6, %v17754_v54, %v8165_v11  ;;  %10265 = vpow2.f32 %v7848_v15  ;;  %vm7783_vm13 = vcmp.gt.f32.partialorder %v17899_v56, 20.0 }
 0x90d   : > { %v8348_v10 = vadd.f32 %v9316_v49, %v17876_v53  ;;  %8463 = vst [vmem:[%s17902_s15] sm:$0xff] %v8337_v62  ;;  %v8215_v54 = vpack.c.bf16 %v8197_v47, %v8196_v40  ;;  %10267 = vpow2.f32 %v7844_v4  ;;  %vm7784_vm7 = vcmp.gt.f32.partialorder %v17829_v55, 20.0 }
 0x90e   : > { %v8195_v31 = vsel %vm7779_vm1, %v17762_v27, %v8163_v12  ;;  %v8339_v21 = vpop.f32.mrf.mxu1 }
 0x90f   : > { %v8214_v23 = vpack.c.bf16 %v8195_v31, %v8194_v22  ;;  %8466 = vst [vmem:[%s17902_s15 + $0x18] sm:$0xff] %v8348_v10  ;;  %v8340_v48 = vadd.f32 %v17876_v53, %v8339_v21 }
 0x911   : > { %9337 = vmatprep.mubr.msk.bf16.mxu1 %vm5613_vm9, %v8214_v23  ;;  %8464 = vst [vmem:[%s17902_s15 + $0x8] sm:$0xff] %v8340_v48 }
 0x912   : > { %9338 = vmatmul.mubr.msk.bf16.gmra.mxu1 %vm5613_vm9, %v8215_v54  ;;  %v10262_v41 = vpop.eup %10261 }
 0x913   : > { %v8120_v27 = vadd.f32 1.0, %v10262_v41  ;;  %v8123_v1 = vmul.f32 -0.5, %v10262_v41  ;;  %v8126_v32 = vand.u32 2147483647, %v10262_v41 }
 0x915   : > { %v10264_v14 = vpop.eup %10263  ;;  %10269 = vlog2.f32 %v8120_v27  ;;  %v8124_v30 = vadd.f32 1.0, %v8123_v1  ;;  %vm8127_vm14 = vcmp.lt.f32.partialorder %v8126_v32, 0.0004427343 }
 0x916   : > { %v8102_v45 = vadd.f32 1.0, %v10264_v14  ;;  %v8105_v9 = vmul.f32 -0.5, %v10264_v14  ;;  %v8108_v39 = vand.u32 2147483647, %v10264_v14 }
 0x917   : > { %v8125_v38 = vmul.f32 %v10262_v41, %v8124_v30 }
 0x918   : > { %10271 = vlog2.f32 %v8102_v45  ;;  %v8106_v51 = vadd.f32 1.0, %v8105_v9  ;;  %vm8109_vm0 = vcmp.lt.f32.partialorder %v8108_v39, 0.0004427343 }
 0x919   : > { %v10266_v19 = vpop.eup %10265 }
 0x91a   : > { %v8129_v36 = vadd.f32 1.0, %v10266_v19  ;;  %v10268_v2 = vpop.eup %10267  ;;  %v8132_v6 = vmul.f32 -0.5, %v10266_v19  ;;  %v8135_v37 = vand.u32 2147483647, %v10266_v19  ;;  %v8107_v0 = vmul.f32 %v10264_v14, %v8106_v51 }
 0x91b   : > { %v8111_v60 = vadd.f32 1.0, %v10268_v2  ;;  %v8114_v3 = vmul.f32 -0.5, %v10268_v2  ;;  %v8117_v33 = vand.u32 2147483647, %v10268_v2 }
 0x91c   : > { %v9319_v34 = vpop.f32.mrf.mxu1  ;;  %10273 = vlog2.f32 %v8129_v36  ;;  %v8133_v46 = vadd.f32 1.0, %v8132_v6  ;;  %vm8136_vm12 = vcmp.lt.f32.partialorder %v8135_v37, 0.0004427343 }
 0x91d   : > { %v8361_v57 = vadd.f32 %v9319_v34, %v17876_v53  ;;  %10275 = vlog2.f32 %v8111_v60  ;;  %v8115_v11 = vadd.f32 1.0, %v8114_v3  ;;  %vm8118_vm5 = vcmp.lt.f32.partialorder %v8117_v33, 0.0004427343 }
 0x91e   : > { %v8352_v7 = vpop.f32.mrf.mxu1  ;;  %v8134_v20 = vmul.f32 %v10266_v19, %v8133_v46 }
 0x91f   : > { %8469 = vst [vmem:[%s17902_s15 + $0x30] sm:$0xff] %v8361_v57  ;;  %v8353_v63 = vadd.f32 %v17876_v53, %v8352_v7  ;;  %v8116_v49 = vmul.f32 %v10268_v2, %v8115_v11 }
 0x920   : > { %v9320_v35 = vpop.f32.mrf.mxu1 }
 0x921   : > { %8467 = vst [vmem:[%s17902_s15 + $0x20] sm:$0xff] %v8353_v63  ;;  %v8364_v13 = vadd.f32 %v9320_v35, %v17876_v53 }
 0x922   : > { %v8355_v17 = vpop.f32.mrf.mxu1  ;;  %v10270_v29 = vpop.eup %10269 }
 0x923   : > { %8470 = vst [vmem:[%s17902_s15 + $0x38] sm:$0xff] %v8364_v13  ;;  %v8356_v43 = vadd.f32 %v17876_v53, %v8355_v17  ;;  %v8122_v52 = vmul.f32 0.6931472, %v10270_v29 }
 0x925   : > { %8468 = vst [vmem:[%s17902_s15 + $0x28] sm:$0xff] %v8356_v43  ;;  %v10272_v18 = vpop.eup %10271  ;;  %v8128_v12 = vsel %vm8127_vm14, %v8125_v38, %v8122_v52 }
 0x926   : > { %v8104_v50 = vmul.f32 0.6931472, %v10272_v18  ;;  %v8168_v31 = vmul.f32 0.01, %v8128_v12 }
 0x928   : > { %v8110_v25 = vsel %vm8109_vm0, %v8107_v0, %v8104_v50  ;;  %v8200_v59 = vsel %vm7784_vm7, %v17818_v24, %v8168_v31 }
 0x929   : > { %v10274_v42 = vpop.eup %10273  ;;  %v8166_v47 = vmul.f32 0.01, %v8110_v25 }
 0x92a   : > { %v8131_v26 = vmul.f32 0.6931472, %v10274_v42  ;;  %v10276_v5 = vpop.eup %10275 }
 0x92b   : > { %v8113_v62 = vmul.f32 0.6931472, %v10276_v5  ;;  %v8198_v21 = vsel %vm7782_vm2, %v17837_v28, %v8166_v47 }
 0x92c   : > { %v8137_v8 = vsel %vm8136_vm12, %v8134_v20, %v8131_v26 }
 0x92d   : > { %v8169_v22 = vmul.f32 0.01, %v8137_v8  ;;  %v8119_v15 = vsel %vm8118_vm5, %v8116_v49, %v8113_v62 }
 0x92e   : > { %v8167_v10 = vmul.f32 0.01, %v8119_v15 }
 0x92f   : > { %v8201_v23 = vsel %vm7785_vm4, %v17858_v16, %v8169_v22 }
 0x930   : > { %v9323_v44 = vpop.f32.mrf.mxu1  ;;  %v8199_v40 = vsel %vm7783_vm13, %v17892_v58, %v8167_v10  ;;  %v8217_v16 = vpack.c.bf16 %v8201_v23, %v8200_v59 }
 0x931   : > { %v8377_v48 = vadd.f32 %v9323_v44, %v17876_v53  ;;  %v8216_v54 = vpack.c.bf16 %v8199_v40, %v8198_v21 }
 0x932   : > { %v8368_v61 = vpop.f32.mrf.mxu1 }
 0x933   : > { %8473 = vst [vmem:[%s17902_s15 + $0x50] sm:$0xff] %v8377_v48  ;;  %v8369_v56 = vadd.f32 %v17876_v53, %v8368_v61  ;;  %9341 = vmatprep.mubr.msk.bf16.mxu1 %vm5613_vm9, %v8216_v54 }
 0x934   : > { %v9324_v55 = vpop.f32.mrf.mxu1  ;;  %9342 = vmatmul.mubr.msk.bf16.gmra.mxu1 %vm5613_vm9, %v8217_v16 }
 0x935   : > { %8471 = vst [vmem:[%s17902_s15 + $0x40] sm:$0xff] %v8369_v56  ;;  %v8380_v28 = vadd.f32 %v9324_v55, %v17876_v53 }
 0x936   : > { %v8371_v58 = vpop.f32.mrf.mxu1 }
 0x937   : > { %8474 = vst [vmem:[%s17902_s15 + $0x58] sm:$0xff] %v8380_v28  ;;  %v8372_v24 = vadd.f32 %v17876_v53, %v8371_v58 }
 0x939   : > { %8472 = vst [vmem:[%s17902_s15 + $0x48] sm:$0xff] %v8372_v24 }
 0x93e   : > { %v9327_v4 = vpop.f32.mrf.mxu1 }
 0x93f   : > { %v8393_v41 = vadd.f32 %v9327_v4, %v17876_v53 }
 0x940   : > { %v8384_v27 = vpop.f32.mrf.mxu1 }
 0x941   : > { %8477 = vst [vmem:[%s17902_s15 + $0x70] sm:$0xff] %v8393_v41  ;;  %v8385_v14 = vadd.f32 %v17876_v53, %v8384_v27 }
 0x942   : > { %v9328_v45 = vpop.f32.mrf.mxu1 }
 0x943   : > { %8475 = vst [vmem:[%s17902_s15 + $0x60] sm:$0xff] %v8385_v14  ;;  %v8396_v19 = vadd.f32 %v9328_v45, %v17876_v53 }
 0x944   : > { %v8387_v36 = vpop.f32.mrf.mxu1 }
 0x945   : > { %8478 = vst [vmem:[%s17902_s15 + $0x78] sm:$0xff] %v8396_v19  ;;  %v8388_v34 = vadd.f32 %v17876_v53, %v8387_v36 }
 0x947   : > { %8476 = vst [vmem:[%s17902_s15 + $0x68] sm:$0xff] %v8388_v34 }
 0x958   : > { %v9331_v2 = vpop.f32.mrf.mxu1 }
 0x959   : > { %v8409_v57 = vadd.f32 %v9331_v2, %v17876_v53 }
 0x95a   : > { %v8400_v60 = vpop.f32.mrf.mxu1 }
 0x95b   : > { %8481 = vst [vmem:[%s17902_s15 + $0x90] sm:$0xff] %v8409_v57  ;;  %v8401_v7 = vadd.f32 %v17876_v53, %v8400_v60 }
 0x95c   : > { %v9332_v63 = vpop.f32.mrf.mxu1 }
 0x95d   : > { %8479 = vst [vmem:[%s17902_s15 + $0x80] sm:$0xff] %v8401_v7  ;;  %v8412_v35 = vadd.f32 %v9332_v63, %v17876_v53 }
 0x95e   : > { %v8403_v13 = vpop.f32.mrf.mxu1 }
 0x95f   : > { %8482 = vst [vmem:[%s17902_s15 + $0x98] sm:$0xff] %v8412_v35  ;;  %v8404_v1 = vadd.f32 %v17876_v53, %v8403_v13 }
 0x961   : > { %8480 = vst [vmem:[%s17902_s15 + $0x88] sm:$0xff] %v8404_v1 }
 0x9ca   : > { %v9335_v9 = vpop.f32.mrf.mxu1 }
 0x9cb   : > { %v8425_v17 = vadd.f32 %v9335_v9, %v17876_v53 }
 0x9cc   : > { %v8416_v6 = vpop.f32.mrf.mxu1 }
 0x9cd   : > { %8485 = vst [vmem:[%s17902_s15 + $0xb0] sm:$0xff] %v8425_v17  ;;  %v8417_v43 = vadd.f32 %v17876_v53, %v8416_v6 }
 0x9ce   : > { %v9336_v29 = vpop.f32.mrf.mxu1 }
 0x9cf   : > { %8483 = vst [vmem:[%s17902_s15 + $0xa0] sm:$0xff] %v8417_v43  ;;  %v8428_v18 = vadd.f32 %v9336_v29, %v17876_v53 }
 0x9d0   : > { %v8419_v30 = vpop.f32.mrf.mxu1 }
 0x9d1   : > { %8486 = vst [vmem:[%s17902_s15 + $0xb8] sm:$0xff] %v8428_v18  ;;  %v8420_v51 = vadd.f32 %v17876_v53, %v8419_v30 }
 0x9d2   : > { %v9339_v3 = vpop.f32.mrf.mxu1 }
 0x9d3   : > { %8484 = vst [vmem:[%s17902_s15 + $0xa8] sm:$0xff] %v8420_v51  ;;  %v8441_v39 = vadd.f32 %v9339_v3, %v17876_v53 }
 0x9d4   : > { %v8432_v46 = vpop.f32.mrf.mxu1 }
 0x9d5   : > { %8489 = vst [vmem:[%s17902_s15 + $0xd0] sm:$0xff] %v8441_v39  ;;  %v8433_v32 = vadd.f32 %v17876_v53, %v8432_v46 }
 0x9d6   : > { %v9340_v50 = vpop.f32.mrf.mxu1 }
 0x9d7   : > { %8487 = vst [vmem:[%s17902_s15 + $0xc0] sm:$0xff] %v8433_v32  ;;  %v8444_v37 = vadd.f32 %v9340_v50, %v17876_v53 }
 0x9d8   : > { %v8435_v52 = vpop.f32.mrf.mxu1 }
 0x9d9   : > { %8490 = vst [vmem:[%s17902_s15 + $0xd8] sm:$0xff] %v8444_v37  ;;  %v8436_v42 = vadd.f32 %v17876_v53, %v8435_v52 }
 0x9db   : > { %8488 = vst [vmem:[%s17902_s15 + $0xc8] sm:$0xff] %v8436_v42 }
 0x9f4   : > { %v9343_v38 = vpop.f32.mrf.mxu1 }
 0x9f5   : > { %v8457_v0 = vadd.f32 %v9343_v38, %v17876_v53 }
 0x9f6   : > { %v8448_v11 = vpop.f32.mrf.mxu1 }
 0x9f7   : > { %8493 = vst [vmem:[%s17902_s15 + $0xf0] sm:$0xff] %v8457_v0  ;;  %v8449_v26 = vadd.f32 %v17876_v53, %v8448_v11 }
 0x9f8   : > { %v9344_v20 = vpop.f32.mrf.mxu1 }
 0x9f9   : > { %8491 = vst [vmem:[%s17902_s15 + $0xe0] sm:$0xff] %v8449_v26  ;;  %v8460_v33 = vadd.f32 %v9344_v20, %v17876_v53 }
 0x9fa   : > { %v8451_v25 = vpop.f32.mrf.mxu1 }
 0x9fb   : > { %8494 = vst [vmem:[%s17902_s15 + $0xf8] sm:$0xff] %v8460_v33  ;;  %v8452_v5 = vadd.f32 %v17876_v53, %v8451_v25 }
 0x9fd   : > { %8492 = vst [vmem:[%s17902_s15 + $0xe8] sm:$0xff] %v8452_v5 }
 0x9fe   : > { %10310 = shalt.err (!%p10307_p3)
}
 0x9ff   : > { %s10311_s8 = scalar_lea.hbm %s17988_s19, 4096  ;;  %s10315_s14 = scalar_lea.hbm %s18044_s7, 32768 }
 0xa00   : > { %p10312_p4 = scmp.ne.s32.totalorder %s17988_s19, %s10311_s8  ;;  %p10316_p9 = scmp.lt.s32.totalorder %s17988_s19, %s18044_s7 }
 0xa01   : > { %p10317_p10 = scmp.lt.s32.totalorder %s10315_s14, %s10311_s8 }
 0xa02   : > { %p10313_p7 = pnand %p10312_p4, %p10451_p5 }
 0xa03   : > { %p10318_p11 = por %p10317_p10, %p10316_p9 }
 0xa04   : > { %p10314_p8 = pneg %p10313_p7 }
 0xa06   : > { %p10319_p12 = pnand %p10318_p11, %p10314_p8 }
 0xa08   : > { %10322 = shalt.err (!%p10319_p12)
}
 0xa09   : > { %s10371_s17 = smov 128   ;;  %s10372_s18 = smov 8  }
 0xa0a   : > { %9481 = dma.vmem_to_hbm [thread:$0]  (%p10451_p5), %s17990_s21, 4096, %s17988_s19, %s17997_s28, %s10371_s17, %s10371_s17, %s10372_s18  }
 0xa0b PF: > { %p9487_p13 = scmp.ge.s32.totalorder %s10357_s27, 2  ;;  %s8524_s20 = sand.u32 1, %s10345_s24  }
 0xa0c   : > { %s8525_s22 = scalar_lea.sflag [#allocation4], %s8524_s20 }
 0xa0d   : > { %p9484_p0 = pnand %p9487_p13, %p10455_p6 }
 0xa0f   : > { %p9485_p1 = pneg %p9484_p0 }
 0xa11   : > { %10340 = dma.done.wait (%p9485_p1), %s8525_s22, 4096  }
 0xa12   : > { %10342 = vsyncadd (%p9485_p1), %s8525_s22, 4294963200  ;;  %p17_p2 = scmp.ge.s32.totalorder %s10438_s30, 10   ;;  %s19024_s24 = smov %s10349_s25 }
 0xa13   : > { %s19025_s25 = smov %s10353_s26  ;;  %s19026_s26 = smov %s10449_s10 }
 0xa14   : > { %s19027_s27 = smov %s10438_s30  ;;  %19 = sbr.rel (!%p17_p2) target bundleno = 3 (0x3), region = 83 }
 0xa19   :  { %8530 = vsyncpa [#allocation4], 1 }
 0xa1a   :  { %8532 = vsyncpa [#allocation4 + $0x1], 1 }

</bundles_post_ra>
